<compile_context>
chip_gen: v6e
topology: v6e:2x2x1
jax: 0.10.0
libtpu: 0.0.40
codegen_flags: <defaults>
</compile_context>

<pallas_src>
import functools
import numpy as np
import jax
import jax.numpy as jnp
from jax import lax
from jax.experimental import pallas as pl
from jax.experimental.pallas import tpu as pltpu


_TAPS = tuple((dy, dx) for dy in (-1, 0, 1) for dx in (-1, 0, 1))


# ---------------------------------------------------------------------------
# In-kernel helpers (traced once; all tap/shift choices are static Python)
# ---------------------------------------------------------------------------
def _tap_lhs(quads, dy, dx, Wh, masks):
    """(4*HWp, C) LHS for conv tap (dy, dx): the 4 destination quadrants stacked
    along rows.  Each quadrant's tap is a cyclic sublane roll (pltpu.roll, XLU)
    of one source quadrant times a 0/1 edge-validity mask (zero padding)."""
    n = quads[0].shape[0]                            # HWp
    parts = []
    for di in (0, 1):
        for dj in (0, 1):
            if dy == 0:
                si, sa = di, 0
            elif dy == 1:
                si, sa = 1 - di, (1 if di == 1 else 0)
            else:                                    # dy == -1
                si, sa = 1 - di, (-1 if di == 0 else 0)
            if dx == 0:
                sj, sb = dj, 0
            elif dx == 1:
                sj, sb = 1 - dj, (1 if dj == 1 else 0)
            else:                                    # dx == -1
                sj, sb = 1 - dj, (-1 if dj == 0 else 0)
            v = quads[2 * si + sj]
            d = sa * Wh + sb
            if d != 0:
                # want out[p] = v[(p + d) % n]  ==  roll(v, -d)  (XLU rotate)
                v = pltpu.roll(v, (-d) % n, axis=0)
                v = v * masks[(sa + 1) * 3 + (sb + 1)]   # zero the wrapped rows
            parts.append(v)
    return jnp.concatenate(parts, axis=0)            # row concat at 8-mult offsets


def _conv3x3(quads, center, w_ref, acc, Wh, masks):
    """3x3 'same' conv as 9 accumulating MXU matmuls, one per tap.
    Each matmul is (4*HWp, K) @ (K, Coutp), f32 accumulation; `acc` may be None
    (init) or an existing f32 (4*HWp, Coutp) carry (e.g. the 1x1 shortcut)."""
    for t, (dy, dx) in enumerate(_TAPS):
        lhs = center if (dy == 0 and dx == 0) else _tap_lhs(quads, dy, dx, Wh, masks)
        part = jnp.dot(lhs.astype(jnp.bfloat16), w_ref[t],
                       preferred_element_type=jnp.float32)
        acc = part if acc is None else acc + part
    return acc


# ---------------------------------------------------------------------------
# Pallas kernel: one image per grid step
# ---------------------------------------------------------------------------
def _disblock_kernel(x_ref, mask_ref, w1_ref, b1_ref, w2_ref, wsc_ref, b2sc_ref,
                     out_ref, *, Wh):
    HWp = x_ref.shape[2]
    masks = [mask_ref[m] for m in range(9)]          # 9 x (HWp, 1) f32 0/1

    xq = [x_ref[0, q] for q in range(4)]             # 4 x (HWp, Cin) f32
    x_stack = jnp.concatenate(xq, axis=0)            # (4*HWp, Cin)

    # conv1 (3x3, pad=1) + bias + ReLU  (f32 accumulation over the 9 taps)
    h1 = _conv3x3(xq, x_stack, w1_ref, None, Wh, masks)
    h1 = jnp.maximum(h1 + b1_ref[...], 0.0)          # (4*HWp, Coutp) f32, lane-dense

    # 1x1 shortcut (commutes with avg-pool; 0.25 pool scale folded into wsc)
    acc = jnp.dot(x_stack.astype(jnp.bfloat16), wsc_ref[...],
                  preferred_element_type=jnp.float32)

    # conv2 (3x3, pad=1); 0.25 pool scale folded into w2
    h1q = [h1[q * HWp:(q + 1) * HWp] for q in range(4)]
    acc = _conv3x3(h1q, h1, w2_ref, acc, Wh, masks)

    # 2x2 avg-pool == sum of the 4 quadrant row-blocks (scale already folded);
    # post-pool biases (b2 + bsc); lane-dense bf16 store.
    y = acc[0:HWp] + acc[HWp:2 * HWp] + acc[2 * HWp:3 * HWp] + acc[3 * HWp:4 * HWp]
    out_ref[0] = (y + b2sc_ref[...]).astype(out_ref.dtype)


# ---------------------------------------------------------------------------
# Wrapper
# ---------------------------------------------------------------------------
def optimized_dis_block(x_nchw, params, *, use_buffered_weights=True):
    N, Cin, H, W = x_nchw.shape
    Cout = params["w1"].shape[0]
    assert H % 2 == 0 and W % 2 == 0
    Hh, Wh = H // 2, W // 2
    HWp = Hh * Wh
    Coutp = ((Cout + 127) // 128) * 128              # lane-dense channel padding

    # glue: space-to-depth into the 4 pooling quadrants, channels-last, f32
    xq = jnp.transpose(x_nchw, (0, 2, 3, 1)).reshape(N, Hh, 2, Wh, 2, Cin)
    xq = jnp.transpose(xq, (0, 2, 4, 1, 3, 5)).reshape(N, 4, HWp, Cin)
    xq = xq.astype(jnp.float32)

    # edge-validity masks for the 9 sub-image row shifts (sa, sb) -- O(HW) data
    a = np.arange(HWp) // Wh
    b = np.arange(HWp) % Wh
    masks_np = np.ones((9, HWp, 1), np.float32)
    for sa in (-1, 0, 1):
        for sb in (-1, 0, 1):
            ok = ((a + sa >= 0) & (a + sa < Hh) & (b + sb >= 0) & (b + sb < Wh))
            masks_np[(sa + 1) * 3 + (sb + 1), :, 0] = ok.astype(np.float32)
    masks = jnp.asarray(masks_np)

    # weight slabs, per-tap layout (t = ky*3+kx), channel-padded, bf16 MXU operands
    w1t = jnp.transpose(params["w1"], (2, 3, 1, 0)).reshape(9, Cin, Cout)
    w1 = jnp.zeros((9, Cin, Coutp), jnp.float32).at[:, :, :Cout].set(w1t)
    w1 = w1.astype(jnp.bfloat16)
    w2t = jnp.transpose(params["w2"], (2, 3, 1, 0)).reshape(9, Cout, Cout)
    w2 = jnp.zeros((9, Coutp, Coutp), jnp.float32).at[:, :Cout, :Cout].set(0.25 * w2t)
    w2 = w2.astype(jnp.bfloat16)
    wsc = jnp.zeros((Cin, Coutp), jnp.float32).at[:, :Cout].set(
        0.25 * params["wsc"][:, :, 0, 0].T).astype(jnp.bfloat16)
    b1 = jnp.zeros((1, Coutp), jnp.float32).at[0, :Cout].set(params["b1"])
    b2sc = jnp.zeros((1, Coutp), jnp.float32).at[0, :Cout].set(
        params["b2"] + params["bsc"])

    # grid-invariant operands: constant index map (+ single-buffering request)
    def const_spec(shape):
        index_map = lambda i, n=len(shape): (0,) * n
        if use_buffered_weights:
            return pl.BlockSpec(shape, index_map, pipeline_mode=pl.Buffered(1))
        return pl.BlockSpec(shape, index_map)

    # explicit VMEM budget (review: re-derive for v7x's 64 MiB physical VMEM)
    const_bytes = int((w1.size + w2.size + wsc.size) * 2
                      + (b1.size + b2sc.size + masks.size) * 4)
    block_bytes = 2 * (4 * HWp * Cin * 4) + 2 * (HWp * Coutp * 2)  # dbl-buffered x/out
    interm_bytes = 6 * (4 * HWp * Coutp * 4)                       # h1/acc/tap temps
    vmem_limit = int(min(max(block_bytes + 2 * const_bytes + interm_bytes + (4 << 20),
                             32 << 20), 64 << 20))

    flops = 2 * N * 4 * HWp * (9 * Cin + 9 * Coutp + Cin) * Coutp
    bytes_accessed = int(xq.size * 4 + masks.size * 4
                         + (w1.size + w2.size + wsc.size) * 2
                         + (b1.size + b2sc.size) * 4 + N * HWp * Coutp * 2)

    kernel = functools.partial(_disblock_kernel, Wh=Wh)

    out = pl.pallas_call(
        kernel,
        out_shape=jax.ShapeDtypeStruct((N, HWp, Coutp), jnp.bfloat16),
        grid=(N,),                                    # one image per step, parallel
        in_specs=[
            pl.BlockSpec((1, 4, HWp, Cin), lambda i: (i, 0, 0, 0)),   # x quadrants
            const_spec((9, HWp, 1)),                                  # edge masks
            const_spec((9, Cin, Coutp)),                              # w1 taps
            const_spec((1, Coutp)),                                   # b1
            const_spec((9, Coutp, Coutp)),                            # w2 taps (0.25 folded)
            const_spec((Cin, Coutp)),                                 # wsc (0.25 folded)
            const_spec((1, Coutp)),                                   # b2 + bsc
        ],
        out_specs=pl.BlockSpec((1, HWp, Coutp), lambda i: (i, 0, 0)),
        compiler_params=pltpu.CompilerParams(
            dimension_semantics=("parallel",),
            vmem_limit_bytes=vmem_limit),
        cost_estimate=pl.CostEstimate(
            flops=flops, transcendentals=0, bytes_accessed=bytes_accessed),
    )(xq, masks, w1, b1, w2, wsc, b2sc)

    # back to NCHW f32: (N, Cout, H/2, W/2)
    out = out[:, :, :Cout].astype(jnp.float32).reshape(N, Hh, Wh, Cout)
    return jnp.transpose(out, (0, 3, 1, 2))


# ---------------------------------------------------------------------------
# Deterministic parameter init (matches shapes of the PyTorch module)
# ---------------------------------------------------------------------------
def xavier_uniform(key, shape, gain):
    fan_in = shape[1] * shape[2] * shape[3]
    fan_out = shape[0] * shape[2] * shape[3]
    bound = gain * np.sqrt(6.0 / (fan_in + fan_out))
    return jax.random.uniform(key, shape, jnp.float32, -bound, bound)


def init_params(key, Cin, Cout):
    k1, k2, k3, k4, k5, k6 = jax.random.split(key, 6)
    w1 = xavier_uniform(k1, (Cout, Cin, 3, 3), 1.0)
    w2 = xavier_uniform(k2, (Cout, Cout, 3, 3), 1.0)
    wsc = xavier_uniform(k3, (Cout, Cin, 1, 1), np.sqrt(2.0))
    b1 = jax.random.uniform(k4, (Cout,), jnp.float32, -1.0, 1.0) / np.sqrt(Cin * 9)
    b2 = jax.random.uniform(k5, (Cout,), jnp.float32, -1.0, 1.0) / np.sqrt(Cout * 9)
    bsc = jax.random.uniform(k6, (Cout,), jnp.float32, -1.0, 1.0) / np.sqrt(Cin)
    return dict(w1=w1, b1=b1, w2=w2, b2=b2, wsc=wsc, bsc=bsc)


# ---------------------------------------------------------------------------
# Pure-JAX reference (same semantics as the PyTorch module, f32)
# ---------------------------------------------------------------------------
def ref_forward(x, p):
    dn = ("NCHW", "OIHW", "NCHW")

    def conv(x, w, b, pad):
        y = lax.conv_general_dilated(x, w, (1, 1), [(pad, pad), (pad, pad)],
                                     dimension_numbers=dn)
        return y + b[None, :, None, None]

    def pool(x):
        N, C, H, W = x.shape
        return x.reshape(N, C, H // 2, 2, W // 2, 2).mean(axis=(3, 5))

    h = jnp.maximum(conv(x, p["w1"], p["b1"], 1), 0.0)
    h = conv(h, p["w2"], p["b2"], 1)
    res = pool(h)
    sc = conv(pool(x), p["wsc"], p["bsc"], 0)
    return res + sc


if __name__ == "__main__":
    key = jax.random.PRNGKey(0)
    kx, kp = jax.random.split(key)
    N, Cin, Cout, H, W = 2, 4, 8, 16, 16

    x = jax.random.normal(kx, (N, Cin, H, W), jnp.float32)   # NCHW, like PyTorch
    params = init_params(kp, Cin, Cout)

    fwd = jax.jit(functools.partial(optimized_dis_block, use_buffered_weights=True))
    try:
        out = jax.block_until_ready(fwd(x, params))
    except Exception:
        # This jax/Mosaic version rejects BlockSpec(pipeline_mode=pl.Buffered(1));
        # retry with default (double-buffered) constant operands.
        fwd = jax.jit(functools.partial(optimized_dis_block,
                                        use_buffered_weights=False))
        out = jax.block_until_ready(fwd(x, params))

    ref = ref_forward(x, params)
    assert out.shape == (N, Cout, H // 2, W // 2)
    # Tolerance loosened vs the f32 reference: MXU operands and the output
    # store are bf16.
    np.testing.assert_allclose(np.asarray(out), np.asarray(ref), rtol=3e-2, atol=3e-2)
    print("KERNEL_OK")
</pallas_src>

<mosaic_0001>
module attributes {stable_mosaic.version = 11 : i64} {
  func.func @_disblock_kernel(%arg0: i32, %arg1: memref<1x4x64x4xf32, #tpu.memory_space<vmem>>, %arg2: memref<9x64x1xf32, #tpu.memory_space<vmem>>, %arg3: memref<9x4x128xbf16, #tpu.memory_space<vmem>>, %arg4: memref<1x128xf32, #tpu.memory_space<vmem>>, %arg5: memref<9x128x128xbf16, #tpu.memory_space<vmem>>, %arg6: memref<4x128xbf16, #tpu.memory_space<vmem>>, %arg7: memref<1x128xf32, #tpu.memory_space<vmem>>, %arg8: memref<1x64x128xbf16, #tpu.memory_space<vmem>>) attributes {dimension_semantics = [#tpu.dimension_semantics<parallel>], iteration_bounds = array<i64: 2>, scalar_prefetch = 0 : i64, scratch_operands = 0 : i64, tpu.core_type = #tpu.core_type<tc>, window_params = [{transform_indices = @transform_0, window_bounds = array<i64: 1, 4, 64, 4>}, {pipeline_mode = #tpu.pipeline_mode<synchronous>, transform_indices = @transform_1, window_bounds = array<i64: 9, 64, 1>}, {pipeline_mode = #tpu.pipeline_mode<synchronous>, transform_indices = @transform_2, window_bounds = array<i64: 9, 4, 128>}, {pipeline_mode = #tpu.pipeline_mode<synchronous>, transform_indices = @transform_3, window_bounds = array<i64: 1, 128>}, {pipeline_mode = #tpu.pipeline_mode<synchronous>, transform_indices = @transform_4, window_bounds = array<i64: 9, 128, 128>}, {pipeline_mode = #tpu.pipeline_mode<synchronous>, transform_indices = @transform_5, window_bounds = array<i64: 4, 128>}, {pipeline_mode = #tpu.pipeline_mode<synchronous>, transform_indices = @transform_6, window_bounds = array<i64: 1, 128>}, {transform_indices = @transform_7, window_bounds = array<i64: 1, 64, 128>}]} {
    %c0 = arith.constant 0 : index
    %c0_0 = arith.constant 0 : index
    %c0_1 = arith.constant 0 : index
    %0 = vector.load %arg2[%c0, %c0_0, %c0_1] : memref<9x64x1xf32, #tpu.memory_space<vmem>>, vector<1x64x1xf32>
    %1 = vector.shape_cast %0 : vector<1x64x1xf32> to vector<64x1xf32>
    %c1 = arith.constant 1 : index
    %c0_2 = arith.constant 0 : index
    %c0_3 = arith.constant 0 : index
    %2 = vector.load %arg2[%c1, %c0_2, %c0_3] : memref<9x64x1xf32, #tpu.memory_space<vmem>>, vector<1x64x1xf32>
    %3 = vector.shape_cast %2 : vector<1x64x1xf32> to vector<64x1xf32>
    %c2 = arith.constant 2 : index
    %c0_4 = arith.constant 0 : index
    %c0_5 = arith.constant 0 : index
    %4 = vector.load %arg2[%c2, %c0_4, %c0_5] : memref<9x64x1xf32, #tpu.memory_space<vmem>>, vector<1x64x1xf32>
    %5 = vector.shape_cast %4 : vector<1x64x1xf32> to vector<64x1xf32>
    %c3 = arith.constant 3 : index
    %c0_6 = arith.constant 0 : index
    %c0_7 = arith.constant 0 : index
    %6 = vector.load %arg2[%c3, %c0_6, %c0_7] : memref<9x64x1xf32, #tpu.memory_space<vmem>>, vector<1x64x1xf32>
    %7 = vector.shape_cast %6 : vector<1x64x1xf32> to vector<64x1xf32>
    %c5 = arith.constant 5 : index
    %c0_8 = arith.constant 0 : index
    %c0_9 = arith.constant 0 : index
    %8 = vector.load %arg2[%c5, %c0_8, %c0_9] : memref<9x64x1xf32, #tpu.memory_space<vmem>>, vector<1x64x1xf32>
    %9 = vector.shape_cast %8 : vector<1x64x1xf32> to vector<64x1xf32>
    %c6 = arith.constant 6 : index
    %c0_10 = arith.constant 0 : index
    %c0_11 = arith.constant 0 : index
    %10 = vector.load %arg2[%c6, %c0_10, %c0_11] : memref<9x64x1xf32, #tpu.memory_space<vmem>>, vector<1x64x1xf32>
    %11 = vector.shape_cast %10 : vector<1x64x1xf32> to vector<64x1xf32>
    %c7 = arith.constant 7 : index
    %c0_12 = arith.constant 0 : index
    %c0_13 = arith.constant 0 : index
    %12 = vector.load %arg2[%c7, %c0_12, %c0_13] : memref<9x64x1xf32, #tpu.memory_space<vmem>>, vector<1x64x1xf32>
    %13 = vector.shape_cast %12 : vector<1x64x1xf32> to vector<64x1xf32>
    %c8 = arith.constant 8 : index
    %c0_14 = arith.constant 0 : index
    %c0_15 = arith.constant 0 : index
    %14 = vector.load %arg2[%c8, %c0_14, %c0_15] : memref<9x64x1xf32, #tpu.memory_space<vmem>>, vector<1x64x1xf32>
    %15 = vector.shape_cast %14 : vector<1x64x1xf32> to vector<64x1xf32>
    %c0_16 = arith.constant 0 : index
    %c0_17 = arith.constant 0 : index
    %c0_18 = arith.constant 0 : index
    %c0_19 = arith.constant 0 : index
    %16 = vector.load %arg1[%c0_16, %c0_17, %c0_18, %c0_19] : memref<1x4x64x4xf32, #tpu.memory_space<vmem>>, vector<1x1x64x4xf32>
    %17 = vector.shape_cast %16 : vector<1x1x64x4xf32> to vector<64x4xf32>
    %c0_20 = arith.constant 0 : index
    %c1_21 = arith.constant 1 : index
    %c0_22 = arith.constant 0 : index
    %c0_23 = arith.constant 0 : index
    %18 = vector.load %arg1[%c0_20, %c1_21, %c0_22, %c0_23] : memref<1x4x64x4xf32, #tpu.memory_space<vmem>>, vector<1x1x64x4xf32>
    %19 = vector.shape_cast %18 : vector<1x1x64x4xf32> to vector<64x4xf32>
    %c0_24 = arith.constant 0 : index
    %c2_25 = arith.constant 2 : index
    %c0_26 = arith.constant 0 : index
    %c0_27 = arith.constant 0 : index
    %20 = vector.load %arg1[%c0_24, %c2_25, %c0_26, %c0_27] : memref<1x4x64x4xf32, #tpu.memory_space<vmem>>, vector<1x1x64x4xf32>
    %21 = vector.shape_cast %20 : vector<1x1x64x4xf32> to vector<64x4xf32>
    %c0_28 = arith.constant 0 : index
    %c3_29 = arith.constant 3 : index
    %c0_30 = arith.constant 0 : index
    %c0_31 = arith.constant 0 : index
    %22 = vector.load %arg1[%c0_28, %c3_29, %c0_30, %c0_31] : memref<1x4x64x4xf32, #tpu.memory_space<vmem>>, vector<1x1x64x4xf32>
    %23 = vector.shape_cast %22 : vector<1x1x64x4xf32> to vector<64x4xf32>
    %24 = tpu.concatenate %17, %19, %21, %23 in 0 : vector<64x4xf32>, vector<64x4xf32>, vector<64x4xf32>, vector<64x4xf32> -> vector<256x4xf32>
    %c9_i32 = arith.constant 9 : i32
    %25 = tpu.dynamic_rotate %23 by %c9_i32 dim 0 : vector<64x4xf32>, i32 -> vector<64x4xf32>
    %26 = vector.broadcast %1 : vector<64x1xf32> to vector<64x4xf32>
    %27 = arith.mulf %25, %26 : vector<64x4xf32>
    %c8_i32 = arith.constant 8 : i32
    %28 = tpu.dynamic_rotate %21 by %c8_i32 dim 0 : vector<64x4xf32>, i32 -> vector<64x4xf32>
    %29 = vector.broadcast %3 : vector<64x1xf32> to vector<64x4xf32>
    %30 = arith.mulf %28, %29 : vector<64x4xf32>
    %c1_i32 = arith.constant 1 : i32
    %31 = tpu.dynamic_rotate %19 by %c1_i32 dim 0 : vector<64x4xf32>, i32 -> vector<64x4xf32>
    %32 = vector.broadcast %7 : vector<64x1xf32> to vector<64x4xf32>
    %33 = arith.mulf %31, %32 : vector<64x4xf32>
    %34 = tpu.concatenate %27, %30, %33, %17 in 0 : vector<64x4xf32>, vector<64x4xf32>, vector<64x4xf32>, vector<64x4xf32> -> vector<256x4xf32>
    %35 = arith.truncf %34 : vector<256x4xf32> to vector<256x4xbf16>
    %c0_32 = arith.constant 0 : index
    %c0_33 = arith.constant 0 : index
    %c0_34 = arith.constant 0 : index
    %36 = vector.load %arg3[%c0_32, %c0_33, %c0_34] : memref<9x4x128xbf16, #tpu.memory_space<vmem>>, vector<1x4x128xbf16>
    %37 = vector.shape_cast %36 : vector<1x4x128xbf16> to vector<4x128xbf16>
    %cst = arith.constant dense<0.000000e+00> : vector<256x128xf32>
    %38 = tpu.matmul %35, %37, %cst {dimension_numbers = #tpu.dot_dimension_numbers<[1], [0], [0], [1], [0, 0, 1, 1], [], []>} : vector<256x4xbf16>, vector<4x128xbf16>, vector<256x128xf32> -> vector<256x128xf32>
    %c8_i32_35 = arith.constant 8 : i32
    %39 = tpu.dynamic_rotate %21 by %c8_i32_35 dim 0 : vector<64x4xf32>, i32 -> vector<64x4xf32>
    %40 = vector.broadcast %3 : vector<64x1xf32> to vector<64x4xf32>
    %41 = arith.mulf %39, %40 : vector<64x4xf32>
    %c8_i32_36 = arith.constant 8 : i32
    %42 = tpu.dynamic_rotate %23 by %c8_i32_36 dim 0 : vector<64x4xf32>, i32 -> vector<64x4xf32>
    %43 = vector.broadcast %3 : vector<64x1xf32> to vector<64x4xf32>
    %44 = arith.mulf %42, %43 : vector<64x4xf32>
    %45 = tpu.concatenate %41, %44, %17, %19 in 0 : vector<64x4xf32>, vector<64x4xf32>, vector<64x4xf32>, vector<64x4xf32> -> vector<256x4xf32>
    %46 = arith.truncf %45 : vector<256x4xf32> to vector<256x4xbf16>
    %c1_37 = arith.constant 1 : index
    %c0_38 = arith.constant 0 : index
    %c0_39 = arith.constant 0 : index
    %47 = vector.load %arg3[%c1_37, %c0_38, %c0_39] : memref<9x4x128xbf16, #tpu.memory_space<vmem>>, vector<1x4x128xbf16>
    %48 = vector.shape_cast %47 : vector<1x4x128xbf16> to vector<4x128xbf16>
    %cst_40 = arith.constant dense<0.000000e+00> : vector<256x128xf32>
    %49 = tpu.matmul %46, %48, %cst_40 {dimension_numbers = #tpu.dot_dimension_numbers<[1], [0], [0], [1], [0, 0, 1, 1], [], []>} : vector<256x4xbf16>, vector<4x128xbf16>, vector<256x128xf32> -> vector<256x128xf32>
    %50 = arith.addf %38, %49 : vector<256x128xf32>
    %c8_i32_41 = arith.constant 8 : i32
    %51 = tpu.dynamic_rotate %23 by %c8_i32_41 dim 0 : vector<64x4xf32>, i32 -> vector<64x4xf32>
    %52 = vector.broadcast %3 : vector<64x1xf32> to vector<64x4xf32>
    %53 = arith.mulf %51, %52 : vector<64x4xf32>
    %c7_i32 = arith.constant 7 : i32
    %54 = tpu.dynamic_rotate %21 by %c7_i32 dim 0 : vector<64x4xf32>, i32 -> vector<64x4xf32>
    %55 = vector.broadcast %5 : vector<64x1xf32> to vector<64x4xf32>
    %56 = arith.mulf %54, %55 : vector<64x4xf32>
    %c63_i32 = arith.constant 63 : i32
    %57 = tpu.dynamic_rotate %17 by %c63_i32 dim 0 : vector<64x4xf32>, i32 -> vector<64x4xf32>
    %58 = vector.broadcast %9 : vector<64x1xf32> to vector<64x4xf32>
    %59 = arith.mulf %57, %58 : vector<64x4xf32>
    %60 = tpu.concatenate %53, %56, %19, %59 in 0 : vector<64x4xf32>, vector<64x4xf32>, vector<64x4xf32>, vector<64x4xf32> -> vector<256x4xf32>
    %61 = arith.truncf %60 : vector<256x4xf32> to vector<256x4xbf16>
    %c2_42 = arith.constant 2 : index
    %c0_43 = arith.constant 0 : index
    %c0_44 = arith.constant 0 : index
    %62 = vector.load %arg3[%c2_42, %c0_43, %c0_44] : memref<9x4x128xbf16, #tpu.memory_space<vmem>>, vector<1x4x128xbf16>
    %63 = vector.shape_cast %62 : vector<1x4x128xbf16> to vector<4x128xbf16>
    %cst_45 = arith.constant dense<0.000000e+00> : vector<256x128xf32>
    %64 = tpu.matmul %61, %63, %cst_45 {dimension_numbers = #tpu.dot_dimension_numbers<[1], [0], [0], [1], [0, 0, 1, 1], [], []>} : vector<256x4xbf16>, vector<4x128xbf16>, vector<256x128xf32> -> vector<256x128xf32>
    %65 = arith.addf %50, %64 : vector<256x128xf32>
    %c1_i32_46 = arith.constant 1 : i32
    %66 = tpu.dynamic_rotate %19 by %c1_i32_46 dim 0 : vector<64x4xf32>, i32 -> vector<64x4xf32>
    %67 = vector.broadcast %7 : vector<64x1xf32> to vector<64x4xf32>
    %68 = arith.mulf %66, %67 : vector<64x4xf32>
    %c1_i32_47 = arith.constant 1 : i32
    %69 = tpu.dynamic_rotate %23 by %c1_i32_47 dim 0 : vector<64x4xf32>, i32 -> vector<64x4xf32>
    %70 = vector.broadcast %7 : vector<64x1xf32> to vector<64x4xf32>
    %71 = arith.mulf %69, %70 : vector<64x4xf32>
    %72 = tpu.concatenate %68, %17, %71, %21 in 0 : vector<64x4xf32>, vector<64x4xf32>, vector<64x4xf32>, vector<64x4xf32> -> vector<256x4xf32>
    %73 = arith.truncf %72 : vector<256x4xf32> to vector<256x4xbf16>
    %c3_48 = arith.constant 3 : index
    %c0_49 = arith.constant 0 : index
    %c0_50 = arith.constant 0 : index
    %74 = vector.load %arg3[%c3_48, %c0_49, %c0_50] : memref<9x4x128xbf16, #tpu.memory_space<vmem>>, vector<1x4x128xbf16>
    %75 = vector.shape_cast %74 : vector<1x4x128xbf16> to vector<4x128xbf16>
    %cst_51 = arith.constant dense<0.000000e+00> : vector<256x128xf32>
    %76 = tpu.matmul %73, %75, %cst_51 {dimension_numbers = #tpu.dot_dimension_numbers<[1], [0], [0], [1], [0, 0, 1, 1], [], []>} : vector<256x4xbf16>, vector<4x128xbf16>, vector<256x128xf32> -> vector<256x128xf32>
    %77 = arith.addf %65, %76 : vector<256x128xf32>
    %78 = arith.truncf %24 : vector<256x4xf32> to vector<256x4xbf16>
    %c4 = arith.constant 4 : index
    %c0_52 = arith.constant 0 : index
    %c0_53 = arith.constant 0 : index
    %79 = vector.load %arg3[%c4, %c0_52, %c0_53] : memref<9x4x128xbf16, #tpu.memory_space<vmem>>, vector<1x4x128xbf16>
    %80 = vector.shape_cast %79 : vector<1x4x128xbf16> to vector<4x128xbf16>
    %cst_54 = arith.constant dense<0.000000e+00> : vector<256x128xf32>
    %81 = tpu.matmul %78, %80, %cst_54 {dimension_numbers = #tpu.dot_dimension_numbers<[1], [0], [0], [1], [0, 0, 1, 1], [], []>} : vector<256x4xbf16>, vector<4x128xbf16>, vector<256x128xf32> -> vector<256x128xf32>
    %82 = arith.addf %77, %81 : vector<256x128xf32>
    %c63_i32_55 = arith.constant 63 : i32
    %83 = tpu.dynamic_rotate %17 by %c63_i32_55 dim 0 : vector<64x4xf32>, i32 -> vector<64x4xf32>
    %84 = vector.broadcast %9 : vector<64x1xf32> to vector<64x4xf32>
    %85 = arith.mulf %83, %84 : vector<64x4xf32>
    %c63_i32_56 = arith.constant 63 : i32
    %86 = tpu.dynamic_rotate %21 by %c63_i32_56 dim 0 : vector<64x4xf32>, i32 -> vector<64x4xf32>
    %87 = vector.broadcast %9 : vector<64x1xf32> to vector<64x4xf32>
    %88 = arith.mulf %86, %87 : vector<64x4xf32>
    %89 = tpu.concatenate %19, %85, %23, %88 in 0 : vector<64x4xf32>, vector<64x4xf32>, vector<64x4xf32>, vector<64x4xf32> -> vector<256x4xf32>
    %90 = arith.truncf %89 : vector<256x4xf32> to vector<256x4xbf16>
    %c5_57 = arith.constant 5 : index
    %c0_58 = arith.constant 0 : index
    %c0_59 = arith.constant 0 : index
    %91 = vector.load %arg3[%c5_57, %c0_58, %c0_59] : memref<9x4x128xbf16, #tpu.memory_space<vmem>>, vector<1x4x128xbf16>
    %92 = vector.shape_cast %91 : vector<1x4x128xbf16> to vector<4x128xbf16>
    %cst_60 = arith.constant dense<0.000000e+00> : vector<256x128xf32>
    %93 = tpu.matmul %90, %92, %cst_60 {dimension_numbers = #tpu.dot_dimension_numbers<[1], [0], [0], [1], [0, 0, 1, 1], [], []>} : vector<256x4xbf16>, vector<4x128xbf16>, vector<256x128xf32> -> vector<256x128xf32>
    %94 = arith.addf %82, %93 : vector<256x128xf32>
    %c1_i32_61 = arith.constant 1 : i32
    %95 = tpu.dynamic_rotate %23 by %c1_i32_61 dim 0 : vector<64x4xf32>, i32 -> vector<64x4xf32>
    %96 = vector.broadcast %7 : vector<64x1xf32> to vector<64x4xf32>
    %97 = arith.mulf %95, %96 : vector<64x4xf32>
    %c57_i32 = arith.constant 57 : i32
    %98 = tpu.dynamic_rotate %19 by %c57_i32 dim 0 : vector<64x4xf32>, i32 -> vector<64x4xf32>
    %99 = vector.broadcast %11 : vector<64x1xf32> to vector<64x4xf32>
    %100 = arith.mulf %98, %99 : vector<64x4xf32>
    %c56_i32 = arith.constant 56 : i32
    %101 = tpu.dynamic_rotate %17 by %c56_i32 dim 0 : vector<64x4xf32>, i32 -> vector<64x4xf32>
    %102 = vector.broadcast %13 : vector<64x1xf32> to vector<64x4xf32>
    %103 = arith.mulf %101, %102 : vector<64x4xf32>
    %104 = tpu.concatenate %97, %21, %100, %103 in 0 : vector<64x4xf32>, vector<64x4xf32>, vector<64x4xf32>, vector<64x4xf32> -> vector<256x4xf32>
    %105 = arith.truncf %104 : vector<256x4xf32> to vector<256x4xbf16>
    %c6_62 = arith.constant 6 : index
    %c0_63 = arith.constant 0 : index
    %c0_64 = arith.constant 0 : index
    %106 = vector.load %arg3[%c6_62, %c0_63, %c0_64] : memref<9x4x128xbf16, #tpu.memory_space<vmem>>, vector<1x4x128xbf16>
    %107 = vector.shape_cast %106 : vector<1x4x128xbf16> to vector<4x128xbf16>
    %cst_65 = arith.constant dense<0.000000e+00> : vector<256x128xf32>
    %108 = tpu.matmul %105, %107, %cst_65 {dimension_numbers = #tpu.dot_dimension_numbers<[1], [0], [0], [1], [0, 0, 1, 1], [], []>} : vector<256x4xbf16>, vector<4x128xbf16>, vector<256x128xf32> -> vector<256x128xf32>
    %109 = arith.addf %94, %108 : vector<256x128xf32>
    %c56_i32_66 = arith.constant 56 : i32
    %110 = tpu.dynamic_rotate %17 by %c56_i32_66 dim 0 : vector<64x4xf32>, i32 -> vector<64x4xf32>
    %111 = vector.broadcast %13 : vector<64x1xf32> to vector<64x4xf32>
    %112 = arith.mulf %110, %111 : vector<64x4xf32>
    %c56_i32_67 = arith.constant 56 : i32
    %113 = tpu.dynamic_rotate %19 by %c56_i32_67 dim 0 : vector<64x4xf32>, i32 -> vector<64x4xf32>
    %114 = vector.broadcast %13 : vector<64x1xf32> to vector<64x4xf32>
    %115 = arith.mulf %113, %114 : vector<64x4xf32>
    %116 = tpu.concatenate %21, %23, %112, %115 in 0 : vector<64x4xf32>, vector<64x4xf32>, vector<64x4xf32>, vector<64x4xf32> -> vector<256x4xf32>
    %117 = arith.truncf %116 : vector<256x4xf32> to vector<256x4xbf16>
    %c7_68 = arith.constant 7 : index
    %c0_69 = arith.constant 0 : index
    %c0_70 = arith.constant 0 : index
    %118 = vector.load %arg3[%c7_68, %c0_69, %c0_70] : memref<9x4x128xbf16, #tpu.memory_space<vmem>>, vector<1x4x128xbf16>
    %119 = vector.shape_cast %118 : vector<1x4x128xbf16> to vector<4x128xbf16>
    %cst_71 = arith.constant dense<0.000000e+00> : vector<256x128xf32>
    %120 = tpu.matmul %117, %119, %cst_71 {dimension_numbers = #tpu.dot_dimension_numbers<[1], [0], [0], [1], [0, 0, 1, 1], [], []>} : vector<256x4xbf16>, vector<4x128xbf16>, vector<256x128xf32> -> vector<256x128xf32>
    %121 = arith.addf %109, %120 : vector<256x128xf32>
    %c63_i32_72 = arith.constant 63 : i32
    %122 = tpu.dynamic_rotate %21 by %c63_i32_72 dim 0 : vector<64x4xf32>, i32 -> vector<64x4xf32>
    %123 = vector.broadcast %9 : vector<64x1xf32> to vector<64x4xf32>
    %124 = arith.mulf %122, %123 : vector<64x4xf32>
    %c56_i32_73 = arith.constant 56 : i32
    %125 = tpu.dynamic_rotate %19 by %c56_i32_73 dim 0 : vector<64x4xf32>, i32 -> vector<64x4xf32>
    %126 = vector.broadcast %13 : vector<64x1xf32> to vector<64x4xf32>
    %127 = arith.mulf %125, %126 : vector<64x4xf32>
    %c55_i32 = arith.constant 55 : i32
    %128 = tpu.dynamic_rotate %17 by %c55_i32 dim 0 : vector<64x4xf32>, i32 -> vector<64x4xf32>
    %129 = vector.broadcast %15 : vector<64x1xf32> to vector<64x4xf32>
    %130 = arith.mulf %128, %129 : vector<64x4xf32>
    %131 = tpu.concatenate %23, %124, %127, %130 in 0 : vector<64x4xf32>, vector<64x4xf32>, vector<64x4xf32>, vector<64x4xf32> -> vector<256x4xf32>
    %132 = arith.truncf %131 : vector<256x4xf32> to vector<256x4xbf16>
    %c8_74 = arith.constant 8 : index
    %c0_75 = arith.constant 0 : index
    %c0_76 = arith.constant 0 : index
    %133 = vector.load %arg3[%c8_74, %c0_75, %c0_76] : memref<9x4x128xbf16, #tpu.memory_space<vmem>>, vector<1x4x128xbf16>
    %134 = vector.shape_cast %133 : vector<1x4x128xbf16> to vector<4x128xbf16>
    %cst_77 = arith.constant dense<0.000000e+00> : vector<256x128xf32>
    %135 = tpu.matmul %132, %134, %cst_77 {dimension_numbers = #tpu.dot_dimension_numbers<[1], [0], [0], [1], [0, 0, 1, 1], [], []>} : vector<256x4xbf16>, vector<4x128xbf16>, vector<256x128xf32> -> vector<256x128xf32>
    %136 = arith.addf %121, %135 : vector<256x128xf32>
    %c0_78 = arith.constant 0 : index
    %c0_79 = arith.constant 0 : index
    %137 = vector.load %arg4[%c0_78, %c0_79] : memref<1x128xf32, #tpu.memory_space<vmem>>, vector<1x128xf32>
    %138 = vector.broadcast %137 : vector<1x128xf32> to vector<256x128xf32>
    %139 = arith.addf %136, %138 : vector<256x128xf32>
    %cst_80 = arith.constant 0.000000e+00 : f32
    %140 = vector.broadcast %cst_80 : f32 to vector<256x128xf32>
    %141 = arith.maximumf %139, %140 : vector<256x128xf32>
    %142 = arith.truncf %24 : vector<256x4xf32> to vector<256x4xbf16>
    %c0_81 = arith.constant 0 : index
    %c0_82 = arith.constant 0 : index
    %143 = vector.load %arg6[%c0_81, %c0_82] : memref<4x128xbf16, #tpu.memory_space<vmem>>, vector<4x128xbf16>
    %cst_83 = arith.constant dense<0.000000e+00> : vector<256x128xf32>
    %144 = tpu.matmul %142, %143, %cst_83 {dimension_numbers = #tpu.dot_dimension_numbers<[1], [0], [0], [1], [0, 0, 1, 1], [], []>} : vector<256x4xbf16>, vector<4x128xbf16>, vector<256x128xf32> -> vector<256x128xf32>
    %145 = vector.extract_strided_slice %141 {offsets = [0, 0], sizes = [64, 128], strides = [1, 1]} : vector<256x128xf32> to vector<64x128xf32>
    %146 = vector.extract_strided_slice %141 {offsets = [64, 0], sizes = [64, 128], strides = [1, 1]} : vector<256x128xf32> to vector<64x128xf32>
    %147 = vector.extract_strided_slice %141 {offsets = [128, 0], sizes = [64, 128], strides = [1, 1]} : vector<256x128xf32> to vector<64x128xf32>
    %148 = vector.extract_strided_slice %141 {offsets = [192, 0], sizes = [64, 128], strides = [1, 1]} : vector<256x128xf32> to vector<64x128xf32>
    %c9_i32_84 = arith.constant 9 : i32
    %149 = tpu.dynamic_rotate %148 by %c9_i32_84 dim 0 : vector<64x128xf32>, i32 -> vector<64x128xf32>
    %150 = vector.broadcast %1 : vector<64x1xf32> to vector<64x128xf32>
    %151 = arith.mulf %149, %150 : vector<64x128xf32>
    %c8_i32_85 = arith.constant 8 : i32
    %152 = tpu.dynamic_rotate %147 by %c8_i32_85 dim 0 : vector<64x128xf32>, i32 -> vector<64x128xf32>
    %153 = vector.broadcast %3 : vector<64x1xf32> to vector<64x128xf32>
    %154 = arith.mulf %152, %153 : vector<64x128xf32>
    %c1_i32_86 = arith.constant 1 : i32
    %155 = tpu.dynamic_rotate %146 by %c1_i32_86 dim 0 : vector<64x128xf32>, i32 -> vector<64x128xf32>
    %156 = vector.broadcast %7 : vector<64x1xf32> to vector<64x128xf32>
    %157 = arith.mulf %155, %156 : vector<64x128xf32>
    %158 = tpu.concatenate %151, %154, %157, %145 in 0 : vector<64x128xf32>, vector<64x128xf32>, vector<64x128xf32>, vector<64x128xf32> -> vector<256x128xf32>
    %159 = arith.truncf %158 : vector<256x128xf32> to vector<256x128xbf16>
    %c0_87 = arith.constant 0 : index
    %c0_88 = arith.constant 0 : index
    %c0_89 = arith.constant 0 : index
    %160 = vector.load %arg5[%c0_87, %c0_88, %c0_89] : memref<9x128x128xbf16, #tpu.memory_space<vmem>>, vector<1x128x128xbf16>
    %161 = vector.shape_cast %160 : vector<1x128x128xbf16> to vector<128x128xbf16>
    %cst_90 = arith.constant dense<0.000000e+00> : vector<256x128xf32>
    %162 = tpu.matmul %159, %161, %cst_90 {dimension_numbers = #tpu.dot_dimension_numbers<[1], [0], [0], [1], [0, 0, 1, 1], [], []>} : vector<256x128xbf16>, vector<128x128xbf16>, vector<256x128xf32> -> vector<256x128xf32>
    %163 = arith.addf %144, %162 : vector<256x128xf32>
    %c8_i32_91 = arith.constant 8 : i32
    %164 = tpu.dynamic_rotate %147 by %c8_i32_91 dim 0 : vector<64x128xf32>, i32 -> vector<64x128xf32>
    %165 = vector.broadcast %3 : vector<64x1xf32> to vector<64x128xf32>
    %166 = arith.mulf %164, %165 : vector<64x128xf32>
    %c8_i32_92 = arith.constant 8 : i32
    %167 = tpu.dynamic_rotate %148 by %c8_i32_92 dim 0 : vector<64x128xf32>, i32 -> vector<64x128xf32>
    %168 = vector.broadcast %3 : vector<64x1xf32> to vector<64x128xf32>
    %169 = arith.mulf %167, %168 : vector<64x128xf32>
    %170 = tpu.concatenate %166, %169, %145, %146 in 0 : vector<64x128xf32>, vector<64x128xf32>, vector<64x128xf32>, vector<64x128xf32> -> vector<256x128xf32>
    %171 = arith.truncf %170 : vector<256x128xf32> to vector<256x128xbf16>
    %c1_93 = arith.constant 1 : index
    %c0_94 = arith.constant 0 : index
    %c0_95 = arith.constant 0 : index
    %172 = vector.load %arg5[%c1_93, %c0_94, %c0_95] : memref<9x128x128xbf16, #tpu.memory_space<vmem>>, vector<1x128x128xbf16>
    %173 = vector.shape_cast %172 : vector<1x128x128xbf16> to vector<128x128xbf16>
    %cst_96 = arith.constant dense<0.000000e+00> : vector<256x128xf32>
    %174 = tpu.matmul %171, %173, %cst_96 {dimension_numbers = #tpu.dot_dimension_numbers<[1], [0], [0], [1], [0, 0, 1, 1], [], []>} : vector<256x128xbf16>, vector<128x128xbf16>, vector<256x128xf32> -> vector<256x128xf32>
    %175 = arith.addf %163, %174 : vector<256x128xf32>
    %c8_i32_97 = arith.constant 8 : i32
    %176 = tpu.dynamic_rotate %148 by %c8_i32_97 dim 0 : vector<64x128xf32>, i32 -> vector<64x128xf32>
    %177 = vector.broadcast %3 : vector<64x1xf32> to vector<64x128xf32>
    %178 = arith.mulf %176, %177 : vector<64x128xf32>
    %c7_i32_98 = arith.constant 7 : i32
    %179 = tpu.dynamic_rotate %147 by %c7_i32_98 dim 0 : vector<64x128xf32>, i32 -> vector<64x128xf32>
    %180 = vector.broadcast %5 : vector<64x1xf32> to vector<64x128xf32>
    %181 = arith.mulf %179, %180 : vector<64x128xf32>
    %c63_i32_99 = arith.constant 63 : i32
    %182 = tpu.dynamic_rotate %145 by %c63_i32_99 dim 0 : vector<64x128xf32>, i32 -> vector<64x128xf32>
    %183 = vector.broadcast %9 : vector<64x1xf32> to vector<64x128xf32>
    %184 = arith.mulf %182, %183 : vector<64x128xf32>
    %185 = tpu.concatenate %178, %181, %146, %184 in 0 : vector<64x128xf32>, vector<64x128xf32>, vector<64x128xf32>, vector<64x128xf32> -> vector<256x128xf32>
    %186 = arith.truncf %185 : vector<256x128xf32> to vector<256x128xbf16>
    %c2_100 = arith.constant 2 : index
    %c0_101 = arith.constant 0 : index
    %c0_102 = arith.constant 0 : index
    %187 = vector.load %arg5[%c2_100, %c0_101, %c0_102] : memref<9x128x128xbf16, #tpu.memory_space<vmem>>, vector<1x128x128xbf16>
    %188 = vector.shape_cast %187 : vector<1x128x128xbf16> to vector<128x128xbf16>
    %cst_103 = arith.constant dense<0.000000e+00> : vector<256x128xf32>
    %189 = tpu.matmul %186, %188, %cst_103 {dimension_numbers = #tpu.dot_dimension_numbers<[1], [0], [0], [1], [0, 0, 1, 1], [], []>} : vector<256x128xbf16>, vector<128x128xbf16>, vector<256x128xf32> -> vector<256x128xf32>
    %190 = arith.addf %175, %189 : vector<256x128xf32>
    %c1_i32_104 = arith.constant 1 : i32
    %191 = tpu.dynamic_rotate %146 by %c1_i32_104 dim 0 : vector<64x128xf32>, i32 -> vector<64x128xf32>
    %192 = vector.broadcast %7 : vector<64x1xf32> to vector<64x128xf32>
    %193 = arith.mulf %191, %192 : vector<64x128xf32>
    %c1_i32_105 = arith.constant 1 : i32
    %194 = tpu.dynamic_rotate %148 by %c1_i32_105 dim 0 : vector<64x128xf32>, i32 -> vector<64x128xf32>
    %195 = vector.broadcast %7 : vector<64x1xf32> to vector<64x128xf32>
    %196 = arith.mulf %194, %195 : vector<64x128xf32>
    %197 = tpu.concatenate %193, %145, %196, %147 in 0 : vector<64x128xf32>, vector<64x128xf32>, vector<64x128xf32>, vector<64x128xf32> -> vector<256x128xf32>
    %198 = arith.truncf %197 : vector<256x128xf32> to vector<256x128xbf16>
    %c3_106 = arith.constant 3 : index
    %c0_107 = arith.constant 0 : index
    %c0_108 = arith.constant 0 : index
    %199 = vector.load %arg5[%c3_106, %c0_107, %c0_108] : memref<9x128x128xbf16, #tpu.memory_space<vmem>>, vector<1x128x128xbf16>
    %200 = vector.shape_cast %199 : vector<1x128x128xbf16> to vector<128x128xbf16>
    %cst_109 = arith.constant dense<0.000000e+00> : vector<256x128xf32>
    %201 = tpu.matmul %198, %200, %cst_109 {dimension_numbers = #tpu.dot_dimension_numbers<[1], [0], [0], [1], [0, 0, 1, 1], [], []>} : vector<256x128xbf16>, vector<128x128xbf16>, vector<256x128xf32> -> vector<256x128xf32>
    %202 = arith.addf %190, %201 : vector<256x128xf32>
    %203 = arith.truncf %141 : vector<256x128xf32> to vector<256x128xbf16>
    %c4_110 = arith.constant 4 : index
    %c0_111 = arith.constant 0 : index
    %c0_112 = arith.constant 0 : index
    %204 = vector.load %arg5[%c4_110, %c0_111, %c0_112] : memref<9x128x128xbf16, #tpu.memory_space<vmem>>, vector<1x128x128xbf16>
    %205 = vector.shape_cast %204 : vector<1x128x128xbf16> to vector<128x128xbf16>
    %cst_113 = arith.constant dense<0.000000e+00> : vector<256x128xf32>
    %206 = tpu.matmul %203, %205, %cst_113 {dimension_numbers = #tpu.dot_dimension_numbers<[1], [0], [0], [1], [0, 0, 1, 1], [], []>} : vector<256x128xbf16>, vector<128x128xbf16>, vector<256x128xf32> -> vector<256x128xf32>
    %207 = arith.addf %202, %206 : vector<256x128xf32>
    %c63_i32_114 = arith.constant 63 : i32
    %208 = tpu.dynamic_rotate %145 by %c63_i32_114 dim 0 : vector<64x128xf32>, i32 -> vector<64x128xf32>
    %209 = vector.broadcast %9 : vector<64x1xf32> to vector<64x128xf32>
    %210 = arith.mulf %208, %209 : vector<64x128xf32>
    %c63_i32_115 = arith.constant 63 : i32
    %211 = tpu.dynamic_rotate %147 by %c63_i32_115 dim 0 : vector<64x128xf32>, i32 -> vector<64x128xf32>
    %212 = vector.broadcast %9 : vector<64x1xf32> to vector<64x128xf32>
    %213 = arith.mulf %211, %212 : vector<64x128xf32>
    %214 = tpu.concatenate %146, %210, %148, %213 in 0 : vector<64x128xf32>, vector<64x128xf32>, vector<64x128xf32>, vector<64x128xf32> -> vector<256x128xf32>
    %215 = arith.truncf %214 : vector<256x128xf32> to vector<256x128xbf16>
    %c5_116 = arith.constant 5 : index
    %c0_117 = arith.constant 0 : index
    %c0_118 = arith.constant 0 : index
    %216 = vector.load %arg5[%c5_116, %c0_117, %c0_118] : memref<9x128x128xbf16, #tpu.memory_space<vmem>>, vector<1x128x128xbf16>
    %217 = vector.shape_cast %216 : vector<1x128x128xbf16> to vector<128x128xbf16>
    %cst_119 = arith.constant dense<0.000000e+00> : vector<256x128xf32>
    %218 = tpu.matmul %215, %217, %cst_119 {dimension_numbers = #tpu.dot_dimension_numbers<[1], [0], [0], [1], [0, 0, 1, 1], [], []>} : vector<256x128xbf16>, vector<128x128xbf16>, vector<256x128xf32> -> vector<256x128xf32>
    %219 = arith.addf %207, %218 : vector<256x128xf32>
    %c1_i32_120 = arith.constant 1 : i32
    %220 = tpu.dynamic_rotate %148 by %c1_i32_120 dim 0 : vector<64x128xf32>, i32 -> vector<64x128xf32>
    %221 = vector.broadcast %7 : vector<64x1xf32> to vector<64x128xf32>
    %222 = arith.mulf %220, %221 : vector<64x128xf32>
    %c57_i32_121 = arith.constant 57 : i32
    %223 = tpu.dynamic_rotate %146 by %c57_i32_121 dim 0 : vector<64x128xf32>, i32 -> vector<64x128xf32>
    %224 = vector.broadcast %11 : vector<64x1xf32> to vector<64x128xf32>
    %225 = arith.mulf %223, %224 : vector<64x128xf32>
    %c56_i32_122 = arith.constant 56 : i32
    %226 = tpu.dynamic_rotate %145 by %c56_i32_122 dim 0 : vector<64x128xf32>, i32 -> vector<64x128xf32>
    %227 = vector.broadcast %13 : vector<64x1xf32> to vector<64x128xf32>
    %228 = arith.mulf %226, %227 : vector<64x128xf32>
    %229 = tpu.concatenate %222, %147, %225, %228 in 0 : vector<64x128xf32>, vector<64x128xf32>, vector<64x128xf32>, vector<64x128xf32> -> vector<256x128xf32>
    %230 = arith.truncf %229 : vector<256x128xf32> to vector<256x128xbf16>
    %c6_123 = arith.constant 6 : index
    %c0_124 = arith.constant 0 : index
    %c0_125 = arith.constant 0 : index
    %231 = vector.load %arg5[%c6_123, %c0_124, %c0_125] : memref<9x128x128xbf16, #tpu.memory_space<vmem>>, vector<1x128x128xbf16>
    %232 = vector.shape_cast %231 : vector<1x128x128xbf16> to vector<128x128xbf16>
    %cst_126 = arith.constant dense<0.000000e+00> : vector<256x128xf32>
    %233 = tpu.matmul %230, %232, %cst_126 {dimension_numbers = #tpu.dot_dimension_numbers<[1], [0], [0], [1], [0, 0, 1, 1], [], []>} : vector<256x128xbf16>, vector<128x128xbf16>, vector<256x128xf32> -> vector<256x128xf32>
    %234 = arith.addf %219, %233 : vector<256x128xf32>
    %c56_i32_127 = arith.constant 56 : i32
    %235 = tpu.dynamic_rotate %145 by %c56_i32_127 dim 0 : vector<64x128xf32>, i32 -> vector<64x128xf32>
    %236 = vector.broadcast %13 : vector<64x1xf32> to vector<64x128xf32>
    %237 = arith.mulf %235, %236 : vector<64x128xf32>
    %c56_i32_128 = arith.constant 56 : i32
    %238 = tpu.dynamic_rotate %146 by %c56_i32_128 dim 0 : vector<64x128xf32>, i32 -> vector<64x128xf32>
    %239 = vector.broadcast %13 : vector<64x1xf32> to vector<64x128xf32>
    %240 = arith.mulf %238, %239 : vector<64x128xf32>
    %241 = tpu.concatenate %147, %148, %237, %240 in 0 : vector<64x128xf32>, vector<64x128xf32>, vector<64x128xf32>, vector<64x128xf32> -> vector<256x128xf32>
    %242 = arith.truncf %241 : vector<256x128xf32> to vector<256x128xbf16>
    %c7_129 = arith.constant 7 : index
    %c0_130 = arith.constant 0 : index
    %c0_131 = arith.constant 0 : index
    %243 = vector.load %arg5[%c7_129, %c0_130, %c0_131] : memref<9x128x128xbf16, #tpu.memory_space<vmem>>, vector<1x128x128xbf16>
    %244 = vector.shape_cast %243 : vector<1x128x128xbf16> to vector<128x128xbf16>
    %cst_132 = arith.constant dense<0.000000e+00> : vector<256x128xf32>
    %245 = tpu.matmul %242, %244, %cst_132 {dimension_numbers = #tpu.dot_dimension_numbers<[1], [0], [0], [1], [0, 0, 1, 1], [], []>} : vector<256x128xbf16>, vector<128x128xbf16>, vector<256x128xf32> -> vector<256x128xf32>
    %246 = arith.addf %234, %245 : vector<256x128xf32>
    %c63_i32_133 = arith.constant 63 : i32
    %247 = tpu.dynamic_rotate %147 by %c63_i32_133 dim 0 : vector<64x128xf32>, i32 -> vector<64x128xf32>
    %248 = vector.broadcast %9 : vector<64x1xf32> to vector<64x128xf32>
    %249 = arith.mulf %247, %248 : vector<64x128xf32>
    %c56_i32_134 = arith.constant 56 : i32
    %250 = tpu.dynamic_rotate %146 by %c56_i32_134 dim 0 : vector<64x128xf32>, i32 -> vector<64x128xf32>
    %251 = vector.broadcast %13 : vector<64x1xf32> to vector<64x128xf32>
    %252 = arith.mulf %250, %251 : vector<64x128xf32>
    %c55_i32_135 = arith.constant 55 : i32
    %253 = tpu.dynamic_rotate %145 by %c55_i32_135 dim 0 : vector<64x128xf32>, i32 -> vector<64x128xf32>
    %254 = vector.broadcast %15 : vector<64x1xf32> to vector<64x128xf32>
    %255 = arith.mulf %253, %254 : vector<64x128xf32>
    %256 = tpu.concatenate %148, %249, %252, %255 in 0 : vector<64x128xf32>, vector<64x128xf32>, vector<64x128xf32>, vector<64x128xf32> -> vector<256x128xf32>
    %257 = arith.truncf %256 : vector<256x128xf32> to vector<256x128xbf16>
    %c8_136 = arith.constant 8 : index
    %c0_137 = arith.constant 0 : index
    %c0_138 = arith.constant 0 : index
    %258 = vector.load %arg5[%c8_136, %c0_137, %c0_138] : memref<9x128x128xbf16, #tpu.memory_space<vmem>>, vector<1x128x128xbf16>
    %259 = vector.shape_cast %258 : vector<1x128x128xbf16> to vector<128x128xbf16>
    %cst_139 = arith.constant dense<0.000000e+00> : vector<256x128xf32>
    %260 = tpu.matmul %257, %259, %cst_139 {dimension_numbers = #tpu.dot_dimension_numbers<[1], [0], [0], [1], [0, 0, 1, 1], [], []>} : vector<256x128xbf16>, vector<128x128xbf16>, vector<256x128xf32> -> vector<256x128xf32>
    %261 = arith.addf %246, %260 : vector<256x128xf32>
    %262 = vector.extract_strided_slice %261 {offsets = [0, 0], sizes = [64, 128], strides = [1, 1]} : vector<256x128xf32> to vector<64x128xf32>
    %263 = vector.extract_strided_slice %261 {offsets = [64, 0], sizes = [64, 128], strides = [1, 1]} : vector<256x128xf32> to vector<64x128xf32>
    %264 = arith.addf %262, %263 : vector<64x128xf32>
    %265 = vector.extract_strided_slice %261 {offsets = [128, 0], sizes = [64, 128], strides = [1, 1]} : vector<256x128xf32> to vector<64x128xf32>
    %266 = arith.addf %264, %265 : vector<64x128xf32>
    %267 = vector.extract_strided_slice %261 {offsets = [192, 0], sizes = [64, 128], strides = [1, 1]} : vector<256x128xf32> to vector<64x128xf32>
    %268 = arith.addf %266, %267 : vector<64x128xf32>
    %c0_140 = arith.constant 0 : index
    %c0_141 = arith.constant 0 : index
    %269 = vector.load %arg7[%c0_140, %c0_141] : memref<1x128xf32, #tpu.memory_space<vmem>>, vector<1x128xf32>
    %270 = vector.broadcast %269 : vector<1x128xf32> to vector<64x128xf32>
    %271 = arith.addf %268, %270 : vector<64x128xf32>
    %272 = arith.truncf %271 : vector<64x128xf32> to vector<64x128xbf16>
    %c0_142 = arith.constant 0 : index
    %c0_143 = arith.constant 0 : index
    %c0_144 = arith.constant 0 : index
    %273 = vector.load %arg8[%c0_142, %c0_143, %c0_144] : memref<1x64x128xbf16, #tpu.memory_space<vmem>>, vector<1x64x128xbf16>
    %274 = vector.shape_cast %273 : vector<1x64x128xbf16> to vector<64x128xbf16>
    %275 = vector.shape_cast %272 : vector<64x128xbf16> to vector<1x64x128xbf16>
    tpu.vector_store %arg8[%c0_142, %c0_143, %c0_144], %275 {strides = array<i32>} : memref<1x64x128xbf16, #tpu.memory_space<vmem>>, vector<1x64x128xbf16>,
    return
  }
  func.func @transform_0(%arg0: i32) -> (i32, i32, i32, i32) {
    %c0_i32 = arith.constant 0 : i32
    %c0_i32_0 = arith.constant 0 : i32
    %c0_i32_1 = arith.constant 0 : i32
    %c0_i32_2 = arith.constant 0 : i32
    return %arg0, %c0_i32, %c0_i32_0, %c0_i32_1 : i32, i32, i32, i32
  }
  func.func @transform_1(%arg0: i32) -> (i32, i32, i32) {
    %c0_i32 = arith.constant 0 : i32
    %c0_i32_0 = arith.constant 0 : i32
    %c0_i32_1 = arith.constant 0 : i32
    %c0_i32_2 = arith.constant 0 : i32
    return %c0_i32, %c0_i32_0, %c0_i32_1 : i32, i32, i32
  }
  func.func @transform_2(%arg0: i32) -> (i32, i32, i32) {
    %c0_i32 = arith.constant 0 : i32
    %c0_i32_0 = arith.constant 0 : i32
    %c0_i32_1 = arith.constant 0 : i32
    %c0_i32_2 = arith.constant 0 : i32
    return %c0_i32, %c0_i32_0, %c0_i32_1 : i32, i32, i32
  }
  func.func @transform_3(%arg0: i32) -> (i32, i32) {
    %c0_i32 = arith.constant 0 : i32
    %c0_i32_0 = arith.constant 0 : i32
    %c0_i32_1 = arith.constant 0 : i32
    return %c0_i32, %c0_i32_0 : i32, i32
  }
  func.func @transform_4(%arg0: i32) -> (i32, i32, i32) {
    %c0_i32 = arith.constant 0 : i32
    %c0_i32_0 = arith.constant 0 : i32
    %c0_i32_1 = arith.constant 0 : i32
    %c0_i32_2 = arith.constant 0 : i32
    return %c0_i32, %c0_i32_0, %c0_i32_1 : i32, i32, i32
  }
  func.func @transform_5(%arg0: i32) -> (i32, i32) {
    %c0_i32 = arith.constant 0 : i32
    %c0_i32_0 = arith.constant 0 : i32
    %c0_i32_1 = arith.constant 0 : i32
    return %c0_i32, %c0_i32_0 : i32, i32
  }
  func.func @transform_6(%arg0: i32) -> (i32, i32) {
    %c0_i32 = arith.constant 0 : i32
    %c0_i32_0 = arith.constant 0 : i32
    %c0_i32_1 = arith.constant 0 : i32
    return %c0_i32, %c0_i32_0 : i32, i32
  }
  func.func @transform_7(%arg0: i32) -> (i32, i32, i32) {
    %c0_i32 = arith.constant 0 : i32
    %c0_i32_0 = arith.constant 0 : i32
    %c0_i32_1 = arith.constant 0 : i32
    return %arg0, %c0_i32, %c0_i32_0 : i32, i32, i32
  }
}

module attributes {stable_mosaic.version = 11 : i64} {
  func.func @_disblock_kernel(%arg0: i32, %arg1: memref<1x4x64x4xf32, #tpu.memory_space<vmem>>, %arg2: memref<9x64x1xf32, #tpu.memory_space<vmem>>, %arg3: memref<9x4x128xbf16, #tpu.memory_space<vmem>>, %arg4: memref<1x128xf32, #tpu.memory_space<vmem>>, %arg5: memref<9x128x128xbf16, #tpu.memory_space<vmem>>, %arg6: memref<4x128xbf16, #tpu.memory_space<vmem>>, %arg7: memref<1x128xf32, #tpu.memory_space<vmem>>, %arg8: memref<1x64x128xbf16, #tpu.memory_space<vmem>>) attributes {dimension_semantics = [#tpu.dimension_semantics<parallel>], iteration_bounds = array<i64: 2>, scalar_prefetch = 0 : i64, scratch_operands = 0 : i64, tpu.core_type = #tpu.core_type<tc>, window_params = [{transform_indices = @transform_0, window_bounds = array<i64: 1, 4, 64, 4>}, {pipeline_mode = #tpu.pipeline_mode<synchronous>, transform_indices = @transform_1, window_bounds = array<i64: 9, 64, 1>}, {pipeline_mode = #tpu.pipeline_mode<synchronous>, transform_indices = @transform_2, window_bounds = array<i64: 9, 4, 128>}, {pipeline_mode = #tpu.pipeline_mode<synchronous>, transform_indices = @transform_3, window_bounds = array<i64: 1, 128>}, {pipeline_mode = #tpu.pipeline_mode<synchronous>, transform_indices = @transform_4, window_bounds = array<i64: 9, 128, 128>}, {pipeline_mode = #tpu.pipeline_mode<synchronous>, transform_indices = @transform_5, window_bounds = array<i64: 4, 128>}, {pipeline_mode = #tpu.pipeline_mode<synchronous>, transform_indices = @transform_6, window_bounds = array<i64: 1, 128>}, {transform_indices = @transform_7, window_bounds = array<i64: 1, 64, 128>}]} {
    %c0 = arith.constant 0 : index
    %c0_0 = arith.constant 0 : index
    %c0_1 = arith.constant 0 : index
    %0 = vector.load %arg2[%c0, %c0_0, %c0_1] : memref<9x64x1xf32, #tpu.memory_space<vmem>>, vector<1x64x1xf32>
    %1 = vector.shape_cast %0 : vector<1x64x1xf32> to vector<64x1xf32>
    %c1 = arith.constant 1 : index
    %c0_2 = arith.constant 0 : index
    %c0_3 = arith.constant 0 : index
    %2 = vector.load %arg2[%c1, %c0_2, %c0_3] : memref<9x64x1xf32, #tpu.memory_space<vmem>>, vector<1x64x1xf32>
    %3 = vector.shape_cast %2 : vector<1x64x1xf32> to vector<64x1xf32>
    %c2 = arith.constant 2 : index
    %c0_4 = arith.constant 0 : index
    %c0_5 = arith.constant 0 : index
    %4 = vector.load %arg2[%c2, %c0_4, %c0_5] : memref<9x64x1xf32, #tpu.memory_space<vmem>>, vector<1x64x1xf32>
    %5 = vector.shape_cast %4 : vector<1x64x1xf32> to vector<64x1xf32>
    %c3 = arith.constant 3 : index
    %c0_6 = arith.constant 0 : index
    %c0_7 = arith.constant 0 : index
    %6 = vector.load %arg2[%c3, %c0_6, %c0_7] : memref<9x64x1xf32, #tpu.memory_space<vmem>>, vector<1x64x1xf32>
    %7 = vector.shape_cast %6 : vector<1x64x1xf32> to vector<64x1xf32>
    %c5 = arith.constant 5 : index
    %c0_8 = arith.constant 0 : index
    %c0_9 = arith.constant 0 : index
    %8 = vector.load %arg2[%c5, %c0_8, %c0_9] : memref<9x64x1xf32, #tpu.memory_space<vmem>>, vector<1x64x1xf32>
    %9 = vector.shape_cast %8 : vector<1x64x1xf32> to vector<64x1xf32>
    %c6 = arith.constant 6 : index
    %c0_10 = arith.constant 0 : index
    %c0_11 = arith.constant 0 : index
    %10 = vector.load %arg2[%c6, %c0_10, %c0_11] : memref<9x64x1xf32, #tpu.memory_space<vmem>>, vector<1x64x1xf32>
    %11 = vector.shape_cast %10 : vector<1x64x1xf32> to vector<64x1xf32>
    %c7 = arith.constant 7 : index
    %c0_12 = arith.constant 0 : index
    %c0_13 = arith.constant 0 : index
    %12 = vector.load %arg2[%c7, %c0_12, %c0_13] : memref<9x64x1xf32, #tpu.memory_space<vmem>>, vector<1x64x1xf32>
    %13 = vector.shape_cast %12 : vector<1x64x1xf32> to vector<64x1xf32>
    %c8 = arith.constant 8 : index
    %c0_14 = arith.constant 0 : index
    %c0_15 = arith.constant 0 : index
    %14 = vector.load %arg2[%c8, %c0_14, %c0_15] : memref<9x64x1xf32, #tpu.memory_space<vmem>>, vector<1x64x1xf32>
    %15 = vector.shape_cast %14 : vector<1x64x1xf32> to vector<64x1xf32>
    %c0_16 = arith.constant 0 : index
    %c0_17 = arith.constant 0 : index
    %c0_18 = arith.constant 0 : index
    %c0_19 = arith.constant 0 : index
    %16 = vector.load %arg1[%c0_16, %c0_17, %c0_18, %c0_19] : memref<1x4x64x4xf32, #tpu.memory_space<vmem>>, vector<1x1x64x4xf32>
    %17 = vector.shape_cast %16 : vector<1x1x64x4xf32> to vector<64x4xf32>
    %c0_20 = arith.constant 0 : index
    %c1_21 = arith.constant 1 : index
    %c0_22 = arith.constant 0 : index
    %c0_23 = arith.constant 0 : index
    %18 = vector.load %arg1[%c0_20, %c1_21, %c0_22, %c0_23] : memref<1x4x64x4xf32, #tpu.memory_space<vmem>>, vector<1x1x64x4xf32>
    %19 = vector.shape_cast %18 : vector<1x1x64x4xf32> to vector<64x4xf32>
    %c0_24 = arith.constant 0 : index
    %c2_25 = arith.constant 2 : index
    %c0_26 = arith.constant 0 : index
    %c0_27 = arith.constant 0 : index
    %20 = vector.load %arg1[%c0_24, %c2_25, %c0_26, %c0_27] : memref<1x4x64x4xf32, #tpu.memory_space<vmem>>, vector<1x1x64x4xf32>
    %21 = vector.shape_cast %20 : vector<1x1x64x4xf32> to vector<64x4xf32>
    %c0_28 = arith.constant 0 : index
    %c3_29 = arith.constant 3 : index
    %c0_30 = arith.constant 0 : index
    %c0_31 = arith.constant 0 : index
    %22 = vector.load %arg1[%c0_28, %c3_29, %c0_30, %c0_31] : memref<1x4x64x4xf32, #tpu.memory_space<vmem>>, vector<1x1x64x4xf32>
    %23 = vector.shape_cast %22 : vector<1x1x64x4xf32> to vector<64x4xf32>
    %24 = tpu.concatenate %17, %19, %21, %23 in 0 : vector<64x4xf32>, vector<64x4xf32>, vector<64x4xf32>, vector<64x4xf32> -> vector<256x4xf32>
    %c9_i32 = arith.constant 9 : i32
    %25 = tpu.dynamic_rotate %23 by %c9_i32 dim 0 : vector<64x4xf32>, i32 -> vector<64x4xf32>
    %26 = vector.broadcast %1 : vector<64x1xf32> to vector<64x4xf32>
    %27 = arith.mulf %25, %26 : vector<64x4xf32>
    %c8_i32 = arith.constant 8 : i32
    %28 = tpu.dynamic_rotate %21 by %c8_i32 dim 0 : vector<64x4xf32>, i32 -> vector<64x4xf32>
    %29 = vector.broadcast %3 : vector<64x1xf32> to vector<64x4xf32>
    %30 = arith.mulf %28, %29 : vector<64x4xf32>
    %c1_i32 = arith.constant 1 : i32
    %31 = tpu.dynamic_rotate %19 by %c1_i32 dim 0 : vector<64x4xf32>, i32 -> vector<64x4xf32>
    %32 = vector.broadcast %7 : vector<64x1xf32> to vector<64x4xf32>
    %33 = arith.mulf %31, %32 : vector<64x4xf32>
    %34 = tpu.concatenate %27, %30, %33, %17 in 0 : vector<64x4xf32>, vector<64x4xf32>, vector<64x4xf32>, vector<64x4xf32> -> vector<256x4xf32>
    %35 = arith.truncf %34 : vector<256x4xf32> to vector<256x4xbf16>
    %c0_32 = arith.constant 0 : index
    %c0_33 = arith.constant 0 : index
    %c0_34 = arith.constant 0 : index
    %36 = vector.load %arg3[%c0_32, %c0_33, %c0_34] : memref<9x4x128xbf16, #tpu.memory_space<vmem>>, vector<1x4x128xbf16>
    %37 = vector.shape_cast %36 : vector<1x4x128xbf16> to vector<4x128xbf16>
    %cst = arith.constant dense<0.000000e+00> : vector<256x128xf32>
    %38 = tpu.matmul %35, %37, %cst {dimension_numbers = #tpu.dot_dimension_numbers<[1], [0], [0], [1], [0, 0, 1, 1], [], []>} : vector<256x4xbf16>, vector<4x128xbf16>, vector<256x128xf32> -> vector<256x128xf32>
    %c8_i32_35 = arith.constant 8 : i32
    %39 = tpu.dynamic_rotate %21 by %c8_i32_35 dim 0 : vector<64x4xf32>, i32 -> vector<64x4xf32>
    %40 = vector.broadcast %3 : vector<64x1xf32> to vector<64x4xf32>
    %41 = arith.mulf %39, %40 : vector<64x4xf32>
    %c8_i32_36 = arith.constant 8 : i32
    %42 = tpu.dynamic_rotate %23 by %c8_i32_36 dim 0 : vector<64x4xf32>, i32 -> vector<64x4xf32>
    %43 = vector.broadcast %3 : vector<64x1xf32> to vector<64x4xf32>
    %44 = arith.mulf %42, %43 : vector<64x4xf32>
    %45 = tpu.concatenate %41, %44, %17, %19 in 0 : vector<64x4xf32>, vector<64x4xf32>, vector<64x4xf32>, vector<64x4xf32> -> vector<256x4xf32>
    %46 = arith.truncf %45 : vector<256x4xf32> to vector<256x4xbf16>
    %c1_37 = arith.constant 1 : index
    %c0_38 = arith.constant 0 : index
    %c0_39 = arith.constant 0 : index
    %47 = vector.load %arg3[%c1_37, %c0_38, %c0_39] : memref<9x4x128xbf16, #tpu.memory_space<vmem>>, vector<1x4x128xbf16>
    %48 = vector.shape_cast %47 : vector<1x4x128xbf16> to vector<4x128xbf16>
    %cst_40 = arith.constant dense<0.000000e+00> : vector<256x128xf32>
    %49 = tpu.matmul %46, %48, %cst_40 {dimension_numbers = #tpu.dot_dimension_numbers<[1], [0], [0], [1], [0, 0, 1, 1], [], []>} : vector<256x4xbf16>, vector<4x128xbf16>, vector<256x128xf32> -> vector<256x128xf32>
    %50 = arith.addf %38, %49 : vector<256x128xf32>
    %c8_i32_41 = arith.constant 8 : i32
    %51 = tpu.dynamic_rotate %23 by %c8_i32_41 dim 0 : vector<64x4xf32>, i32 -> vector<64x4xf32>
    %52 = vector.broadcast %3 : vector<64x1xf32> to vector<64x4xf32>
    %53 = arith.mulf %51, %52 : vector<64x4xf32>
    %c7_i32 = arith.constant 7 : i32
    %54 = tpu.dynamic_rotate %21 by %c7_i32 dim 0 : vector<64x4xf32>, i32 -> vector<64x4xf32>
    %55 = vector.broadcast %5 : vector<64x1xf32> to vector<64x4xf32>
    %56 = arith.mulf %54, %55 : vector<64x4xf32>
    %c63_i32 = arith.constant 63 : i32
    %57 = tpu.dynamic_rotate %17 by %c63_i32 dim 0 : vector<64x4xf32>, i32 -> vector<64x4xf32>
    %58 = vector.broadcast %9 : vector<64x1xf32> to vector<64x4xf32>
    %59 = arith.mulf %57, %58 : vector<64x4xf32>
    %60 = tpu.concatenate %53, %56, %19, %59 in 0 : vector<64x4xf32>, vector<64x4xf32>, vector<64x4xf32>, vector<64x4xf32> -> vector<256x4xf32>
    %61 = arith.truncf %60 : vector<256x4xf32> to vector<256x4xbf16>
    %c2_42 = arith.constant 2 : index
    %c0_43 = arith.constant 0 : index
    %c0_44 = arith.constant 0 : index
    %62 = vector.load %arg3[%c2_42, %c0_43, %c0_44] : memref<9x4x128xbf16, #tpu.memory_space<vmem>>, vector<1x4x128xbf16>
    %63 = vector.shape_cast %62 : vector<1x4x128xbf16> to vector<4x128xbf16>
    %cst_45 = arith.constant dense<0.000000e+00> : vector<256x128xf32>
    %64 = tpu.matmul %61, %63, %cst_45 {dimension_numbers = #tpu.dot_dimension_numbers<[1], [0], [0], [1], [0, 0, 1, 1], [], []>} : vector<256x4xbf16>, vector<4x128xbf16>, vector<256x128xf32> -> vector<256x128xf32>
    %65 = arith.addf %50, %64 : vector<256x128xf32>
    %c1_i32_46 = arith.constant 1 : i32
    %66 = tpu.dynamic_rotate %19 by %c1_i32_46 dim 0 : vector<64x4xf32>, i32 -> vector<64x4xf32>
    %67 = vector.broadcast %7 : vector<64x1xf32> to vector<64x4xf32>
    %68 = arith.mulf %66, %67 : vector<64x4xf32>
    %c1_i32_47 = arith.constant 1 : i32
    %69 = tpu.dynamic_rotate %23 by %c1_i32_47 dim 0 : vector<64x4xf32>, i32 -> vector<64x4xf32>
    %70 = vector.broadcast %7 : vector<64x1xf32> to vector<64x4xf32>
    %71 = arith.mulf %69, %70 : vector<64x4xf32>
    %72 = tpu.concatenate %68, %17, %71, %21 in 0 : vector<64x4xf32>, vector<64x4xf32>, vector<64x4xf32>, vector<64x4xf32> -> vector<256x4xf32>
    %73 = arith.truncf %72 : vector<256x4xf32> to vector<256x4xbf16>
    %c3_48 = arith.constant 3 : index
    %c0_49 = arith.constant 0 : index
    %c0_50 = arith.constant 0 : index
    %74 = vector.load %arg3[%c3_48, %c0_49, %c0_50] : memref<9x4x128xbf16, #tpu.memory_space<vmem>>, vector<1x4x128xbf16>
    %75 = vector.shape_cast %74 : vector<1x4x128xbf16> to vector<4x128xbf16>
    %cst_51 = arith.constant dense<0.000000e+00> : vector<256x128xf32>
    %76 = tpu.matmul %73, %75, %cst_51 {dimension_numbers = #tpu.dot_dimension_numbers<[1], [0], [0], [1], [0, 0, 1, 1], [], []>} : vector<256x4xbf16>, vector<4x128xbf16>, vector<256x128xf32> -> vector<256x128xf32>
    %77 = arith.addf %65, %76 : vector<256x128xf32>
    %78 = arith.truncf %24 : vector<256x4xf32> to vector<256x4xbf16>
    %c4 = arith.constant 4 : index
    %c0_52 = arith.constant 0 : index
    %c0_53 = arith.constant 0 : index
    %79 = vector.load %arg3[%c4, %c0_52, %c0_53] : memref<9x4x128xbf16, #tpu.memory_space<vmem>>, vector<1x4x128xbf16>
    %80 = vector.shape_cast %79 : vector<1x4x128xbf16> to vector<4x128xbf16>
    %cst_54 = arith.constant dense<0.000000e+00> : vector<256x128xf32>
    %81 = tpu.matmul %78, %80, %cst_54 {dimension_numbers = #tpu.dot_dimension_numbers<[1], [0], [0], [1], [0, 0, 1, 1], [], []>} : vector<256x4xbf16>, vector<4x128xbf16>, vector<256x128xf32> -> vector<256x128xf32>
    %82 = arith.addf %77, %81 : vector<256x128xf32>
    %c63_i32_55 = arith.constant 63 : i32
    %83 = tpu.dynamic_rotate %17 by %c63_i32_55 dim 0 : vector<64x4xf32>, i32 -> vector<64x4xf32>
    %84 = vector.broadcast %9 : vector<64x1xf32> to vector<64x4xf32>
    %85 = arith.mulf %83, %84 : vector<64x4xf32>
    %c63_i32_56 = arith.constant 63 : i32
    %86 = tpu.dynamic_rotate %21 by %c63_i32_56 dim 0 : vector<64x4xf32>, i32 -> vector<64x4xf32>
    %87 = vector.broadcast %9 : vector<64x1xf32> to vector<64x4xf32>
    %88 = arith.mulf %86, %87 : vector<64x4xf32>
    %89 = tpu.concatenate %19, %85, %23, %88 in 0 : vector<64x4xf32>, vector<64x4xf32>, vector<64x4xf32>, vector<64x4xf32> -> vector<256x4xf32>
    %90 = arith.truncf %89 : vector<256x4xf32> to vector<256x4xbf16>
    %c5_57 = arith.constant 5 : index
    %c0_58 = arith.constant 0 : index
    %c0_59 = arith.constant 0 : index
    %91 = vector.load %arg3[%c5_57, %c0_58, %c0_59] : memref<9x4x128xbf16, #tpu.memory_space<vmem>>, vector<1x4x128xbf16>
    %92 = vector.shape_cast %91 : vector<1x4x128xbf16> to vector<4x128xbf16>
    %cst_60 = arith.constant dense<0.000000e+00> : vector<256x128xf32>
    %93 = tpu.matmul %90, %92, %cst_60 {dimension_numbers = #tpu.dot_dimension_numbers<[1], [0], [0], [1], [0, 0, 1, 1], [], []>} : vector<256x4xbf16>, vector<4x128xbf16>, vector<256x128xf32> -> vector<256x128xf32>
    %94 = arith.addf %82, %93 : vector<256x128xf32>
    %c1_i32_61 = arith.constant 1 : i32
    %95 = tpu.dynamic_rotate %23 by %c1_i32_61 dim 0 : vector<64x4xf32>, i32 -> vector<64x4xf32>
    %96 = vector.broadcast %7 : vector<64x1xf32> to vector<64x4xf32>
    %97 = arith.mulf %95, %96 : vector<64x4xf32>
    %c57_i32 = arith.constant 57 : i32
    %98 = tpu.dynamic_rotate %19 by %c57_i32 dim 0 : vector<64x4xf32>, i32 -> vector<64x4xf32>
    %99 = vector.broadcast %11 : vector<64x1xf32> to vector<64x4xf32>
    %100 = arith.mulf %98, %99 : vector<64x4xf32>
    %c56_i32 = arith.constant 56 : i32
    %101 = tpu.dynamic_rotate %17 by %c56_i32 dim 0 : vector<64x4xf32>, i32 -> vector<64x4xf32>
    %102 = vector.broadcast %13 : vector<64x1xf32> to vector<64x4xf32>
    %103 = arith.mulf %101, %102 : vector<64x4xf32>
    %104 = tpu.concatenate %97, %21, %100, %103 in 0 : vector<64x4xf32>, vector<64x4xf32>, vector<64x4xf32>, vector<64x4xf32> -> vector<256x4xf32>
    %105 = arith.truncf %104 : vector<256x4xf32> to vector<256x4xbf16>
    %c6_62 = arith.constant 6 : index
    %c0_63 = arith.constant 0 : index
    %c0_64 = arith.constant 0 : index
    %106 = vector.load %arg3[%c6_62, %c0_63, %c0_64] : memref<9x4x128xbf16, #tpu.memory_space<vmem>>, vector<1x4x128xbf16>
    %107 = vector.shape_cast %106 : vector<1x4x128xbf16> to vector<4x128xbf16>
    %cst_65 = arith.constant dense<0.000000e+00> : vector<256x128xf32>
    %108 = tpu.matmul %105, %107, %cst_65 {dimension_numbers = #tpu.dot_dimension_numbers<[1], [0], [0], [1], [0, 0, 1, 1], [], []>} : vector<256x4xbf16>, vector<4x128xbf16>, vector<256x128xf32> -> vector<256x128xf32>
    %109 = arith.addf %94, %108 : vector<256x128xf32>
    %c56_i32_66 = arith.constant 56 : i32
    %110 = tpu.dynamic_rotate %17 by %c56_i32_66 dim 0 : vector<64x4xf32>, i32 -> vector<64x4xf32>
    %111 = vector.broadcast %13 : vector<64x1xf32> to vector<64x4xf32>
    %112 = arith.mulf %110, %111 : vector<64x4xf32>
    %c56_i32_67 = arith.constant 56 : i32
    %113 = tpu.dynamic_rotate %19 by %c56_i32_67 dim 0 : vector<64x4xf32>, i32 -> vector<64x4xf32>
    %114 = vector.broadcast %13 : vector<64x1xf32> to vector<64x4xf32>
    %115 = arith.mulf %113, %114 : vector<64x4xf32>
    %116 = tpu.concatenate %21, %23, %112, %115 in 0 : vector<64x4xf32>, vector<64x4xf32>, vector<64x4xf32>, vector<64x4xf32> -> vector<256x4xf32>
    %117 = arith.truncf %116 : vector<256x4xf32> to vector<256x4xbf16>
    %c7_68 = arith.constant 7 : index
    %c0_69 = arith.constant 0 : index
    %c0_70 = arith.constant 0 : index
    %118 = vector.load %arg3[%c7_68, %c0_69, %c0_70] : memref<9x4x128xbf16, #tpu.memory_space<vmem>>, vector<1x4x128xbf16>
    %119 = vector.shape_cast %118 : vector<1x4x128xbf16> to vector<4x128xbf16>
    %cst_71 = arith.constant dense<0.000000e+00> : vector<256x128xf32>
    %120 = tpu.matmul %117, %119, %cst_71 {dimension_numbers = #tpu.dot_dimension_numbers<[1], [0], [0], [1], [0, 0, 1, 1], [], []>} : vector<256x4xbf16>, vector<4x128xbf16>, vector<256x128xf32> -> vector<256x128xf32>
    %121 = arith.addf %109, %120 : vector<256x128xf32>
    %c63_i32_72 = arith.constant 63 : i32
    %122 = tpu.dynamic_rotate %21 by %c63_i32_72 dim 0 : vector<64x4xf32>, i32 -> vector<64x4xf32>
    %123 = vector.broadcast %9 : vector<64x1xf32> to vector<64x4xf32>
    %124 = arith.mulf %122, %123 : vector<64x4xf32>
    %c56_i32_73 = arith.constant 56 : i32
    %125 = tpu.dynamic_rotate %19 by %c56_i32_73 dim 0 : vector<64x4xf32>, i32 -> vector<64x4xf32>
    %126 = vector.broadcast %13 : vector<64x1xf32> to vector<64x4xf32>
    %127 = arith.mulf %125, %126 : vector<64x4xf32>
    %c55_i32 = arith.constant 55 : i32
    %128 = tpu.dynamic_rotate %17 by %c55_i32 dim 0 : vector<64x4xf32>, i32 -> vector<64x4xf32>
    %129 = vector.broadcast %15 : vector<64x1xf32> to vector<64x4xf32>
    %130 = arith.mulf %128, %129 : vector<64x4xf32>
    %131 = tpu.concatenate %23, %124, %127, %130 in 0 : vector<64x4xf32>, vector<64x4xf32>, vector<64x4xf32>, vector<64x4xf32> -> vector<256x4xf32>
    %132 = arith.truncf %131 : vector<256x4xf32> to vector<256x4xbf16>
    %c8_74 = arith.constant 8 : index
    %c0_75 = arith.constant 0 : index
    %c0_76 = arith.constant 0 : index
    %133 = vector.load %arg3[%c8_74, %c0_75, %c0_76] : memref<9x4x128xbf16, #tpu.memory_space<vmem>>, vector<1x4x128xbf16>
    %134 = vector.shape_cast %133 : vector<1x4x128xbf16> to vector<4x128xbf16>
    %cst_77 = arith.constant dense<0.000000e+00> : vector<256x128xf32>
    %135 = tpu.matmul %132, %134, %cst_77 {dimension_numbers = #tpu.dot_dimension_numbers<[1], [0], [0], [1], [0, 0, 1, 1], [], []>} : vector<256x4xbf16>, vector<4x128xbf16>, vector<256x128xf32> -> vector<256x128xf32>
    %136 = arith.addf %121, %135 : vector<256x128xf32>
    %c0_78 = arith.constant 0 : index
    %c0_79 = arith.constant 0 : index
    %137 = vector.load %arg4[%c0_78, %c0_79] : memref<1x128xf32, #tpu.memory_space<vmem>>, vector<1x128xf32>
    %138 = vector.broadcast %137 : vector<1x128xf32> to vector<256x128xf32>
    %139 = arith.addf %136, %138 : vector<256x128xf32>
    %cst_80 = arith.constant 0.000000e+00 : f32
    %140 = vector.broadcast %cst_80 : f32 to vector<256x128xf32>
    %141 = arith.maximumf %139, %140 : vector<256x128xf32>
    %142 = arith.truncf %24 : vector<256x4xf32> to vector<256x4xbf16>
    %c0_81 = arith.constant 0 : index
    %c0_82 = arith.constant 0 : index
    %143 = vector.load %arg6[%c0_81, %c0_82] : memref<4x128xbf16, #tpu.memory_space<vmem>>, vector<4x128xbf16>
    %cst_83 = arith.constant dense<0.000000e+00> : vector<256x128xf32>
    %144 = tpu.matmul %142, %143, %cst_83 {dimension_numbers = #tpu.dot_dimension_numbers<[1], [0], [0], [1], [0, 0, 1, 1], [], []>} : vector<256x4xbf16>, vector<4x128xbf16>, vector<256x128xf32> -> vector<256x128xf32>
    %145 = vector.extract_strided_slice %141 {offsets = [0, 0], sizes = [64, 128], strides = [1, 1]} : vector<256x128xf32> to vector<64x128xf32>
    %146 = vector.extract_strided_slice %141 {offsets = [64, 0], sizes = [64, 128], strides = [1, 1]} : vector<256x128xf32> to vector<64x128xf32>
    %147 = vector.extract_strided_slice %141 {offsets = [128, 0], sizes = [64, 128], strides = [1, 1]} : vector<256x128xf32> to vector<64x128xf32>
    %148 = vector.extract_strided_slice %141 {offsets = [192, 0], sizes = [64, 128], strides = [1, 1]} : vector<256x128xf32> to vector<64x128xf32>
    %c9_i32_84 = arith.constant 9 : i32
    %149 = tpu.dynamic_rotate %148 by %c9_i32_84 dim 0 : vector<64x128xf32>, i32 -> vector<64x128xf32>
    %150 = vector.broadcast %1 : vector<64x1xf32> to vector<64x128xf32>
    %151 = arith.mulf %149, %150 : vector<64x128xf32>
    %c8_i32_85 = arith.constant 8 : i32
    %152 = tpu.dynamic_rotate %147 by %c8_i32_85 dim 0 : vector<64x128xf32>, i32 -> vector<64x128xf32>
    %153 = vector.broadcast %3 : vector<64x1xf32> to vector<64x128xf32>
    %154 = arith.mulf %152, %153 : vector<64x128xf32>
    %c1_i32_86 = arith.constant 1 : i32
    %155 = tpu.dynamic_rotate %146 by %c1_i32_86 dim 0 : vector<64x128xf32>, i32 -> vector<64x128xf32>
    %156 = vector.broadcast %7 : vector<64x1xf32> to vector<64x128xf32>
    %157 = arith.mulf %155, %156 : vector<64x128xf32>
    %158 = tpu.concatenate %151, %154, %157, %145 in 0 : vector<64x128xf32>, vector<64x128xf32>, vector<64x128xf32>, vector<64x128xf32> -> vector<256x128xf32>
    %159 = arith.truncf %158 : vector<256x128xf32> to vector<256x128xbf16>
    %c0_87 = arith.constant 0 : index
    %c0_88 = arith.constant 0 : index
    %c0_89 = arith.constant 0 : index
    %160 = vector.load %arg5[%c0_87, %c0_88, %c0_89] : memref<9x128x128xbf16, #tpu.memory_space<vmem>>, vector<1x128x128xbf16>
    %161 = vector.shape_cast %160 : vector<1x128x128xbf16> to vector<128x128xbf16>
    %cst_90 = arith.constant dense<0.000000e+00> : vector<256x128xf32>
    %162 = tpu.matmul %159, %161, %cst_90 {dimension_numbers = #tpu.dot_dimension_numbers<[1], [0], [0], [1], [0, 0, 1, 1], [], []>} : vector<256x128xbf16>, vector<128x128xbf16>, vector<256x128xf32> -> vector<256x128xf32>
    %163 = arith.addf %144, %162 : vector<256x128xf32>
    %c8_i32_91 = arith.constant 8 : i32
    %164 = tpu.dynamic_rotate %147 by %c8_i32_91 dim 0 : vector<64x128xf32>, i32 -> vector<64x128xf32>
    %165 = vector.broadcast %3 : vector<64x1xf32> to vector<64x128xf32>
    %166 = arith.mulf %164, %165 : vector<64x128xf32>
    %c8_i32_92 = arith.constant 8 : i32
    %167 = tpu.dynamic_rotate %148 by %c8_i32_92 dim 0 : vector<64x128xf32>, i32 -> vector<64x128xf32>
    %168 = vector.broadcast %3 : vector<64x1xf32> to vector<64x128xf32>
    %169 = arith.mulf %167, %168 : vector<64x128xf32>
    %170 = tpu.concatenate %166, %169, %145, %146 in 0 : vector<64x128xf32>, vector<64x128xf32>, vector<64x128xf32>, vector<64x128xf32> -> vector<256x128xf32>
    %171 = arith.truncf %170 : vector<256x128xf32> to vector<256x128xbf16>
    %c1_93 = arith.constant 1 : index
    %c0_94 = arith.constant 0 : index
    %c0_95 = arith.constant 0 : index
    %172 = vector.load %arg5[%c1_93, %c0_94, %c0_95] : memref<9x128x128xbf16, #tpu.memory_space<vmem>>, vector<1x128x128xbf16>
    %173 = vector.shape_cast %172 : vector<1x128x128xbf16> to vector<128x128xbf16>
    %cst_96 = arith.constant dense<0.000000e+00> : vector<256x128xf32>
    %174 = tpu.matmul %171, %173, %cst_96 {dimension_numbers = #tpu.dot_dimension_numbers<[1], [0], [0], [1], [0, 0, 1, 1], [], []>} : vector<256x128xbf16>, vector<128x128xbf16>, vector<256x128xf32> -> vector<256x128xf32>
    %175 = arith.addf %163, %174 : vector<256x128xf32>
    %c8_i32_97 = arith.constant 8 : i32
    %176 = tpu.dynamic_rotate %148 by %c8_i32_97 dim 0 : vector<64x128xf32>, i32 -> vector<64x128xf32>
    %177 = vector.broadcast %3 : vector<64x1xf32> to vector<64x128xf32>
    %178 = arith.mulf %176, %177 : vector<64x128xf32>
    %c7_i32_98 = arith.constant 7 : i32
    %179 = tpu.dynamic_rotate %147 by %c7_i32_98 dim 0 : vector<64x128xf32>, i32 -> vector<64x128xf32>
    %180 = vector.broadcast %5 : vector<64x1xf32> to vector<64x128xf32>
    %181 = arith.mulf %179, %180 : vector<64x128xf32>
    %c63_i32_99 = arith.constant 63 : i32
    %182 = tpu.dynamic_rotate %145 by %c63_i32_99 dim 0 : vector<64x128xf32>, i32 -> vector<64x128xf32>
    %183 = vector.broadcast %9 : vector<64x1xf32> to vector<64x128xf32>
    %184 = arith.mulf %182, %183 : vector<64x128xf32>
    %185 = tpu.concatenate %178, %181, %146, %184 in 0 : vector<64x128xf32>, vector<64x128xf32>, vector<64x128xf32>, vector<64x128xf32> -> vector<256x128xf32>
    %186 = arith.truncf %185 : vector<256x128xf32> to vector<256x128xbf16>
    %c2_100 = arith.constant 2 : index
    %c0_101 = arith.constant 0 : index
    %c0_102 = arith.constant 0 : index
    %187 = vector.load %arg5[%c2_100, %c0_101, %c0_102] : memref<9x128x128xbf16, #tpu.memory_space<vmem>>, vector<1x128x128xbf16>
    %188 = vector.shape_cast %187 : vector<1x128x128xbf16> to vector<128x128xbf16>
    %cst_103 = arith.constant dense<0.000000e+00> : vector<256x128xf32>
    %189 = tpu.matmul %186, %188, %cst_103 {dimension_numbers = #tpu.dot_dimension_numbers<[1], [0], [0], [1], [0, 0, 1, 1], [], []>} : vector<256x128xbf16>, vector<128x128xbf16>, vector<256x128xf32> -> vector<256x128xf32>
    %190 = arith.addf %175, %189 : vector<256x128xf32>
    %c1_i32_104 = arith.constant 1 : i32
    %191 = tpu.dynamic_rotate %146 by %c1_i32_104 dim 0 : vector<64x128xf32>, i32 -> vector<64x128xf32>
    %192 = vector.broadcast %7 : vector<64x1xf32> to vector<64x128xf32>
    %193 = arith.mulf %191, %192 : vector<64x128xf32>
    %c1_i32_105 = arith.constant 1 : i32
    %194 = tpu.dynamic_rotate %148 by %c1_i32_105 dim 0 : vector<64x128xf32>, i32 -> vector<64x128xf32>
    %195 = vector.broadcast %7 : vector<64x1xf32> to vector<64x128xf32>
    %196 = arith.mulf %194, %195 : vector<64x128xf32>
    %197 = tpu.concatenate %193, %145, %196, %147 in 0 : vector<64x128xf32>, vector<64x128xf32>, vector<64x128xf32>, vector<64x128xf32> -> vector<256x128xf32>
    %198 = arith.truncf %197 : vector<256x128xf32> to vector<256x128xbf16>
    %c3_106 = arith.constant 3 : index
    %c0_107 = arith.constant 0 : index
    %c0_108 = arith.constant 0 : index
    %199 = vector.load %arg5[%c3_106, %c0_107, %c0_108] : memref<9x128x128xbf16, #tpu.memory_space<vmem>>, vector<1x128x128xbf16>
    %200 = vector.shape_cast %199 : vector<1x128x128xbf16> to vector<128x128xbf16>
    %cst_109 = arith.constant dense<0.000000e+00> : vector<256x128xf32>
    %201 = tpu.matmul %198, %200, %cst_109 {dimension_numbers = #tpu.dot_dimension_numbers<[1], [0], [0], [1], [0, 0, 1, 1], [], []>} : vector<256x128xbf16>, vector<128x128xbf16>, vector<256x128xf32> -> vector<256x128xf32>
    %202 = arith.addf %190, %201 : vector<256x128xf32>
    %203 = arith.truncf %141 : vector<256x128xf32> to vector<256x128xbf16>
    %c4_110 = arith.constant 4 : index
    %c0_111 = arith.constant 0 : index
    %c0_112 = arith.constant 0 : index
    %204 = vector.load %arg5[%c4_110, %c0_111, %c0_112] : memref<9x128x128xbf16, #tpu.memory_space<vmem>>, vector<1x128x128xbf16>
    %205 = vector.shape_cast %204 : vector<1x128x128xbf16> to vector<128x128xbf16>
    %cst_113 = arith.constant dense<0.000000e+00> : vector<256x128xf32>
    %206 = tpu.matmul %203, %205, %cst_113 {dimension_numbers = #tpu.dot_dimension_numbers<[1], [0], [0], [1], [0, 0, 1, 1], [], []>} : vector<256x128xbf16>, vector<128x128xbf16>, vector<256x128xf32> -> vector<256x128xf32>
    %207 = arith.addf %202, %206 : vector<256x128xf32>
    %c63_i32_114 = arith.constant 63 : i32
    %208 = tpu.dynamic_rotate %145 by %c63_i32_114 dim 0 : vector<64x128xf32>, i32 -> vector<64x128xf32>
    %209 = vector.broadcast %9 : vector<64x1xf32> to vector<64x128xf32>
    %210 = arith.mulf %208, %209 : vector<64x128xf32>
    %c63_i32_115 = arith.constant 63 : i32
    %211 = tpu.dynamic_rotate %147 by %c63_i32_115 dim 0 : vector<64x128xf32>, i32 -> vector<64x128xf32>
    %212 = vector.broadcast %9 : vector<64x1xf32> to vector<64x128xf32>
    %213 = arith.mulf %211, %212 : vector<64x128xf32>
    %214 = tpu.concatenate %146, %210, %148, %213 in 0 : vector<64x128xf32>, vector<64x128xf32>, vector<64x128xf32>, vector<64x128xf32> -> vector<256x128xf32>
    %215 = arith.truncf %214 : vector<256x128xf32> to vector<256x128xbf16>
    %c5_116 = arith.constant 5 : index
    %c0_117 = arith.constant 0 : index
    %c0_118 = arith.constant 0 : index
    %216 = vector.load %arg5[%c5_116, %c0_117, %c0_118] : memref<9x128x128xbf16, #tpu.memory_space<vmem>>, vector<1x128x128xbf16>
    %217 = vector.shape_cast %216 : vector<1x128x128xbf16> to vector<128x128xbf16>
    %cst_119 = arith.constant dense<0.000000e+00> : vector<256x128xf32>
    %218 = tpu.matmul %215, %217, %cst_119 {dimension_numbers = #tpu.dot_dimension_numbers<[1], [0], [0], [1], [0, 0, 1, 1], [], []>} : vector<256x128xbf16>, vector<128x128xbf16>, vector<256x128xf32> -> vector<256x128xf32>
    %219 = arith.addf %207, %218 : vector<256x128xf32>
    %c1_i32_120 = arith.constant 1 : i32
    %220 = tpu.dynamic_rotate %148 by %c1_i32_120 dim 0 : vector<64x128xf32>, i32 -> vector<64x128xf32>
    %221 = vector.broadcast %7 : vector<64x1xf32> to vector<64x128xf32>
    %222 = arith.mulf %220, %221 : vector<64x128xf32>
    %c57_i32_121 = arith.constant 57 : i32
    %223 = tpu.dynamic_rotate %146 by %c57_i32_121 dim 0 : vector<64x128xf32>, i32 -> vector<64x128xf32>
    %224 = vector.broadcast %11 : vector<64x1xf32> to vector<64x128xf32>
    %225 = arith.mulf %223, %224 : vector<64x128xf32>
    %c56_i32_122 = arith.constant 56 : i32
    %226 = tpu.dynamic_rotate %145 by %c56_i32_122 dim 0 : vector<64x128xf32>, i32 -> vector<64x128xf32>
    %227 = vector.broadcast %13 : vector<64x1xf32> to vector<64x128xf32>
    %228 = arith.mulf %226, %227 : vector<64x128xf32>
    %229 = tpu.concatenate %222, %147, %225, %228 in 0 : vector<64x128xf32>, vector<64x128xf32>, vector<64x128xf32>, vector<64x128xf32> -> vector<256x128xf32>
    %230 = arith.truncf %229 : vector<256x128xf32> to vector<256x128xbf16>
    %c6_123 = arith.constant 6 : index
    %c0_124 = arith.constant 0 : index
    %c0_125 = arith.constant 0 : index
    %231 = vector.load %arg5[%c6_123, %c0_124, %c0_125] : memref<9x128x128xbf16, #tpu.memory_space<vmem>>, vector<1x128x128xbf16>
    %232 = vector.shape_cast %231 : vector<1x128x128xbf16> to vector<128x128xbf16>
    %cst_126 = arith.constant dense<0.000000e+00> : vector<256x128xf32>
    %233 = tpu.matmul %230, %232, %cst_126 {dimension_numbers = #tpu.dot_dimension_numbers<[1], [0], [0], [1], [0, 0, 1, 1], [], []>} : vector<256x128xbf16>, vector<128x128xbf16>, vector<256x128xf32> -> vector<256x128xf32>
    %234 = arith.addf %219, %233 : vector<256x128xf32>
    %c56_i32_127 = arith.constant 56 : i32
    %235 = tpu.dynamic_rotate %145 by %c56_i32_127 dim 0 : vector<64x128xf32>, i32 -> vector<64x128xf32>
    %236 = vector.broadcast %13 : vector<64x1xf32> to vector<64x128xf32>
    %237 = arith.mulf %235, %236 : vector<64x128xf32>
    %c56_i32_128 = arith.constant 56 : i32
    %238 = tpu.dynamic_rotate %146 by %c56_i32_128 dim 0 : vector<64x128xf32>, i32 -> vector<64x128xf32>
    %239 = vector.broadcast %13 : vector<64x1xf32> to vector<64x128xf32>
    %240 = arith.mulf %238, %239 : vector<64x128xf32>
    %241 = tpu.concatenate %147, %148, %237, %240 in 0 : vector<64x128xf32>, vector<64x128xf32>, vector<64x128xf32>, vector<64x128xf32> -> vector<256x128xf32>
    %242 = arith.truncf %241 : vector<256x128xf32> to vector<256x128xbf16>
    %c7_129 = arith.constant 7 : index
    %c0_130 = arith.constant 0 : index
    %c0_131 = arith.constant 0 : index
    %243 = vector.load %arg5[%c7_129, %c0_130, %c0_131] : memref<9x128x128xbf16, #tpu.memory_space<vmem>>, vector<1x128x128xbf16>
    %244 = vector.shape_cast %243 : vector<1x128x128xbf16> to vector<128x128xbf16>
    %cst_132 = arith.constant dense<0.000000e+00> : vector<256x128xf32>
    %245 = tpu.matmul %242, %244, %cst_132 {dimension_numbers = #tpu.dot_dimension_numbers<[1], [0], [0], [1], [0, 0, 1, 1], [], []>} : vector<256x128xbf16>, vector<128x128xbf16>, vector<256x128xf32> -> vector<256x128xf32>
    %246 = arith.addf %234, %245 : vector<256x128xf32>
    %c63_i32_133 = arith.constant 63 : i32
    %247 = tpu.dynamic_rotate %147 by %c63_i32_133 dim 0 : vector<64x128xf32>, i32 -> vector<64x128xf32>
    %248 = vector.broadcast %9 : vector<64x1xf32> to vector<64x128xf32>
    %249 = arith.mulf %247, %248 : vector<64x128xf32>
    %c56_i32_134 = arith.constant 56 : i32
    %250 = tpu.dynamic_rotate %146 by %c56_i32_134 dim 0 : vector<64x128xf32>, i32 -> vector<64x128xf32>
    %251 = vector.broadcast %13 : vector<64x1xf32> to vector<64x128xf32>
    %252 = arith.mulf %250, %251 : vector<64x128xf32>
    %c55_i32_135 = arith.constant 55 : i32
    %253 = tpu.dynamic_rotate %145 by %c55_i32_135 dim 0 : vector<64x128xf32>, i32 -> vector<64x128xf32>
    %254 = vector.broadcast %15 : vector<64x1xf32> to vector<64x128xf32>
    %255 = arith.mulf %253, %254 : vector<64x128xf32>
    %256 = tpu.concatenate %148, %249, %252, %255 in 0 : vector<64x128xf32>, vector<64x128xf32>, vector<64x128xf32>, vector<64x128xf32> -> vector<256x128xf32>
    %257 = arith.truncf %256 : vector<256x128xf32> to vector<256x128xbf16>
    %c8_136 = arith.constant 8 : index
    %c0_137 = arith.constant 0 : index
    %c0_138 = arith.constant 0 : index
    %258 = vector.load %arg5[%c8_136, %c0_137, %c0_138] : memref<9x128x128xbf16, #tpu.memory_space<vmem>>, vector<1x128x128xbf16>
    %259 = vector.shape_cast %258 : vector<1x128x128xbf16> to vector<128x128xbf16>
    %cst_139 = arith.constant dense<0.000000e+00> : vector<256x128xf32>
    %260 = tpu.matmul %257, %259, %cst_139 {dimension_numbers = #tpu.dot_dimension_numbers<[1], [0], [0], [1], [0, 0, 1, 1], [], []>} : vector<256x128xbf16>, vector<128x128xbf16>, vector<256x128xf32> -> vector<256x128xf32>
    %261 = arith.addf %246, %260 : vector<256x128xf32>
    %262 = vector.extract_strided_slice %261 {offsets = [0, 0], sizes = [64, 128], strides = [1, 1]} : vector<256x128xf32> to vector<64x128xf32>
    %263 = vector.extract_strided_slice %261 {offsets = [64, 0], sizes = [64, 128], strides = [1, 1]} : vector<256x128xf32> to vector<64x128xf32>
    %264 = arith.addf %262, %263 : vector<64x128xf32>
    %265 = vector.extract_strided_slice %261 {offsets = [128, 0], sizes = [64, 128], strides = [1, 1]} : vector<256x128xf32> to vector<64x128xf32>
    %266 = arith.addf %264, %265 : vector<64x128xf32>
    %267 = vector.extract_strided_slice %261 {offsets = [192, 0], sizes = [64, 128], strides = [1, 1]} : vector<256x128xf32> to vector<64x128xf32>
    %268 = arith.addf %266, %267 : vector<64x128xf32>
    %c0_140 = arith.constant 0 : index
    %c0_141 = arith.constant 0 : index
    %269 = vector.load %arg7[%c0_140, %c0_141] : memref<1x128xf32, #tpu.memory_space<vmem>>, vector<1x128xf32>
    %270 = vector.broadcast %269 : vector<1x128xf32> to vector<64x128xf32>
    %271 = arith.addf %268, %270 : vector<64x128xf32>
    %272 = arith.truncf %271 : vector<64x128xf32> to vector<64x128xbf16>
    %c0_142 = arith.constant 0 : index
    %c0_143 = arith.constant 0 : index
    %c0_144 = arith.constant 0 : index
    %273 = vector.load %arg8[%c0_142, %c0_143, %c0_144] : memref<1x64x128xbf16, #tpu.memory_space<vmem>>, vector<1x64x128xbf16>
    %274 = vector.shape_cast %273 : vector<1x64x128xbf16> to vector<64x128xbf16>
    %275 = vector.shape_cast %272 : vector<64x128xbf16> to vector<1x64x128xbf16>
    tpu.vector_store %arg8[%c0_142, %c0_143, %c0_144], %275 {strides = array<i32>} : memref<1x64x128xbf16, #tpu.memory_space<vmem>>, vector<1x64x128xbf16>,
    return
  }
  func.func @transform_0(%arg0: i32) -> (i32, i32, i32, i32) {
    %c0_i32 = arith.constant 0 : i32
    %c0_i32_0 = arith.constant 0 : i32
    %c0_i32_1 = arith.constant 0 : i32
    %c0_i32_2 = arith.constant 0 : i32
    return %arg0, %c0_i32, %c0_i32_0, %c0_i32_1 : i32, i32, i32, i32
  }
  func.func @transform_1(%arg0: i32) -> (i32, i32, i32) {
    %c0_i32 = arith.constant 0 : i32
    %c0_i32_0 = arith.constant 0 : i32
    %c0_i32_1 = arith.constant 0 : i32
    %c0_i32_2 = arith.constant 0 : i32
    return %c0_i32, %c0_i32_0, %c0_i32_1 : i32, i32, i32
  }
  func.func @transform_2(%arg0: i32) -> (i32, i32, i32) {
    %c0_i32 = arith.constant 0 : i32
    %c0_i32_0 = arith.constant 0 : i32
    %c0_i32_1 = arith.constant 0 : i32
    %c0_i32_2 = arith.constant 0 : i32
    return %c0_i32, %c0_i32_0, %c0_i32_1 : i32, i32, i32
  }
  func.func @transform_3(%arg0: i32) -> (i32, i32) {
    %c0_i32 = arith.constant 0 : i32
    %c0_i32_0 = arith.constant 0 : i32
    %c0_i32_1 = arith.constant 0 : i32
    return %c0_i32, %c0_i32_0 : i32, i32
  }
  func.func @transform_4(%arg0: i32) -> (i32, i32, i32) {
    %c0_i32 = arith.constant 0 : i32
    %c0_i32_0 = arith.constant 0 : i32
    %c0_i32_1 = arith.constant 0 : i32
    %c0_i32_2 = arith.constant 0 : i32
    return %c0_i32, %c0_i32_0, %c0_i32_1 : i32, i32, i32
  }
  func.func @transform_5(%arg0: i32) -> (i32, i32) {
    %c0_i32 = arith.constant 0 : i32
    %c0_i32_0 = arith.constant 0 : i32
    %c0_i32_1 = arith.constant 0 : i32
    return %c0_i32, %c0_i32_0 : i32, i32
  }
  func.func @transform_6(%arg0: i32) -> (i32, i32) {
    %c0_i32 = arith.constant 0 : i32
    %c0_i32_0 = arith.constant 0 : i32
    %c0_i32_1 = arith.constant 0 : i32
    return %c0_i32, %c0_i32_0 : i32, i32
  }
  func.func @transform_7(%arg0: i32) -> (i32, i32, i32) {
    %c0_i32 = arith.constant 0 : i32
    %c0_i32_0 = arith.constant 0 : i32
    %c0_i32_1 = arith.constant 0 : i32
    return %arg0, %c0_i32, %c0_i32_0 : i32, i32, i32
  }
}

</mosaic_0001>

<bundles_post_ra>
// kernel: optimized_dis_block.1
= control target key start
LH: loop header
LB: loop body
LE: loop exit
PB: predicated region body
PF: predicated region fallthrough
CT: control target
= control target key end

     0   :  { %s7549_s24 = smov 0   ;;  %s11207_s0 = inlined_call_operand.vmem [shape: f32[2,4,64,4], index: 0, kind: input, shape index: {}]   ;;  %s11208_s1 = inlined_call_operand.vmem [shape: f32[9,64,1], index: 1, kind: input, shape index: {}]   ;;  %s11209_s2 = inlined_call_operand.vmem [shape: bf16[9,4,128], index: 2, kind: input, shape index: {}]   ;;  %s11210_s3 = inlined_call_operand.vmem [shape: f32[1,128], index: 3, kind: input, shape index: {}]   ;;  %s11211_s4 = inlined_call_operand.vmem [shape: bf16[9,128,128], index: 4, kind: input, shape index: {}]   ;;  %s11212_s5 = inlined_call_operand.vmem [shape: bf16[4,128], index: 5, kind: input, shape index: {}]   ;;  %s11213_s6 = inlined_call_operand.vmem [shape: f32[1,128], index: 6, kind: input, shape index: {}]   ;;  %s11214_s7 = inlined_call_operand.vmem [shape: bf16[2,64,128], index: 7, kind: output, shape index: {}]  }
   0x1 LB: > { %s5728_s25 = sadd.s32 4294967295, %s7506_s24   ;;  %p5732_p0 = scmp.ge.s32.totalorder %s7506_s24, 1  ;;  %s7506_s24 = sphi %s7549_s24, %s17_s24  }
   0x2   : > { %p237_p1 = scmp.lt.s32.totalorder %s7506_s24, 3 }
   0x4   : > { %p238_p2 = pnand %p5732_p0, %p237_p1 }
   0x6   : > { %241 = sbr.rel (%p238_p2) target bundleno = 1167 (0x48f), region = 48 }
   0xb   : > { %v5739_v0 = vld [vmem:[%s11208_s1 + $0x50] sm:$0xff]  ;;  %v5737_v1 = vld [vmem:[%s11208_s1 + $0x40] sm:$0xff]  ;;  %v7508_v2 = vmov 0   ;;  %v5740_v3 = vld [vmem:[%s11208_s1 + $0x58] sm:$0xff]  ;;  %p269_p3 = scmp.lt.s32.totalorder %s5728_s25, 1  ;;  %vm649_vm0 = vcmask 1041408  }
   0xc   : > { %7411 = vset.pattern.permute.xlu1 %v7508_v2  ;;  %7410 = vset.pattern.permute.xlu0 %v7508_v2  ;;  %v5738_v4 = vld [vmem:[%s11208_s1 + $0x48] sm:$0xff]  ;;  %v5741_v6 = vld [vmem:[%s11208_s1 + $0x60] sm:$0xff]  ;;  %v5744_v7 = vld [vmem:[%s11208_s1 + $0x78] sm:$0xff]  ;;  %vm600_vm1 = vcmask 31744  }
   0xd   : > { %465 = vperm.xlu1 %7411, %v5739_v0   ;;  %455 = vperm.xlu0 %7410, %v5737_v1   ;;  %v5742_v5 = vld [vmem:[%s11208_s1 + $0x68] sm:$0xff]  ;;  %s12018_s25 = smov (!%p269_p3, %s5728_s25), 1  ;;  %v5743_v8 = vld [vmem:[%s11208_s1 + $0x70] sm:$0xff]  ;;  %v280_v10 = vld [vmem:[%s11208_s1] sm:$0xff] }
   0xe   : > { %s6197_s19 = sshll.u32 %s12018_s25, 8  ;;  %v281_v9 = vld [vmem:[%s11208_s1 + $0x8] sm:$0xff]  ;;  %v5817_v11 = vld [vmem:[%s11209_s2 + $0x2] sm:$0x3]  ;;  %v283_v12 = vld [vmem:[%s11208_s1 + $0x18] sm:$0xff]  ;;  %s6198_s14 = sshll.u32 %s12018_s25, 5 }
   0xf   : > { %s7593_s28 = scalar_lea.vmem %s11207_s0, %s6197_s19  ;;  %v282_v13 = vld [vmem:[%s11208_s1 + $0x10] sm:$0xff]  ;;  %7391 = vmatprep.subr.msk.bf16.mxu1 %vm649_vm0, %v5817_v11  ;;  %v651_v14 = vsel %vm649_vm0, %v5817_v11, 0  ;;  %7390 = vmatprep.subr.msk.bf16.mxu0 %vm649_vm0, %v5817_v11  ;;  %v285_v20 = vld [vmem:[%s11208_s1 + $0x28] sm:$0xff]  ;;  %v284_v22 = vld [vmem:[%s11208_s1 + $0x20] sm:$0xff]  ;;  %s278_s17 = scalar_lea.vmem %s11214_s7, %s6198_s14 }
  0x10   : > { %v351_v15 = vld [vmem:[%s7593_s28] sm:$0xff]  ;;  %7389 = vmatpush3.bf16.msra.mxu1 %v651_v14  ;;  %v352_v16 = vld [vmem:[%s7593_s28 + $0x8] sm:$0xff]  ;;  %6617 = vmatpush3.bf16.msra.mxu0 %v651_v14  ;;  %v7612_v18 = vld [vmem:[%s7593_s28 + $0x10] sm:$0xff] }
  0x11   : > { %470 = vperm.xlu1 %7411, %v5740_v3   ;;  %460 = vperm.xlu0 %7410, %v5738_v4   ;;  %v7609_v17 = vpack.c.bf16 %v352_v16, %v351_v15  ;;  %v354_v19 = vld [vmem:[%s7593_s28 + $0x18] sm:$0xff]  ;;  %v355_v23 = vld [vmem:[%s7593_s28 + $0x20] sm:$0xff]  ;;  %v356_v24 = vld [vmem:[%s7593_s28 + $0x28] sm:$0xff] }
  0x12   : > { %v7619_v21 = vpack.c.bf16 %v354_v19, %v7612_v18  ;;  %v7630_v25 = vpack.c.bf16 %v356_v24, %v355_v23  ;;  %v357_v26 = vld [vmem:[%s7593_s28 + $0x30] sm:$0xff]  ;;  %v358_v27 = vld [vmem:[%s7593_s28 + $0x38] sm:$0xff]  ;;  %v581_v28 = vld [vmem:[%s11209_s2] sm:$0x3] }
  0x13   : > { %11403 = vst [vmem:[#allocation2_spill] sm:$0xff] %v7609_v17  ;;  %6634 = vmatprep.mubr.msk.bf16.mxu1 %vm600_vm1, %v7609_v17  ;;  %v287_v29 = vld [vmem:[%s11208_s1 + $0x38] sm:$0xff]  ;;  %v286_v30 = vld [vmem:[%s11208_s1 + $0x30] sm:$0xff]  ;;  %7392 = vmatprep.subr.msk.bf16.mxu1 %vm649_vm0, %v581_v28  ;;  %v839_v31 = vsel %vm649_vm0, %v581_v28, 0  ;;  %v7647_v32 = vpack.c.bf16 %v358_v27, %v357_v26  ;;  %v7650_v33 = vld [vmem:[%s7593_s28 + $0x40] sm:$0xff] }
  0x14   : > { %11404 = vst [vmem:[#allocation3_spill] sm:$0xff] %v7619_v21  ;;  %6635 = vmatmul.mubr.msk.bf16.vlgmr.msra.gmra.mxu1 %vm600_vm1, %v7619_v21  ;;  %11405 = vst [vmem:[#allocation4_spill] sm:$0xff] %v7630_v25  ;;  %v7653_v34 = vld [vmem:[%s7593_s28 + $0x48] sm:$0xff]  ;;  %v7662_v36 = vld [vmem:[%s11209_s2 + $0x4] sm:$0x3] }
  0x15   : > { %480 = vperm.xlu1 %7411, %v5742_v5   ;;  %475 = vperm.xlu0 %7410, %v5741_v6   ;;  %11406 = vst [vmem:[#allocation5_spill] sm:$0xff] %v7647_v32  ;;  %v7657_v35 = vpack.c.bf16 %v7653_v34, %v7650_v33  ;;  %v5746_v37 = vld [vmem:[%s11208_s1 + $0x88] sm:$0xff]  ;;  %v5745_v38 = vld [vmem:[%s11208_s1 + $0x80] sm:$0xff]  ;;  %v7675_v39 = vld [vmem:[%s7593_s28 + $0x50] sm:$0xff] }
  0x16   : > { %6638 = vmatprep.mubr.msk.bf16.mxu1 %vm600_vm1, %v7630_v25  ;;  %6651 = vmatpush3.bf16.msra.mxu1 %v839_v31  ;;  %v7678_v40 = vld [vmem:[%s7593_s28 + $0x58] sm:$0xff]  ;;  %v7686_v42 = vld [vmem:[%s7593_s28 + $0x60] sm:$0xff]  ;;  %v7689_v43 = vld [vmem:[%s7593_s28 + $0x68] sm:$0xff] }
  0x17   : > { %11407 = vst [vmem:[#allocation6_spill] sm:$0xff] %v7657_v35  ;;  %7393 = vmatprep.subr.msk.bf16.mxu0 %vm649_vm0, %v7662_v36  ;;  %v5748_v41 = vld [vmem:[%s11208_s1 + $0x98] sm:$0xff]  ;;  %v5747_v44 = vld [vmem:[%s11208_s1 + $0x90] sm:$0xff]  ;;  %v7696_v45 = vpack.c.bf16 %v7678_v40, %v7675_v39  ;;  %v7701_v46 = vld [vmem:[%s11209_s2 + $0x6] sm:$0x3]  ;;  %v7711_v49 = vpack.c.bf16 %v7689_v43, %v7686_v42 }
  0x18   : > { %v5750_v47 = vld [vmem:[%s11208_s1 + $0xa8] sm:$0xff]  ;;  %v5749_v48 = vld [vmem:[%s11208_s1 + $0xa0] sm:$0xff]  ;;  %7394 = vmatprep.subr.msk.bf16.mxu1 %vm649_vm0, %v7701_v46  ;;  %v7718_v50 = vld [vmem:[%s7593_s28 + $0x70] sm:$0xff] }
  0x19   : > { %490 = vperm.xlu1 %7411, %v5744_v7   ;;  %485 = vperm.xlu0 %7410, %v5743_v8   ;;  %11408 = vst [vmem:[#allocation7_spill] sm:$0xff] %v7696_v45  ;;  %11409 = vst [vmem:[#allocation8_spill] sm:$0xff] %v7711_v49  ;;  %v5752_v51 = vld [vmem:[%s11208_s1 + $0xb8] sm:$0xff]  ;;  %v5751_v52 = vld [vmem:[%s11208_s1 + $0xb0] sm:$0xff] }
  0x1a   : > { %v7729_v53 = vld [vmem:[%s7593_s28 + $0x78] sm:$0xff]  ;;  %v5754_v55 = vld [vmem:[%s11208_s1 + $0xc8] sm:$0xff]  ;;  %v5753_v56 = vld [vmem:[%s11208_s1 + $0xc0] sm:$0xff] }
  0x1b   : > { %v7733_v54 = vpack.c.bf16 %v7729_v53, %v7718_v50  ;;  %v5756_v57 = vld [vmem:[%s11208_s1 + $0xd8] sm:$0xff]  ;;  %v5755_v58 = vld [vmem:[%s11208_s1 + $0xd0] sm:$0xff]  ;;  %v5758_v59 = vld [vmem:[%s11208_s1 + $0xe8] sm:$0xff] }
  0x1c   : > { %6639 = vmatmul.mubr.msk.bf16.gmra.mxu1 %vm600_vm1, %v7647_v32  ;;  %v5757_v60 = vld [vmem:[%s11208_s1 + $0xe0] sm:$0xff]  ;;  %v5760_v61 = vld [vmem:[%s11208_s1 + $0xf8] sm:$0xff]  ;;  %v5759_v62 = vld [vmem:[%s11208_s1 + $0xf0] sm:$0xff] }
  0x1d   : > { %412 = vperm.xlu1 %7411, %v281_v9   ;;  %407 = vperm.xlu0 %7410, %v280_v10   ;;  %11410 = vst [vmem:[#allocation9_spill] sm:$0xff] %v7733_v54  ;;  %v5762_v63 = vld [vmem:[%s11208_s1 + $0x148] sm:$0xff]  ;;  %v5761_v0 = vld [vmem:[%s11208_s1 + $0x140] sm:$0xff]  ;;  %v5764_v1 = vld [vmem:[%s11208_s1 + $0x158] sm:$0xff] }
  0x1e   : > { %6642 = vmatprep.mubr.msk.bf16.mxu1 %vm600_vm1, %v7657_v35  ;;  %v5763_v2 = vld [vmem:[%s11208_s1 + $0x150] sm:$0xff]  ;;  %v5766_v3 = vld [vmem:[%s11208_s1 + $0x168] sm:$0xff]  ;;  %v5765_v4 = vld [vmem:[%s11208_s1 + $0x160] sm:$0xff] }
  0x1f   : > { %v5768_v5 = vld [vmem:[%s11208_s1 + $0x178] sm:$0xff]  ;;  %v5767_v6 = vld [vmem:[%s11208_s1 + $0x170] sm:$0xff]  ;;  %v5770_v7 = vld [vmem:[%s11208_s1 + $0x188] sm:$0xff] }
  0x20   : > { %v5769_v8 = vld [vmem:[%s11208_s1 + $0x180] sm:$0xff]  ;;  %v5772_v9 = vld [vmem:[%s11208_s1 + $0x198] sm:$0xff]  ;;  %v5771_v10 = vld [vmem:[%s11208_s1 + $0x190] sm:$0xff] }
  0x21   : > { %422 = vperm.xlu1 %7411, %v283_v12   ;;  %417 = vperm.xlu0 %7410, %v282_v13   ;;  %v5774_v11 = vld [vmem:[%s11208_s1 + $0x1a8] sm:$0xff]  ;;  %v5773_v12 = vld [vmem:[%s11208_s1 + $0x1a0] sm:$0xff]  ;;  %v5776_v13 = vld [vmem:[%s11208_s1 + $0x1b8] sm:$0xff] }
  0x22   : > { %v5775_v14 = vld [vmem:[%s11208_s1 + $0x1b0] sm:$0xff]  ;;  %v5778_v15 = vld [vmem:[%s11208_s1 + $0x1c8] sm:$0xff]  ;;  %v5777_v16 = vld [vmem:[%s11208_s1 + $0x1c0] sm:$0xff] }
  0x23   : > { %v5780_v19 = vld [vmem:[%s11208_s1 + $0x1d8] sm:$0xff]  ;;  %v5781_v23 = vld [vmem:[%s11208_s1 + $0x1e0] sm:$0xff]  ;;  %v5783_v26 = vld [vmem:[%s11208_s1 + $0x1f0] sm:$0xff] }
  0x24   : > { %6643 = vmatmul.mubr.msk.bf16.gmra.mxu1 %vm600_vm1, %v7696_v45  ;;  %v5784_v24 = vld [vmem:[%s11208_s1 + $0x1f8] sm:$0xff]  ;;  %v5786_v27 = vld [vmem:[%s11208_s1 + $0x208] sm:$0xff]  ;;  %v5785_v28 = vld [vmem:[%s11208_s1 + $0x200] sm:$0xff] }
  0x25   : > { %432 = vperm.xlu1 %7411, %v285_v20   ;;  %427 = vperm.xlu0 %7410, %v284_v22   ;;  %v5779_v20 = vld [vmem:[%s11208_s1 + $0x1d0] sm:$0xff]  ;;  %v5782_v22 = vld [vmem:[%s11208_s1 + $0x1e8] sm:$0xff] }
  0x26   : > { %6646 = vmatprep.mubr.msk.bf16.mxu1 %vm600_vm1, %v7711_v49  ;;  %v5790_v31 = vld [vmem:[%s11208_s1 + $0x228] sm:$0xff] }
  0x29   : > { %442 = vperm.xlu1 %7411, %v287_v29   ;;  %437 = vperm.xlu0 %7410, %v286_v30   ;;  %v5788_v29 = vld [vmem:[%s11208_s1 + $0x218] sm:$0xff]  ;;  %v5787_v30 = vld [vmem:[%s11208_s1 + $0x210] sm:$0xff] }
  0x2c   : > { %6647 = vmatmul.mubr.msk.bf16.gmra.mxu1 %vm600_vm1, %v7733_v54 }
  0x2d   : > { %1026 = vperm.xlu1 %7411, %v5746_v37   ;;  %1021 = vperm.xlu0 %7410, %v5745_v38   ;;  %v5789_v37 = vld [vmem:[%s11208_s1 + $0x220] sm:$0xff]  ;;  %v5792_v38 = vld [vmem:[%s11208_s1 + $0x238] sm:$0xff] }
  0x31   : > { %1036 = vperm.xlu1 %7411, %v5748_v41   ;;  %1031 = vperm.xlu0 %7410, %v5747_v44   ;;  %v5791_v41 = vld [vmem:[%s11208_s1 + $0x230] sm:$0xff] }
  0x35   : > { %1046 = vperm.xlu1 %7411, %v5750_v47   ;;  %1041 = vperm.xlu0 %7410, %v5749_v48   ;;  %v7862_v48 = vld [vmem:[%s7593_s28 + $0x88] sm:$0xff] }
  0x39   : > { %1056 = vperm.xlu1 %7411, %v5752_v51   ;;  %1051 = vperm.xlu0 %7410, %v5751_v52   ;;  %v7865_v51 = vld [vmem:[%s7593_s28 + $0x90] sm:$0xff]  ;;  %v7868_v52 = vld [vmem:[%s7593_s28 + $0x80] sm:$0xff] }
  0x3d   : > { %524 = vperm.xlu1 %7411, %v5754_v55   ;;  %519 = vperm.xlu0 %7410, %v5753_v56   ;;  %v7871_v55 = vld [vmem:[%s7593_s28 + $0xb8] sm:$0xff]  ;;  %v394_v56 = vlaneseq }
  0x41   : > { %534 = vperm.xlu1 %7411, %v5756_v57   ;;  %529 = vperm.xlu0 %7410, %v5755_v58  }
  0x45   : > { %544 = vperm.xlu1 %7411, %v5758_v59   ;;  %539 = vperm.xlu0 %7410, %v5757_v60  }
  0x49   : > { %554 = vperm.xlu1 %7411, %v5760_v61   ;;  %549 = vperm.xlu0 %7410, %v5759_v62  }
  0x4d   : > { %1090 = vperm.xlu1 %7411, %v5762_v63   ;;  %1085 = vperm.xlu0 %7410, %v5761_v0   ;;  %v7886_v63 = vld [vmem:[%s7593_s28 + $0xa0] sm:$0xff]  ;;  %v7889_v0 = vld [vmem:[%s7593_s28 + $0x98] sm:$0xff] }
  0x51   : > { %1100 = vperm.xlu1 %7411, %v5764_v1   ;;  %1095 = vperm.xlu0 %7410, %v5763_v2  }
  0x55   : > { %1110 = vperm.xlu1 %7411, %v5766_v3   ;;  %1105 = vperm.xlu0 %7410, %v5765_v4   ;;  %v7896_v3 = vld [vmem:[%s7593_s28 + $0xf0] sm:$0xff]  ;;  %v7898_v4 = vshrl.u32 %v394_v56, 7 }
  0x56   : > { %11415 = vst [vmem:[#allocation14_spill] sm:$0xff] %v7896_v3 }
  0x57   : > { %11416 = vst [vmem:[#allocation15_spill] sm:$0xff] %v7898_v4  ;;  %vm396_vm2 = vcmp.lt.s32.totalorder %v7898_v4, 1  ;;  %vm1010_vm3 = vcmp.lt.s32.totalorder %v7898_v4, 7 }
  0x59   : > { %1120 = vperm.xlu1 %7411, %v5768_v5   ;;  %1115 = vperm.xlu0 %7410, %v5767_v6  }
  0x5d   : > { %2042 = vperm.xlu1 %7411, %v5770_v7   ;;  %2037 = vperm.xlu0 %7410, %v5769_v8   ;;  %v1166_v7 = vsel %vm649_vm0, %v7662_v36, 0  ;;  %v7907_v8 = vld [vmem:[%s7593_s28 + $0xf8] sm:$0xff]  ;;  %v7924_v36 = vld [vmem:[%s7593_s28 + $0xb0] sm:$0xff] }
  0x5e   : > { %11419 = vst [vmem:[#allocation18_spill] sm:$0xff] %v7907_v8 }
  0x61   : > { %2052 = vperm.xlu1 %7411, %v5772_v9   ;;  %2047 = vperm.xlu0 %7410, %v5771_v10   ;;  %v7910_v9 = vld [vmem:[%s7593_s28 + $0xc0] sm:$0xff] }
  0x62   : > { %11420 = vst [vmem:[#allocation19_spill] sm:$0xff] %v7910_v9 }
  0x65   : > { %2062 = vperm.xlu1 %7411, %v5774_v11   ;;  %2057 = vperm.xlu0 %7410, %v5773_v12   ;;  %v7921_v12 = vld [vmem:[%s11209_s2 + $0x8] sm:$0x3] }
  0x69   : > { %2072 = vperm.xlu1 %7411, %v5776_v13   ;;  %2067 = vperm.xlu0 %7410, %v5775_v14   ;;  %v7929_v13 = vld [vmem:[%s7593_s28 + $0xa8] sm:$0xff]  ;;  %v386_v14 = vrot.slane %v7910_v9, 7 }
  0x6d   : > { %2090 = vperm.xlu1 %7411, %v5778_v15   ;;  %2085 = vperm.xlu0 %7410, %v5777_v16   ;;  %v393_v15 = vrot.slane %v7907_v8, 7  ;;  %v392_v16 = vrot.slane %v7896_v3, 7 }
  0x71   : > { %2100 = vperm.xlu1 %7411, %v5780_v19   ;;  %2095 = vperm.xlu0 %7410, %v5779_v20  }
  0x75   : > { %2110 = vperm.xlu1 %7411, %v5782_v22   ;;  %2105 = vperm.xlu0 %7410, %v5781_v23   ;;  %v7944_v23 = vld [vmem:[%s7593_s28 + $0xc8] sm:$0xff] }
  0x76   : > { %11423 = vst [vmem:[#allocation22_spill] sm:$0xff] %v7944_v23 }
  0x79   : > { %2120 = vperm.xlu1 %7411, %v5784_v24   ;;  %2115 = vperm.xlu0 %7410, %v5783_v26   ;;  %v7947_v24 = vld [vmem:[%s7593_s28 + $0xd0] sm:$0xff] }
  0x7a   : > { %11424 = vst [vmem:[#allocation23_spill] sm:$0xff] %v7947_v24 }
  0x7d   : > { %2590 = vperm.xlu1 %7411, %v5786_v27   ;;  %2585 = vperm.xlu0 %7410, %v5785_v28  }
  0x81   : > { %2600 = vperm.xlu1 %7411, %v5788_v29   ;;  %2595 = vperm.xlu0 %7410, %v5787_v30   ;;  %v7959_v29 = vsel %vm396_vm2, %v393_v15, %v386_v14  ;;  %v7963_v30 = vsel %vm396_vm2, %v392_v16, %v393_v15 }
  0x85   : > { %2610 = vperm.xlu1 %7411, %v5790_v31   ;;  %2605 = vperm.xlu0 %7410, %v5789_v37   ;;  %v387_v31 = vrot.slane %v7944_v23, 7  ;;  %v388_v37 = vrot.slane %v7947_v24, 7 }
  0x87   : > { %v7993_v15 = vsel %vm396_vm2, %v386_v14, %v387_v31 }
  0x88   : > { %v7857_v44 = vpop.permute.xlu1 %465  ;;  %v7859_v47 = vpop.permute.xlu0 %455 }
  0x89   : > { %11411 = vst [vmem:[#allocation10_spill] sm:$0xff] %v7857_v44  ;;  %11412 = vst [vmem:[#allocation11_spill] sm:$0xff] %v7859_v47  ;;  %2620 = vperm.xlu1 %7411, %v5792_v38   ;;  %2615 = vperm.xlu0 %7410, %v5791_v41   ;;  %v495_v59 = vmul.f32 %v7862_v48, %v7857_v44  ;;  %v493_v61 = vmul.f32 %v7871_v55, %v7859_v47 }
  0x8a   : > { %v582_v38 = vmul.f32 %v7907_v8, %v7859_v47 }
  0x8c   : > { %v7873_v57 = vpop.permute.xlu1 %470  ;;  %v7875_v58 = vpop.permute.xlu0 %460 }
  0x8d   : > { %11413 = vst [vmem:[#allocation12_spill] sm:$0xff] %v7873_v57  ;;  %11414 = vst [vmem:[#allocation13_spill] sm:$0xff] %v7875_v58  ;;  %v496_v60 = vmul.f32 %v7865_v51, %v7873_v57  ;;  %v494_v62 = vmul.f32 %v7868_v52, %v7875_v58  ;;  %v583_v26 = vmul.f32 %v7910_v9, %v7875_v58 }
  0x8e   : > { %v584_v58 = vmul.f32 %v7944_v23, %v7857_v44  ;;  %v8036_v44 = vld [vmem:[%s11209_s2 + $0xa] sm:$0x3] }
  0x8f   : > { %v7891_v1 = vpack.c.bf16 %v494_v62, %v493_v61  ;;  %v7893_v2 = vpack.c.bf16 %v496_v60, %v495_v59  ;;  %v7976_v60 = vld [vmem:[%s7593_s28 + $0xe0] sm:$0xff]  ;;  %v7979_v61 = vld [vmem:[%s7593_s28 + $0xd8] sm:$0xff] }
  0x90   : > { %v7900_v5 = vpop.permute.xlu1 %480  ;;  %v7902_v6 = vpop.permute.xlu0 %475  ;;  %11427 = vst [vmem:[#allocation26_spill] sm:$0xff] %v7976_v60  ;;  %11428 = vst [vmem:[#allocation27_spill] sm:$0xff] %v7979_v61 }
  0x91   : > { %11417 = vst [vmem:[#allocation16_spill] sm:$0xff] %v7900_v5  ;;  %11418 = vst [vmem:[#allocation17_spill] sm:$0xff] %v7902_v6  ;;  %v498_v10 = vmul.f32 %v7886_v63, %v7900_v5  ;;  %v497_v11 = vmul.f32 %v7889_v0, %v7902_v6  ;;  %6618 = vmatprep.mubr.msk.bf16.mxu0 %vm600_vm1, %v7891_v1  ;;  %v587_v47 = vmul.f32 %v7976_v60, %v7900_v5 }
  0x92   : > { %6619 = vmatmul.mubr.msk.bf16.vlgmr.msra.gmra.mxu0 %vm600_vm1, %v7893_v2  ;;  %v586_v14 = vmul.f32 %v7979_v61, %v7902_v6 }
  0x93   : > { %6685 = vmatpush3.bf16.msra.mxu0 %v1166_v7  ;;  %v7934_v19 = vpack.c.bf16 %v498_v10, %v497_v11  ;;  %v590_v10 = vpack.c.bf16 %v583_v26, %v582_v38  ;;  %v7989_v11 = vsel %vm396_vm2, %v387_v31, %v388_v37  ;;  %v585_v26 = vmul.f32 %v7947_v24, %v7873_v57  ;;  %v8009_v31 = vld [vmem:[%s7593_s28 + $0xe8] sm:$0xff] }
  0x94   : > { %v7937_v20 = vpop.permute.xlu1 %490  ;;  %v7939_v22 = vpop.permute.xlu0 %485  ;;  %7395 = vmatprep.subr.msk.bf16.mxu0 %vm649_vm0, %v7921_v12  ;;  %11431 = vst [vmem:[#allocation30_spill] sm:$0xff] %v8009_v31  ;;  %v391_v6 = vrot.slane %v8009_v31, 7 }
  0x95   : > { %11421 = vst [vmem:[#allocation20_spill] sm:$0xff] %v7937_v20  ;;  %11422 = vst [vmem:[#allocation21_spill] sm:$0xff] %v7939_v22  ;;  %v500_v27 = vmul.f32 %v7924_v36, %v7937_v20  ;;  %v499_v28 = vmul.f32 %v7929_v13, %v7939_v22  ;;  %6622 = vmatprep.mubr.msk.bf16.mxu0 %vm600_vm1, %v7934_v19 }
  0x97   : > { %v7969_v41 = vpack.c.bf16 %v500_v27, %v499_v28  ;;  %v389_v27 = vrot.slane %v7979_v61, 7  ;;  %v390_v28 = vrot.slane %v7976_v60, 7  ;;  %v591_v60 = vpack.c.bf16 %v585_v26, %v584_v58 }
  0x98   : > { %v7971_v56 = vpop.permute.xlu1 %412  ;;  %v7973_v59 = vpop.permute.xlu0 %407 }
  0x99   : > { %11425 = vst [vmem:[#allocation24_spill] sm:$0xff] %v7971_v56  ;;  %11426 = vst [vmem:[#allocation25_spill] sm:$0xff] %v7973_v59  ;;  %v446_v62 = vmul.f32 %v7971_v56, %v7959_v29  ;;  %v445_v7 = vmul.f32 %v7973_v59, %v7963_v30  ;;  %v8020_v57 = vsel %vm396_vm2, %v389_v27, %v390_v28 }
  0x9a   : > { %6623 = vmatmul.mubr.msk.bf16.gmra.mxu0 %vm600_vm1, %v7969_v41  ;;  %v8024_v5 = vsel %vm396_vm2, %v388_v37, %v389_v27  ;;  %v8050_v58 = vsel %vm396_vm2, %v390_v28, %v391_v6 }
  0x9b   : > { %v565_v56 = vpack.c.bf16 %v446_v62, %v445_v7  ;;  %6626 = vmatprep.mubr.msk.bf16.mxu0 %vm600_vm1, %v590_v10 }
  0x9c   : > { %v8000_v38 = vpop.permute.xlu1 %422  ;;  %v8002_v59 = vpop.permute.xlu0 %417 }
  0x9d   : > { %11429 = vst [vmem:[#allocation28_spill] sm:$0xff] %v8000_v38  ;;  %11430 = vst [vmem:[#allocation29_spill] sm:$0xff] %v8002_v59  ;;  %v448_v62 = vmul.f32 %v8000_v38, %v7989_v11  ;;  %v447_v7 = vmul.f32 %v8002_v59, %v7993_v15  ;;  %6652 = vmatprep.mubr.msk.bf16.mxu1 %vm600_vm1, %v565_v56  ;;  %v1404_v38 = vsel %vm649_vm0, %v7701_v46, 0 }
  0x9e   : > { %v8046_v46 = vsel %vm396_vm2, %v391_v6, %v392_v16 }
  0x9f   : > { %v566_v8 = vpack.c.bf16 %v448_v62, %v447_v7  ;;  %v592_v62 = vpack.c.bf16 %v587_v47, %v586_v14  ;;  %v589_v47 = vmul.f32 %v7896_v3, %v7937_v20  ;;  %v504_v20 = vrot.slane %v7678_v40, 7 }
  0xa0   : > { %v8029_v59 = vpop.permute.xlu1 %432  ;;  %v8031_v56 = vpop.permute.xlu0 %427 }
  0xa1   : > { %11432 = vst [vmem:[#allocation31_spill] sm:$0xff] %v8029_v59  ;;  %11433 = vst [vmem:[#allocation32_spill] sm:$0xff] %v8031_v56  ;;  %v450_v37 = vmul.f32 %v8029_v59, %v8020_v57  ;;  %v449_v27 = vmul.f32 %v8031_v56, %v8024_v5  ;;  %6653 = vmatmul.mubr.msk.bf16.vlgmr.msra.gmra.mxu1 %vm600_vm1, %v566_v8  ;;  %v588_v8 = vmul.f32 %v8009_v31, %v7939_v22  ;;  %v8106_v56 = vld [vmem:[%s11209_s2 + $0xc] sm:$0x3] }
  0xa2   : > { %6627 = vmatmul.mubr.msk.bf16.gmra.mxu0 %vm600_vm1, %v591_v60  ;;  %6719 = vmatpush3.bf16.msra.mxu1 %v1404_v38  ;;  %v502_v59 = vrot.slane %v7653_v34, 7 }
  0xa3   : > { %v567_v26 = vpack.c.bf16 %v450_v37, %v449_v27  ;;  %6630 = vmatprep.mubr.msk.bf16.mxu0 %vm600_vm1, %v592_v62  ;;  %7396 = vmatprep.subr.msk.bf16.mxu1 %vm649_vm0, %v8036_v44  ;;  %v593_v27 = vpack.c.bf16 %v589_v47, %v588_v8 }
  0xa4   : > { %v8059_v14 = vpop.permute.xlu1 %442  ;;  %v8061_v16 = vpop.permute.xlu0 %437 }
  0xa5   : > { %11434 = vst [vmem:[#allocation33_spill] sm:$0xff] %v8059_v14  ;;  %11435 = vst [vmem:[#allocation34_spill] sm:$0xff] %v8061_v16  ;;  %v452_v6 = vmul.f32 %v8059_v14, %v8046_v46  ;;  %v451_v28 = vmul.f32 %v8061_v16, %v8050_v58  ;;  %6656 = vmatprep.mubr.msk.bf16.mxu1 %vm600_vm1, %v567_v26  ;;  %v1002_v26 = vrot.slane %v7868_v52, 1 }
  0xa7   : > { %v568_v38 = vpack.c.bf16 %v452_v6, %v451_v28  ;;  %v1003_v6 = vrot.slane %v7862_v48, 1  ;;  %v11237_v28 = vrot.slane %v7871_v55, 1 }
  0xa8   : > { %v8068_v7 = vpop.permute.xlu1 %1026  ;;  %v8070_v37 = vpop.permute.xlu0 %1021 }
  0xa9   : > { %11436 = vst [vmem:[#allocation35_spill] sm:$0xff] %v8068_v7  ;;  %11437 = vst [vmem:[#allocation36_spill] sm:$0xff] %v8070_v37  ;;  %6657 = vmatmul.mubr.msk.bf16.gmra.mxu1 %vm600_vm1, %v568_v38  ;;  %v8099_v38 = vsel %vm1010_vm3, %v11237_v28, %v1002_v26  ;;  %v1004_v28 = vrot.slane %v7865_v51, 1 }
  0xaa   : > { %6631 = vmatmul.mubr.msk.bf16.gmra.mxu0 %vm600_vm1, %v593_v27  ;;  %6660 = vmatprep.mubr.msk.bf16.mxu1 %vm600_vm1, %v7891_v1  ;;  %v1618_v1 = vsel %vm649_vm0, %v7921_v12, 0  ;;  %v501_v12 = vrot.slane %v7650_v33, 7  ;;  %v1007_v33 = vrot.slane %v7929_v13, 1 }
  0xab   : > { %6686 = vmatprep.mubr.msk.bf16.mxu0 %vm600_vm1, %v590_v10  ;;  %v8093_v10 = vsel %vm1010_vm3, %v1002_v26, %v1003_v6  ;;  %v8147_v61 = vsel %vm1010_vm3, %v1003_v6, %v1004_v28 }
  0xac   : > { %v8077_v14 = vpop.permute.xlu1 %1036  ;;  %v8079_v16 = vpop.permute.xlu0 %1031  ;;  %v1060_v22 = vmul.f32 %v8068_v7, %v8093_v10  ;;  %v503_v7 = vrot.slane %v7675_v39, 7 }
  0xad   : > { %11438 = vst [vmem:[#allocation37_spill] sm:$0xff] %v8077_v14  ;;  %11439 = vst [vmem:[#allocation38_spill] sm:$0xff] %v8079_v16 }
  0xb0   : > { %v8085_v47 = vpop.permute.xlu1 %1046  ;;  %v8087_v8 = vpop.permute.xlu0 %1041 }
  0xb1   : > { %11440 = vst [vmem:[#allocation39_spill] sm:$0xff] %v8085_v47  ;;  %11441 = vst [vmem:[#allocation40_spill] sm:$0xff] %v8087_v8  ;;  %6661 = vmatmul.mubr.msk.bf16.gmra.mxu1 %vm600_vm1, %v7893_v2  ;;  %v1005_v2 = vrot.slane %v7889_v0, 1 }
  0xb2   : > { %6664 = vmatprep.mubr.msk.bf16.mxu1 %vm600_vm1, %v7934_v19  ;;  %6687 = vmatmul.mubr.msk.bf16.vlgmr.msra.gmra.mxu0 %vm600_vm1, %v591_v60  ;;  %v1059_v19 = vmul.f32 %v8070_v37, %v8099_v38  ;;  %v1006_v60 = vrot.slane %v7886_v63, 1 }
  0xb3   : > { %6753 = vmatpush3.bf16.msra.mxu0 %v1618_v1  ;;  %6690 = vmatprep.mubr.msk.bf16.mxu0 %vm600_vm1, %v592_v62  ;;  %v8131_v62 = vsel %vm396_vm2, %v501_v12, %v502_v59  ;;  %v11444_v1 = vrot.slane %v7729_v53, 7  ;;  %v8143_v3 = vsel %vm1010_vm3, %v1004_v28, %v1005_v2 }
  0xb4   : > { %v8123_v34 = vpop.permute.xlu1 %1056  ;;  %v8125_v26 = vpop.permute.xlu0 %1051  ;;  %7397 = vmatprep.subr.msk.bf16.mxu0 %vm649_vm0, %v8106_v56  ;;  %v1131_v31 = vpack.c.bf16 %v1060_v22, %v1059_v19  ;;  %v8151_v24 = vsel %vm1010_vm3, %v1006_v60, %v1007_v33  ;;  %v8178_v19 = vsel %vm396_vm2, %v502_v59, %v503_v7 }
  0xb5   : > { %11442 = vst [vmem:[#allocation41_spill] sm:$0xff] %v8123_v34  ;;  %11443 = vst [vmem:[#allocation42_spill] sm:$0xff] %v8125_v26  ;;  %v8137_v37 = vsel %vm396_vm2, %v11444_v1, %v501_v12  ;;  %v8155_v12 = vsel %vm1010_vm3, %v1005_v2, %v1006_v60  ;;  %v8174_v2 = vsel %vm396_vm2, %v503_v7, %v504_v20  ;;  %v506_v60 = vrot.slane %v7689_v43, 7 }
  0xb6   : > { %v1064_v59 = vmul.f32 %v8085_v47, %v8151_v24 }
  0xb8   : > { %v8157_v39 = vpop.permute.xlu1 %524  ;;  %v8159_v40 = vpop.permute.xlu0 %519 }
  0xb9   : > { %11445 = vst [vmem:[#allocation43_spill] sm:$0xff] %v8157_v39  ;;  %11446 = vst [vmem:[#allocation44_spill] sm:$0xff] %v8159_v40  ;;  %v558_v1 = vmul.f32 %v8157_v39, %v8131_v62  ;;  %v1362_v22 = vmul.f32 %v8157_v39, %v7993_v15  ;;  %v557_v6 = vmul.f32 %v8159_v40, %v8137_v37  ;;  %6665 = vmatmul.mubr.msk.bf16.gmra.mxu1 %vm600_vm1, %v7969_v41 }
  0xba   : > { %v1361_v28 = vmul.f32 %v8159_v40, %v7959_v29  ;;  %6691 = vmatmul.mubr.msk.bf16.gmra.mxu0 %vm600_vm1, %v593_v27  ;;  %v505_v15 = vrot.slane %v7686_v42, 7  ;;  %v1008_v39 = vrot.slane %v7924_v36, 1  ;;  %v1062_v27 = vmul.f32 %v8077_v14, %v8143_v3 }
  0xbb   : > { %6694 = vmatprep.mubr.msk.bf16.mxu0 %vm600_vm1, %v1131_v31  ;;  %v8184_v29 = vpack.c.bf16 %v558_v1, %v557_v6  ;;  %v1061_v40 = vmul.f32 %v8079_v16, %v8147_v61  ;;  %v1063_v42 = vmul.f32 %v8087_v8, %v8155_v12  ;;  %v507_v8 = vrot.slane %v7718_v50, 7 }
  0xbc   : > { %v8186_v41 = vpack.c.bf16 %v1362_v22, %v1361_v28  ;;  %v8196_v43 = vpop.permute.xlu1 %534  ;;  %v8198_v7 = vpop.permute.xlu0 %529  ;;  %v8212_v28 = vsel %vm396_vm2, %v505_v15, %v506_v60  ;;  %v8216_v47 = vsel %vm396_vm2, %v504_v20, %v505_v15  ;;  %v1012_v23 = vsel %vm1010_vm3, %v1007_v33, %v1008_v39 }
  0xbd   : > { %11447 = vst [vmem:[#allocation45_spill] sm:$0xff] %v8196_v43  ;;  %11448 = vst [vmem:[#allocation46_spill] sm:$0xff] %v8198_v7  ;;  %v560_v31 = vmul.f32 %v8196_v43, %v8174_v2  ;;  %v1364_v1 = vmul.f32 %v8196_v43, %v8024_v5  ;;  %v559_v22 = vmul.f32 %v8198_v7, %v8178_v19  ;;  %6668 = vmatprep.mubr.msk.bf16.mxu1 %vm600_vm1, %v8184_v29 }
  0xbe   : > { %v1363_v6 = vmul.f32 %v8198_v7, %v7989_v11  ;;  %v1132_v16 = vpack.c.bf16 %v1062_v27, %v1061_v40  ;;  %v1133_v43 = vpack.c.bf16 %v1064_v59, %v1063_v42  ;;  %v11449_v11 = vrot.slane %v7871_v55, 1 }
  0xbf   : > { %v8219_v5 = vpack.c.bf16 %v560_v31, %v559_v22  ;;  %v11452_v33 = vrot.slane %v7729_v53, 7 }
  0xc0   : > { %v8221_v14 = vpack.c.bf16 %v1364_v1, %v1363_v6  ;;  %v8227_v7 = vsel %vm1010_vm3, %v1008_v39, %v11449_v11  ;;  %v8231_v9 = vpop.permute.xlu1 %544  ;;  %v8233_v20 = vpop.permute.xlu0 %539 }
  0xc1   : > { %11450 = vst [vmem:[#allocation47_spill] sm:$0xff] %v8231_v9  ;;  %11451 = vst [vmem:[#allocation48_spill] sm:$0xff] %v8233_v20  ;;  %v562_v50 = vmul.f32 %v8231_v9, %v8212_v28  ;;  %v1366_v40 = vmul.f32 %v8231_v9, %v8050_v58  ;;  %v561_v15 = vmul.f32 %v8233_v20, %v8216_v47  ;;  %6669 = vmatmul.mubr.msk.bf16.gmra.mxu1 %vm600_vm1, %v8219_v5  ;;  %v8364_v9 = vld [vmem:[%s7593_s28 + $0x28] sm:$0xff] }
  0xc2   : > { %v1365_v27 = vmul.f32 %v8233_v20, %v8020_v57  ;;  %6695 = vmatmul.mubr.msk.bf16.gmra.mxu0 %vm600_vm1, %v1132_v16  ;;  %v8250_v39 = vsel %vm396_vm2, %v507_v8, %v11452_v33  ;;  %v8254_v58 = vsel %vm396_vm2, %v506_v60, %v507_v8  ;;  %v1066_v42 = vmul.f32 %v8123_v34, %v8227_v7 }
  0xc3   : > { %6698 = vmatprep.mubr.msk.bf16.mxu0 %vm600_vm1, %v1133_v43  ;;  %v8257_v59 = vpack.c.bf16 %v562_v50, %v561_v15  ;;  %v1065_v16 = vmul.f32 %v8125_v26, %v1012_v23  ;;  %11466 = vst [vmem:[#allocation62_spill] sm:$0xff] %v8364_v9  ;;  %v1072_v20 = vrot.slane %v8364_v9, 1 }
  0xc4   : > { %v8259_v57 = vpack.c.bf16 %v1366_v40, %v1365_v27  ;;  %v8264_v53 = vpop.permute.xlu1 %554  ;;  %v8266_v31 = vpop.permute.xlu0 %549 }
  0xc5   : > { %11453 = vst [vmem:[#allocation49_spill] sm:$0xff] %v8264_v53  ;;  %11454 = vst [vmem:[#allocation50_spill] sm:$0xff] %v8266_v31  ;;  %v564_v1 = vmul.f32 %v8264_v53, %v8250_v39  ;;  %v1368_v8 = vmul.f32 %v8264_v53, %v7963_v30  ;;  %v563_v60 = vmul.f32 %v8266_v31, %v8254_v58  ;;  %6672 = vmatprep.mubr.msk.bf16.mxu1 %vm600_vm1, %v8257_v59 }
  0xc6   : > { %v1367_v43 = vmul.f32 %v8266_v31, %v8046_v46  ;;  %v1134_v11 = vpack.c.bf16 %v1066_v42, %v1065_v16  ;;  %v8308_v42 = vld [vmem:[%s7593_s28 + $0x8] sm:$0xff] }
  0xc7   : > { %v8278_v22 = vpack.c.bf16 %v564_v1, %v563_v60  ;;  %v1068_v16 = vrot.slane %v8308_v42, 1  ;;  %v1069_v1 = vrot.slane %v7612_v18, 1 }
  0xc8   : > { %v8280_v6 = vpack.c.bf16 %v1368_v8, %v1367_v43  ;;  %v8282_v50 = vpop.permute.xlu1 %1090  ;;  %v8284_v40 = vpop.permute.xlu0 %1085  ;;  %v8313_v8 = vld [vmem:[%s7593_s28] sm:$0xff] }
  0xc9   : > { %11455 = vst [vmem:[#allocation51_spill] sm:$0xff] %v8282_v50  ;;  %11456 = vst [vmem:[#allocation52_spill] sm:$0xff] %v8284_v40  ;;  %v1814_v30 = vmul.f32 %v8282_v50, %v8147_v61  ;;  %v1813_v46 = vmul.f32 %v8284_v40, %v8093_v10  ;;  %6673 = vmatmul.mubr.msk.bf16.gmra.mxu1 %vm600_vm1, %v8278_v22  ;;  %v1067_v60 = vrot.slane %v8313_v8, 1 }
  0xca   : > { %6699 = vmatmul.mubr.msk.bf16.gmra.mxu0 %vm600_vm1, %v1134_v11  ;;  %6676 = vmatprep.mubr.msk.bf16.mxu1 %vm600_vm1, %v7609_v17  ;;  %11459 = vst [vmem:[#allocation55_spill] sm:$0xff] %v8313_v8  ;;  %v8329_v18 = vsel %vm1010_vm3, %v1068_v16, %v1069_v1  ;;  %v8368_v8 = vld [vmem:[%s7593_s28 + $0x30] sm:$0xff] }
  0xcb   : > { %6702 = vmatprep.mubr.msk.bf16.mxu0 %vm600_vm1, %v7657_v35  ;;  %v8297_v15 = vpack.c.bf16 %v1814_v30, %v1813_v46  ;;  %v8333_v46 = vsel %vm1010_vm3, %v1067_v60, %v1068_v16  ;;  %v1124_v34 = vmul.f32 %v8282_v50, %v8329_v18  ;;  %11467 = vst [vmem:[#allocation63_spill] sm:$0xff] %v8368_v8 }
  0xcc   : > { %v8299_v27 = vpop.permute.xlu1 %1100  ;;  %v8301_v33 = vpop.permute.xlu0 %1095  ;;  %v1123_v26 = vmul.f32 %v8284_v40, %v8333_v46 }
  0xcd   : > { %11457 = vst [vmem:[#allocation53_spill] sm:$0xff] %v8299_v27  ;;  %11458 = vst [vmem:[#allocation54_spill] sm:$0xff] %v8301_v33  ;;  %v1816_v61 = vmul.f32 %v8299_v27, %v8155_v12  ;;  %v1815_v10 = vmul.f32 %v8301_v33, %v8143_v3 }
  0xcf   : > { %v8316_v43 = vpack.c.bf16 %v1816_v61, %v1815_v10  ;;  %v8348_v10 = vld [vmem:[%s7593_s28 + $0x20] sm:$0xff] }
  0xd0   : > { %v8318_v11 = vpop.permute.xlu1 %1110  ;;  %v8320_v12 = vpop.permute.xlu0 %1105  ;;  %11463 = vst [vmem:[#allocation59_spill] sm:$0xff] %v8348_v10  ;;  %v1071_v16 = vrot.slane %v8348_v10, 1 }
  0xd1   : > { %11460 = vst [vmem:[#allocation56_spill] sm:$0xff] %v8318_v11  ;;  %11461 = vst [vmem:[#allocation57_spill] sm:$0xff] %v8320_v12  ;;  %v1818_v3 = vmul.f32 %v8318_v11, %v1012_v23  ;;  %v1817_v30 = vmul.f32 %v8320_v12, %v8151_v24  ;;  %6677 = vmatmul.mubr.msk.bf16.gmra.mxu1 %vm600_vm1, %v7619_v21  ;;  %v8344_v24 = vld [vmem:[%s7593_s28 + $0x18] sm:$0xff] }
  0xd2   : > { %6703 = vmatmul.mubr.msk.bf16.gmra.mxu0 %vm600_vm1, %v7696_v45  ;;  %6680 = vmatprep.mubr.msk.bf16.mxu1 %vm600_vm1, %v7630_v25  ;;  %11462 = vst [vmem:[#allocation58_spill] sm:$0xff] %v8344_v24  ;;  %v1070_v61 = vrot.slane %v8344_v24, 1  ;;  %v1073_v24 = vrot.slane %v8368_v8, 1 }
  0xd3   : > { %6706 = vmatprep.mubr.msk.bf16.mxu0 %vm600_vm1, %v7711_v49  ;;  %v8341_v23 = vpack.c.bf16 %v1818_v3, %v1817_v30 }
  0xd4   : > { %v8351_v53 = vpop.permute.xlu1 %1120  ;;  %v8353_v31 = vpop.permute.xlu0 %1115  ;;  %v8375_v50 = vsel %vm1010_vm3, %v1070_v61, %v1071_v16  ;;  %v8399_v8 = vsel %vm1010_vm3, %v1072_v20, %v1073_v24 }
  0xd5   : > { %11464 = vst [vmem:[#allocation60_spill] sm:$0xff] %v8351_v53  ;;  %11465 = vst [vmem:[#allocation61_spill] sm:$0xff] %v8353_v31  ;;  %v1820_v3 = vmul.f32 %v8351_v53, %v8099_v38  ;;  %v1819_v30 = vmul.f32 %v8353_v31, %v8227_v7  ;;  %v8383_v7 = vsel %vm1010_vm3, %v1069_v1, %v1070_v61 }
  0xd6   : > { %v8403_v1 = vsel %vm1010_vm3, %v1071_v16, %v1072_v20 }
  0xd7   : > { %v8371_v10 = vpack.c.bf16 %v1820_v3, %v1819_v30  ;;  %v8395_v30 = vpack.c.bf16 %v1124_v34, %v1123_v26  ;;  %v1126_v26 = vmul.f32 %v8299_v27, %v8375_v50  ;;  %v1125_v34 = vmul.f32 %v8301_v33, %v8383_v7 }
  0xd8   : > { %v8377_v40 = vpop.permute.xlu1 %2042  ;;  %v8379_v38 = vpop.permute.xlu0 %2037 }
  0xd9   : > { %11468 = vst [vmem:[#allocation64_spill] sm:$0xff] %v8377_v40  ;;  %11469 = vst [vmem:[#allocation65_spill] sm:$0xff] %v8379_v38  ;;  %v8387_v9 = vmul.f32 %v8377_v40, %v8178_v19  ;;  %v8391_v3 = vmul.f32 %v8379_v38, %v8131_v62  ;;  %6681 = vmatmul.mubr.msk.bf16.gmra.mxu1 %vm600_vm1, %v7647_v32  ;;  %v8418_v19 = vld [vmem:[%s7593_s28 + $0x38] sm:$0xff]  ;;  %v1127_v62 = vmul.f32 %v8320_v12, %v8403_v1 }
  0xda   : > { %6707 = vmatmul.mubr.msk.bf16.gmra.mxu0 %vm600_vm1, %v7733_v54  ;;  %6720 = vmatprep.mubr.msk.bf16.mxu1 %vm600_vm1, %v8184_v29  ;;  %11470 = vst [vmem:[#allocation66_spill] sm:$0xff] %v8418_v19  ;;  %v1074_v20 = vrot.slane %v8418_v19, 1  ;;  %v1128_v29 = vmul.f32 %v8318_v11, %v8399_v8  ;;  %v8447_v12 = vpack.c.bf16 %v1126_v26, %v1125_v34 }
  0xdb   : > { %6710 = vmatprep.mubr.msk.bf16.mxu0 %vm600_vm1, %v8395_v30 }
  0xdc   : > { %v8421_v61 = vpop.permute.xlu1 %2052  ;;  %v8423_v16 = vpop.permute.xlu0 %2047  ;;  %v8441_v27 = vsel %vm1010_vm3, %v1074_v20, %v1067_v60  ;;  %v8463_v38 = vpack.c.bf16 %v1128_v29, %v1127_v62 }
  0xdd   : > { %11471 = vst [vmem:[#allocation67_spill] sm:$0xff] %v8421_v61  ;;  %11472 = vst [vmem:[#allocation68_spill] sm:$0xff] %v8423_v16  ;;  %v8431_v40 = vmul.f32 %v8421_v61, %v8216_v47  ;;  %v8435_v33 = vmul.f32 %v8423_v16, %v8174_v2  ;;  %v1840_v47 = vsel %vm649_vm0, %v8036_v44, 0  ;;  %v1075_v2 = vsel %vm1010_vm3, %v1073_v24, %v1074_v20  ;;  %v8468_v44 = vld [vmem:[%s11209_s2 + $0xe] sm:$0x3] }
  0xe0   : > { %v8443_v19 = vpop.permute.xlu1 %2062  ;;  %v8445_v11 = vpop.permute.xlu0 %2057 }
  0xe1   : > { %11473 = vst [vmem:[#allocation69_spill] sm:$0xff] %v8443_v19  ;;  %11474 = vst [vmem:[#allocation70_spill] sm:$0xff] %v8445_v11  ;;  %v8455_v16 = vmul.f32 %v8443_v19, %v8254_v58  ;;  %v8459_v60 = vmul.f32 %v8445_v11, %v8212_v28  ;;  %6721 = vmatmul.mubr.msk.bf16.vlgmr.msra.gmra.mxu1 %vm600_vm1, %v8219_v5  ;;  %v1130_v5 = vmul.f32 %v8351_v53, %v8441_v27 }
  0xe2   : > { %6711 = vmatmul.mubr.msk.bf16.gmra.mxu0 %vm600_vm1, %v8447_v12  ;;  %6724 = vmatprep.mubr.msk.bf16.mxu1 %vm600_vm1, %v8257_v59  ;;  %v1129_v58 = vmul.f32 %v8353_v31, %v1075_v2 }
  0xe3   : > { %6714 = vmatprep.mubr.msk.bf16.mxu0 %vm600_vm1, %v8463_v38  ;;  %6787 = vmatpush3.bf16.msra.mxu1 %v1840_v47 }
  0xe4   : > { %v8481_v24 = vpop.permute.xlu1 %2072  ;;  %v8483_v62 = vpop.permute.xlu0 %2067  ;;  %7398 = vmatprep.subr.msk.bf16.mxu1 %vm649_vm0, %v8468_v44  ;;  %v8501_v47 = vpack.c.bf16 %v1130_v5, %v1129_v58  ;;  %v8526_v58 = vld [vmem:[%s11209_s2 + $0x10] sm:$0x3] }
  0xe5   : > { %11475 = vst [vmem:[#allocation71_spill] sm:$0xff] %v8481_v24  ;;  %11476 = vst [vmem:[#allocation72_spill] sm:$0xff] %v8483_v62  ;;  %v8489_v59 = vmul.f32 %v8481_v24, %v8137_v37  ;;  %v8493_v26 = vmul.f32 %v8483_v62, %v8250_v39 }
  0xe8   : > { %v8497_v20 = vpop.permute.xlu1 %2090  ;;  %v8499_v29 = vpop.permute.xlu0 %2085 }
  0xe9   : > { %11477 = vst [vmem:[#allocation73_spill] sm:$0xff] %v8497_v20  ;;  %11478 = vst [vmem:[#allocation74_spill] sm:$0xff] %v8499_v29  ;;  %6725 = vmatmul.mubr.msk.bf16.gmra.mxu1 %vm600_vm1, %v8278_v22  ;;  %v2166_v22 = vsel %vm649_vm0, %v8106_v56, 0 }
  0xea   : > { %6715 = vmatmul.mubr.msk.bf16.gmra.mxu0 %vm600_vm1, %v8501_v47  ;;  %6728 = vmatprep.mubr.msk.bf16.mxu1 %vm600_vm1, %v7609_v17 }
  0xeb   : > { %6754 = vmatprep.mubr.msk.bf16.mxu0 %vm600_vm1, %v7609_v17 }
  0xec   : > { %v8511_v37 = vpop.permute.xlu1 %2100  ;;  %v8513_v39 = vpop.permute.xlu0 %2095 }
  0xed   : > { %11479 = vst [vmem:[#allocation75_spill] sm:$0xff] %v8511_v37  ;;  %11480 = vst [vmem:[#allocation76_spill] sm:$0xff] %v8513_v39 }
  0xf0   : > { %v8515_v34 = vpop.permute.xlu1 %2110  ;;  %v8517_v5 = vpop.permute.xlu0 %2105 }
  0xf1   : > { %11481 = vst [vmem:[#allocation77_spill] sm:$0xff] %v8515_v34  ;;  %11482 = vst [vmem:[#allocation78_spill] sm:$0xff] %v8517_v5  ;;  %6729 = vmatmul.mubr.msk.bf16.gmra.mxu1 %vm600_vm1, %v7619_v21 }
  0xf2   : > { %6755 = vmatmul.mubr.msk.bf16.vlgmr.msra.gmra.mxu0 %vm600_vm1, %v7619_v21  ;;  %6732 = vmatprep.mubr.msk.bf16.mxu1 %vm600_vm1, %v7630_v25 }
  0xf3   : > { %6821 = vmatpush3.bf16.msra.mxu0 %v2166_v22  ;;  %6758 = vmatprep.mubr.msk.bf16.mxu0 %vm600_vm1, %v7630_v25 }
  0xf4   : > { %v8534_v28 = vpop.permute.xlu1 %2120  ;;  %v8536_v56 = vpop.permute.xlu0 %2115  ;;  %7399 = vmatprep.subr.msk.bf16.mxu0 %vm649_vm0, %v8526_v58 }
  0xf5   : > { %11483 = vst [vmem:[#allocation79_spill] sm:$0xff] %v8534_v28  ;;  %11484 = vst [vmem:[#allocation80_spill] sm:$0xff] %v8536_v56 }
  0xf8   : > { %v8540_v62 = vpop.permute.xlu1 %2590  ;;  %v8542_v19 = vpop.permute.xlu0 %2585 }
  0xf9   : > { %11485 = vst [vmem:[#allocation81_spill] sm:$0xff] %v8540_v62  ;;  %11486 = vst [vmem:[#allocation82_spill] sm:$0xff] %v8542_v19  ;;  %v8546_v11 = vmul.f32 %v8540_v62, %v8383_v7  ;;  %v8550_v22 = vmul.f32 %v8542_v19, %v8329_v18  ;;  %6733 = vmatmul.mubr.msk.bf16.gmra.mxu1 %vm600_vm1, %v7647_v32 }
  0xfa   : > { %6736 = vmatprep.mubr.msk.bf16.mxu1 %vm600_vm1, %v8186_v41  ;;  %6759 = vmatmul.mubr.msk.bf16.gmra.mxu0 %vm600_vm1, %v7647_v32 }
  0xfb   : > { %6762 = vmatprep.mubr.msk.bf16.mxu0 %vm600_vm1, %v7657_v35 }
  0xfc   : > { %v8562_v7 = vpop.permute.xlu1 %2600  ;;  %v8564_v62 = vpop.permute.xlu0 %2595 }
  0xfd   : > { %11487 = vst [vmem:[#allocation83_spill] sm:$0xff] %v8562_v7  ;;  %11488 = vst [vmem:[#allocation84_spill] sm:$0xff] %v8564_v62  ;;  %v8568_v18 = vmul.f32 %v8562_v7, %v8403_v1  ;;  %v8572_v19 = vmul.f32 %v8564_v62, %v8375_v50  ;;  %v11506_v50 = vld [vmem:[#allocation30_spill] sm:$0xff]  ;;  %v8667_v62 = vpop.f32.mrf.mxu1 }
 0x100   : > { %v8576_v61 = vpop.permute.xlu1 %2610  ;;  %v8578_v53 = vpop.permute.xlu0 %2605 }
 0x101   : > { %11489 = vst [vmem:[#allocation85_spill] sm:$0xff] %v8576_v61  ;;  %11490 = vst [vmem:[#allocation86_spill] sm:$0xff] %v8578_v53  ;;  %v8581_v24 = vmul.f32 %v8576_v61, %v1075_v2  ;;  %v8585_v4 = vmul.f32 %v8578_v53, %v8399_v8  ;;  %6737 = vmatmul.mubr.msk.bf16.gmra.mxu1 %vm600_vm1, %v8221_v14  ;;  %v8611_v61 = vpack.c.bf16 %v7862_v48, %v7868_v52  ;;  %v11499_v52 = vld [vmem:[#allocation19_spill] sm:$0xff] }
 0x102   : > { %6740 = vmatprep.mubr.msk.bf16.mxu1 %vm600_vm1, %v8259_v57  ;;  %6763 = vmatmul.mubr.msk.bf16.gmra.mxu0 %vm600_vm1, %v7696_v45  ;;  %v8629_v48 = vpack.c.bf16 %v7929_v13, %v7886_v63  ;;  %v11502_v13 = vld [vmem:[#allocation23_spill] sm:$0xff]  ;;  %v11514_v53 = vpack.c.bf16 %v8431_v40, %v8435_v33 }
 0x103   : > { %6766 = vmatprep.mubr.msk.bf16.mxu0 %vm600_vm1, %v7711_v49  ;;  %11495 = vst [vmem:[#allocation91_spill] sm:$0xff] %v8611_v61 }
 0x104   : > { %v8597_v1 = vpop.permute.xlu1 %2620  ;;  %v8599_v2 = vpop.permute.xlu0 %2615  ;;  %11497 = vst [vmem:[#allocation93_spill] sm:$0xff] %v8629_v48 }
 0x105   : > { %11491 = vst [vmem:[#allocation87_spill] sm:$0xff] %v8597_v1  ;;  %11492 = vst [vmem:[#allocation88_spill] sm:$0xff] %v8599_v2  ;;  %v8603_v8 = vmul.f32 %v8597_v1, %v8333_v46  ;;  %v8607_v31 = vmul.f32 %v8599_v2, %v8441_v27  ;;  %v8625_v27 = vpack.c.bf16 %v7889_v0, %v7865_v51  ;;  %v11500_v0 = vld [vmem:[#allocation22_spill] sm:$0xff]  ;;  %v11503_v46 = vld [vmem:[#allocation27_spill] sm:$0xff] }
 0x106   : > { %v8641_v51 = vpack.c.bf16 %v7871_v55, %v7924_v36  ;;  %v8645_v63 = vpack.c.bf16 %v11500_v0, %v11499_v52  ;;  %v8657_v55 = vpack.c.bf16 %v11503_v46, %v11502_v13  ;;  %v11505_v36 = vld [vmem:[#allocation26_spill] sm:$0xff]  ;;  %v2388_v0 = vsel %vm649_vm0, %v8468_v44, 0 }
 0x107   : > { %11493 = vst [vmem:[#allocation89_spill] sm:$0xff] %v8603_v8  ;;  %11494 = vst [vmem:[#allocation90_spill] sm:$0xff] %v8607_v31  ;;  %v8661_v52 = vpack.c.bf16 %v11506_v50, %v11505_v36  ;;  %v8675_v50 = vpop.f32.mrf.mxu1  ;;  %v11508_v13 = vld [vmem:[#allocation14_spill] sm:$0xff]  ;;  %v2123_v2 = vmul.f32 %v8308_v42, %v8499_v29  ;;  %v11519_v42 = vld [vmem:[#allocation59_spill] sm:$0xff] }
 0x108   : > { %11496 = vst [vmem:[#allocation92_spill] sm:$0xff] %v8625_v27  ;;  %11498 = vst [vmem:[#allocation94_spill] sm:$0xff] %v8641_v51  ;;  %v11509_v46 = vld [vmem:[#allocation18_spill] sm:$0xff] }
 0x109   : > { %6741 = vmatmul.mubr.msk.bf16.gmra.mxu1 %vm600_vm1, %v8280_v6  ;;  %11501 = vst [vmem:[#allocation19_spill] sm:$0xff] %v8645_v63  ;;  %11504 = vst [vmem:[#allocation22_spill] sm:$0xff] %v8657_v55  ;;  %v8679_v44 = vpack.c.bf16 %v11509_v46, %v11508_v13  ;;  %v8683_v36 = vpop.f32.mrf.mxu1  ;;  %v2650_v13 = vsel %vm649_vm0, %v8526_v58, 0 }
 0x10a   : > { %6767 = vmatmul.mubr.msk.bf16.gmra.mxu0 %vm600_vm1, %v7733_v54  ;;  %6744 = vmatprep.mubr.msk.bf16.mxu1 %vm600_vm1, %v8611_v61  ;;  %11507 = vst [vmem:[#allocation23_spill] sm:$0xff] %v8661_v52 }
 0x10b   : > { %6770 = vmatprep.mubr.msk.bf16.mxu0 %vm600_vm1, %v8611_v61 }
 0x111   : > { %6745 = vmatmul.mubr.msk.bf16.gmra.mxu1 %vm600_vm1, %v8625_v27 }
 0x112   : > { %6771 = vmatmul.mubr.msk.bf16.gmra.mxu0 %vm600_vm1, %v8625_v27  ;;  %6748 = vmatprep.mubr.msk.bf16.mxu1 %vm600_vm1, %v8629_v48 }
 0x113   : > { %6774 = vmatprep.mubr.msk.bf16.mxu0 %vm600_vm1, %v8629_v48 }
 0x119   : > { %6749 = vmatmul.mubr.msk.bf16.gmra.mxu1 %vm600_vm1, %v8641_v51 }
 0x11a   : > { %6775 = vmatmul.mubr.msk.bf16.gmra.mxu0 %vm600_vm1, %v8641_v51  ;;  %6788 = vmatprep.mubr.msk.bf16.mxu1 %vm600_vm1, %v7657_v35 }
 0x11b   : > { %6778 = vmatprep.mubr.msk.bf16.mxu0 %vm600_vm1, %v8645_v63 }
 0x121   : > { %6789 = vmatmul.mubr.msk.bf16.vlgmr.msra.gmra.mxu1 %vm600_vm1, %v7696_v45 }
 0x122   : > { %6779 = vmatmul.mubr.msk.bf16.gmra.mxu0 %vm600_vm1, %v8657_v55  ;;  %6792 = vmatprep.mubr.msk.bf16.mxu1 %vm600_vm1, %v7711_v49 }
 0x123   : > { %6782 = vmatprep.mubr.msk.bf16.mxu0 %vm600_vm1, %v8661_v52  ;;  %6855 = vmatpush3.bf16.msra.mxu1 %v2388_v0  ;;  %v8691_v0 = vpop.f32.mrf.mxu1 }
 0x124   : > { %11510 = vst [vmem:[#allocation27_spill] sm:$0xff] %v8691_v0 }
 0x125   : > { %v8697_v46 = vpop.f32.mrf.mxu1 }
 0x129   : > { %6793 = vmatmul.mubr.msk.bf16.gmra.mxu1 %vm600_vm1, %v7733_v54 }
 0x12a   : > { %6783 = vmatmul.mubr.msk.bf16.gmra.mxu0 %vm600_vm1, %v8679_v44  ;;  %6796 = vmatprep.mubr.msk.bf16.mxu1 %vm600_vm1, %v8395_v30 }
 0x12b   : > { %6822 = vmatprep.mubr.msk.bf16.mxu0 %vm600_vm1, %v8186_v41  ;;  %v8705_v41 = vpop.f32.mrf.mxu1 }
 0x12d   : > { %v8709_v30 = vpop.f32.mrf.mxu1 }
 0x131   : > { %6797 = vmatmul.mubr.msk.bf16.gmra.mxu1 %vm600_vm1, %v8447_v12 }
 0x132   : > { %6800 = vmatprep.mubr.msk.bf16.mxu1 %vm600_vm1, %v8463_v38  ;;  %6823 = vmatmul.mubr.msk.bf16.vlgmr.msra.gmra.mxu0 %vm600_vm1, %v8221_v14  ;;  %v8717_v14 = vpop.f32.mrf.mxu1  ;;  %v11512_v38 = vpack.c.bf16 %v8387_v9, %v8391_v3  ;;  %v11515_v9 = vpack.c.bf16 %v8455_v16, %v8459_v60  ;;  %v11518_v16 = vpack.c.bf16 %v8489_v59, %v8493_v26  ;;  %v11522_v59 = vld [vmem:[#allocation62_spill] sm:$0xff] }
 0x133   : > { %6889 = vmatpush3.bf16.msra.mxu0 %v2650_v13  ;;  %6826 = vmatprep.mubr.msk.bf16.mxu0 %vm600_vm1, %v8259_v57  ;;  %11511 = vst [vmem:[#allocation26_spill] sm:$0xff] %v8717_v14  ;;  %v2126_v60 = vmul.f32 %v11519_v42, %v8511_v37  ;;  %v2127_v26 = vmul.f32 %v11522_v59, %v8517_v5  ;;  %v11525_v59 = vld [vmem:[#allocation66_spill] sm:$0xff] }
 0x134   : > { %v8721_v57 = vpop.f32.mrf.mxu1 }
 0x139   : > { %6801 = vmatmul.mubr.msk.bf16.gmra.mxu1 %vm600_vm1, %v8501_v47 }
 0x13a   : > { %6827 = vmatmul.mubr.msk.bf16.gmra.mxu0 %vm600_vm1, %v8280_v6  ;;  %6804 = vmatprep.mubr.msk.bf16.mxu1 %vm600_vm1, %v8645_v63  ;;  %v8729_v6 = vpop.f32.mrf.mxu1 }
 0x13b   : > { %6830 = vmatprep.mubr.msk.bf16.mxu0 %vm600_vm1, %v8611_v61 }
 0x13c   : > { %v8733_v12 = vpop.f32.mrf.mxu1 }
 0x13e   : > { %v8743_v47 = vpop.f32.mrf.mxu1 }
 0x13f   : > { %11513 = vst [vmem:[#allocation30_spill] sm:$0xff] %v8743_v47 }
 0x140   : > { %v8747_v58 = vpop.f32.mrf.mxu1 }
 0x141   : > { %6805 = vmatmul.mubr.msk.bf16.gmra.mxu1 %vm600_vm1, %v8657_v55 }
 0x142   : > { %6831 = vmatmul.mubr.msk.bf16.gmra.mxu0 %vm600_vm1, %v8625_v27  ;;  %6808 = vmatprep.mubr.msk.bf16.mxu1 %vm600_vm1, %v8661_v52  ;;  %v8763_v1 = vpop.f32.mrf.mxu1 }
 0x143   : > { %6834 = vmatprep.mubr.msk.bf16.mxu0 %vm600_vm1, %v8629_v48  ;;  %11516 = vst [vmem:[#allocation14_spill] sm:$0xff] %v8763_v1 }
 0x144   : > { %v8769_v40 = vpop.f32.mrf.mxu1 }
 0x145   : > { %11517 = vst [vmem:[#allocation18_spill] sm:$0xff] %v8769_v40 }
 0x149   : > { %6809 = vmatmul.mubr.msk.bf16.gmra.mxu1 %vm600_vm1, %v8679_v44 }
 0x14a   : > { %6812 = vmatprep.mubr.msk.bf16.mxu1 %vm600_vm1, %v8297_v15  ;;  %6835 = vmatmul.mubr.msk.bf16.gmra.mxu0 %vm600_vm1, %v8641_v51 }
 0x14b   : > { %6838 = vmatprep.mubr.msk.bf16.mxu0 %vm600_vm1, %v11512_v38  ;;  %v7491_v38 = vld [vmem:[%s7593_s28 + $0x10] sm:$0xff] }
 0x14c   : > { %v2124_v7 = vmul.f32 %v7491_v38, %v8497_v20  ;;  %v11521_v38 = vld [vmem:[#allocation63_spill] sm:$0xff] }
 0x14d   : > { %v2128_v0 = vmul.f32 %v11521_v38, %v8515_v34 }
 0x14f   : > { %v8793_v42 = vpack.c.bf16 %v2128_v0, %v2127_v26 }
 0x151   : > { %6813 = vmatmul.mubr.msk.bf16.gmra.mxu1 %vm600_vm1, %v8316_v43 }
 0x152   : > { %v6620_v13 = vpop.f32.mrf.mxu0  ;;  %6816 = vmatprep.mubr.msk.bf16.mxu1 %vm600_vm1, %v8341_v23  ;;  %6839 = vmatmul.mubr.msk.bf16.gmra.mxu0 %vm600_vm1, %v11514_v53  ;;  %v8767_v53 = vpack.c.bf16 %v2124_v7, %v2123_v2  ;;  %v11520_v7 = vld [vmem:[#allocation58_spill] sm:$0xff] }
 0x153   : > { %6842 = vmatprep.mubr.msk.bf16.mxu0 %vm600_vm1, %v11515_v9  ;;  %v2125_v2 = vmul.f32 %v11520_v7, %v8513_v39 }
 0x154   : > { %v687_v3 = vpop.f32.mrf.mxu0 }
 0x155   : > { %v8789_v49 = vpack.c.bf16 %v2126_v60, %v2125_v2  ;;  %v11524_v60 = vld [vmem:[#allocation55_spill] sm:$0xff] }
 0x156   : > { %v6621_v47 = vpop.f32.mrf.mxu0  ;;  %v2130_v2 = vmul.f32 %v11524_v60, %v8534_v28 }
 0x158   : > { %v690_v14 = vpop.f32.mrf.mxu0 }
 0x159   : > { %6817 = vmatmul.mubr.msk.bf16.gmra.mxu1 %vm600_vm1, %v8371_v10 }
 0x15a   : > { %v6624_v33 = vpop.f32.mrf.mxu0  ;;  %6843 = vmatmul.mubr.msk.bf16.gmra.mxu0 %vm600_vm1, %v11518_v16  ;;  %6856 = vmatprep.mubr.msk.bf16.mxu1 %vm600_vm1, %v8611_v61  ;;  %v8787_v16 = vpop.f32.mrf.mxu1 }
 0x15b   : > { %6846 = vmatprep.mubr.msk.bf16.mxu0 %vm600_vm1, %v8767_v53  ;;  %11523 = vst [vmem:[#allocation59_spill] sm:$0xff] %v8787_v16 }
 0x15c   : > { %v703_v9 = vpop.f32.mrf.mxu0 }
 0x15e   : > { %v6625_v54 = vpop.f32.mrf.mxu0 }
 0x160   : > { %v706_v61 = vpop.f32.mrf.mxu0 }
 0x161   : > { %v6654_v45 = vpop.f32.mrf.mxu1  ;;  %6857 = vmatmul.mubr.msk.bf16.vlgmr.msra.gmra.mxu1 %vm600_vm1, %v8625_v27  ;;  %v2129_v27 = vmul.f32 %v11525_v59, %v8536_v56 }
 0x162   : > { %v884_v7 = vadd.f32 %v6654_v45, %v6620_v13  ;;  %v6628_v35 = vpop.f32.mrf.mxu0  ;;  %6847 = vmatmul.mubr.msk.bf16.gmra.mxu0 %vm600_vm1, %v8789_v49  ;;  %6860 = vmatprep.mubr.msk.bf16.mxu1 %vm600_vm1, %v8629_v48 }
 0x163   : > { %v875_v38 = vpop.f32.mrf.mxu1  ;;  %6850 = vmatprep.mubr.msk.bf16.mxu0 %vm600_vm1, %v8793_v42  ;;  %v8805_v40 = vpack.c.bf16 %v2130_v2, %v2129_v27 }
 0x164   : > { %v876_v0 = vadd.f32 %v875_v38, %v687_v3  ;;  %v719_v26 = vpop.f32.mrf.mxu0 }
 0x165   : > { %v6655_v45 = vpop.f32.mrf.mxu1 }
 0x166   : > { %v887_v13 = vadd.f32 %v6655_v45, %v6621_v47  ;;  %v6629_v32 = vpop.f32.mrf.mxu0 }
 0x167   : > { %v878_v25 = vpop.f32.mrf.mxu1 }
 0x168   : > { %v879_v21 = vadd.f32 %v878_v25, %v690_v14  ;;  %v722_v16 = vpop.f32.mrf.mxu0 }
 0x169   : > { %v6658_v48 = vpop.f32.mrf.mxu1  ;;  %6861 = vmatmul.mubr.msk.bf16.gmra.mxu1 %vm600_vm1, %v8641_v51 }
 0x16a   : > { %v900_v17 = vadd.f32 %v6658_v48, %v6624_v33  ;;  %v6632_v1 = vpop.f32.mrf.mxu0  ;;  %6851 = vmatmul.mubr.msk.bf16.gmra.mxu0 %vm600_vm1, %v8805_v40  ;;  %6864 = vmatprep.mubr.msk.bf16.mxu1 %vm600_vm1, %v8645_v63 }
 0x16b   : > { %v891_v3 = vpop.f32.mrf.mxu1  ;;  %6890 = vmatprep.mubr.msk.bf16.mxu0 %vm600_vm1, %v8645_v63 }
 0x16c   : > { %v892_v25 = vadd.f32 %v891_v3, %v703_v9  ;;  %v735_v14 = vpop.f32.mrf.mxu0 }
 0x16d   : > { %v6659_v27 = vpop.f32.mrf.mxu1 }
 0x16e   : > { %v903_v47 = vadd.f32 %v6659_v27, %v6625_v54  ;;  %v6633_v38 = vpop.f32.mrf.mxu0 }
 0x16f   : > { %v894_v60 = vpop.f32.mrf.mxu1 }
 0x170   : > { %v895_v2 = vadd.f32 %v894_v60, %v706_v61  ;;  %v738_v59 = vpop.f32.mrf.mxu0 }
 0x171   : > { %v6662_v48 = vpop.f32.mrf.mxu1  ;;  %6865 = vmatmul.mubr.msk.bf16.gmra.mxu1 %vm600_vm1, %v8657_v55 }
 0x172   : > { %v916_v33 = vadd.f32 %v6662_v48, %v6628_v35  ;;  %v6688_v45 = vpop.f32.mrf.mxu0  ;;  %6891 = vmatmul.mubr.msk.bf16.vlgmr.msra.gmra.mxu0 %vm600_vm1, %v8657_v55  ;;  %6868 = vmatprep.mubr.msk.bf16.mxu1 %vm600_vm1, %v8661_v52 }
 0x173   : > { %v8821_v9 = vadd.f32 %v6688_v45, %v884_v7  ;;  %v907_v3 = vpop.f32.mrf.mxu1  ;;  %6894 = vmatprep.mubr.msk.bf16.mxu0 %vm600_vm1, %v8661_v52 }
 0x174   : > { %v908_v54 = vadd.f32 %v907_v3, %v719_v26  ;;  %v1202_v61 = vpop.f32.mrf.mxu0 }
 0x175   : > { %v8825_v27 = vadd.f32 %v1202_v61, %v876_v0  ;;  %v6663_v60 = vpop.f32.mrf.mxu1 }
 0x176   : > { %v919_v63 = vadd.f32 %v6663_v60, %v6629_v32  ;;  %v6689_v35 = vpop.f32.mrf.mxu0 }
 0x177   : > { %v8827_v48 = vadd.f32 %v6689_v35, %v887_v13  ;;  %v910_v51 = vpop.f32.mrf.mxu1 }
 0x178   : > { %v911_v55 = vadd.f32 %v910_v51, %v722_v16  ;;  %v1205_v31 = vpop.f32.mrf.mxu0 }
 0x179   : > { %v8829_v8 = vadd.f32 %v1205_v31, %v879_v21  ;;  %v6666_v7 = vpop.f32.mrf.mxu1  ;;  %6869 = vmatmul.mubr.msk.bf16.gmra.mxu1 %vm600_vm1, %v8679_v44 }
 0x17a   : > { %v932_v45 = vadd.f32 %v6666_v7, %v6632_v1  ;;  %v6692_v52 = vpop.f32.mrf.mxu0  ;;  %6872 = vmatprep.mubr.msk.bf16.mxu1 %vm600_vm1, %v8767_v53  ;;  %6895 = vmatmul.mubr.msk.bf16.gmra.mxu0 %vm600_vm1, %v8679_v44 }
 0x17b   : > { %v8837_v32 = vadd.f32 %v6692_v52, %v900_v17  ;;  %v923_v0 = vpop.f32.mrf.mxu1  ;;  %6898 = vmatprep.mubr.msk.bf16.mxu0 %vm600_vm1, %v8297_v15 }
 0x17c   : > { %v924_v21 = vadd.f32 %v923_v0, %v735_v14  ;;  %v1218_v31 = vpop.f32.mrf.mxu0 }
 0x17d   : > { %v8841_v51 = vadd.f32 %v1218_v31, %v892_v25  ;;  %v6667_v16 = vpop.f32.mrf.mxu1 }
 0x17e   : > { %v935_v1 = vadd.f32 %v6667_v16, %v6633_v38  ;;  %v6693_v26 = vpop.f32.mrf.mxu0 }
 0x17f   : > { %v8843_v13 = vadd.f32 %v6693_v26, %v903_v47  ;;  %v926_v53 = vpop.f32.mrf.mxu1  ;;  %v7492_v47 = vld [vmem:[%s7593_s28 + $0x50] sm:$0xff]  ;;  %v7495_v26 = vld [vmem:[%s7593_s28 + $0x58] sm:$0xff] }
 0x180   : > { %v927_v3 = vadd.f32 %v926_v53, %v738_v59  ;;  %v1221_v61 = vpop.f32.mrf.mxu0  ;;  %v2362_v38 = vmul.f32 %v7492_v47, %v8497_v20  ;;  %v2363_v53 = vmul.f32 %v7495_v26, %v8513_v39  ;;  %v7497_v47 = vld [vmem:[%s7593_s28 + $0x68] sm:$0xff] }
 0x181   : > { %v8845_v17 = vadd.f32 %v1221_v61, %v895_v2  ;;  %v6670_v52 = vpop.f32.mrf.mxu1  ;;  %6873 = vmatmul.mubr.msk.bf16.gmra.mxu1 %vm600_vm1, %v8789_v49  ;;  %v7493_v2 = vld [vmem:[%s7593_s28 + $0x48] sm:$0xff] }
 0x182   : > { %v6696_v15 = vpop.f32.mrf.mxu0  ;;  %6876 = vmatprep.mubr.msk.bf16.mxu1 %vm600_vm1, %v8793_v42  ;;  %6899 = vmatmul.mubr.msk.bf16.gmra.mxu0 %vm600_vm1, %v8316_v43  ;;  %v2361_v49 = vmul.f32 %v7493_v2, %v8499_v29 }
 0x183   : > { %v8853_v25 = vadd.f32 %v6696_v15, %v916_v33  ;;  %v939_v14 = vpop.f32.mrf.mxu1  ;;  %6902 = vmatprep.mubr.msk.bf16.mxu0 %vm600_vm1, %v8341_v23  ;;  %v7496_v15 = vld [vmem:[%s7593_s28 + $0x70] sm:$0xff] }
 0x184   : > { %v1234_v59 = vpop.f32.mrf.mxu0  ;;  %v2369_v23 = vpack.c.bf16 %v2362_v38, %v2361_v49  ;;  %v2365_v38 = vmul.f32 %v7497_v47, %v8517_v5 }
 0x185   : > { %v8861_v60 = vadd.f32 %v1234_v59, %v908_v54  ;;  %v6671_v42 = vpop.f32.mrf.mxu1 }
 0x186   : > { %v6697_v35 = vpop.f32.mrf.mxu0 }
 0x187   : > { %v8863_v43 = vadd.f32 %v6697_v35, %v919_v63  ;;  %v8865_v33 = vpop.f32.mrf.mxu1  ;;  %v7494_v63 = vld [vmem:[%s7593_s28 + $0x60] sm:$0xff] }
 0x188   : > { %v1237_v7 = vpop.f32.mrf.mxu0  ;;  %v2364_v54 = vmul.f32 %v7494_v63, %v8511_v37  ;;  %v948_v63 = vadd.f32 %v6670_v52, %v8667_v62  ;;  %v951_v52 = vadd.f32 %v6671_v42, %v8683_v36 }
 0x189   : > { %v8867_v0 = vadd.f32 %v1237_v7, %v911_v55  ;;  %v6674_v31 = vpop.f32.mrf.mxu1  ;;  %6877 = vmatmul.mubr.msk.bf16.gmra.mxu1 %vm600_vm1, %v8805_v40  ;;  %v2366_v40 = vmul.f32 %v7496_v15, %v8515_v34 }
 0x18a   : > { %v6700_v16 = vpop.f32.mrf.mxu0  ;;  %6880 = vmatprep.mubr.msk.bf16.mxu1 %vm600_vm1, %v2369_v23  ;;  %6903 = vmatmul.mubr.msk.bf16.gmra.mxu0 %vm600_vm1, %v8371_v10  ;;  %v2370_v35 = vpack.c.bf16 %v2364_v54, %v2363_v53  ;;  %v7499_v54 = vld [vmem:[%s7593_s28 + $0x78] sm:$0xff] }
 0x18b   : > { %v8878_v61 = vadd.f32 %v6700_v16, %v932_v45  ;;  %v955_v55 = vpop.f32.mrf.mxu1  ;;  %6906 = vmatprep.mubr.msk.bf16.mxu0 %vm600_vm1, %v2369_v23  ;;  %v2371_v23 = vpack.c.bf16 %v2366_v40, %v2365_v38  ;;  %v2367_v53 = vmul.f32 %v7499_v54, %v8536_v56  ;;  %v940_v40 = vadd.f32 %v939_v14, %v8675_v50 }
 0x18c   : > { %v1250_v2 = vpop.f32.mrf.mxu0  ;;  %v964_v50 = vadd.f32 %v6674_v31, %v8697_v46  ;;  %v956_v36 = vadd.f32 %v955_v55, %v8705_v41 }
 0x18d   : > { %v8885_v10 = vadd.f32 %v1250_v2, %v924_v21  ;;  %v6675_v49 = vpop.f32.mrf.mxu1  ;;  %v7498_v21 = vld [vmem:[%s7593_s28 + $0x40] sm:$0xff] }
 0x18e   : > { %v6701_v59 = vpop.f32.mrf.mxu0 }
 0x18f   : > { %v8887_v7 = vadd.f32 %v6701_v59, %v935_v1  ;;  %v8889_v45 = vpop.f32.mrf.mxu1  ;;  %v2368_v1 = vmul.f32 %v7498_v21, %v8534_v28 }
 0x190   : > { %v1253_v16 = vpop.f32.mrf.mxu0 }
 0x191   : > { %v8892_v26 = vadd.f32 %v1253_v16, %v927_v3  ;;  %v6678_v15 = vpop.f32.mrf.mxu1  ;;  %6881 = vmatmul.mubr.msk.bf16.gmra.mxu1 %vm600_vm1, %v2370_v35  ;;  %v2372_v16 = vpack.c.bf16 %v2368_v1, %v2367_v53  ;;  %v967_v53 = vadd.f32 %v6675_v49, %v8709_v30 }
 0x192   : > { %v6704_v47 = vpop.f32.mrf.mxu0  ;;  %6884 = vmatprep.mubr.msk.bf16.mxu1 %vm600_vm1, %v2371_v23  ;;  %6907 = vmatmul.mubr.msk.bf16.gmra.mxu0 %vm600_vm1, %v2370_v35  ;;  %v980_v41 = vadd.f32 %v6678_v15, %v8721_v57 }
 0x193   : > { %v8902_v38 = vadd.f32 %v6704_v47, %v948_v63  ;;  %v971_v62 = vpop.f32.mrf.mxu1  ;;  %6910 = vmatprep.mubr.msk.bf16.mxu0 %vm600_vm1, %v2371_v23  ;;  %v11526_v47 = vpack.c.bf16 %v8546_v11, %v8550_v22  ;;  %v11527_v22 = vpack.c.bf16 %v8568_v18, %v8572_v19 }
 0x194   : > { %v1266_v3 = vpop.f32.mrf.mxu0  ;;  %v972_v30 = vadd.f32 %v971_v62, %v8729_v6 }
 0x195   : > { %v8906_v2 = vadd.f32 %v1266_v3, %v940_v40  ;;  %v6679_v59 = vpop.f32.mrf.mxu1 }
 0x196   : > { %v6705_v35 = vpop.f32.mrf.mxu0 }
 0x197   : > { %v8908_v34 = vadd.f32 %v6705_v35, %v951_v52  ;;  %v8910_v21 = vpop.f32.mrf.mxu1 }
 0x198   : > { %v8912_v54 = vpop.f32.mrf.mxu0 }
 0x199   : > { %v6682_v14 = vpop.f32.mrf.mxu1  ;;  %6885 = vmatmul.mubr.msk.bf16.gmra.mxu1 %vm600_vm1, %v2372_v16 }
 0x19a   : > { %v6708_v23 = vpop.f32.mrf.mxu0  ;;  %6911 = vmatmul.mubr.msk.bf16.gmra.mxu0 %vm600_vm1, %v2372_v16 }
 0x19b   : > { %v8918_v42 = vadd.f32 %v6708_v23, %v964_v50  ;;  %v987_v63 = vpop.f32.mrf.mxu1  ;;  %6914 = vmatprep.mubr.msk.bf16.mxu0 %vm600_vm1, %v11526_v47  ;;  %v11528_v23 = vpack.c.bf16 %v8581_v24, %v8585_v4  ;;  %v996_v4 = vadd.f32 %v6682_v14, %v8747_v58  ;;  %v11534_v14 = vld [vmem:[#allocation18_spill] sm:$0xff] }
 0x19c   : > { %v1282_v1 = vpop.f32.mrf.mxu0 }
 0x19d   : > { %v8925_v46 = vadd.f32 %v1282_v1, %v956_v36  ;;  %v6683_v31 = vpop.f32.mrf.mxu1 }
 0x19e   : > { %v6709_v40 = vpop.f32.mrf.mxu0 }
 0x19f   : > { %v8927_v3 = vadd.f32 %v6709_v40, %v967_v53  ;;  %v990_v52 = vpop.f32.mrf.mxu1  ;;  %v11529_v40 = vld [vmem:[#allocation89_spill] sm:$0xff] }
 0x1a0   : > { %v8929_v35 = vpop.f32.mrf.mxu0 }
 0x1a1   : > { %v6722_v55 = vpop.f32.mrf.mxu1 }
 0x1a2   : > { %v1569_v16 = vadd.f32 %v6722_v55, %v8821_v9  ;;  %v6712_v11 = vpop.f32.mrf.mxu0  ;;  %6915 = vmatmul.mubr.msk.bf16.gmra.mxu0 %vm600_vm1, %v11527_v22  ;;  %v983_v9 = vadd.f32 %v6679_v59, %v8733_v12  ;;  %v11532_v59 = vld [vmem:[#allocation14_spill] sm:$0xff] }
 0x1a3   : > { %v8938_v49 = vadd.f32 %v6712_v11, %v980_v41  ;;  %v1440_v50 = vpop.f32.mrf.mxu1  ;;  %6918 = vmatprep.mubr.msk.bf16.mxu0 %vm600_vm1, %v11528_v23  ;;  %v11530_v41 = vld [vmem:[#allocation90_spill] sm:$0xff]  ;;  %v988_v55 = vadd.f32 %v987_v63, %v11532_v59 }
 0x1a4   : > { %v1567_v57 = vadd.f32 %v1440_v50, %v8825_v27  ;;  %v1298_v15 = vpop.f32.mrf.mxu0  ;;  %v11531_v12 = vpack.c.bf16 %v11529_v40, %v11530_v41  ;;  %v11533_v22 = vld [vmem:[#allocation2_spill] sm:$0xff]  ;;  %v999_v50 = vadd.f32 %v6683_v31, %v11534_v14 }
 0x1a5   : > { %v8946_v36 = vadd.f32 %v1298_v15, %v972_v30  ;;  %v6723_v19 = vpop.f32.mrf.mxu1 }
 0x1a6   : > { %v1570_v18 = vadd.f32 %v6723_v19, %v8827_v48  ;;  %v6713_v47 = vpop.f32.mrf.mxu0  ;;  %v11535_v19 = vld [vmem:[#allocation59_spill] sm:$0xff] }
 0x1a7   : > { %v8949_v6 = vadd.f32 %v6713_v47, %v983_v9  ;;  %v1443_v62 = vpop.f32.mrf.mxu1  ;;  %v991_v47 = vadd.f32 %v990_v52, %v11535_v19 }
 0x1a8   : > { %v8951_v1 = vpop.f32.mrf.mxu0  ;;  %v1568_v14 = vadd.f32 %v1443_v62, %v8829_v8  ;;  %v11537_v62 = vld [vmem:[#allocation4_spill] sm:$0xff] }
 0x1a9   : > { %v6726_v24 = vpop.f32.mrf.mxu1 }
 0x1aa   : > { %v1573_v53 = vadd.f32 %v6726_v24, %v8837_v32  ;;  %v6716_v27 = vpop.f32.mrf.mxu0  ;;  %6919 = vmatmul.mubr.msk.bf16.gmra.mxu0 %vm600_vm1, %v11531_v12 }
 0x1ab   : > { %v8960_v48 = vadd.f32 %v6716_v27, %v996_v4  ;;  %v1456_v11 = vpop.f32.mrf.mxu1  ;;  %6972 = vmatprep.mubr.msk.bf16.mxu0 %vm600_vm1, %v11533_v22 }
 0x1ac   : > { %v1571_v30 = vadd.f32 %v1456_v11, %v8841_v51  ;;  %v1314_v58 = vpop.f32.mrf.mxu0 }
 0x1ad   : > { %v8966_v32 = vadd.f32 %v1314_v58, %v988_v55  ;;  %v6727_v23 = vpop.f32.mrf.mxu1  ;;  %v2916_v58 = vld [vmem:[%s11212_s5] sm:$0x3] }
 0x1ae   : > { %v1574_v15 = vadd.f32 %v6727_v23, %v8843_v13  ;;  %v6717_v9 = vpop.f32.mrf.mxu0  ;;  %7400 = vmatprep.subr.msk.bf16.mxu0 %vm649_vm0, %v2916_v58 }
 0x1af   : > { %v8970_v63 = vadd.f32 %v6717_v9, %v999_v50  ;;  %v1459_v4 = vpop.f32.mrf.mxu1 }
 0x1b0   : > { %v1317_v24 = vpop.f32.mrf.mxu0 }
 0x1b1   : > { %v8972_v27 = vadd.f32 %v1317_v24, %v991_v47  ;;  %v6730_v40 = vpop.f32.mrf.mxu1  ;;  %v11536_v24 = vld [vmem:[#allocation3_spill] sm:$0xff] }
 0x1b2   : > { %v1577_v51 = vadd.f32 %v6730_v40, %v8853_v25  ;;  %v6756_v41 = vpop.f32.mrf.mxu0 }
 0x1b3   : > { %v8975_v12 = vadd.f32 %v6756_v41, %v1569_v16  ;;  %v1472_v31 = vpop.f32.mrf.mxu1 }
 0x1b4   : > { %v1575_v59 = vadd.f32 %v1472_v31, %v8861_v60  ;;  %v1654_v55 = vpop.f32.mrf.mxu0  ;;  %v3215_v60 = vsel %vm649_vm0, %v2916_v58, 0 }
 0x1b5   : > { %v8978_v13 = vadd.f32 %v1654_v55, %v1567_v57  ;;  %v6731_v11 = vpop.f32.mrf.mxu1  ;;  %6971 = vmatpush3.bf16.msra.mxu0 %v3215_v60 }
 0x1b6   : > { %v1578_v52 = vadd.f32 %v6731_v11, %v8863_v43  ;;  %v6757_v22 = vpop.f32.mrf.mxu0 }
 0x1b7   : > { %v8985_v25 = vadd.f32 %v6757_v22, %v1570_v18  ;;  %v1475_v16 = vpop.f32.mrf.mxu1 }
 0x1b8   : > { %v1657_v50 = vpop.f32.mrf.mxu0  ;;  %6973 = vmatmul.mubr.msk.bf16.vlgmr.msra.gmra.mxu0 %vm600_vm1, %v11536_v24  ;;  %v1576_v24 = vadd.f32 %v1475_v16, %v8867_v0  ;;  %v11541_v16 = vld [vmem:[#allocation8_spill] sm:$0xff] }
 0x1b9   : > { %v8989_v57 = vadd.f32 %v1657_v50, %v1568_v14  ;;  %v6734_v23 = vpop.f32.mrf.mxu1  ;;  %6976 = vmatprep.mubr.msk.bf16.mxu0 %vm600_vm1, %v11537_v62 }
 0x1ba   : > { %v1581_v43 = vadd.f32 %v6734_v23, %v8878_v61  ;;  %v6760_v9 = vpop.f32.mrf.mxu0  ;;  %v1572_v61 = vadd.f32 %v1459_v4, %v8845_v17  ;;  %v11538_v23 = vld [vmem:[#allocation5_spill] sm:$0xff]  ;;  %v11539_v4 = vld [vmem:[#allocation6_spill] sm:$0xff] }
 0x1bb   : > { %v8992_v19 = vadd.f32 %v6760_v9, %v1573_v53  ;;  %v1488_v47 = vpop.f32.mrf.mxu1 }
 0x1bc   : > { %v1579_v8 = vadd.f32 %v1488_v47, %v8885_v10  ;;  %v1670_v18 = vpop.f32.mrf.mxu0 }
 0x1bd   : > { %v8999_v40 = vadd.f32 %v1670_v18, %v1571_v30  ;;  %v6735_v41 = vpop.f32.mrf.mxu1 }
 0x1be   : > { %v1582_v31 = vadd.f32 %v6735_v41, %v8887_v7  ;;  %v6761_v55 = vpop.f32.mrf.mxu0  ;;  %v7412_v7 = vld [vmem:[%s11211_s4 + $0x38] sm:$0xff]  }
 0x1bf   : > { %v9003_v53 = vadd.f32 %v6761_v55, %v1574_v15  ;;  %v1491_v11 = vpop.f32.mrf.mxu1  ;;  %6922 = vmatprep.subr.bf16.mxu1 %v7412_v7 }
 0x1c0   : > { %v1673_v22 = vpop.f32.mrf.mxu0  ;;  %6977 = vmatmul.mubr.msk.bf16.gmra.mxu0 %vm600_vm1, %v11538_v23  ;;  %6923 = vmatpush3.bf16.msra.mxu1 %v7412_v7  ;;  %v1580_v23 = vadd.f32 %v1491_v11, %v8892_v26  ;;  %v11543_v11 = vld [vmem:[#allocation91_spill] sm:$0xff] }
 0x1c1   : > { %v9005_v58 = vadd.f32 %v1673_v22, %v1572_v61  ;;  %v6738_v14 = vpop.f32.mrf.mxu1  ;;  %6980 = vmatprep.mubr.msk.bf16.mxu0 %vm600_vm1, %v11539_v4 }
 0x1c2   : > { %v1585_v10 = vadd.f32 %v6738_v14, %v8902_v38  ;;  %v6764_v60 = vpop.f32.mrf.mxu0 }
 0x1c3   : > { %v9008_v50 = vadd.f32 %v6764_v60, %v1577_v51  ;;  %v1504_v30 = vpop.f32.mrf.mxu1  ;;  %v11540_v60 = vld [vmem:[#allocation7_spill] sm:$0xff] }
 0x1c4   : > { %v1583_v17 = vadd.f32 %v1504_v30, %v8906_v2  ;;  %v1686_v15 = vpop.f32.mrf.mxu0 }
 0x1c5   : > { %v9018_v9 = vadd.f32 %v1686_v15, %v1575_v59  ;;  %v6739_v38 = vpop.f32.mrf.mxu1 }
 0x1c6   : > { %v1586_v51 = vadd.f32 %v6739_v38, %v8908_v34  ;;  %v6765_v47 = vpop.f32.mrf.mxu0  ;;  %v7413_v34 = vld [vmem:[%s11211_s4 + $0x30] sm:$0xff]  }
 0x1c7   : > { %v9022_v18 = vadd.f32 %v6765_v47, %v1578_v52  ;;  %v9024_v62 = vpop.f32.mrf.mxu1  ;;  %6924 = vmatprep.subr.bf16.mxu1 %v7413_v34 }
 0x1c8   : > { %v1689_v41 = vpop.f32.mrf.mxu0  ;;  %6981 = vmatmul.mubr.msk.bf16.gmra.mxu0 %vm600_vm1, %v11540_v60  ;;  %6925 = vmatpush3.bf16.msra.mxu1 %v7413_v34 }
 0x1c9   : > { %v9026_v2 = vadd.f32 %v1689_v41, %v1576_v24  ;;  %v6742_v55 = vpop.f32.mrf.mxu1  ;;  %6984 = vmatprep.mubr.msk.bf16.mxu0 %vm600_vm1, %v11541_v16 }
 0x1ca   : > { %v1589_v61 = vadd.f32 %v6742_v55, %v8918_v42  ;;  %v6768_v59 = vpop.f32.mrf.mxu0 }
 0x1cb   : > { %v9029_v22 = vadd.f32 %v6768_v59, %v1581_v43  ;;  %v1520_v14 = vpop.f32.mrf.mxu1  ;;  %v11542_v59 = vld [vmem:[#allocation9_spill] sm:$0xff] }
 0x1cc   : > { %v1587_v0 = vadd.f32 %v1520_v14, %v8925_v46  ;;  %v1702_v52 = vpop.f32.mrf.mxu0 }
 0x1cd   : > { %v9039_v30 = vadd.f32 %v1702_v52, %v1579_v8  ;;  %v6743_v42 = vpop.f32.mrf.mxu1 }
 0x1ce   : > { %v1590_v43 = vadd.f32 %v6743_v42, %v8927_v3  ;;  %v6769_v7 = vpop.f32.mrf.mxu0  ;;  %v7414_v3 = vld [vmem:[%s11211_s4 + $0x28] sm:$0xff]  }
 0x1cf   : > { %v9043_v15 = vadd.f32 %v6769_v7, %v1582_v31  ;;  %v9045_v4 = vpop.f32.mrf.mxu1  ;;  %6926 = vmatprep.subr.bf16.mxu1 %v7414_v3 }
 0x1d0   : > { %v1705_v38 = vpop.f32.mrf.mxu0  ;;  %6985 = vmatmul.mubr.msk.bf16.gmra.mxu0 %vm600_vm1, %v11542_v59  ;;  %6927 = vmatpush3.bf16.msra.mxu1 %v7414_v3  ;;  %v7418_v3 = vld [vmem:[%s11211_s4 + $0xb0] sm:$0xff]  }
 0x1d1   : > { %v9047_v46 = vadd.f32 %v1705_v38, %v1580_v23  ;;  %v6746_v47 = vpop.f32.mrf.mxu1  ;;  %6988 = vmatprep.mubr.msk.bf16.mxu0 %vm600_vm1, %v11543_v11 }
 0x1d2   : > { %v1593_v24 = vadd.f32 %v6746_v47, %v8938_v49  ;;  %v6772_v8 = vpop.f32.mrf.mxu0 }
 0x1d3   : > { %v9050_v41 = vadd.f32 %v6772_v8, %v1585_v10  ;;  %v1536_v55 = vpop.f32.mrf.mxu1 }
 0x1d4   : > { %v1591_v26 = vadd.f32 %v1536_v55, %v8946_v36  ;;  %v1718_v31 = vpop.f32.mrf.mxu0  ;;  %v7416_v36 = vld [vmem:[%s11211_s4 + $0xb8] sm:$0xff]  }
 0x1d5   : > { %v9060_v14 = vadd.f32 %v1718_v31, %v1583_v17  ;;  %v6747_v49 = vpop.f32.mrf.mxu1  ;;  %7052 = vmatprep.subr.bf16.mxu0 %v7416_v36  ;;  %v11545_v55 = vld [vmem:[#allocation93_spill] sm:$0xff] }
 0x1d6   : > { %v1594_v10 = vadd.f32 %v6747_v49, %v8949_v6  ;;  %v6773_v34 = vpop.f32.mrf.mxu0  ;;  %v7415_v6 = vld [vmem:[%s11211_s4 + $0x20] sm:$0xff]   ;;  %7053 = vmatpush3.bf16.msra.mxu0 %v7416_v36 }
 0x1d7   : > { %v9063_v60 = vadd.f32 %v6773_v34, %v1586_v51  ;;  %v9065_v52 = vpop.f32.mrf.mxu1  ;;  %v11544_v51 = vld [vmem:[#allocation92_spill] sm:$0xff]  ;;  %6928 = vmatprep.subr.bf16.mxu1 %v7415_v6  ;;  %7054 = vmatprep.subr.bf16.mxu0 %v7418_v3  ;;  %v7419_v34 = vld [vmem:[%s11211_s4 + $0xa8] sm:$0xff]  }
 0x1d8   : > { %v9067_v16 = vpop.f32.mrf.mxu0  ;;  %6989 = vmatmul.mubr.msk.bf16.gmra.mxu0 %vm600_vm1, %v11544_v51  ;;  %6929 = vmatpush3.bf16.msra.mxu1 %v7415_v6 }
 0x1d9   : > { %v6750_v42 = vpop.f32.mrf.mxu1  ;;  %6992 = vmatprep.mubr.msk.bf16.mxu0 %vm600_vm1, %v11545_v55  ;;  %v7421_v55 = vld [vmem:[%s11211_s4 + $0xa0] sm:$0xff]  }
 0x1da   : > { %v1597_v17 = vadd.f32 %v6750_v42, %v8960_v48  ;;  %v6776_v7 = vpop.f32.mrf.mxu0  ;;  %7055 = vmatpush3.bf16.msra.mxu0 %v7418_v3 }
 0x1db   : > { %v9073_v23 = vadd.f32 %v6776_v7, %v1589_v61  ;;  %v1552_v38 = vpop.f32.mrf.mxu1  ;;  %7056 = vmatprep.subr.bf16.mxu0 %v7419_v34 }
 0x1dc   : > { %v1595_v47 = vadd.f32 %v1552_v38, %v8966_v32  ;;  %v1734_v8 = vpop.f32.mrf.mxu0  ;;  %v11546_v38 = vld [vmem:[#allocation94_spill] sm:$0xff] }
 0x1dd   : > { %v9083_v48 = vadd.f32 %v1734_v8, %v1587_v0  ;;  %v6751_v61 = vpop.f32.mrf.mxu1  ;;  %v11547_v8 = vld [vmem:[#allocation19_spill] sm:$0xff] }
 0x1de   : > { %v1598_v59 = vadd.f32 %v6751_v61, %v8970_v63  ;;  %v6777_v31 = vpop.f32.mrf.mxu0  ;;  %7057 = vmatpush3.bf16.msra.mxu0 %v7419_v34  ;;  %v7422_v34 = vld [vmem:[%s11211_s4 + $0x98] sm:$0xff]  }
 0x1df   : > { %v9089_v11 = vadd.f32 %v6777_v31, %v1590_v43  ;;  %v9091_v32 = vpop.f32.mrf.mxu1  ;;  %v7417_v43 = vld [vmem:[%s11211_s4 + $0x18] sm:$0xff]   ;;  %7058 = vmatprep.subr.bf16.mxu0 %v7421_v55 }
 0x1e0   : > { %v9093_v49 = vpop.f32.mrf.mxu0  ;;  %6993 = vmatmul.mubr.msk.bf16.gmra.mxu0 %vm600_vm1, %v11546_v38  ;;  %6930 = vmatprep.subr.bf16.mxu1 %v7417_v43 }
 0x1e1   : > { %v6790_v0 = vpop.f32.mrf.mxu1  ;;  %6996 = vmatprep.mubr.msk.bf16.mxu0 %vm600_vm1, %v11547_v8  ;;  %6931 = vmatpush3.bf16.msra.mxu1 %v7417_v43  ;;  %v11548_v43 = vld [vmem:[#allocation22_spill] sm:$0xff] }
 0x1e2   : > { %v2005_v42 = vadd.f32 %v6790_v0, %v8975_v12  ;;  %v6780_v36 = vpop.f32.mrf.mxu0  ;;  %7059 = vmatpush3.bf16.msra.mxu0 %v7421_v55 }
 0x1e3   : > { %v9099_v7 = vadd.f32 %v6780_v36, %v1593_v24  ;;  %v1876_v63 = vpop.f32.mrf.mxu1  ;;  %7060 = vmatprep.subr.bf16.mxu0 %v7422_v34 }
 0x1e4   : > { %v2003_v6 = vadd.f32 %v1876_v63, %v8978_v13  ;;  %v1750_v51 = vpop.f32.mrf.mxu0 }
 0x1e5   : > { %v9109_v12 = vadd.f32 %v1750_v51, %v1591_v26  ;;  %v6791_v24 = vpop.f32.mrf.mxu1 }
 0x1e6   : > { %v2006_v61 = vadd.f32 %v6791_v24, %v8985_v25  ;;  %v6781_v3 = vpop.f32.mrf.mxu0  ;;  %7061 = vmatpush3.bf16.msra.mxu0 %v7422_v34  ;;  %v11549_v24 = vld [vmem:[#allocation23_spill] sm:$0xff] }
 0x1e7   : > { %v9115_v31 = vadd.f32 %v6781_v3, %v1594_v10  ;;  %v9117_v13 = vpop.f32.mrf.mxu1  ;;  %v7420_v10 = vld [vmem:[%s11211_s4 + $0x10] sm:$0xff]  }
 0x1e8   : > { %v9119_v0 = vpop.f32.mrf.mxu0  ;;  %6997 = vmatmul.mubr.msk.bf16.gmra.mxu0 %vm600_vm1, %v11548_v43  ;;  %6932 = vmatprep.subr.bf16.mxu1 %v7420_v10 }
 0x1e9   : > { %v6794_v26 = vpop.f32.mrf.mxu1  ;;  %7000 = vmatprep.mubr.msk.bf16.mxu0 %vm600_vm1, %v11549_v24  ;;  %6933 = vmatpush3.bf16.msra.mxu1 %v7420_v10 }
 0x1ea   : > { %v2009_v36 = vadd.f32 %v6794_v26, %v8992_v19  ;;  %v6784_v63 = vpop.f32.mrf.mxu0  ;;  %v7424_v26 = vld [vmem:[%s11211_s4 + $0x90] sm:$0xff]  }
 0x1eb   : > { %v9125_v38 = vadd.f32 %v6784_v63, %v1597_v17  ;;  %v1892_v25 = vpop.f32.mrf.mxu1  ;;  %7062 = vmatprep.subr.bf16.mxu0 %v7424_v26 }
 0x1ec   : > { %v2007_v51 = vadd.f32 %v1892_v25, %v8999_v40  ;;  %v1766_v8 = vpop.f32.mrf.mxu0  ;;  %7063 = vmatpush3.bf16.msra.mxu0 %v7424_v26 }
 0x1ed   : > { %v9135_v19 = vadd.f32 %v1766_v8, %v1595_v47  ;;  %v6795_v17 = vpop.f32.mrf.mxu1 }
 0x1ee   : > { %v2010_v55 = vadd.f32 %v6795_v17, %v9003_v53  ;;  %v6785_v3 = vpop.f32.mrf.mxu0  ;;  %v7425_v53 = vld [vmem:[%s11211_s4 + $0x88] sm:$0xff]  }
 0x1ef   : > { %v9141_v63 = vadd.f32 %v6785_v3, %v1598_v59  ;;  %v9143_v40 = vpop.f32.mrf.mxu1  ;;  %v7423_v17 = vld [vmem:[%s11211_s4 + $0x8] sm:$0xff]   ;;  %7064 = vmatprep.subr.bf16.mxu0 %v7425_v53 }
 0x1f0   : > { %v9145_v34 = vpop.f32.mrf.mxu0  ;;  %7001 = vmatmul.mubr.msk.bf16.gmra.mxu0 %vm600_vm1, %v8679_v44  ;;  %6934 = vmatprep.subr.bf16.mxu1 %v7423_v17  ;;  %v7427_v44 = vld [vmem:[%s11211_s4 + $0x80] sm:$0xff]  }
 0x1f1   : > { %11550 = vst [vmem:[#allocation58_spill] sm:$0xff] %v9141_v63  ;;  %v6798_v25 = vpop.f32.mrf.mxu1  ;;  %7065 = vmatpush3.bf16.msra.mxu0 %v7425_v53  ;;  %6935 = vmatpush3.bf16.msra.mxu1 %v7423_v17  ;;  %v7426_v53 = vld [vmem:[%s11211_s4] sm:$0xff]  }
 0x1f2   : > { %v2013_v47 = vadd.f32 %v6798_v25, %v9008_v50  ;;  %v6824_v43 = vpop.f32.mrf.mxu0  ;;  %7066 = vmatprep.subr.bf16.mxu0 %v7427_v44  ;;  %6936 = vmatprep.subr.bf16.mxu1 %v7426_v53 }
 0x1f3   : > { %v9151_v10 = vadd.f32 %v6824_v43, %v2005_v42  ;;  %v1908_v8 = vpop.f32.mrf.mxu1 }
 0x1f4   : > { %v2011_v59 = vadd.f32 %v1908_v8, %v9018_v9  ;;  %v2202_v24 = vpop.f32.mrf.mxu0 }
 0x1f5   : > { %v9159_v50 = vadd.f32 %v2202_v24, %v2003_v6  ;;  %v6799_v3 = vpop.f32.mrf.mxu1  ;;  %7067 = vmatpush3.bf16.msra.mxu0 %v7427_v44  ;;  %6937 = vmatpush3.bf16.msra.mxu1 %v7426_v53 }
 0x1f6   : > { %v2014_v26 = vadd.f32 %v6799_v3, %v9022_v18  ;;  %v6825_v42 = vpop.f32.mrf.mxu0 }
 0x1f7   : > { %v9165_v25 = vadd.f32 %v6825_v42, %v2006_v61  ;;  %v9167_v9 = vpop.f32.mrf.mxu1 }
 0x1f8   : > { %v9169_v43 = vpop.f32.mrf.mxu0 }
 0x1f9   : > { %v6802_v6 = vpop.f32.mrf.mxu1 }
 0x1fa   : > { %v2017_v18 = vadd.f32 %v6802_v6, %v9029_v22  ;;  %v6828_v8 = vpop.f32.mrf.mxu0  ;;  %v9188_v22 = vld [vmem:[%s11211_s4 + $0x78] sm:$0xff]  }
 0x1fb   : > { %v9175_v24 = vadd.f32 %v6828_v8, %v2009_v36  ;;  %v1924_v3 = vpop.f32.mrf.mxu1  ;;  %11551 = vst [vmem:[#allocation63_spill] sm:$0xff] %v9188_v22  ;;  %7004 = vmatprep.subr.bf16.mxu1 %v9188_v22 }
 0x1fc   : > { %v2015_v61 = vadd.f32 %v1924_v3, %v9039_v30  ;;  %v2218_v42 = vpop.f32.mrf.mxu0 }
 0x1fd   : > { %v9178_v17 = vadd.f32 %v2218_v42, %v2007_v51  ;;  %v6803_v5 = vpop.f32.mrf.mxu1 }
 0x1fe   : > { %v2018_v56 = vadd.f32 %v6803_v5, %v9043_v15  ;;  %v6829_v37 = vpop.f32.mrf.mxu0 }
 0x1ff   : > { %v9181_v29 = vadd.f32 %v6829_v37, %v2010_v55  ;;  %v9183_v44 = vpop.f32.mrf.mxu1 }
 0x200   : > { %v9190_v36 = vpop.f32.mrf.mxu0 }
 0x201   : > { %v6806_v30 = vpop.f32.mrf.mxu1 }
 0x202   : > { %v2021_v51 = vadd.f32 %v6806_v30, %v9050_v41  ;;  %v6832_v6 = vpop.f32.mrf.mxu0 }
 0x203   : > { %v9194_v53 = vadd.f32 %v6832_v6, %v2013_v47  ;;  %v1940_v5 = vpop.f32.mrf.mxu1 }
 0x204   : > { %v2019_v37 = vadd.f32 %v1940_v5, %v9060_v14  ;;  %v2234_v15 = vpop.f32.mrf.mxu0 }
 0x205   : > { %v9197_v55 = vadd.f32 %v2234_v15, %v2011_v59  ;;  %v6807_v8 = vpop.f32.mrf.mxu1 }
 0x206   : > { %v2022_v3 = vadd.f32 %v6807_v8, %v9063_v60  ;;  %v6833_v42 = vpop.f32.mrf.mxu0 }
 0x207   : > { %v9200_v39 = vadd.f32 %v6833_v42, %v2014_v26  ;;  %v9202_v28 = vpop.f32.mrf.mxu1 }
 0x208   : > { %v9204_v22 = vpop.f32.mrf.mxu0 }
 0x209   : > { %v6810_v41 = vpop.f32.mrf.mxu1 }
 0x20a   : > { %v2025_v47 = vadd.f32 %v6810_v41, %v9073_v23  ;;  %v6836_v30 = vpop.f32.mrf.mxu0 }
 0x20b   : > { %v9207_v6 = vadd.f32 %v6836_v30, %v2017_v18  ;;  %v1956_v14 = vpop.f32.mrf.mxu1 }
 0x20c   : > { %v2023_v59 = vadd.f32 %v1956_v14, %v9083_v48  ;;  %v2250_v5 = vpop.f32.mrf.mxu0 }
 0x20d   : > { %v9210_v15 = vadd.f32 %v2250_v5, %v2015_v61  ;;  %v6811_v60 = vpop.f32.mrf.mxu1 }
 0x20e   : > { %v2026_v26 = vadd.f32 %v6811_v60, %v9089_v11  ;;  %v6837_v8 = vpop.f32.mrf.mxu0 }
 0x20f   : > { %v9213_v42 = vadd.f32 %v6837_v8, %v2018_v56  ;;  %v9215_v20 = vpop.f32.mrf.mxu1 }
 0x210   : > { %v9217_v63 = vpop.f32.mrf.mxu0 }
 0x211   : > { %11552 = vst [vmem:[#allocation62_spill] sm:$0xff] %v9213_v42  ;;  %11553 = vst [vmem:[#allocation55_spill] sm:$0xff] %v9217_v63  ;;  %v6814_v23 = vpop.f32.mrf.mxu1 }
 0x212   : > { %v2029_v18 = vadd.f32 %v6814_v23, %v9099_v7  ;;  %v6840_v41 = vpop.f32.mrf.mxu0 }
 0x213   : > { %v9220_v30 = vadd.f32 %v6840_v41, %v2021_v51  ;;  %v1972_v48 = vpop.f32.mrf.mxu1 }
 0x214   : > { %v2027_v61 = vadd.f32 %v1972_v48, %v9109_v12  ;;  %v2266_v14 = vpop.f32.mrf.mxu0 }
 0x215   : > { %11554 = vst [vmem:[#allocation66_spill] sm:$0xff] %v9220_v30  ;;  %v9223_v5 = vadd.f32 %v2266_v14, %v2019_v37  ;;  %v6815_v11 = vpop.f32.mrf.mxu1 }
 0x216   : > { %v2030_v56 = vadd.f32 %v6815_v11, %v9115_v31  ;;  %v6841_v60 = vpop.f32.mrf.mxu0  ;;  %v9239_v31 = vld [vmem:[%s11211_s4 + $0x138] sm:$0xff]  }
 0x217   : > { %11555 = vst [vmem:[#allocation89_spill] sm:$0xff] %v9223_v5  ;;  %v9226_v8 = vadd.f32 %v6841_v60, %v2022_v3  ;;  %v9228_v42 = vpop.f32.mrf.mxu1  ;;  %11558 = vst [vmem:[#allocation2_spill] sm:$0xff] %v9239_v31  ;;  %7148 = vmatprep.subr.bf16.mxu0 %v9239_v31 }
 0x218   : > { %v9230_v63 = vpop.f32.mrf.mxu0 }
 0x219   : > { %11556 = vst [vmem:[#allocation90_spill] sm:$0xff] %v9226_v8  ;;  %v6818_v7 = vpop.f32.mrf.mxu1 }
 0x21a   : > { %v2033_v51 = vadd.f32 %v6818_v7, %v9125_v38  ;;  %v6844_v23 = vpop.f32.mrf.mxu0 }
 0x21b   : > { %v9233_v41 = vadd.f32 %v6844_v23, %v2025_v47  ;;  %v1988_v12 = vpop.f32.mrf.mxu1 }
 0x21c   : > { %v2031_v37 = vadd.f32 %v1988_v12, %v9135_v19  ;;  %v2282_v48 = vpop.f32.mrf.mxu0 }
 0x21d   : > { %11557 = vst [vmem:[#allocation14_spill] sm:$0xff] %v9233_v41  ;;  %v9241_v3 = vadd.f32 %v2282_v48, %v2023_v59  ;;  %v9243_v14 = vpop.f32.mrf.mxu1 }
 0x21e   : > { %v6845_v11 = vpop.f32.mrf.mxu0 }
 0x21f   : > { %11559 = vst [vmem:[#allocation18_spill] sm:$0xff] %v9241_v3  ;;  %v9246_v38 = vadd.f32 %v6845_v11, %v2026_v26  ;;  %v9248_v47 = vpop.f32.mrf.mxu1 }
 0x220   : > { %v9250_v60 = vpop.f32.mrf.mxu0 }
 0x221   : > { %11560 = vst [vmem:[#allocation59_spill] sm:$0xff] %v9246_v38  ;;  %v6858_v19 = vpop.f32.mrf.mxu1 }
 0x222   : > { %v2553_v7 = vadd.f32 %v6858_v19, %v9151_v10  ;;  %v6848_v23 = vpop.f32.mrf.mxu0 }
 0x223   : > { %v9253_v12 = vadd.f32 %v6848_v23, %v2029_v18  ;;  %v2424_v41 = vpop.f32.mrf.mxu1 }
 0x224   : > { %v2551_v59 = vadd.f32 %v2424_v41, %v9159_v50  ;;  %v2298_v48 = vpop.f32.mrf.mxu0 }
 0x225   : > { %v9256_v3 = vadd.f32 %v2298_v48, %v2027_v61  ;;  %v6859_v8 = vpop.f32.mrf.mxu1 }
 0x226   : > { %v2554_v26 = vadd.f32 %v6859_v8, %v9165_v25  ;;  %v6849_v11 = vpop.f32.mrf.mxu0 }
 0x227   : > { %v9259_v31 = vadd.f32 %v6849_v11, %v2030_v56  ;;  %v2427_v38 = vpop.f32.mrf.mxu1 }
 0x228   : > { %v9261_v5 = vpop.f32.mrf.mxu0 }
 0x229   : > { %11561 = vst [vmem:[#allocation3_spill] sm:$0xff] %v9259_v31  ;;  %v6862_v30 = vpop.f32.mrf.mxu1 }
 0x22a   : > { %v2557_v10 = vadd.f32 %v6862_v30, %v9175_v24  ;;  %v6852_v18 = vpop.f32.mrf.mxu0  ;;  %v11564_v24 = vld [vmem:[#allocation27_spill] sm:$0xff] }
 0x22b   : > { %v9264_v19 = vadd.f32 %v6852_v18, %v2033_v51  ;;  %v2440_v23 = vpop.f32.mrf.mxu1  ;;  %v943_v30 = vadd.f32 %v8865_v33, %v11564_v24  ;;  %v11565_v18 = vld [vmem:[#allocation26_spill] sm:$0xff] }
 0x22c   : > { %v2555_v50 = vadd.f32 %v2440_v23, %v9178_v17  ;;  %v2314_v61 = vpop.f32.mrf.mxu0 }
 0x22d   : > { %11562 = vst [vmem:[#allocation4_spill] sm:$0xff] %v9264_v19  ;;  %v9267_v41 = vadd.f32 %v2314_v61, %v2031_v37  ;;  %v6863_v48 = vpop.f32.mrf.mxu1  ;;  %v959_v37 = vadd.f32 %v8889_v45, %v11565_v18  ;;  %v9288_v61 = vld [vmem:[%s11210_s3] ss:$0 sm:$0xff] }
 0x22e   : > { %v9270_v25 = vadd.f32 %v6863_v48, %v9181_v29  ;;  %v9272_v56 = vpop.f32.mrf.mxu0  ;;  %v2004_v29 = vadd.f32 %v9117_v13, %v8989_v57 }
 0x22f   : > { %11563 = vst [vmem:[#allocation5_spill] sm:$0xff] %v9267_v41  ;;  %v2443_v8 = vpop.f32.mrf.mxu1  ;;  %v11566_v41 = vld [vmem:[#allocation30_spill] sm:$0xff]  ;;  %v1350_v45 = vadd.f32 %v8929_v35, %v959_v37 }
 0x230   : > { %v9274_v11 = vpop.f32.mrf.mxu0  ;;  %v975_v33 = vadd.f32 %v8910_v21, %v11566_v41  ;;  %v2330_v57 = vadd.f32 %v9169_v43, %v2004_v29 }
 0x231   : > { %v6866_v31 = vpop.f32.mrf.mxu1 }
 0x232   : > { %v9279_v51 = vadd.f32 %v6866_v31, %v9194_v53  ;;  %v6892_v17 = vpop.f32.mrf.mxu0  ;;  %v1346_v53 = vadd.f32 %v8912_v54, %v943_v30  ;;  %v2552_v41 = vadd.f32 %v2427_v38, %v2330_v57 }
 0x233   : > { %v2815_v23 = vadd.f32 %v6892_v17, %v2553_v7  ;;  %v2456_v48 = vpop.f32.mrf.mxu1  ;;  %v1354_v17 = vadd.f32 %v8951_v1, %v975_v33 }
 0x234   : > { %v9294_v31 = vadd.f32 %v2456_v48, %v9197_v55  ;;  %v2686_v24 = vpop.f32.mrf.mxu0  ;;  %v1584_v18 = vadd.f32 %v9024_v62, %v1346_v53  ;;  %v1588_v55 = vadd.f32 %v9045_v4, %v1350_v45  ;;  %v1596_v62 = vadd.f32 %v9091_v32, %v8972_v27 }
 0x235   : > { %v2813_v13 = vadd.f32 %v2686_v24, %v2551_v59  ;;  %v6867_v7 = vpop.f32.mrf.mxu1  ;;  %v2854_v19 = vadd.f32 %v9288_v61, %v2815_v23  ;;  %v1592_v35 = vadd.f32 %v9065_v52, %v1354_v17  ;;  %v2012_v27 = vadd.f32 %v9167_v9, %v9026_v2 }
 0x236   : > { %v9302_v21 = vadd.f32 %v6867_v7, %v9200_v39  ;;  %v6893_v54 = vpop.f32.mrf.mxu0  ;;  %v1798_v43 = vadd.f32 %v9067_v16, %v1584_v18  ;;  %v1802_v39 = vadd.f32 %v9093_v49, %v1588_v55  ;;  %v1810_v33 = vadd.f32 %v9145_v34, %v1596_v62  ;;  %v11573_v62 = vld [vmem:[#allocation58_spill] sm:$0xff]  ;;  %v7429_v55 = vld [vmem:[%s11211_s4 + $0x70] sm:$0xff]  }
 0x237   : > { %v2816_v30 = vadd.f32 %v6893_v54, %v2554_v26  ;;  %v9305_v48 = vpop.f32.mrf.mxu1  ;;  %v2852_v1 = vadd.f32 %v9288_v61, %v2813_v13  ;;  %v1806_v38 = vadd.f32 %v9119_v0, %v1592_v35  ;;  %v2008_v26 = vadd.f32 %v9143_v40, %v9005_v58 }
 0x238   : > { %v2689_v59 = vpop.f32.mrf.mxu0  ;;  %v9317_v52 = vmax.f32 %v2854_v19, 0.0  ;;  %v2016_v34 = vadd.f32 %v9183_v44, %v9047_v46  ;;  %v2020_v57 = vadd.f32 %v9202_v28, %v1798_v43  ;;  %v2338_v28 = vadd.f32 %v9204_v22, %v2012_v27 }
 0x239   : > { %v2855_v37 = vadd.f32 %v9288_v61, %v2816_v30  ;;  %v2814_v29 = vadd.f32 %v2689_v59, %v2552_v41  ;;  %v6870_v4 = vpop.f32.mrf.mxu1  ;;  %v2334_v0 = vadd.f32 %v9190_v36, %v2008_v26  ;;  %v9329_v24 = vmax.f32 %v2852_v1, 0.0  ;;  %v11571_v30 = vld [vmem:[#allocation55_spill] sm:$0xff] }
 0x23a   : > { %v9320_v16 = vadd.f32 %v6870_v4, %v9207_v6  ;;  %v6896_v23 = vpop.f32.mrf.mxu0  ;;  %v3678_v36 = vrot.slane %v9317_v52, 1  ;;  %v2342_v35 = vadd.f32 %v11571_v30, %v2016_v34  ;;  %v2028_v22 = vadd.f32 %v9228_v42, %v1806_v38 }
 0x23b   : > { %v9325_v32 = vmax.f32 %v2855_v37, 0.0  ;;  %v2853_v49 = vadd.f32 %v9288_v61, %v2814_v29  ;;  %v2472_v53 = vpop.f32.mrf.mxu1  ;;  %v2819_v58 = vadd.f32 %v6896_v23, %v2557_v10  ;;  %v2556_v13 = vadd.f32 %v2443_v8, %v2334_v0 }
 0x23c   : > { %v9332_v40 = vadd.f32 %v2472_v53, %v9210_v15  ;;  %v2702_v6 = vpop.f32.mrf.mxu0  ;;  %v2024_v8 = vadd.f32 %v9215_v20, %v1802_v39  ;;  %v11348_v18 = vrot.slane %v9329_v24, 1  ;;  %v9366_v20 = vadd.f32 %v9230_v63, %v2020_v57 }
 0x23d   : > { %v3679_v19 = vrot.slane %v9325_v32, 1  ;;  %v9337_v2 = vmax.f32 %v2853_v49, 0.0  ;;  %v2817_v9 = vadd.f32 %v2702_v6, %v2555_v50  ;;  %v6871_v45 = vpop.f32.mrf.mxu1  ;;  %v9343_v15 = vpack.c.bf16 %v9325_v32, %v9317_v52 }
 0x23e   : > { %v6897_v7 = vpop.f32.mrf.mxu0  ;;  %v2034_v39 = vadd.f32 %v9243_v14, %v11573_v62  ;;  %v2032_v4 = vadd.f32 %v9248_v47, %v1810_v33  ;;  %v2858_v26 = vadd.f32 %v9288_v61, %v2819_v58  ;;  %v9380_v63 = vadd.f32 %v9250_v60, %v2024_v8 }
 0x23f   : > { %11567 = vst [vmem:[#allocation6_spill] sm:$0xff] %v9343_v15  ;;  %v3677_v10 = vrot.slane %v9337_v2, 1  ;;  %v2856_v46 = vadd.f32 %v9288_v61, %v2817_v9  ;;  %v2820_v44 = vadd.f32 %v6897_v7, %v9270_v25  ;;  %v2475_v17 = vpop.f32.mrf.mxu1  ;;  %v9350_v50 = vpack.c.bf16 %v9337_v2, %v9329_v24  ;;  %v11577_v9 = vld [vmem:[#allocation73_spill] sm:$0xff] }
 0x240   : > { %v2705_v54 = vpop.f32.mrf.mxu0  ;;  %v9357_v41 = vsel %vm1010_vm3, %v3678_v36, %v3679_v19  ;;  %v9383_v14 = vadd.f32 %v9261_v5, %v2028_v22  ;;  %v9388_v0 = vadd.f32 %v9272_v56, %v2034_v39  ;;  %v9391_v47 = vadd.f32 %v9274_v11, %v2032_v4 }
 0x241   : > { %11568 = vst [vmem:[#allocation7_spill] sm:$0xff] %v9350_v50  ;;  %11570 = vst [vmem:[#allocation8_spill] sm:$0xff] %v9357_v41  ;;  %v2888_v43 = vmax.f32 %v2856_v46, 0.0  ;;  %v2818_v25 = vadd.f32 %v2705_v54, %v2556_v13  ;;  %v6874_v1 = vpop.f32.mrf.mxu1  ;;  %v9362_v59 = vsel %vm1010_vm3, %v3677_v10, %v3678_v36  ;;  %v9374_v29 = vsel %vm1010_vm3, %v11348_v18, %v3677_v10  ;;  %v11580_v36 = vld [vmem:[#allocation79_spill] sm:$0xff]  ;;  %v11582_v10 = vld [vmem:[#allocation76_spill] sm:$0xff] }
 0x242   : > { %11572 = vst [vmem:[#allocation9_spill] sm:$0xff] %v9362_v59  ;;  %v6900_v37 = vpop.f32.mrf.mxu0  ;;  %11574 = vst [vmem:[#allocation91_spill] sm:$0xff] %v9374_v29  ;;  %v2859_v27 = vadd.f32 %v9288_v61, %v2820_v44  ;;  %v2560_v6 = vadd.f32 %v9305_v48, %v2338_v28  ;;  %v9404_v56 = vmul.f32 %v9317_v52, %v11577_v9  ;;  %v9406_v11 = vmax.f32 %v2858_v26, 0.0  ;;  %v11586_v28 = vld [vmem:[#allocation62_spill] sm:$0xff]  ;;  %v11608_v50 = vld [vmem:[#allocation43_spill] sm:$0xff] }
 0x243   : > { %v3680_v23 = vrot.slane %v2888_v43, 1  ;;  %v2857_v42 = vadd.f32 %v9288_v61, %v2818_v25  ;;  %v2488_v38 = vpop.f32.mrf.mxu1  ;;  %v2823_v49 = vadd.f32 %v6900_v37, %v9279_v51  ;;  %v9413_v7 = vmul.f32 %v9329_v24, %v11580_v36  ;;  %v11590_v37 = vld [vmem:[#allocation74_spill] sm:$0xff] }
 0x244   : > { %v2718_v53 = vpop.f32.mrf.mxu0  ;;  %11578 = vst [vmem:[#allocation94_spill] sm:$0xff] %v9404_v56  ;;  %11579 = vst [vmem:[#allocation19_spill] sm:$0xff] %v9406_v11  ;;  %v9419_v46 = vmax.f32 %v2859_v27, 0.0  ;;  %v2566_v8 = vadd.f32 %v6871_v45, %v11586_v28  ;;  %v2564_v54 = vadd.f32 %v2475_v17, %v2342_v35  ;;  %v9438_v4 = vmul.f32 %v9337_v2, %v11590_v37  ;;  %v11592_v17 = vld [vmem:[#allocation66_spill] sm:$0xff] }
 0x245   : > { %v9393_v33 = vmax.f32 %v2857_v42, 0.0  ;;  %v2821_v58 = vadd.f32 %v2718_v53, %v9294_v31  ;;  %v6875_v60 = vpop.f32.mrf.mxu1  ;;  %v2862_v5 = vadd.f32 %v9288_v61, %v2823_v49  ;;  %v9400_v51 = vsel %vm1010_vm3, %v3679_v19, %v3680_v23  ;;  %11581 = vst [vmem:[#allocation22_spill] sm:$0xff] %v9413_v7  ;;  %v11594_v49 = vld [vmem:[#allocation75_spill] sm:$0xff] }
 0x246   : > { %v6901_v34 = vpop.f32.mrf.mxu0  ;;  %11576 = vst [vmem:[#allocation93_spill] sm:$0xff] %v9400_v51  ;;  %v9417_v19 = vmul.f32 %v9325_v32, %v11582_v10  ;;  %11584 = vst [vmem:[#allocation27_spill] sm:$0xff] %v9419_v46  ;;  %v2569_v35 = vadd.f32 %v6874_v1, %v11592_v17  ;;  %v9446_v53 = vmul.f32 %v2888_v43, %v11594_v49 }
 0x247   : > { %11575 = vst [vmem:[#allocation92_spill] sm:$0xff] %v9393_v33  ;;  %v11347_v57 = vrot.slane %v9393_v33, 1  ;;  %v2860_v31 = vadd.f32 %v9288_v61, %v2821_v58  ;;  %v2824_v13 = vadd.f32 %v6901_v34, %v9302_v21  ;;  %v2491_v48 = vpop.f32.mrf.mxu1  ;;  %v9422_v44 = vpack.c.bf16 %v9393_v33, %v2888_v43  ;;  %11591 = vst [vmem:[#allocation62_spill] sm:$0xff] %v9438_v4  ;;  %v11597_v34 = vld [vmem:[#allocation80_spill] sm:$0xff] }
 0x248   : > { %11583 = vst [vmem:[#allocation23_spill] sm:$0xff] %v9417_v19  ;;  %v2721_v52 = vpop.f32.mrf.mxu0  ;;  %v9426_v22 = vmax.f32 %v2862_v5, 0.0  ;;  %11595 = vst [vmem:[#allocation75_spill] sm:$0xff] %v9446_v53  ;;  %v11613_v33 = vld [vmem:[#allocation44_spill] sm:$0xff] }
 0x249   : > { %11585 = vst [vmem:[#allocation26_spill] sm:$0xff] %v9422_v44  ;;  %v2863_v21 = vadd.f32 %v9288_v61, %v2824_v13  ;;  %v2822_v30 = vadd.f32 %v2721_v52, %v2560_v6  ;;  %v6878_v25 = vpop.f32.mrf.mxu1  ;;  %v9428_v62 = vmax.f32 %v2860_v31, 0.0  ;;  %v9434_v32 = vsel %vm1010_vm3, %v3680_v23, %v11347_v57  ;;  %v11596_v23 = vld [vmem:[#allocation89_spill] sm:$0xff]  ;;  %v11632_v19 = vld [vmem:[#allocation20_spill] sm:$0xff] }
 0x24a   : > { %11587 = vst [vmem:[#allocation30_spill] sm:$0xff] %v9426_v22  ;;  %v6904_v39 = vpop.f32.mrf.mxu0  ;;  %11589 = vst [vmem:[#allocation58_spill] sm:$0xff] %v9434_v32  ;;  %v2567_v6 = vadd.f32 %v2488_v38, %v11596_v23  ;;  %v9453_v31 = vmul.f32 %v9419_v46, %v11597_v34  ;;  %v2951_v43 = vrot.slane %v9426_v22, 7  ;;  %v11619_v22 = vld [vmem:[#allocation4_spill] sm:$0xff]  ;;  %v11630_v34 = vld [vmem:[#allocation67_spill] sm:$0xff] }
 0x24b   : > { %11588 = vst [vmem:[#allocation55_spill] sm:$0xff] %v9428_v62  ;;  %v9442_v26 = vmax.f32 %v2863_v21, 0.0  ;;  %v2861_v42 = vadd.f32 %v9288_v61, %v2822_v30  ;;  %v2504_v27 = vpop.f32.mrf.mxu1  ;;  %v2827_v5 = vadd.f32 %v6904_v39, %v9320_v16  ;;  %v2949_v21 = vrot.slane %v9428_v62, 7  ;;  %v11600_v30 = vld [vmem:[#allocation90_spill] sm:$0xff] }
 0x24c   : > { %v2734_v2 = vpop.f32.mrf.mxu0  ;;  %11598 = vst [vmem:[#allocation89_spill] sm:$0xff] %v9453_v31  ;;  %v2570_v38 = vadd.f32 %v6875_v60, %v11600_v30 }
 0x24d   : > { %11593 = vst [vmem:[#allocation66_spill] sm:$0xff] %v9442_v26  ;;  %v2952_v1 = vrot.slane %v9442_v26, 7  ;;  %v9456_v13 = vmax.f32 %v2861_v42, 0.0  ;;  %v2825_v52 = vadd.f32 %v2734_v2, %v9332_v40  ;;  %v6879_v28 = vpop.f32.mrf.mxu1  ;;  %v2866_v16 = vadd.f32 %v9288_v61, %v2827_v5  ;;  %v11602_v2 = vld [vmem:[#allocation14_spill] sm:$0xff] }
 0x24e   : > { %v6905_v39 = vpop.f32.mrf.mxu0  ;;  %v2568_v40 = vadd.f32 %v2491_v48, %v9366_v20  ;;  %v2573_v58 = vadd.f32 %v6878_v25, %v11602_v2  ;;  %v11605_v48 = vld [vmem:[#allocation59_spill] sm:$0xff] }
 0x24f   : > { %11599 = vst [vmem:[#allocation95_spill] sm:$0xff] %v9456_v13  ;;  %v2950_v17 = vrot.slane %v9456_v13, 7  ;;  %v2864_v23 = vadd.f32 %v9288_v61, %v2825_v52  ;;  %v2828_v57 = vadd.f32 %v6905_v39, %v2566_v8  ;;  %v2507_v45 = vpop.f32.mrf.mxu1  ;;  %v9467_v42 = vpack.c.bf16 %v9456_v13, %v9428_v62  ;;  %v11604_v13 = vld [vmem:[#allocation18_spill] sm:$0xff] }
 0x250   : > { %v9471_v18 = vmax.f32 %v2866_v16, 0.0  ;;  %v2737_v60 = vpop.f32.mrf.mxu0  ;;  %v9475_v5 = vsel %vm396_vm2, %v2951_v43, %v2952_v1  ;;  %v2571_v20 = vadd.f32 %v2504_v27, %v11604_v13  ;;  %v9484_v25 = vadd.f32 %v6879_v28, %v11605_v48  ;;  %v11607_v48 = vld [vmem:[#allocation45_spill] sm:$0xff] }
 0x251   : > { %11601 = vst [vmem:[#allocation90_spill] sm:$0xff] %v9467_v42  ;;  %11603 = vst [vmem:[#allocation14_spill] sm:$0xff] %v9475_v5  ;;  %v2896_v30 = vmax.f32 %v2864_v23, 0.0  ;;  %v2867_v52 = vadd.f32 %v9288_v61, %v2828_v57  ;;  %v2826_v8 = vadd.f32 %v2737_v60, %v2564_v54  ;;  %v6882_v39 = vpop.f32.mrf.mxu1  ;;  %v9480_v9 = vsel %vm396_vm2, %v2949_v21, %v2950_v17 }
 0x252   : > { %v9487_v16 = vadd.f32 %v2507_v45, %v9380_v63  ;;  %v6908_v2 = vpop.f32.mrf.mxu0  ;;  %v9491_v23 = vsel %vm396_vm2, %v2950_v17, %v2951_v43  ;;  %v9498_v27 = vadd.f32 %v6882_v39, %v9253_v12  ;;  %v11606_v63 = vld [vmem:[#allocation46_spill] sm:$0xff]  ;;  %v2968_v43 = vmul.f32 %v9475_v5, %v11607_v48 }
 0x253   : > { %v2953_v54 = vrot.slane %v2896_v30, 7  ;;  %v9494_v60 = vmax.f32 %v2867_v52, 0.0  ;;  %v2865_v37 = vadd.f32 %v9288_v61, %v2826_v8  ;;  %v2520_v44 = vpop.f32.mrf.mxu1  ;;  %v2831_v13 = vadd.f32 %v6908_v2, %v2569_v35 }
 0x254   : > { %v2750_v28 = vpop.f32.mrf.mxu0  ;;  %v2967_v45 = vmul.f32 %v9491_v23, %v11606_v63  ;;  %v2966_v8 = vmul.f32 %v9480_v9, %v11608_v50  ;;  %v9510_v12 = vmul.f32 %v2896_v30, %v11594_v49  ;;  %v9518_v17 = vadd.f32 %v2520_v44, %v9256_v3 }
 0x255   : > { %v9505_v57 = vmax.f32 %v2865_v37, 0.0  ;;  %v2829_v52 = vadd.f32 %v2750_v28, %v2567_v6  ;;  %v6883_v15 = vpop.f32.mrf.mxu1  ;;  %v2870_v35 = vadd.f32 %v9288_v61, %v2831_v13  ;;  %v2960_v41 = vsel %vm396_vm2, %v2952_v1, %v2953_v54  ;;  %v11617_v13 = vld [vmem:[#allocation71_spill] sm:$0xff] }
 0x256   : > { %11609 = vst [vmem:[#allocation18_spill] sm:$0xff] %v9510_v12  ;;  %v6909_v39 = vpop.f32.mrf.mxu0  ;;  %v9513_v2 = vpack.c.bf16 %v2968_v43, %v2967_v45  ;;  %v11611_v32 = vrot.slane %v9494_v60, 7  ;;  %v11612_v45 = vld [vmem:[#allocation3_spill] sm:$0xff]  ;;  %v9599_v53 = vmul.f32 %v2960_v41, %v11630_v34 }
 0x257   : > { %v2868_v37 = vadd.f32 %v9288_v61, %v2829_v52  ;;  %v2832_v6 = vadd.f32 %v6909_v39, %v2570_v38  ;;  %v2523_v28 = vpop.f32.mrf.mxu1  ;;  %v9526_v51 = vmax.f32 %v2870_v35, 0.0  ;;  %v9529_v43 = vadd.f32 %v6883_v15, %v11612_v45  ;;  %v11625_v12 = vld [vmem:[#allocation47_spill] sm:$0xff] }
 0x258   : > { %11610 = vst [vmem:[#allocation59_spill] sm:$0xff] %v9513_v2  ;;  %v2964_v49 = vsel %vm396_vm2, %v11611_v32, %v2949_v21  ;;  %v2753_v1 = vpop.f32.mrf.mxu0  ;;  %v9536_v2 = vpack.c.bf16 %v9505_v57, %v2896_v30  ;;  %v11615_v32 = vld [vmem:[#allocation12_spill] sm:$0xff]  ;;  %v9541_v35 = vadd.f32 %v2523_v28, %v9383_v14  ;;  %v11620_v14 = vld [vmem:[#allocation5_spill] sm:$0xff]  ;;  %11631 = vst [vmem:[#allocation71_spill] sm:$0xff] %v9599_v53 }
 0x259   : > { %v2965_v3 = vmul.f32 %v2964_v49, %v11613_v33  ;;  %v9532_v44 = vmax.f32 %v2868_v37, 0.0  ;;  %v2871_v38 = vadd.f32 %v9288_v61, %v2832_v6  ;;  %v2830_v52 = vadd.f32 %v2753_v1, %v2568_v40  ;;  %v6886_v39 = vpop.f32.mrf.mxu1  ;;  %v11645_v53 = vld [vmem:[#allocation40_spill] sm:$0xff] }
 0x25a   : > { %11614 = vst [vmem:[#allocation46_spill] sm:$0xff] %v9536_v2  ;;  %v2944_v21 = vmul.f32 %v9526_v51, %v11615_v32  ;;  %v6912_v15 = vpop.f32.mrf.mxu0  ;;  %v9546_v59 = vmul.f32 %v2964_v49, %v11617_v13  ;;  %v3654_v37 = vrot.slane %v9526_v51, 1  ;;  %v9554_v42 = vadd.f32 %v6886_v39, %v11619_v22 }
 0x25b   : > { %v9543_v45 = vpack.c.bf16 %v2966_v8, %v2965_v3  ;;  %v9549_v6 = vmax.f32 %v2871_v38, 0.0  ;;  %v2869_v40 = vadd.f32 %v9288_v61, %v2830_v52  ;;  %v2835_v30 = vadd.f32 %v6912_v15, %v2573_v58  ;;  %v2536_v1 = vpop.f32.mrf.mxu1 }
 0x25c   : > { %11618 = vst [vmem:[#allocation43_spill] sm:$0xff] %v9546_v59  ;;  %v3652_v2 = vrot.slane %v9532_v44, 1  ;;  %v9557_v28 = vadd.f32 %v2536_v1, %v11620_v14  ;;  %v2766_v8 = vpop.f32.mrf.mxu0  ;;  %v11621_v49 = vrot.slane %v9505_v57, 7  ;;  %v11623_v1 = vld [vmem:[#allocation13_spill] sm:$0xff] }
 0x25d   : > { %11616 = vst [vmem:[#allocation45_spill] sm:$0xff] %v9543_v45  ;;  %v3655_v3 = vrot.slane %v9549_v6, 1  ;;  %v9566_v38 = vmax.f32 %v2869_v40, 0.0  ;;  %v2874_v58 = vadd.f32 %v9288_v61, %v2835_v30  ;;  %v2833_v52 = vadd.f32 %v2766_v8, %v2571_v20  ;;  %v6887_v15 = vpop.f32.mrf.mxu1  ;;  %v11624_v45 = vld [vmem:[#allocation48_spill] sm:$0xff]  ;;  %v11626_v8 = vld [vmem:[#allocation17_spill] sm:$0xff] }
 0x25e   : > { %v9563_v13 = vsel %vm396_vm2, %v2953_v54, %v11621_v49  ;;  %v9570_v22 = vadd.f32 %v6887_v15, %v9388_v0  ;;  %v6913_v39 = vpop.f32.mrf.mxu0  ;;  %v2942_v14 = vmul.f32 %v9532_v44, %v11623_v1  ;;  %v2969_v29 = vmul.f32 %v2960_v41, %v11624_v45  ;;  %v11627_v15 = vld [vmem:[#allocation10_spill] sm:$0xff] }
 0x25f   : > { %11622 = vst [vmem:[#allocation3_spill] sm:$0xff] %v9563_v13  ;;  %v2970_v54 = vmul.f32 %v9563_v13, %v11625_v12  ;;  %v3653_v49 = vrot.slane %v9566_v38, 1  ;;  %v9578_v40 = vmax.f32 %v2874_v58, 0.0  ;;  %v2872_v30 = vadd.f32 %v9288_v61, %v2833_v52  ;;  %v2539_v20 = vpop.f32.mrf.mxu1  ;;  %v11648_v13 = vld [vmem:[#allocation53_spill] sm:$0xff] }
 0x260   : > { %v2945_v0 = vmul.f32 %v9549_v6, %v11626_v8  ;;  %v2943_v26 = vmul.f32 %v9566_v38, %v11627_v15  ;;  %v2836_v10 = vadd.f32 %v6913_v39, %v9484_v25  ;;  %v2769_v62 = vpop.f32.mrf.mxu0  ;;  %v9588_v36 = vsel %vm1010_vm3, %v3654_v37, %v3655_v3 }
 0x261   : > { %11628 = vst [vmem:[#allocation44_spill] sm:$0xff] %v9588_v36  ;;  %v9590_v7 = vpack.c.bf16 %v2970_v54, %v2969_v29  ;;  %v9592_v58 = vmax.f32 %v2872_v30, 0.0  ;;  %v9595_v52 = vadd.f32 %v2539_v20, %v9391_v47  ;;  %v2834_v31 = vadd.f32 %v2769_v62, %v9487_v16  ;;  %v11635_v30 = vld [vmem:[#allocation38_spill] sm:$0xff] }
 0x262   : > { %v9603_v25 = vmul.f32 %v9578_v40, %v11632_v19  ;;  %v2875_v39 = vadd.f32 %v9288_v61, %v2836_v10  ;;  %v6916_v59 = vpop.f32.mrf.mxu0  ;;  %v9608_v29 = vsel %vm1010_vm3, %v3652_v2, %v3653_v49  ;;  %v9612_v47 = vsel %vm1010_vm3, %v3653_v49, %v3654_v37 }
 0x263   : > { %11629 = vst [vmem:[#allocation12_spill] sm:$0xff] %v9590_v7  ;;  %11633 = vst [vmem:[#allocation4_spill] sm:$0xff] %v9608_v29  ;;  %v3658_v62 = vrot.slane %v9578_v40, 1  ;;  %v3656_v41 = vrot.slane %v9592_v58, 1  ;;  %v2873_v34 = vadd.f32 %v9288_v61, %v2834_v31  ;;  %v2839_v16 = vadd.f32 %v6916_v59, %v9498_v27  ;;  %v11637_v7 = vld [vmem:[#allocation37_spill] sm:$0xff] }
 0x264   : > { %11634 = vst [vmem:[#allocation5_spill] sm:$0xff] %v9612_v47  ;;  %v9618_v54 = vmax.f32 %v2875_v39, 0.0  ;;  %v2782_v10 = vpop.f32.mrf.mxu0  ;;  %v9622_v20 = vmul.f32 %v9612_v47, %v11635_v30  ;;  %v9626_v56 = vmul.f32 %v9588_v36, %v11637_v7  ;;  %v9628_v37 = vpack.c.bf16 %v2944_v21, %v2943_v26  ;;  %v11640_v30 = vld [vmem:[#allocation35_spill] sm:$0xff] }
 0x265   : > { %v9630_v49 = vmax.f32 %v2873_v34, 0.0  ;;  %v2878_v4 = vadd.f32 %v9288_v61, %v2839_v16  ;;  %v2837_v31 = vadd.f32 %v2782_v10, %v9518_v17  ;;  %v3663_v59 = vsel %vm1010_vm3, %v3655_v3, %v3656_v41  ;;  %v11641_v7 = vld [vmem:[#allocation11_spill] sm:$0xff]  ;;  %v11642_v3 = vld [vmem:[#allocation16_spill] sm:$0xff] }
 0x266   : > { %11636 = vst [vmem:[#allocation13_spill] sm:$0xff] %v9622_v20  ;;  %11638 = vst [vmem:[#allocation48_spill] sm:$0xff] %v9626_v56  ;;  %v3659_v27 = vrot.slane %v9618_v54, 1  ;;  %v6917_v39 = vpop.f32.mrf.mxu0  ;;  %v9639_v47 = vmul.f32 %v9608_v29, %v11640_v30  ;;  %v2941_v26 = vmul.f32 %v9618_v54, %v11641_v7  ;;  %v2946_v10 = vmul.f32 %v9592_v58, %v11642_v3  ;;  %v11647_v20 = vld [vmem:[#allocation21_spill] sm:$0xff] }
 0x267   : > { %11639 = vst [vmem:[#allocation47_spill] sm:$0xff] %v9628_v37  ;;  %v3657_v34 = vrot.slane %v9630_v49, 1  ;;  %v9646_v16 = vmax.f32 %v2878_v4, 0.0  ;;  %v2876_v17 = vadd.f32 %v9288_v61, %v2837_v31  ;;  %v2840_v37 = vadd.f32 %v6917_v39, %v9529_v43 }
 0x268   : > { %v2785_v36 = vpop.f32.mrf.mxu0  ;;  %v9654_v30 = vsel %vm1010_vm3, %v3659_v27, %v3652_v2  ;;  %v9656_v29 = vpack.c.bf16 %v2942_v14, %v2941_v26  ;;  %v9659_v21 = vmul.f32 %v3663_v59, %v11645_v53  ;;  %v2947_v4 = vmul.f32 %v9630_v49, %v11647_v20  ;;  %v11650_v14 = vld [vmem:[#allocation36_spill] sm:$0xff] }
 0x269   : > { %11643 = vst [vmem:[#allocation17_spill] sm:$0xff] %v9654_v30  ;;  %v9663_v56 = vmax.f32 %v2876_v17, 0.0  ;;  %v2838_v31 = vadd.f32 %v2785_v36, %v9541_v35  ;;  %v9667_v5 = vmul.f32 %v3663_v59, %v11648_v13  ;;  %v2919_v43 = vrot.slane %v9646_v16, 7 }
 0x26a   : > { %11644 = vst [vmem:[#allocation10_spill] sm:$0xff] %v9656_v29  ;;  %11646 = vst [vmem:[#allocation67_spill] sm:$0xff] %v9659_v21  ;;  %v2879_v2 = vadd.f32 %v9288_v61, %v2840_v37  ;;  %v6920_v39 = vpop.f32.mrf.mxu0  ;;  %v9673_v26 = vmul.f32 %v9654_v30, %v11650_v14  ;;  %v9677_v53 = vsel %vm1010_vm3, %v3656_v41, %v3657_v34 }
 0x26b   : > { %11649 = vst [vmem:[#allocation20_spill] sm:$0xff] %v9667_v5  ;;  %v3381_v17 = vmul.f32 %v9646_v16, %v11615_v32  ;;  %v11385_v36 = vrot.slane %v9663_v56, 7  ;;  %v2877_v35 = vadd.f32 %v9288_v61, %v2838_v31  ;;  %v2843_v59 = vadd.f32 %v6920_v39, %v9554_v42  ;;  %v11651_v5 = vld [vmem:[#allocation39_spill] sm:$0xff] }
 0x26c   : > { %v9684_v13 = vmax.f32 %v2879_v2, 0.0  ;;  %v2798_v37 = vpop.f32.mrf.mxu0  ;;  %v9690_v29 = vmul.f32 %v9677_v53, %v11651_v5  ;;  %v9692_v41 = vpack.c.bf16 %v2946_v10, %v2945_v0  ;;  %v9700_v42 = vsel %vm1010_vm3, %v3658_v62, %v3659_v27 }
 0x26d   : > { %v9694_v30 = vmax.f32 %v2877_v35, 0.0  ;;  %v2882_v32 = vadd.f32 %v9288_v61, %v2843_v59  ;;  %v2841_v31 = vadd.f32 %v2798_v37, %v9557_v28  ;;  %11654 = vst [vmem:[#allocation35_spill] sm:$0xff] %v9700_v42  ;;  %v3379_v14 = vmul.f32 %v9663_v56, %v11623_v1 }
 0x26e   : > { %11652 = vst [vmem:[#allocation38_spill] sm:$0xff] %v9690_v29  ;;  %11653 = vst [vmem:[#allocation37_spill] sm:$0xff] %v9692_v41  ;;  %v2920_v2 = vrot.slane %v9684_v13, 7  ;;  %v6921_v39 = vpop.f32.mrf.mxu0  ;;  %v9709_v0 = vsel %vm1010_vm3, %v3657_v34, %v3658_v62  ;;  %v3382_v1 = vmul.f32 %v9684_v13, %v11626_v8  ;;  %v11656_v62 = vld [vmem:[#allocation42_spill] sm:$0xff] }
 0x26f   : > { %11655 = vst [vmem:[#allocation11_spill] sm:$0xff] %v9709_v0  ;;  %v2918_v10 = vrot.slane %v9694_v30, 7  ;;  %v3380_v28 = vmul.f32 %v9694_v30, %v11627_v15  ;;  %v9714_v27 = vmax.f32 %v2882_v32, 0.0  ;;  %v2880_v35 = vadd.f32 %v9288_v61, %v2841_v31  ;;  %v11658_v31 = vld [vmem:[#allocation41_spill] sm:$0xff] }
 0x270   : > { %v2844_v59 = vadd.f32 %v6921_v39, %v9570_v22  ;;  %v2801_v37 = vpop.f32.mrf.mxu0  ;;  %v2929_v5 = vsel %vm396_vm2, %v2919_v43, %v2920_v2  ;;  %v9724_v34 = vmul.f32 %v9709_v0, %v11656_v62  ;;  %v9738_v8 = vmul.f32 %v9700_v42, %v11658_v31  ;;  %v11659_v39 = vld [vmem:[#allocation29_spill] sm:$0xff]  ;;  %v11660_v62 = vld [vmem:[#allocation28_spill] sm:$0xff] }
 0x271   : > { %v2930_v15 = vsel %vm396_vm2, %v2918_v10, %v2919_v43  ;;  %v9732_v32 = vsel %vm396_vm2, %v11385_v36, %v2918_v10  ;;  %v9734_v22 = vpack.c.bf16 %v3381_v17, %v3380_v28  ;;  %v2923_v43 = vrot.slane %v9714_v27, 7 }
 0x272   : > { %v9742_v41 = vmul.f32 %v9732_v32, %v11659_v39  ;;  %v9745_v21 = vmul.f32 %v2930_v15, %v11660_v62  ;;  %v9748_v29 = vmax.f32 %v2880_v35, 0.0  ;;  %v3385_v10 = vmul.f32 %v9714_v27, %v11632_v19 }
 0x273   : > { %11657 = vst [vmem:[#allocation16_spill] sm:$0xff] %v9734_v22  ;;  %v2883_v17 = vadd.f32 %v9288_v61, %v2844_v59  ;;  %v2842_v28 = vadd.f32 %v2801_v37, %v9595_v52  ;;  %v3968_v31 = vmul.f32 %v2930_v15, %v11606_v63  ;;  %v3969_v35 = vmul.f32 %v2929_v5, %v11607_v48  ;;  %v11663_v37 = vld [vmem:[#allocation31_spill] sm:$0xff] }
 0x274   : > { %v2974_v39 = vpack.c.bf16 %v9745_v21, %v9742_v41  ;;  %v2921_v36 = vrot.slane %v9748_v29, 7  ;;  %v3383_v62 = vmul.f32 %v9748_v29, %v11642_v3  ;;  %v9765_v52 = vpack.c.bf16 %v9603_v25, %v2947_v4 }
 0x275   : > { %v2915_v42 = vmax.f32 %v2883_v17, 0.0  ;;  %v2881_v0 = vadd.f32 %v9288_v61, %v2842_v28  ;;  %v9771_v41 = vpack.c.bf16 %v3969_v35, %v3968_v31  ;;  %v9775_v3 = vpack.c.bf16 %v9494_v60, %v9471_v18  ;;  %v11664_v17 = vld [vmem:[#allocation32_spill] sm:$0xff] }
 0x276   : > { %v9767_v63 = vpack.c.bf16 %v3383_v62, %v3382_v1  ;;  %v2928_v21 = vsel %vm396_vm2, %v2920_v2, %v2921_v36  ;;  %v2937_v25 = vmul.f32 %v2929_v5, %v11664_v17  ;;  %v11665_v4 = vrot.slane %v9494_v60, 7 }
 0x277   : > { %11662 = vst [vmem:[#allocation21_spill] sm:$0xff] %v9771_v41  ;;  %v2924_v48 = vrot.slane %v2915_v42, 7  ;;  %v2913_v59 = vmax.f32 %v2881_v0, 0.0  ;;  %v3378_v61 = vmul.f32 %v2915_v42, %v11641_v7  ;;  %v2938_v15 = vmul.f32 %v2928_v21, %v11663_v37 }
 0x278   : > { %11661 = vst [vmem:[#allocation40_spill] sm:$0xff] %v9767_v63  ;;  %v11666_v1 = vrot.slane %v9471_v18, 7  ;;  %v11668_v31 = vrot.slane %v9505_v57, 7  ;;  %v11669_v7 = vrot.slane %v9329_v24, 1  ;;  %v11670_v5 = vrot.slane %v9419_v46, 1  ;;  %v11673_v24 = vld [vmem:[#allocation25_spill] sm:$0xff] }
 0x279   : > { %v2922_v35 = vrot.slane %v2913_v59, 7  ;;  %v3384_v37 = vmul.f32 %v2913_v59, %v11647_v20  ;;  %v9805_v17 = vpack.c.bf16 %v3379_v14, %v3378_v61  ;;  %v2975_v19 = vpack.c.bf16 %v2938_v15, %v2937_v25  ;;  %v11676_v61 = vld [vmem:[#allocation24_spill] sm:$0xff]  ;;  %v11678_v46 = vld [vmem:[#allocation33_spill] sm:$0xff] }
 0x27a   : > { %v9786_v2 = vsel %vm396_vm2, %v11666_v1, %v11665_v4  ;;  %v11667_v28 = vmov %v11666_v1  ;;  %v9802_v62 = vsel %vm1010_vm3, %v11670_v5, %v11669_v7  ;;  %v2925_v4 = vsel %vm396_vm2, %v2923_v43, %v2924_v48  ;;  %v7434_v7 = vld [vmem:[%s11211_s4 + $0x130] sm:$0xff]  }
 0x27b   : > { %v9794_v0 = vsel %vm396_vm2, %v11668_v31, %v11667_v28  ;;  %11671 = vst [vmem:[#allocation36_spill] sm:$0xff] %v9805_v17  ;;  %v11672_v1 = vrot.slane %v9663_v56, 7  ;;  %v2933_v31 = vmul.f32 %v2925_v4, %v11673_v24  ;;  %v11674_v20 = vrot.slane %v9406_v11, 1  ;;  %7068 = vmatprep.mubr.bf16.mxu0 %v9805_v17 }
 0x27c   : > { %v2926_v15 = vsel %vm396_vm2, %v2922_v35, %v2923_v43  ;;  %v2927_v25 = vsel %vm396_vm2, %v2921_v36, %v2922_v35  ;;  %7069 = vmatmul.mubr.bf16.vlgmr.msra.gmra.mxu0 %v9734_v22  ;;  %v11682_v36 = vld [vmem:[#allocation61_spill] sm:$0xff]  ;;  %v11683_v22 = vld [vmem:[#allocation60_spill] sm:$0xff] }
 0x27d   : > { %v2932_v28 = vsel %vm396_vm2, %v2924_v48, %v11672_v1  ;;  %v9823_v14 = vsel %vm1010_vm3, %v11674_v20, %v11670_v5  ;;  %v9827_v48 = vpack.c.bf16 %v3385_v10, %v3384_v37  ;;  %v11677_v1 = vld [vmem:[#allocation34_spill] sm:$0xff]  ;;  %v9838_v5 = vmul.f32 %v2926_v15, %v11678_v46  ;;  %7072 = vmatprep.mubr.bf16.mxu0 %v9767_v63 }
 0x27e   : > { %11675 = vst [vmem:[#allocation39_spill] sm:$0xff] %v9823_v14  ;;  %v2934_v41 = vmul.f32 %v2932_v28, %v11676_v61  ;;  %v9835_v24 = vmul.f32 %v2927_v25, %v11677_v1  ;;  %v11679_v20 = vld [vmem:[#allocation50_spill] sm:$0xff]  ;;  %v11680_v61 = vld [vmem:[#allocation49_spill] sm:$0xff]  ;;  %v3698_v35 = vmul.f32 %v9823_v14, %v11682_v36  ;;  %v3699_v1 = vmul.f32 %v9802_v62, %v11683_v22  ;;  %v11730_v14 = vld [vmem:[#allocation67_spill] sm:$0xff] }
 0x27f   : > { %v2971_v17 = vmul.f32 %v9794_v0, %v11679_v20  ;;  %v2972_v10 = vmul.f32 %v9786_v2, %v11680_v61  ;;  %v11681_v37 = vld [vmem:[#allocation2_spill] sm:$0xff]  ;;  %v3973_v46 = vmul.f32 %v2925_v4, %v11680_v61  ;;  %v9869_v61 = vpack.c.bf16 %v9549_v6, %v9526_v51 }
 0x280   : > { %v2973_v43 = vpack.c.bf16 %v2934_v41, %v2933_v31  ;;  %7149 = vmatpush3.bf16.msra.mxu0 %v11681_v37  ;;  %v2976_v11 = vpack.c.bf16 %v9838_v5, %v9835_v24  ;;  %v9860_v41 = vpack.c.bf16 %v9566_v38, %v9532_v44  ;;  %v7435_v31 = vld [vmem:[%s11211_s4 + $0x128] sm:$0xff]   ;;  %v9865_v4 = vpack.c.bf16 %v3699_v1, %v3698_v35  ;;  %v11696_v37 = vld [vmem:[#allocation94_spill] sm:$0xff] }
 0x281   : > { %7150 = vmatprep.subr.bf16.mxu0 %v7434_v7  ;;  %v9856_v63 = vpack.c.bf16 %v2972_v10, %v2971_v17  ;;  %v9873_v24 = vpack.c.bf16 %v9630_v49, %v9592_v58  ;;  %v9877_v17 = vpack.c.bf16 %v9618_v54, %v9578_v40  ;;  %v9881_v44 = vpack.c.bf16 %v9694_v30, %v9663_v56  ;;  %v11684_v58 = vld [vmem:[#allocation63_spill] sm:$0xff] }
 0x282   : > { %6938 = vmatprep.mubr.bf16.mxu1 %v2973_v43  ;;  %v9885_v38 = vpack.c.bf16 %v9684_v13, %v9646_v16  ;;  %v9888_v51 = vpack.c.bf16 %v2913_v59, %v9748_v29  ;;  %v9891_v6 = vpack.c.bf16 %v2915_v42, %v9714_v27  ;;  %v3966_v40 = vmul.f32 %v2932_v28, %v11613_v33  ;;  %v7430_v13 = vld [vmem:[%s11211_s4 + $0x68] sm:$0xff]   ;;  %v11685_v16 = vld [vmem:[#allocation65_spill] sm:$0xff]  ;;  %v11687_v27 = vld [vmem:[#allocation68_spill] sm:$0xff] }
 0x283   : > { %6939 = vmatmul.mubr.bf16.vlgmr.msra.gmra.mxu1 %v2974_v39  ;;  %v3967_v54 = vmul.f32 %v9732_v32, %v11608_v50  ;;  %v3970_v56 = vmul.f32 %v2928_v21, %v11624_v45  ;;  %v3971_v29 = vmul.f32 %v2927_v25, %v11625_v12  ;;  %v3972_v49 = vmul.f32 %v2926_v15, %v11679_v20  ;;  %v7437_v50 = vld [vmem:[%s11211_s4 + $0x120] sm:$0xff]   ;;  %v11686_v45 = vld [vmem:[#allocation64_spill] sm:$0xff]  ;;  %v11691_v28 = vld [vmem:[#allocation69_spill] sm:$0xff] }
 0x284   : > { %7005 = vmatpush3.bf16.msra.mxu1 %v11684_v58  ;;  %6942 = vmatprep.mubr.bf16.mxu1 %v2975_v19  ;;  %v9905_v30 = vmul.f32 %v9480_v9, %v11685_v16  ;;  %v9914_v42 = vmul.f32 %v9491_v23, %v11686_v45  ;;  %v11688_v32 = vld [vmem:[#allocation14_spill] sm:$0xff]  ;;  %v11690_v19 = vld [vmem:[#allocation3_spill] sm:$0xff]  ;;  %v11692_v23 = vld [vmem:[#allocation72_spill] sm:$0xff]  ;;  %v11693_v25 = vpack.c.bf16 %v9639_v47, %v9673_v26 }
 0x285   : > { %7006 = vmatprep.subr.bf16.mxu1 %v7429_v55  ;;  %7151 = vmatpush3.bf16.msra.mxu0 %v7434_v7  ;;  %v9910_v33 = vpack.c.bf16 %v3967_v54, %v3966_v40  ;;  %v9918_v12 = vmul.f32 %v11688_v32, %v11687_v27  ;;  %v11689_v39 = vld [vmem:[#allocation70_spill] sm:$0xff]  ;;  %v9925_v9 = vpack.c.bf16 %v3971_v29, %v3970_v56  ;;  %v11694_v20 = vld [vmem:[#allocation71_spill] sm:$0xff]  ;;  %v11700_v58 = vld [vmem:[#allocation80_spill] sm:$0xff] }
 0x286   : > { %7152 = vmatprep.subr.bf16.mxu0 %v7435_v31  ;;  %v9922_v21 = vmul.f32 %v11690_v19, %v11689_v39  ;;  %7073 = vmatmul.mubr.bf16.gmra.mxu0 %v9827_v48  ;;  %v9927_v59 = vpack.c.bf16 %v3973_v46, %v3972_v49  ;;  %v9931_v7 = vmul.f32 %v9794_v0, %v11691_v28  ;;  %v11695_v43 = vld [vmem:[#allocation62_spill] sm:$0xff]  ;;  %v11698_v0 = vld [vmem:[#allocation23_spill] sm:$0xff]  ;;  %v11701_v54 = vld [vmem:[#allocation17_spill] sm:$0xff] }
 0x287   : > { %v9935_v15 = vmul.f32 %v9786_v2, %v11692_v23  ;;  %7076 = vmatprep.mubr.bf16.mxu0 %v11693_v25  ;;  %v9946_v35 = vpack.c.bf16 %v11696_v37, %v11695_v43  ;;  %v7431_v2 = vld [vmem:[%s11211_s4 + $0x60] sm:$0xff]   ;;  %v11699_v1 = vld [vmem:[#allocation75_spill] sm:$0xff]  ;;  %v5060_v40 = vmul.f32 %v9494_v60, %v11700_v58  ;;  %v4509_v56 = vmul.f32 %v11701_v54, %v11683_v22  ;;  %v11702_v29 = vld [vmem:[#allocation89_spill] sm:$0xff] }
 0x288   : > { %7007 = vmatpush3.bf16.msra.mxu1 %v7429_v55  ;;  %v11697_v55 = vld [vmem:[#allocation43_spill] sm:$0xff]  ;;  %v9957_v46 = vpack.c.bf16 %v11699_v1, %v11698_v0  ;;  %v11703_v49 = vld [vmem:[#allocation22_spill] sm:$0xff]  ;;  %v11704_v45 = vld [vmem:[#allocation52_spill] sm:$0xff] }
 0x289   : > { %7008 = vmatprep.subr.bf16.mxu1 %v7430_v13  ;;  %7153 = vmatpush3.bf16.msra.mxu0 %v7435_v31  ;;  %v7438_v31 = vld [vmem:[%s11211_s4 + $0x118] sm:$0xff]   ;;  %v9968_v16 = vpack.c.bf16 %v11703_v49, %v11702_v29  ;;  %v11705_v27 = vld [vmem:[#allocation4_spill] sm:$0xff]  ;;  %v11706_v39 = vld [vmem:[#allocation51_spill] sm:$0xff] }
 0x28a   : > { %7154 = vmatprep.subr.bf16.mxu0 %v7437_v50  ;;  %v4502_v32 = vmul.f32 %v11705_v27, %v11704_v45  ;;  %v11707_v19 = vld [vmem:[#allocation5_spill] sm:$0xff]  ;;  %v11708_v60 = vld [vmem:[#allocation54_spill] sm:$0xff]  ;;  %v11709_v23 = vld [vmem:[#allocation44_spill] sm:$0xff] }
 0x28b   : > { %6943 = vmatmul.mubr.bf16.gmra.mxu1 %v2976_v11  ;;  %v4503_v28 = vmul.f32 %v11707_v19, %v11706_v39  ;;  %v4504_v25 = vmul.f32 %v11709_v23, %v11708_v60  ;;  %v11710_v22 = vld [vmem:[#allocation57_spill] sm:$0xff]  ;;  %v11711_v37 = vld [vmem:[#allocation56_spill] sm:$0xff]  ;;  %v11712_v0 = vld [vmem:[#allocation11_spill] sm:$0xff] }
 0x28c   : > { %v4506_v43 = vmul.f32 %v9677_v53, %v11710_v22  ;;  %v4507_v1 = vmul.f32 %v11712_v0, %v11711_v37  ;;  %v11713_v58 = vld [vmem:[#allocation79_spill] sm:$0xff]  ;;  %v11715_v49 = vld [vmem:[#allocation76_spill] sm:$0xff]  ;;  %v11716_v26 = vld [vmem:[#allocation66_spill] sm:$0xff]  ;;  %7009 = vmatpush3.bf16.msra.mxu1 %v7430_v13 }
 0x28d   : > { %v11714_v54 = vld [vmem:[#allocation55_spill] sm:$0xff]  ;;  %v5056_v47 = vmul.f32 %v11716_v26, %v11715_v49  ;;  %v11717_v27 = vld [vmem:[#allocation10_spill] sm:$0xff]  ;;  %7010 = vmatprep.subr.bf16.mxu1 %v7431_v2  ;;  %v7433_v53 = vld [vmem:[%s11211_s4 + $0x58] sm:$0xff]   ;;  %7155 = vmatpush3.bf16.msra.mxu0 %v7437_v50  ;;  %v9990_v23 = vpack.c.bf16 %v4503_v28, %v4502_v32 }
 0x28e   : > { %v5061_v29 = vmul.f32 %v11714_v54, %v11713_v58  ;;  %6946 = vmatprep.mubr.bf16.mxu1 %v11717_v27  ;;  %v11718_v11 = vld [vmem:[#allocation35_spill] sm:$0xff]  ;;  %v11719_v0 = vld [vmem:[#allocation20_spill] sm:$0xff]  ;;  %v9995_v58 = vpack.c.bf16 %v4507_v1, %v4506_v43  ;;  %7156 = vmatprep.subr.bf16.mxu0 %v7438_v31  ;;  %v11725_v28 = vld [vmem:[#allocation13_spill] sm:$0xff] }
 0x28f   : > { %v4508_v19 = vmul.f32 %v11718_v11, %v11682_v36  ;;  %v9993_v10 = vpack.c.bf16 %v11719_v0, %v4504_v25  ;;  %v7440_v13 = vld [vmem:[%s11211_s4 + $0x110] sm:$0xff]   ;;  %v11721_v36 = vld [vmem:[#allocation18_spill] sm:$0xff]  ;;  %v11727_v25 = vld [vmem:[#allocation77_spill] sm:$0xff] }
 0x290   : > { %11720 = vst [vmem:[#allocation42_spill] sm:$0xff] %v9995_v58  ;;  %v10003_v49 = vpack.c.bf16 %v11721_v36, %v5056_v47  ;;  %v11723_v11 = vld [vmem:[#allocation78_spill] sm:$0xff]  ;;  %v11724_v32 = vld [vmem:[#allocation48_spill] sm:$0xff]  ;;  %v5059_v43 = vmul.f32 %v9471_v18, %v11727_v25  ;;  %v10012_v1 = vpack.c.bf16 %v5061_v29, %v5060_v40  ;;  %7011 = vmatpush3.bf16.msra.mxu1 %v7431_v2  ;;  %v7441_v18 = vld [vmem:[%s11211_s4 + $0x108] sm:$0xff]  }
 0x291   : > { %v10000_v54 = vpack.c.bf16 %v4509_v56, %v4508_v19  ;;  %v5058_v50 = vmul.f32 %v9505_v57, %v11723_v11  ;;  %v11726_v5 = vpack.c.bf16 %v11724_v32, %v11725_v28  ;;  %v11729_v0 = vld [vmem:[#allocation38_spill] sm:$0xff]  ;;  %7012 = vmatprep.subr.bf16.mxu1 %v7433_v53  ;;  %v7436_v47 = vld [vmem:[%s11211_s4 + $0x50] sm:$0xff]   ;;  %7157 = vmatpush3.bf16.msra.mxu0 %v7438_v31  ;;  %v11733_v56 = vld [vmem:[#allocation87_spill] sm:$0xff] }
 0x292   : > { %11722 = vst [vmem:[#allocation41_spill] sm:$0xff] %v10003_v49  ;;  %11728 = vst [vmem:[#allocation29_spill] sm:$0xff] %v10012_v1  ;;  %v11731_v58 = vpack.c.bf16 %v11729_v0, %v11730_v14  ;;  %7158 = vmatprep.subr.bf16.mxu0 %v7440_v13  ;;  %v11736_v14 = vld [vmem:[#allocation88_spill] sm:$0xff]  ;;  %v11738_v40 = vld [vmem:[#allocation47_spill] sm:$0xff]  ;;  %v11740_v36 = vpack.c.bf16 %v9738_v8, %v9724_v34 }
 0x293   : > { %7077 = vmatmul.mubr.bf16.gmra.mxu0 %v11726_v5  ;;  %v10020_v57 = vpack.c.bf16 %v5059_v43, %v5058_v50  ;;  %v11734_v5 = vld [vmem:[#allocation91_spill] sm:$0xff]  ;;  %v10031_v2 = vmul.f32 %v9802_v62, %v11736_v14  ;;  %6947 = vmatmul.mubr.bf16.gmra.mxu1 %v11738_v40  ;;  %v11739_v29 = vld [vmem:[#allocation37_spill] sm:$0xff]  ;;  %v7443_v62 = vld [vmem:[%s11211_s4 + $0x100] sm:$0xff]  }
 0x294   : > { %7080 = vmatprep.mubr.bf16.mxu0 %v11731_v58  ;;  %v10024_v19 = vmul.f32 %v11734_v5, %v11733_v56  ;;  %6950 = vmatprep.mubr.bf16.mxu1 %v11739_v29  ;;  %v7439_v58 = vld [vmem:[%s11211_s4 + $0x48] sm:$0xff]   ;;  %v11741_v50 = vld [vmem:[#allocation90_spill] sm:$0xff]  ;;  %v11742_v32 = vld [vmem:[#allocation45_spill] sm:$0xff]  ;;  %v3692_v0 = vmul.f32 %v11734_v5, %v11704_v45 }
 0x295   : > { %11732 = vst [vmem:[#allocation28_spill] sm:$0xff] %v10020_v57  ;;  %11737 = vst [vmem:[#allocation32_spill] sm:$0xff] %v10031_v2  ;;  %7013 = vmatpush3.bf16.msra.mxu1 %v7433_v53  ;;  %7159 = vmatpush3.bf16.msra.mxu0 %v7440_v13  ;;  %v7442_v53 = vld [vmem:[%s11211_s4 + $0x40] sm:$0xff]   ;;  %v7448_v13 = vld [vmem:[%s11211_s4 + $0x1b8] sm:$0xff]  }
 0x296   : > { %11735 = vst [vmem:[#allocation31_spill] sm:$0xff] %v10024_v19  ;;  %7014 = vmatprep.subr.bf16.mxu1 %v7436_v47  ;;  %7160 = vmatprep.subr.bf16.mxu0 %v7441_v18  ;;  %v11743_v34 = vld [vmem:[#allocation30_spill] sm:$0xff]  ;;  %v7444_v28 = vld [vmem:[%s11211_s4 + $0xf8] sm:$0xff]   ;;  %v11746_v56 = vld [vmem:[#allocation59_spill] sm:$0xff] }
 0x297   : > { %v10057_v8 = vpack.c.bf16 %v11716_v26, %v11743_v34  ;;  %v11744_v43 = vld [vmem:[#allocation46_spill] sm:$0xff]  ;;  %v11753_v45 = vld [vmem:[#allocation53_spill] sm:$0xff]  ;;  %v11757_v57 = vld [vmem:[#allocation7_spill] sm:$0xff] }
 0x298   : > { %v11755_v19 = vld [vmem:[#allocation58_spill] sm:$0xff] }
 0x299   : > { %7015 = vmatpush3.bf16.msra.mxu1 %v7436_v47  ;;  %7161 = vmatpush3.bf16.msra.mxu0 %v7441_v18  ;;  %v11745_v47 = vld [vmem:[#allocation9_spill] sm:$0xff]  ;;  %v11747_v18 = vld [vmem:[#allocation12_spill] sm:$0xff]  ;;  %v3696_v1 = vmul.f32 %v11755_v19, %v11710_v22  ;;  %v11759_v22 = vld [vmem:[#allocation26_spill] sm:$0xff] }
 0x29a   : > { %7016 = vmatprep.subr.bf16.mxu1 %v7439_v58  ;;  %7162 = vmatprep.subr.bf16.mxu0 %v7443_v62  ;;  %v3693_v26 = vmul.f32 %v11745_v47, %v11706_v39  ;;  %v11754_v39 = vld [vmem:[#allocation93_spill] sm:$0xff] }
 0x29b   : > { %7081 = vmatmul.mubr.bf16.gmra.mxu0 %v11740_v36  ;;  %6951 = vmatmul.mubr.bf16.gmra.mxu1 %v9765_v52  ;;  %v11750_v36 = vld [vmem:[#allocation92_spill] sm:$0xff]  ;;  %v3695_v5 = vmul.f32 %v11754_v39, %v11753_v45 }
 0x29c   : > { %7084 = vmatprep.mubr.bf16.mxu0 %v11741_v50  ;;  %6954 = vmatprep.mubr.bf16.mxu1 %v11742_v32  ;;  %v10070_v14 = vpack.c.bf16 %v3693_v26, %v3692_v0  ;;  %v11751_v31 = vrot.slane %v11750_v36, 1  ;;  %v11756_v26 = vld [vmem:[#allocation8_spill] sm:$0xff] }
 0x29d   : > { %7017 = vmatpush3.bf16.msra.mxu1 %v7439_v58  ;;  %7163 = vmatpush3.bf16.msra.mxu0 %v7443_v62  ;;  %v11748_v58 = vld [vmem:[#allocation19_spill] sm:$0xff]  ;;  %v3694_v47 = vmul.f32 %v11756_v26, %v11708_v60  ;;  %v7445_v45 = vld [vmem:[%s11211_s4 + $0xf0] sm:$0xff]  }
 0x29e   : > { %7018 = vmatprep.subr.bf16.mxu1 %v7442_v53  ;;  %7244 = vmatprep.subr.bf16.mxu0 %v7448_v13  ;;  %v11749_v62 = vrot.slane %v11748_v58, 1  ;;  %v11760_v60 = vld [vmem:[#allocation27_spill] sm:$0xff] }
 0x2a0   : > { %v10079_v2 = vsel %vm1010_vm3, %v11751_v31, %v11749_v62  ;;  %v10092_v31 = vpack.c.bf16 %v3695_v5, %v3694_v47  ;;  %v10112_v47 = vpop.f32.mrf.mxu0 }
 0x2a1   : > { %7019 = vmatpush3.bf16.msra.mxu1 %v7442_v53  ;;  %v3697_v0 = vmul.f32 %v10079_v2, %v11711_v37  ;;  %v11758_v53 = vld [vmem:[#allocation6_spill] sm:$0xff]  ;;  %v10104_v37 = vpack.c.bf16 %v11760_v60, %v11748_v58 }
 0x2a2   : > { %7100 = vmatprep.subr.bf16.mxu1 %v7444_v28  ;;  %v10122_v5 = vpop.f32.mrf.mxu0 }
 0x2a3   : > { %7085 = vmatmul.mubr.bf16.gmra.mxu0 %v10057_v8  ;;  %6955 = vmatmul.mubr.bf16.gmra.mxu1 %v11746_v56  ;;  %v10094_v62 = vpack.c.bf16 %v3697_v0, %v3696_v1  ;;  %v7450_v1 = vld [vmem:[%s11211_s4 + $0x1b0] sm:$0xff]   ;;  %v7453_v0 = vld [vmem:[%s11211_s4 + $0x1a0] sm:$0xff]  }
 0x2a4   : > { %7088 = vmatprep.mubr.bf16.mxu0 %v11744_v43  ;;  %6958 = vmatprep.mubr.bf16.mxu1 %v11747_v18  ;;  %v10132_v60 = vpop.f32.mrf.mxu0 }
 0x2a5   : > { %11761 = vst [vmem:[#allocation25_spill] sm:$0xff] %v10132_v60 }
 0x2ab   : > { %7089 = vmatmul.mubr.bf16.gmra.mxu0 %v9775_v3  ;;  %6959 = vmatmul.mubr.bf16.gmra.mxu1 %v9856_v63 }
 0x2ac   : > { %7092 = vmatprep.mubr.bf16.mxu0 %v10070_v14  ;;  %6962 = vmatprep.mubr.bf16.mxu1 %v11757_v57 }
 0x2b3   : > { %7093 = vmatmul.mubr.bf16.gmra.mxu0 %v10092_v31  ;;  %6963 = vmatmul.mubr.bf16.gmra.mxu1 %v11758_v53 }
 0x2b4   : > { %7096 = vmatprep.mubr.bf16.mxu0 %v10094_v62  ;;  %6966 = vmatprep.mubr.bf16.mxu1 %v11759_v22 }
 0x2bb   : > { %7097 = vmatmul.mubr.bf16.gmra.mxu0 %v9865_v4  ;;  %6967 = vmatmul.mubr.bf16.gmra.mxu1 %v10104_v37 }
 0x2bc   : > { %7164 = vmatprep.mubr.bf16.mxu0 %v11757_v57  ;;  %7020 = vmatprep.mubr.bf16.mxu1 %v11717_v27  ;;  %v7451_v27 = vld [vmem:[%s11211_s4 + $0x1a8] sm:$0xff]  }
 0x2c3   : > { %7165 = vmatmul.mubr.bf16.vlgmr.msra.gmra.mxu0 %v11758_v53  ;;  %7021 = vmatmul.mubr.bf16.vlgmr.msra.gmra.mxu1 %v11738_v40  ;;  %v7447_v40 = vld [vmem:[%s11211_s4 + $0xe0] sm:$0xff]  }
 0x2c4   : > { %7168 = vmatprep.mubr.bf16.mxu0 %v11759_v22  ;;  %7245 = vmatpush3.bf16.msra.mxu0 %v7448_v13  ;;  %v7446_v13 = vld [vmem:[%s11211_s4 + $0xe8] sm:$0xff]  }
 0x2c5   : > { %7246 = vmatprep.subr.bf16.mxu0 %v7450_v1  ;;  %7101 = vmatpush3.bf16.msra.mxu1 %v7444_v28  ;;  %v10142_v28 = vpop.f32.mrf.mxu0 }
 0x2c6   : > { %7024 = vmatprep.mubr.bf16.mxu1 %v11739_v29  ;;  %7102 = vmatprep.subr.bf16.mxu1 %v7445_v45  ;;  %v7454_v29 = vld [vmem:[%s11211_s4 + $0x198] sm:$0xff]   ;;  %11762 = vst [vmem:[#allocation24_spill] sm:$0xff] %v10142_v28  ;;  %v11766_v28 = vld [vmem:[#allocation40_spill] sm:$0xff] }
 0x2c7   : > { %v10152_v60 = vpop.f32.mrf.mxu0 }
 0x2c8   : > { %7247 = vmatpush3.bf16.msra.mxu0 %v7450_v1  ;;  %v11763_v1 = vld [vmem:[#allocation36_spill] sm:$0xff]  ;;  %11764 = vst [vmem:[#allocation34_spill] sm:$0xff] %v10152_v60 }
 0x2c9   : > { %7248 = vmatprep.subr.bf16.mxu0 %v7451_v27  ;;  %7103 = vmatpush3.bf16.msra.mxu1 %v7445_v45  ;;  %v7449_v45 = vld [vmem:[%s11211_s4 + $0xd8] sm:$0xff]  }
 0x2ca   : > { %7104 = vmatprep.subr.bf16.mxu1 %v7446_v13 }
 0x2cb   : > { %7169 = vmatmul.mubr.bf16.gmra.mxu0 %v10104_v37  ;;  %7025 = vmatmul.mubr.bf16.gmra.mxu1 %v9765_v52  ;;  %v7452_v52 = vld [vmem:[%s11211_s4 + $0xd0] sm:$0xff]  }
 0x2cc   : > { %7172 = vmatprep.mubr.bf16.mxu0 %v11741_v50  ;;  %7249 = vmatpush3.bf16.msra.mxu0 %v7451_v27  ;;  %v7456_v27 = vld [vmem:[%s11211_s4 + $0x190] sm:$0xff]  }
 0x2cd   : > { %7250 = vmatprep.subr.bf16.mxu0 %v7453_v0  ;;  %7028 = vmatprep.mubr.bf16.mxu1 %v11763_v1  ;;  %v10162_v1 = vpop.f32.mrf.mxu0 }
 0x2ce   : > { %7105 = vmatpush3.bf16.msra.mxu1 %v7446_v13  ;;  %v7457_v13 = vld [vmem:[%s11211_s4 + $0x188] sm:$0xff]  }
 0x2cf   : > { %7106 = vmatprep.subr.bf16.mxu1 %v7447_v40  ;;  %v10172_v60 = vpop.f32.mrf.mxu0 }
 0x2d0   : > { %7251 = vmatpush3.bf16.msra.mxu0 %v7453_v0  ;;  %v11765_v0 = vld [vmem:[#allocation16_spill] sm:$0xff] }
 0x2d1   : > { %7252 = vmatprep.subr.bf16.mxu0 %v7454_v29 }
 0x2d2   : > { %7107 = vmatpush3.bf16.msra.mxu1 %v7447_v40  ;;  %v7455_v40 = vld [vmem:[%s11211_s4 + $0xc8] sm:$0xff]  }
 0x2d3   : > { %7173 = vmatmul.mubr.bf16.gmra.mxu0 %v10057_v8  ;;  %7108 = vmatprep.subr.bf16.mxu1 %v7449_v45 }
 0x2d4   : > { %7176 = vmatprep.mubr.bf16.mxu0 %v11744_v43  ;;  %7253 = vmatpush3.bf16.msra.mxu0 %v7454_v29  ;;  %v7459_v29 = vld [vmem:[%s11211_s4 + $0x180] sm:$0xff]  }
 0x2d5   : > { %7254 = vmatprep.subr.bf16.mxu0 %v7456_v27  ;;  %7029 = vmatmul.mubr.bf16.gmra.mxu1 %v11765_v0 }
 0x2d6   : > { %7032 = vmatprep.mubr.bf16.mxu1 %v11766_v28  ;;  %7109 = vmatpush3.bf16.msra.mxu1 %v7449_v45  ;;  %v7458_v28 = vld [vmem:[%s11211_s4 + $0xc0] sm:$0xff]   ;;  %v7464_v45 = vld [vmem:[%s11211_s4 + $0x238] sm:$0xff]  }
 0x2d7   : > { %7110 = vmatprep.subr.bf16.mxu1 %v7452_v52 }
 0x2d8   : > { %7255 = vmatpush3.bf16.msra.mxu0 %v7456_v27  ;;  %v10182_v27 = vpop.f32.mrf.mxu0 }
 0x2d9   : > { %7256 = vmatprep.subr.bf16.mxu0 %v7457_v13 }
 0x2da   : > { %7111 = vmatpush3.bf16.msra.mxu1 %v7452_v52  ;;  %v7460_v52 = vld [vmem:[%s11211_s4 + $0x178] sm:$0xff]  }
 0x2db   : > { %7177 = vmatmul.mubr.bf16.gmra.mxu0 %v9775_v3  ;;  %7112 = vmatprep.subr.bf16.mxu1 %v7455_v40 }
 0x2dc   : > { %7180 = vmatprep.mubr.bf16.mxu0 %v9860_v41  ;;  %7257 = vmatpush3.bf16.msra.mxu0 %v7457_v13  ;;  %v10189_v13 = vpop.f32.mrf.mxu0 }
 0x2dd   : > { %7258 = vmatprep.subr.bf16.mxu0 %v7459_v29  ;;  %7033 = vmatmul.mubr.bf16.gmra.mxu1 %v9827_v48  ;;  %11767 = vst [vmem:[#allocation33_spill] sm:$0xff] %v10189_v13 }
 0x2de   : > { %7036 = vmatprep.mubr.bf16.mxu1 %v11757_v57  ;;  %7113 = vmatpush3.bf16.msra.mxu1 %v7455_v40  ;;  %v10193_v48 = vpop.f32.mrf.mxu0 }
 0x2df   : > { %7114 = vmatprep.subr.bf16.mxu1 %v7458_v28  ;;  %11768 = vst [vmem:[#allocation50_spill] sm:$0xff] %v10193_v48  ;;  %v11775_v48 = vld [vmem:[#allocation21_spill] sm:$0xff] }
 0x2e0   : > { %7259 = vmatpush3.bf16.msra.mxu0 %v7459_v29  ;;  %v10197_v0 = vpop.f32.mrf.mxu0 }
 0x2e1   : > { %7340 = vmatprep.subr.bf16.mxu0 %v7464_v45  ;;  %11769 = vst [vmem:[#allocation49_spill] sm:$0xff] %v10197_v0 }
 0x2e2   : > { %7115 = vmatpush3.bf16.msra.mxu1 %v7458_v28  ;;  %v10201_v40 = vpop.f32.mrf.mxu0 }
 0x2e3   : > { %7181 = vmatmul.mubr.bf16.gmra.mxu0 %v9869_v61  ;;  %7196 = vmatprep.subr.bf16.mxu1 %v7460_v52  ;;  %11770 = vst [vmem:[#allocation2_spill] sm:$0xff] %v10201_v40 }
 0x2e4   : > { %7184 = vmatprep.mubr.bf16.mxu0 %v9873_v24  ;;  %v10205_v29 = vpop.f32.mrf.mxu0 }
 0x2e5   : > { %7037 = vmatmul.mubr.bf16.gmra.mxu1 %v11758_v53  ;;  %11771 = vst [vmem:[#allocation61_spill] sm:$0xff] %v10205_v29  ;;  %v7466_v29 = vld [vmem:[%s11211_s4 + $0x230] sm:$0xff]  }
 0x2e6   : > { %7040 = vmatprep.mubr.bf16.mxu1 %v11759_v22  ;;  %v10209_v28 = vpop.f32.mrf.mxu0 }
 0x2e7   : > { %11772 = vst [vmem:[#allocation60_spill] sm:$0xff] %v10209_v28 }
 0x2e8   : > { %v10213_v0 = vpop.f32.mrf.mxu0 }
 0x2e9   : > { %11773 = vst [vmem:[#allocation63_spill] sm:$0xff] %v10213_v0  ;;  %v7461_v0 = vld [vmem:[%s11211_s4 + $0x170] sm:$0xff]  }
 0x2ea   : > { %v10217_v40 = vpop.f32.mrf.mxu0 }
 0x2eb   : > { %7185 = vmatmul.mubr.bf16.gmra.mxu0 %v9877_v17  ;;  %11774 = vst [vmem:[#allocation65_spill] sm:$0xff] %v10217_v40 }
 0x2ec   : > { %7188 = vmatprep.mubr.bf16.mxu0 %v9881_v44  ;;  %v10224_v28 = vpop.f32.mrf.mxu0 }
 0x2ed   : > { %7041 = vmatmul.mubr.bf16.gmra.mxu1 %v10104_v37  ;;  %11776 = vst [vmem:[#allocation64_spill] sm:$0xff] %v10224_v28  ;;  %v7469_v28 = vld [vmem:[%s11211_s4 + $0x220] sm:$0xff]  }
 0x2ee   : > { %7044 = vmatprep.mubr.bf16.mxu1 %v11741_v50  ;;  %v10234_v40 = vpop.f32.mrf.mxu0 }
 0x2f0   : > { %v10244_v13 = vpop.f32.mrf.mxu0 }
 0x2f3   : > { %7189 = vmatmul.mubr.bf16.gmra.mxu0 %v9885_v38 }
 0x2f4   : > { %7192 = vmatprep.mubr.bf16.mxu0 %v9888_v51 }
 0x2f5   : > { %7045 = vmatmul.mubr.bf16.gmra.mxu1 %v10057_v8 }
 0x2f6   : > { %7048 = vmatprep.mubr.bf16.mxu1 %v11744_v43 }
 0x2fb   : > { %7193 = vmatmul.mubr.bf16.gmra.mxu0 %v9891_v6 }
 0x2fc   : > { %7260 = vmatprep.mubr.bf16.mxu0 %v9910_v33 }
 0x2fd   : > { %7049 = vmatmul.mubr.bf16.gmra.mxu1 %v9775_v3 }
 0x2fe   : > { %7116 = vmatprep.mubr.bf16.mxu1 %v11742_v32  ;;  %v7467_v32 = vld [vmem:[%s11211_s4 + $0x228] sm:$0xff]  }
 0x303   : > { %7261 = vmatmul.mubr.bf16.vlgmr.msra.gmra.mxu0 %v11775_v48 }
 0x304   : > { %7264 = vmatprep.mubr.bf16.mxu0 %v9925_v9  ;;  %7341 = vmatpush3.bf16.msra.mxu0 %v7464_v45  ;;  %v7462_v45 = vld [vmem:[%s11211_s4 + $0x168] sm:$0xff]  }
 0x305   : > { %7342 = vmatprep.subr.bf16.mxu0 %v7466_v29  ;;  %7117 = vmatmul.mubr.bf16.vlgmr.msra.gmra.mxu1 %v11746_v56  ;;  %v7463_v56 = vld [vmem:[%s11211_s4 + $0x160] sm:$0xff]  }
 0x306   : > { %7197 = vmatpush3.bf16.msra.mxu1 %v7460_v52  ;;  %7120 = vmatprep.mubr.bf16.mxu1 %v11747_v18  ;;  %v7470_v18 = vld [vmem:[%s11211_s4 + $0x218] sm:$0xff]   ;;  %v10254_v52 = vpop.f32.mrf.mxu0 }
 0x307   : > { %7198 = vmatprep.subr.bf16.mxu1 %v7461_v0 }
 0x308   : > { %7343 = vmatpush3.bf16.msra.mxu0 %v7466_v29  ;;  %v7472_v29 = vld [vmem:[%s11211_s4 + $0x210] sm:$0xff]  }
 0x309   : > { %7344 = vmatprep.subr.bf16.mxu0 %v7467_v32 }
 0x30a   : > { %7199 = vmatpush3.bf16.msra.mxu1 %v7461_v0  ;;  %v7465_v0 = vld [vmem:[%s11211_s4 + $0x158] sm:$0xff]  }
 0x30b   : > { %7265 = vmatmul.mubr.bf16.gmra.mxu0 %v9927_v59  ;;  %7200 = vmatprep.subr.bf16.mxu1 %v7462_v45 }
 0x30c   : > { %7268 = vmatprep.mubr.bf16.mxu0 %v9860_v41  ;;  %7345 = vmatpush3.bf16.msra.mxu0 %v7467_v32  ;;  %v10264_v32 = vpop.f32.mrf.mxu0 }
 0x30d   : > { %7346 = vmatprep.subr.bf16.mxu0 %v7469_v28  ;;  %7121 = vmatmul.mubr.bf16.gmra.mxu1 %v9856_v63  ;;  %v7468_v63 = vld [vmem:[%s11211_s4 + $0x150] sm:$0xff]  }
 0x30e   : > { %7124 = vmatprep.mubr.bf16.mxu1 %v11757_v57  ;;  %7201 = vmatpush3.bf16.msra.mxu1 %v7462_v45  ;;  %v7473_v57 = vld [vmem:[%s11211_s4 + $0x208] sm:$0xff]  }
 0x30f   : > { %7202 = vmatprep.subr.bf16.mxu1 %v7463_v56  ;;  %v7471_v45 = vld [vmem:[%s11211_s4 + $0x148] sm:$0xff]  }
 0x310   : > { %7347 = vmatpush3.bf16.msra.mxu0 %v7469_v28  ;;  %v10274_v28 = vpop.f32.mrf.mxu0 }
 0x311   : > { %7348 = vmatprep.subr.bf16.mxu0 %v7470_v18 }
 0x312   : > { %7203 = vmatpush3.bf16.msra.mxu1 %v7463_v56  ;;  %v7475_v56 = vld [vmem:[%s11211_s4 + $0x200] sm:$0xff]  }
 0x313   : > { %7269 = vmatmul.mubr.bf16.gmra.mxu0 %v9869_v61  ;;  %7204 = vmatprep.subr.bf16.mxu1 %v7465_v0 }
 0x314   : > { %7272 = vmatprep.mubr.bf16.mxu0 %v9873_v24  ;;  %7349 = vmatpush3.bf16.msra.mxu0 %v7470_v18  ;;  %v10284_v18 = vpop.f32.mrf.mxu0 }
 0x315   : > { %7350 = vmatprep.subr.bf16.mxu0 %v7472_v29  ;;  %7125 = vmatmul.mubr.bf16.gmra.mxu1 %v11758_v53  ;;  %v11777_v53 = vpack.c.bf16 %v9914_v42, %v9905_v30  ;;  %v7476_v30 = vld [vmem:[%s11211_s4 + $0x1f8] sm:$0xff]   ;;  %v11779_v42 = vpack.c.bf16 %v11694_v20, %v9918_v12 }
 0x316   : > { %7128 = vmatprep.mubr.bf16.mxu1 %v11759_v22  ;;  %7205 = vmatpush3.bf16.msra.mxu1 %v7465_v0  ;;  %v7474_v22 = vld [vmem:[%s11211_s4 + $0x140] sm:$0xff]   ;;  %v10293_v0 = vpop.f32.mrf.mxu0 }
 0x317   : > { %7206 = vmatprep.subr.bf16.mxu1 %v7468_v63  ;;  %11778 = vst [vmem:[#allocation68_spill] sm:$0xff] %v10293_v0 }
 0x318   : > { %7351 = vmatpush3.bf16.msra.mxu0 %v7472_v29  ;;  %v10302_v29 = vpop.f32.mrf.mxu0 }
 0x319   : > { %7352 = vmatprep.subr.bf16.mxu0 %v7473_v57  ;;  %11780 = vst [vmem:[#allocation14_spill] sm:$0xff] %v10302_v29 }
 0x31a   : > { %7207 = vmatpush3.bf16.msra.mxu1 %v7468_v63  ;;  %v11783_v63 = vpack.c.bf16 %v11697_v55, %v9935_v15 }
 0x31b   : > { %7273 = vmatmul.mubr.bf16.gmra.mxu0 %v9877_v17  ;;  %7208 = vmatprep.subr.bf16.mxu1 %v7471_v45 }
 0x31c   : > { %7276 = vmatprep.mubr.bf16.mxu0 %v11777_v53  ;;  %7353 = vmatpush3.bf16.msra.mxu0 %v7473_v57 }
 0x31d   : > { %7354 = vmatprep.subr.bf16.mxu0 %v7475_v56  ;;  %7129 = vmatmul.mubr.bf16.gmra.mxu1 %v10104_v37  ;;  %v11781_v37 = vpack.c.bf16 %v9931_v7, %v9922_v21  ;;  %v4784_v21 = vmul.f32 %v11750_v36, %v11723_v11  ;;  %v7477_v36 = vld [vmem:[%s11211_s4 + $0x1f0] sm:$0xff]  }
 0x31e   : > { %7132 = vmatprep.mubr.bf16.mxu1 %v9910_v33  ;;  %7209 = vmatpush3.bf16.msra.mxu1 %v7471_v45  ;;  %v10308_v33 = vpop.f32.mrf.mxu0 }
 0x31f   : > { %7210 = vmatprep.subr.bf16.mxu1 %v7474_v22  ;;  %11782 = vst [vmem:[#allocation70_spill] sm:$0xff] %v10308_v33 }
 0x320   : > { %7355 = vmatpush3.bf16.msra.mxu0 %v7475_v56  ;;  %v10314_v12 = vpop.f32.mrf.mxu0  ;;  %v7478_v56 = vld [vmem:[%s11211_s4 + $0x1e8] sm:$0xff]  }
 0x321   : > { %11784 = vst [vmem:[#allocation3_spill] sm:$0xff] %v10314_v12 }
 0x322   : > { %7211 = vmatpush3.bf16.msra.mxu1 %v7474_v22  ;;  %v10320_v7 = vpop.f32.mrf.mxu0 }
 0x323   : > { %7277 = vmatmul.mubr.bf16.gmra.mxu0 %v11779_v42  ;;  %7292 = vmatprep.subr.bf16.mxu1 %v7476_v30  ;;  %11785 = vst [vmem:[#allocation69_spill] sm:$0xff] %v10320_v7 }
 0x324   : > { %7280 = vmatprep.mubr.bf16.mxu0 %v11781_v37  ;;  %v10328_v15 = vpop.f32.mrf.mxu0 }
 0x325   : > { %7133 = vmatmul.mubr.bf16.gmra.mxu1 %v11775_v48  ;;  %11786 = vst [vmem:[#allocation72_spill] sm:$0xff] %v10328_v15 }
 0x326   : > { %7136 = vmatprep.mubr.bf16.mxu1 %v9925_v9  ;;  %v4785_v9 = vmul.f32 %v11748_v58, %v11727_v25  ;;  %v10332_v55 = vpop.f32.mrf.mxu0 }
 0x327   : > { %11787 = vst [vmem:[#allocation71_spill] sm:$0xff] %v10332_v55 }
 0x328   : > { %v10325_v20 = vpack.c.bf16 %v4785_v9, %v4784_v21  ;;  %v7480_v9 = vld [vmem:[%s11211_s4 + $0x1d8] sm:$0xff]  }
 0x32b   : > { %7281 = vmatmul.mubr.bf16.gmra.mxu0 %v11783_v63 }
 0x32c   : > { %7284 = vmatprep.mubr.bf16.mxu0 %v9946_v35 }
 0x32d   : > { %7137 = vmatmul.mubr.bf16.gmra.mxu1 %v9927_v59  ;;  %v10336_v59 = vpop.f32.mrf.mxu0 }
 0x32e   : > { %7140 = vmatprep.mubr.bf16.mxu1 %v9860_v41  ;;  %11788 = vst [vmem:[#allocation62_spill] sm:$0xff] %v10336_v59 }
 0x32f   : > { %v10340_v11 = vpop.f32.mrf.mxu0 }
 0x330   : > { %11789 = vst [vmem:[#allocation94_spill] sm:$0xff] %v10340_v11  ;;  %v11813_v11 = vld [vmem:[#allocation82_spill] sm:$0xff] }
 0x333   : > { %7285 = vmatmul.mubr.bf16.gmra.mxu0 %v9957_v46 }
 0x334   : > { %7288 = vmatprep.mubr.bf16.mxu0 %v10325_v20 }
 0x335   : > { %7141 = vmatmul.mubr.bf16.gmra.mxu1 %v9869_v61 }
 0x336   : > { %7144 = vmatprep.mubr.bf16.mxu1 %v9873_v24 }
 0x33b   : > { %7289 = vmatmul.mubr.bf16.gmra.mxu0 %v9968_v16 }
 0x33c   : > { %7356 = vmatprep.mubr.bf16.mxu0 %v9881_v44  ;;  %v10343_v25 = vpop.f32.mrf.mxu0 }
 0x33d   : > { %7145 = vmatmul.mubr.bf16.gmra.mxu1 %v9877_v17  ;;  %11790 = vst [vmem:[#allocation43_spill] sm:$0xff] %v10343_v25 }
 0x33e   : > { %7212 = vmatprep.mubr.bf16.mxu1 %v11741_v50  ;;  %v10347_v58 = vpop.f32.mrf.mxu0 }
 0x33f   : > { %11791 = vst [vmem:[#allocation23_spill] sm:$0xff] %v10347_v58 }
 0x340   : > { %v10355_v57 = vpop.f32.mrf.mxu0 }
 0x341   : > { %11792 = vst [vmem:[#allocation75_spill] sm:$0xff] %v10355_v57 }
 0x342   : > { %v10360_v45 = vpop.f32.mrf.mxu0 }
 0x343   : > { %7357 = vmatmul.mubr.bf16.vlgmr.msra.gmra.mxu0 %v9885_v38  ;;  %v10352_v48 = vpop.f32.mrf.mxu1  ;;  %11793 = vst [vmem:[#allocation80_spill] sm:$0xff] %v10360_v45 }
 0x344   : > { %7360 = vmatprep.mubr.bf16.mxu0 %v9888_v51 }
 0x345   : > { %7213 = vmatmul.mubr.bf16.vlgmr.msra.gmra.mxu1 %v10057_v8  ;;  %v10358_v50 = vpop.f32.mrf.mxu1 }
 0x346   : > { %7293 = vmatpush3.bf16.msra.mxu1 %v7476_v30  ;;  %7216 = vmatprep.mubr.bf16.mxu1 %v11744_v43  ;;  %v10367_v22 = vpop.f32.mrf.mxu0  ;;  %v7479_v30 = vld [vmem:[%s11211_s4 + $0x1e0] sm:$0xff]  }
 0x347   : > { %7294 = vmatprep.subr.bf16.mxu1 %v7477_v36  ;;  %v10365_v53 = vpop.f32.mrf.mxu1  ;;  %11794 = vst [vmem:[#allocation17_spill] sm:$0xff] %v10367_v22  ;;  %v11802_v22 = vld [vmem:[#allocation95_spill] sm:$0xff] }
 0x348   : > { %v10373_v43 = vpop.f32.mrf.mxu0 }
 0x349   : > { %v10371_v8 = vpop.f32.mrf.mxu1  ;;  %11795 = vst [vmem:[#allocation89_spill] sm:$0xff] %v10373_v43 }
 0x34a   : > { %7295 = vmatpush3.bf16.msra.mxu1 %v7477_v36  ;;  %v10381_v37 = vpop.f32.mrf.mxu0 }
 0x34b   : > { %7361 = vmatmul.mubr.bf16.gmra.mxu0 %v9891_v6  ;;  %7296 = vmatprep.subr.bf16.mxu1 %v7478_v56  ;;  %v10378_v42 = vpop.f32.mrf.mxu1  ;;  %11796 = vst [vmem:[#allocation22_spill] sm:$0xff] %v10381_v37  ;;  %v11801_v37 = vld [vmem:[#allocation74_spill] sm:$0xff] }
 0x34c   : > { %7364 = vmatprep.mubr.bf16.mxu0 %v9990_v23  ;;  %v10386_v21 = vpop.f32.mrf.mxu0  ;;  %v5054_v45 = vmul.f32 %v11802_v22, %v11801_v37  ;;  %v7482_v22 = vld [vmem:[%s11211_s4 + $0x1c8] sm:$0xff]  }
 0x34d   : > { %7217 = vmatmul.mubr.bf16.gmra.mxu1 %v9775_v3  ;;  %v10384_v63 = vpop.f32.mrf.mxu1  ;;  %11797 = vst [vmem:[#allocation52_spill] sm:$0xff] %v10386_v21  ;;  %v11799_v3 = vld [vmem:[#allocation42_spill] sm:$0xff]  ;;  %v7481_v21 = vld [vmem:[%s11211_s4 + $0x1d0] sm:$0xff]  }
 0x34e   : > { %7220 = vmatprep.mubr.bf16.mxu1 %v10070_v14  ;;  %7297 = vmatpush3.bf16.msra.mxu1 %v7478_v56 }
 0x34f   : > { %7298 = vmatprep.subr.bf16.mxu1 %v7479_v30  ;;  %v10391_v36 = vpop.f32.mrf.mxu1 }
 0x351   : > { %v10397_v14 = vpop.f32.mrf.mxu1 }
 0x352   : > { %7299 = vmatpush3.bf16.msra.mxu1 %v7479_v30  ;;  %v11804_v30 = vld [vmem:[#allocation73_spill] sm:$0xff] }
 0x353   : > { %v10393_v43 = vpop.f32.mrf.mxu0  ;;  %7365 = vmatmul.mubr.bf16.gmra.mxu0 %v9993_v10  ;;  %7300 = vmatprep.subr.bf16.mxu1 %v7480_v9  ;;  %v10406_v57 = vpop.f32.mrf.mxu1  ;;  %v5055_v58 = vmul.f32 %v11743_v34, %v11804_v30 }
 0x354   : > { %11798 = vst [vmem:[#allocation4_spill] sm:$0xff] %v10393_v43  ;;  %7368 = vmatprep.mubr.bf16.mxu0 %v11799_v3 }
 0x355   : > { %v10399_v56 = vpop.f32.mrf.mxu0  ;;  %7221 = vmatmul.mubr.bf16.gmra.mxu1 %v10092_v31  ;;  %v10421_v37 = vpack.c.bf16 %v5055_v58, %v5054_v45 }
 0x356   : > { %11800 = vst [vmem:[#allocation51_spill] sm:$0xff] %v10399_v56  ;;  %7224 = vmatprep.mubr.bf16.mxu1 %v10094_v62  ;;  %7301 = vmatpush3.bf16.msra.mxu1 %v7480_v9  ;;  %v10414_v56 = vpop.f32.mrf.mxu1  ;;  %v7483_v9 = vld [vmem:[%s11211_s4 + $0x1c0] sm:$0xff]  }
 0x357   : > { %v10409_v43 = vpop.f32.mrf.mxu0  ;;  %7302 = vmatprep.subr.bf16.mxu1 %v7481_v21 }
 0x358   : > { %11803 = vst [vmem:[#allocation5_spill] sm:$0xff] %v10409_v43  ;;  %v10423_v31 = vpop.f32.mrf.mxu1 }
 0x359   : > { %v10416_v25 = vpop.f32.mrf.mxu0 }
 0x35a   : > { %11805 = vst [vmem:[#allocation54_spill] sm:$0xff] %v10416_v25  ;;  %7303 = vmatpush3.bf16.msra.mxu1 %v7481_v21  ;;  %v10429_v34 = vpop.f32.mrf.mxu1  ;;  %v11811_v25 = vld [vmem:[#allocation28_spill] sm:$0xff] }
 0x35b   : > { %v10425_v43 = vpop.f32.mrf.mxu0  ;;  %7369 = vmatmul.mubr.bf16.gmra.mxu0 %v10000_v54  ;;  %7304 = vmatprep.subr.bf16.mxu1 %v7482_v22 }
 0x35c   : > { %11806 = vst [vmem:[#allocation44_spill] sm:$0xff] %v10425_v43  ;;  %7372 = vmatprep.mubr.bf16.mxu0 %v10421_v37  ;;  %v10436_v58 = vpop.f32.mrf.mxu1 }
 0x35d   : > { %v10431_v62 = vpop.f32.mrf.mxu0  ;;  %7225 = vmatmul.mubr.bf16.gmra.mxu1 %v9865_v4 }
 0x35e   : > { %11807 = vst [vmem:[#allocation57_spill] sm:$0xff] %v10431_v62  ;;  %7228 = vmatprep.mubr.bf16.mxu1 %v9881_v44  ;;  %7305 = vmatpush3.bf16.msra.mxu1 %v7482_v22  ;;  %v10442_v30 = vpop.f32.mrf.mxu1  ;;  %v11814_v22 = vld [vmem:[#allocation9_spill] sm:$0xff] }
 0x35f   : > { %v10439_v45 = vpop.f32.mrf.mxu0  ;;  %7306 = vmatprep.subr.bf16.mxu1 %v7483_v9  ;;  %v5324_v59 = vmul.f32 %v11814_v22, %v11813_v11  ;;  %v11819_v11 = vld [vmem:[#allocation29_spill] sm:$0xff]  ;;  %v11820_v22 = vld [vmem:[#allocation83_spill] sm:$0xff] }
 0x360   : > { %11808 = vst [vmem:[#allocation56_spill] sm:$0xff] %v10439_v45  ;;  %v10446_v62 = vpop.f32.mrf.mxu1 }
 0x361   : > { %v10444_v21 = vpop.f32.mrf.mxu0 }
 0x362   : > { %11809 = vst [vmem:[#allocation11_spill] sm:$0xff] %v10444_v21  ;;  %7307 = vmatpush3.bf16.msra.mxu1 %v7483_v9  ;;  %v10452_v4 = vpop.f32.mrf.mxu1 }
 0x363   : > { %v10448_v43 = vpop.f32.mrf.mxu0  ;;  %7373 = vmatmul.mubr.bf16.gmra.mxu0 %v10003_v49 }
 0x364   : > { %11810 = vst [vmem:[#allocation79_spill] sm:$0xff] %v10448_v43  ;;  %7376 = vmatprep.mubr.bf16.mxu0 %v11811_v25  ;;  %v10458_v55 = vpop.f32.mrf.mxu1  ;;  %v11816_v43 = vld [vmem:[#allocation81_spill] sm:$0xff] }
 0x365   : > { %v10454_v45 = vpop.f32.mrf.mxu0  ;;  %7229 = vmatmul.mubr.bf16.gmra.mxu1 %v9885_v38  ;;  %v5325_v15 = vmul.f32 %v11756_v26, %v11816_v43  ;;  %v11822_v26 = vld [vmem:[#allocation86_spill] sm:$0xff] }
 0x366   : > { %11812 = vst [vmem:[#allocation55_spill] sm:$0xff] %v10454_v45  ;;  %7232 = vmatprep.mubr.bf16.mxu1 %v9888_v51  ;;  %v10466_v7 = vpop.f32.mrf.mxu1  ;;  %v5328_v43 = vmul.f32 %v10079_v2, %v11822_v26 }
 0x367   : > { %v10461_v21 = vpop.f32.mrf.mxu0  ;;  %v5332_v12 = vpack.c.bf16 %v5325_v15, %v5324_v59  ;;  %v11824_v59 = vld [vmem:[#allocation84_spill] sm:$0xff] }
 0x368   : > { %11815 = vst [vmem:[#allocation76_spill] sm:$0xff] %v10461_v21  ;;  %v10470_v45 = vpop.f32.mrf.mxu1  ;;  %v5327_v21 = vmul.f32 %v11755_v19, %v11820_v22  ;;  %v11826_v19 = vld [vmem:[#allocation39_spill] sm:$0xff] }
 0x369   : > { %v10468_v9 = vpop.f32.mrf.mxu0 }
 0x36a   : > { %11817 = vst [vmem:[#allocation66_spill] sm:$0xff] %v10468_v9  ;;  %v10477_v33 = vpop.f32.mrf.mxu1 }
 0x36b   : > { %v10472_v25 = vpop.f32.mrf.mxu0  ;;  %7377 = vmatmul.mubr.bf16.gmra.mxu0 %v11819_v11 }
 0x36c   : > { %11818 = vst [vmem:[#allocation10_spill] sm:$0xff] %v10472_v25  ;;  %7380 = vmatprep.mubr.bf16.mxu0 %v5332_v12  ;;  %v10483_v29 = vpop.f32.mrf.mxu1  ;;  %v5326_v25 = vmul.f32 %v11754_v39, %v11824_v59  ;;  %v11825_v12 = vld [vmem:[#allocation85_spill] sm:$0xff] }
 0x36d   : > { %v10479_v49 = vpop.f32.mrf.mxu0  ;;  %7233 = vmatmul.mubr.bf16.gmra.mxu1 %v9891_v6  ;;  %v5329_v22 = vmul.f32 %v11826_v19, %v11825_v12  ;;  %v11833_v12 = vld [vmem:[#allocation31_spill] sm:$0xff]  ;;  %v11834_v19 = vld [vmem:[#allocation32_spill] sm:$0xff] }
 0x36e   : > { %11821 = vst [vmem:[#allocation35_spill] sm:$0xff] %v10479_v49  ;;  %7236 = vmatprep.mubr.bf16.mxu1 %v9990_v23  ;;  %v10493_v9 = vpop.f32.mrf.mxu1  ;;  %v5333_v11 = vpack.c.bf16 %v5327_v21, %v5326_v25 }
 0x36f   : > { %v10486_v15 = vpop.f32.mrf.mxu0  ;;  %v5334_v2 = vpack.c.bf16 %v5329_v22, %v5328_v43  ;;  %v11835_v22 = vpack.c.bf16 %v11833_v12, %v11834_v19 }
 0x370   : > { %11823 = vst [vmem:[#allocation20_spill] sm:$0xff] %v10486_v15  ;;  %v10497_v26 = vpop.f32.mrf.mxu1 }
 0x371   : > { %v10495_v49 = vpop.f32.mrf.mxu0 }
 0x372   : > { %11827 = vst [vmem:[#allocation18_spill] sm:$0xff] %v10495_v49  ;;  %v10501_v15 = vpop.f32.mrf.mxu1 }
 0x373   : > { %v10499_v0 = vpop.f32.mrf.mxu0  ;;  %7381 = vmatmul.mubr.bf16.gmra.mxu0 %v5333_v11 }
 0x374   : > { %11828 = vst [vmem:[#allocation78_spill] sm:$0xff] %v10499_v0  ;;  %7384 = vmatprep.mubr.bf16.mxu0 %v5334_v2  ;;  %v10505_v23 = vpop.f32.mrf.mxu1 }
 0x375   : > { %v10503_v39 = vpop.f32.mrf.mxu0  ;;  %7237 = vmatmul.mubr.bf16.gmra.mxu1 %v9993_v10 }
 0x376   : > { %11829 = vst [vmem:[#allocation48_spill] sm:$0xff] %v10503_v39  ;;  %7240 = vmatprep.mubr.bf16.mxu1 %v11799_v3  ;;  %v10511_v25 = vpop.f32.mrf.mxu1 }
 0x377   : > { %v10508_v59 = vpop.f32.mrf.mxu0 }
 0x378   : > { %11830 = vst [vmem:[#allocation13_spill] sm:$0xff] %v10508_v59  ;;  %v10515_v43 = vpop.f32.mrf.mxu1 }
 0x379   : > { %v10513_v21 = vpop.f32.mrf.mxu0 }
 0x37a   : > { %11831 = vst [vmem:[#allocation77_spill] sm:$0xff] %v10513_v21  ;;  %v10522_v2 = vpop.f32.mrf.mxu1 }
 0x37b   : > { %v10517_v11 = vpop.f32.mrf.mxu0  ;;  %7385 = vmatmul.mubr.bf16.gmra.mxu0 %v11835_v22 }
 0x37c   : > { %11832 = vst [vmem:[#allocation38_spill] sm:$0xff] %v10517_v11  ;;  %v10526_v10 = vpop.f32.mrf.mxu1 }
 0x37d   : > { %v10524_v39 = vpop.f32.mrf.mxu0  ;;  %7241 = vmatmul.mubr.bf16.gmra.mxu1 %v10000_v54 }
 0x37e   : > { %11836 = vst [vmem:[#allocation67_spill] sm:$0xff] %v10524_v39  ;;  %7308 = vmatprep.mubr.bf16.mxu1 %v9860_v41  ;;  %v10532_v21 = vpop.f32.mrf.mxu1  ;;  %v3260_v39 = vadd.f32 %v10112_v47, %v10352_v48  ;;  %v3252_v41 = vadd.f32 %v10122_v5, %v10358_v50 }
 0x37f   : > { %v10529_v3 = vpop.f32.mrf.mxu0 }
 0x380   : > { %11837 = vst [vmem:[#allocation87_spill] sm:$0xff] %v10529_v3  ;;  %v10536_v11 = vpop.f32.mrf.mxu1 }
 0x381   : > { %v10534_v59 = vpop.f32.mrf.mxu0  ;;  %11839 = vst [vmem:[#allocation88_spill] sm:$0xff] %v10536_v11 }
 0x382   : > { %11838 = vst [vmem:[#allocation91_spill] sm:$0xff] %v10534_v59  ;;  %v10540_v19 = vpop.f32.mrf.mxu1 }
 0x383   : > { %v10538_v12 = vpop.f32.mrf.mxu0  ;;  %11841 = vst [vmem:[#allocation37_spill] sm:$0xff] %v10540_v19 }
 0x384   : > { %11840 = vst [vmem:[#allocation47_spill] sm:$0xff] %v10538_v12  ;;  %v7022_v54 = vpop.f32.mrf.mxu1 }
 0x385   : > { %v10542_v22 = vpop.f32.mrf.mxu0  ;;  %7309 = vmatmul.mubr.bf16.vlgmr.msra.gmra.mxu1 %v9869_v61  ;;  %v10551_v59 = vadd.f32 %v7022_v54, %v3260_v39  ;;  %v11846_v61 = vld [vmem:[#allocation24_spill] sm:$0xff] }
 0x386   : > { %11842 = vst [vmem:[#allocation90_spill] sm:$0xff] %v10542_v22  ;;  %7312 = vmatprep.mubr.bf16.mxu1 %v9873_v24  ;;  %v3493_v12 = vpop.f32.mrf.mxu1  ;;  %v11845_v22 = vld [vmem:[#allocation25_spill] sm:$0xff]  ;;  %v11847_v24 = vld [vmem:[#allocation34_spill] sm:$0xff] }
 0x387   : > { %v10547_v3 = vpop.f32.mrf.mxu0  ;;  %v3263_v49 = vadd.f32 %v11845_v22, %v10365_v53  ;;  %v10558_v19 = vadd.f32 %v3493_v12, %v3252_v41  ;;  %v3276_v39 = vadd.f32 %v11847_v24, %v10378_v42  ;;  %v3268_v12 = vadd.f32 %v10162_v1, %v10384_v63 }
 0x388   : > { %11843 = vst [vmem:[#allocation45_spill] sm:$0xff] %v10547_v3  ;;  %v7023_v47 = vpop.f32.mrf.mxu1  ;;  %v3255_v3 = vadd.f32 %v11846_v61, %v10371_v8  ;;  %v3279_v42 = vadd.f32 %v10172_v60, %v10391_v36  ;;  %v11849_v36 = vld [vmem:[#allocation50_spill] sm:$0xff] }
 0x389   : > { %v10554_v0 = vpop.f32.mrf.mxu0  ;;  %v10564_v11 = vadd.f32 %v7023_v47, %v3263_v49 }
 0x38a   : > { %11844 = vst [vmem:[#allocation30_spill] sm:$0xff] %v10554_v0  ;;  %v3496_v5 = vpop.f32.mrf.mxu1 }
 0x38b   : > { %v10560_v48 = vpop.f32.mrf.mxu0  ;;  %v10570_v54 = vadd.f32 %v3496_v5, %v3255_v3 }
 0x38c   : > { %v7026_v0 = vpop.f32.mrf.mxu1 }
 0x38d   : > { %v10566_v50 = vpop.f32.mrf.mxu0  ;;  %7313 = vmatmul.mubr.bf16.gmra.mxu1 %v9877_v17  ;;  %v10577_v22 = vadd.f32 %v7026_v0, %v3276_v39  ;;  %v3271_v17 = vadd.f32 %v10182_v27, %v10397_v14  ;;  %v3284_v39 = vadd.f32 %v11849_v36, %v10414_v56 }
 0x38e   : > { %7316 = vmatprep.mubr.bf16.mxu1 %v9881_v44  ;;  %v3509_v49 = vpop.f32.mrf.mxu1  ;;  %v11848_v44 = vld [vmem:[#allocation33_spill] sm:$0xff] }
 0x38f   : > { %v10573_v53 = vpop.f32.mrf.mxu0  ;;  %v10584_v3 = vadd.f32 %v3509_v49, %v3268_v12  ;;  %v3292_v63 = vadd.f32 %v11848_v44, %v10406_v57  ;;  %v11851_v49 = vld [vmem:[#allocation49_spill] sm:$0xff] }
 0x390   : > { %v7027_v41 = vpop.f32.mrf.mxu1  ;;  %v3295_v57 = vadd.f32 %v11851_v49, %v10423_v31 }
 0x391   : > { %v10580_v8 = vpop.f32.mrf.mxu0  ;;  %v10590_v61 = vadd.f32 %v7027_v41, %v3279_v42 }
 0x392   : > { %v3512_v1 = vpop.f32.mrf.mxu1 }
 0x393   : > { %v10586_v47 = vpop.f32.mrf.mxu0  ;;  %v10596_v5 = vadd.f32 %v3512_v1, %v3271_v17 }
 0x395   : > { %v10592_v0 = vpop.f32.mrf.mxu0  ;;  %v7030_v24 = vpop.f32.mrf.mxu1  ;;  %7317 = vmatmul.mubr.bf16.gmra.mxu1 %v9885_v38  ;;  %v11852_v38 = vld [vmem:[#allocation2_spill] sm:$0xff] }
 0x396   : > { %v10603_v12 = vadd.f32 %v7030_v24, %v3292_v63  ;;  %7320 = vmatprep.mubr.bf16.mxu1 %v9888_v51  ;;  %v3287_v1 = vadd.f32 %v11852_v38, %v10429_v34  ;;  %v11853_v51 = vld [vmem:[#allocation61_spill] sm:$0xff] }
 0x397   : > { %v10599_v60 = vpop.f32.mrf.mxu0  ;;  %v3525_v27 = vpop.f32.mrf.mxu1  ;;  %v3308_v24 = vadd.f32 %v11853_v51, %v10436_v58 }
 0x398   : > { %v10610_v42 = vadd.f32 %v3525_v27, %v3284_v39  ;;  %v11855_v39 = vld [vmem:[#allocation60_spill] sm:$0xff] }
 0x399   : > { %v10606_v14 = vpop.f32.mrf.mxu0  ;;  %v7031_v41 = vpop.f32.mrf.mxu1  ;;  %v3300_v27 = vadd.f32 %v11855_v39, %v10442_v30 }
 0x39a   : > { %11850 = vst [vmem:[#allocation46_spill] sm:$0xff] %v10606_v14  ;;  %v10616_v44 = vadd.f32 %v7031_v41, %v3295_v57  ;;  %v11857_v41 = vld [vmem:[#allocation63_spill] sm:$0xff] }
 0x39b   : > { %v10612_v17 = vpop.f32.mrf.mxu0  ;;  %v3528_v56 = vpop.f32.mrf.mxu1  ;;  %v3311_v58 = vadd.f32 %v11857_v41, %v10446_v62 }
 0x39c   : > { %v10622_v36 = vadd.f32 %v3528_v56, %v3287_v1 }
 0x39d   : > { %v10618_v63 = vpop.f32.mrf.mxu0  ;;  %v7034_v14 = vpop.f32.mrf.mxu1  ;;  %7321 = vmatmul.mubr.bf16.gmra.mxu1 %v9891_v6  ;;  %v11858_v6 = vld [vmem:[#allocation65_spill] sm:$0xff] }
 0x39e   : > { %v10629_v49 = vadd.f32 %v7034_v14, %v3308_v24  ;;  %7324 = vmatprep.mubr.bf16.mxu1 %v9946_v35  ;;  %v3303_v51 = vadd.f32 %v11858_v6, %v10452_v4  ;;  %v11859_v35 = vld [vmem:[#allocation64_spill] sm:$0xff] }
 0x39f   : > { %v10625_v31 = vpop.f32.mrf.mxu0  ;;  %v3541_v34 = vpop.f32.mrf.mxu1  ;;  %v3324_v24 = vadd.f32 %v11859_v35, %v10458_v55  ;;  %v3327_v55 = vadd.f32 %v10244_v13, %v10470_v45  ;;  %v3332_v45 = vadd.f32 %v10274_v28, %v10493_v9 }
 0x3a0   : > { %11854 = vst [vmem:[#allocation59_spill] sm:$0xff] %v10625_v31  ;;  %v10636_v38 = vadd.f32 %v3541_v34, %v3300_v27  ;;  %v3316_v27 = vadd.f32 %v10234_v40, %v10466_v7 }
 0x3a1   : > { %v10632_v57 = vpop.f32.mrf.mxu0  ;;  %v7035_v1 = vpop.f32.mrf.mxu1 }
 0x3a2   : > { %11856 = vst [vmem:[#allocation12_spill] sm:$0xff] %v10632_v57  ;;  %v10642_v31 = vadd.f32 %v7035_v1, %v3311_v58 }
 0x3a3   : > { %v10638_v56 = vpop.f32.mrf.mxu0  ;;  %v3544_v30 = vpop.f32.mrf.mxu1 }
 0x3a4   : > { %v10648_v39 = vadd.f32 %v3544_v30, %v3303_v51 }
 0x3a5   : > { %v10644_v14 = vpop.f32.mrf.mxu0  ;;  %v7038_v57 = vpop.f32.mrf.mxu1  ;;  %7325 = vmatmul.mubr.bf16.gmra.mxu1 %v9957_v46  ;;  %v3319_v46 = vadd.f32 %v10254_v52, %v10477_v33 }
 0x3a6   : > { %v10655_v34 = vadd.f32 %v7038_v57, %v3324_v24  ;;  %7328 = vmatprep.mubr.bf16.mxu1 %v10325_v20  ;;  %v3340_v20 = vadd.f32 %v10264_v32, %v10483_v29  ;;  %v3343_v32 = vadd.f32 %v10284_v18, %v10497_v26  ;;  %v11864_v18 = vld [vmem:[#allocation41_spill] sm:$0xff] }
 0x3a7   : > { %v10651_v62 = vpop.f32.mrf.mxu0  ;;  %v3557_v4 = vpop.f32.mrf.mxu1 }
 0x3a8   : > { %v10662_v58 = vadd.f32 %v3557_v4, %v3316_v27 }
 0x3a9   : > { %v10658_v41 = vpop.f32.mrf.mxu0  ;;  %v7039_v1 = vpop.f32.mrf.mxu1 }
 0x3aa   : > { %v10668_v51 = vadd.f32 %v7039_v1, %v3327_v55 }
 0x3ab   : > { %v10664_v6 = vpop.f32.mrf.mxu0  ;;  %v3560_v40 = vpop.f32.mrf.mxu1 }
 0x3ac   : > { %v10674_v57 = vadd.f32 %v3560_v40, %v3319_v46 }
 0x3ad   : > { %v10670_v7 = vpop.f32.mrf.mxu0  ;;  %v7042_v30 = vpop.f32.mrf.mxu1  ;;  %7329 = vmatmul.mubr.bf16.gmra.mxu1 %v9968_v16  ;;  %v11861_v16 = vld [vmem:[#allocation68_spill] sm:$0xff] }
 0x3ae   : > { %v10681_v35 = vadd.f32 %v7042_v30, %v3340_v20  ;;  %7332 = vmatprep.mubr.bf16.mxu1 %v10421_v37  ;;  %v3335_v4 = vadd.f32 %v11861_v16, %v10501_v15  ;;  %v11863_v37 = vld [vmem:[#allocation14_spill] sm:$0xff]  ;;  %v11867_v15 = vld [vmem:[#allocation28_spill] sm:$0xff] }
 0x3af   : > { %v10677_v13 = vpop.f32.mrf.mxu0  ;;  %v3573_v52 = vpop.f32.mrf.mxu1  ;;  %v3356_v1 = vadd.f32 %v11863_v37, %v10505_v23  ;;  %v11866_v20 = vld [vmem:[#allocation70_spill] sm:$0xff]  ;;  %v11871_v37 = vld [vmem:[#allocation69_spill] sm:$0xff] }
 0x3b0   : > { %v10688_v29 = vadd.f32 %v3573_v52, %v3332_v45  ;;  %v3348_v30 = vadd.f32 %v11866_v20, %v10511_v25 }
 0x3b1   : > { %v10684_v33 = vpop.f32.mrf.mxu0  ;;  %v7043_v24 = vpop.f32.mrf.mxu1 }
 0x3b2   : > { %v10694_v55 = vadd.f32 %v7043_v24, %v3343_v32  ;;  %v11869_v24 = vld [vmem:[#allocation3_spill] sm:$0xff] }
 0x3b3   : > { %v10690_v27 = vpop.f32.mrf.mxu0  ;;  %v3576_v28 = vpop.f32.mrf.mxu1  ;;  %v3359_v23 = vadd.f32 %v11869_v24, %v10515_v43  ;;  %v11874_v43 = vld [vmem:[#allocation29_spill] sm:$0xff] }
 0x3b4   : > { %11860 = vst [vmem:[#allocation19_spill] sm:$0xff] %v10690_v27  ;;  %v10700_v46 = vadd.f32 %v3576_v28, %v3335_v4 }
 0x3b5   : > { %v10696_v9 = vpop.f32.mrf.mxu0  ;;  %v7046_v40 = vpop.f32.mrf.mxu1  ;;  %7333 = vmatmul.mubr.bf16.gmra.mxu1 %v11864_v18  ;;  %v3351_v18 = vadd.f32 %v11871_v37, %v10522_v2  ;;  %v11879_v37 = vld [vmem:[#allocation62_spill] sm:$0xff] }
 0x3b6   : > { %11862 = vst [vmem:[#allocation92_spill] sm:$0xff] %v10696_v9  ;;  %v10707_v45 = vadd.f32 %v7046_v40, %v3356_v1  ;;  %7336 = vmatprep.mubr.bf16.mxu1 %v11867_v15  ;;  %v11873_v40 = vld [vmem:[#allocation72_spill] sm:$0xff] }
 0x3b7   : > { %v10703_v26 = vpop.f32.mrf.mxu0  ;;  %v3589_v52 = vpop.f32.mrf.mxu1  ;;  %v3372_v20 = vadd.f32 %v11873_v40, %v10526_v10  ;;  %v11882_v40 = vld [vmem:[#allocation94_spill] sm:$0xff] }
 0x3b8   : > { %11865 = vst [vmem:[#allocation15_spill] sm:$0xff] %v10703_v26  ;;  %v10714_v16 = vadd.f32 %v3589_v52, %v3348_v30  ;;  %v11876_v52 = vld [vmem:[#allocation71_spill] sm:$0xff] }
 0x3b9   : > { %v10710_v32 = vpop.f32.mrf.mxu0  ;;  %v7047_v4 = vpop.f32.mrf.mxu1  ;;  %v3364_v24 = vadd.f32 %v11876_v52, %v10532_v21 }
 0x3ba   : > { %11868 = vst [vmem:[#allocation53_spill] sm:$0xff] %v10710_v32  ;;  %v10720_v26 = vadd.f32 %v7047_v4, %v3359_v23  ;;  %v11878_v4 = vld [vmem:[#allocation88_spill] sm:$0xff] }
 0x3bb   : > { %v10716_v28 = vpop.f32.mrf.mxu0  ;;  %v3592_v25 = vpop.f32.mrf.mxu1 }
 0x3bc   : > { %11870 = vst [vmem:[#allocation93_spill] sm:$0xff] %v10716_v28  ;;  %v10726_v15 = vadd.f32 %v3592_v25, %v3351_v18  ;;  %v11881_v25 = vld [vmem:[#allocation37_spill] sm:$0xff] }
 0x3bd   : > { %v10722_v1 = vpop.f32.mrf.mxu0  ;;  %v7050_v32 = vpop.f32.mrf.mxu1  ;;  %7337 = vmatmul.mubr.bf16.gmra.mxu1 %v11874_v43  ;;  %v3367_v43 = vadd.f32 %v11882_v40, %v11881_v25 }
 0x3be   : > { %11872 = vst [vmem:[#allocation58_spill] sm:$0xff] %v10722_v1  ;;  %v10733_v28 = vadd.f32 %v7050_v32, %v3372_v20  ;;  %v3375_v1 = vadd.f32 %v11879_v37, %v11878_v4  ;;  %v11884_v20 = vld [vmem:[#allocation43_spill] sm:$0xff] }
 0x3bf   : > { %v10729_v30 = vpop.f32.mrf.mxu0  ;;  %v3605_v2 = vpop.f32.mrf.mxu1  ;;  %v3936_v52 = vadd.f32 %v11884_v20, %v10551_v59  ;;  %v11890_v20 = vld [vmem:[#allocation80_spill] sm:$0xff] }
 0x3c0   : > { %11875 = vst [vmem:[#allocation8_spill] sm:$0xff] %v10729_v30  ;;  %v10739_v9 = vadd.f32 %v3605_v2, %v3364_v24  ;;  %v11886_v2 = vld [vmem:[#allocation23_spill] sm:$0xff] }
 0x3c1   : > { %v10735_v23 = vpop.f32.mrf.mxu0  ;;  %v7051_v10 = vpop.f32.mrf.mxu1  ;;  %v3934_v37 = vadd.f32 %v11886_v2, %v10558_v19  ;;  %v11892_v2 = vld [vmem:[#allocation17_spill] sm:$0xff] }
 0x3c2   : > { %11877 = vst [vmem:[#allocation7_spill] sm:$0xff] %v10735_v23  ;;  %v10745_v30 = vadd.f32 %v7051_v10, %v3375_v1  ;;  %v11888_v10 = vld [vmem:[#allocation75_spill] sm:$0xff] }
 0x3c3   : > { %v10741_v18 = vpop.f32.mrf.mxu0  ;;  %v3608_v27 = vpop.f32.mrf.mxu1 }
 0x3c4   : > { %11880 = vst [vmem:[#allocation6_spill] sm:$0xff] %v10741_v18  ;;  %v10749_v32 = vadd.f32 %v3608_v27, %v3367_v43  ;;  %v3937_v27 = vadd.f32 %v11888_v10, %v10564_v11  ;;  %v11894_v10 = vld [vmem:[#allocation89_spill] sm:$0xff] }
 0x3c5   : > { %v10747_v21 = vpop.f32.mrf.mxu0  ;;  %v7118_v23 = vpop.f32.mrf.mxu1 }
 0x3c6   : > { %11883 = vst [vmem:[#allocation26_spill] sm:$0xff] %v10747_v21  ;;  %v10755_v24 = vadd.f32 %v7118_v23, %v3936_v52  ;;  %v3935_v23 = vadd.f32 %v11890_v20, %v10570_v54  ;;  %v11896_v20 = vld [vmem:[#allocation22_spill] sm:$0xff] }
 0x3c7   : > { %v10753_v4 = vpop.f32.mrf.mxu0  ;;  %v4081_v18 = vpop.f32.mrf.mxu1 }
 0x3c8   : > { %11885 = vst [vmem:[#allocation27_spill] sm:$0xff] %v10753_v4  ;;  %v10761_v1 = vadd.f32 %v4081_v18, %v3934_v37  ;;  %v3940_v18 = vadd.f32 %v11892_v2, %v10577_v22  ;;  %v11898_v2 = vld [vmem:[#allocation52_spill] sm:$0xff] }
 0x3c9   : > { %v10759_v25 = vpop.f32.mrf.mxu0  ;;  %v7119_v40 = vpop.f32.mrf.mxu1 }
 0x3ca   : > { %11887 = vst [vmem:[#allocation36_spill] sm:$0xff] %v10759_v25  ;;  %v10767_v59 = vadd.f32 %v7119_v40, %v3937_v27  ;;  %v3938_v27 = vadd.f32 %v11894_v10, %v10584_v3  ;;  %v11900_v10 = vld [vmem:[#allocation4_spill] sm:$0xff] }
 0x3cb   : > { %v10765_v43 = vpop.f32.mrf.mxu0  ;;  %v4084_v52 = vpop.f32.mrf.mxu1 }
 0x3cc   : > { %11889 = vst [vmem:[#allocation16_spill] sm:$0xff] %v10765_v43  ;;  %v10773_v19 = vadd.f32 %v4084_v52, %v3935_v23  ;;  %v3941_v23 = vadd.f32 %v11896_v20, %v10590_v61  ;;  %v11902_v20 = vld [vmem:[#allocation51_spill] sm:$0xff] }
 0x3cd   : > { %v10771_v4 = vpop.f32.mrf.mxu0  ;;  %v7122_v37 = vpop.f32.mrf.mxu1 }
 0x3ce   : > { %11891 = vst [vmem:[#allocation40_spill] sm:$0xff] %v10771_v4  ;;  %v10779_v11 = vadd.f32 %v7122_v37, %v3940_v18  ;;  %v3939_v18 = vadd.f32 %v11898_v2, %v10596_v5  ;;  %v11904_v2 = vld [vmem:[#allocation5_spill] sm:$0xff] }
 0x3cf   : > { %v10777_v25 = vpop.f32.mrf.mxu0  ;;  %v4097_v40 = vpop.f32.mrf.mxu1 }
 0x3d0   : > { %11893 = vst [vmem:[#allocation21_spill] sm:$0xff] %v10777_v25  ;;  %v10785_v54 = vadd.f32 %v4097_v40, %v3938_v27  ;;  %v3944_v27 = vadd.f32 %v11900_v10, %v10603_v12  ;;  %v11906_v10 = vld [vmem:[#allocation54_spill] sm:$0xff] }
 0x3d1   : > { %v10783_v43 = vpop.f32.mrf.mxu0  ;;  %v7123_v52 = vpop.f32.mrf.mxu1 }
 0x3d2   : > { %11895 = vst [vmem:[#allocation42_spill] sm:$0xff] %v10783_v43  ;;  %v10791_v22 = vadd.f32 %v7123_v52, %v3941_v23  ;;  %v3942_v23 = vadd.f32 %v11902_v20, %v10610_v42  ;;  %v11908_v20 = vld [vmem:[#allocation44_spill] sm:$0xff] }
 0x3d3   : > { %v10789_v4 = vpop.f32.mrf.mxu0  ;;  %v4100_v37 = vpop.f32.mrf.mxu1 }
 0x3d4   : > { %11897 = vst [vmem:[#allocation74_spill] sm:$0xff] %v10789_v4  ;;  %v10797_v3 = vadd.f32 %v4100_v37, %v3939_v18  ;;  %v3945_v18 = vadd.f32 %v11904_v2, %v10616_v44  ;;  %v11910_v2 = vld [vmem:[#allocation57_spill] sm:$0xff] }
 0x3d5   : > { %v10795_v25 = vpop.f32.mrf.mxu0  ;;  %v7126_v40 = vpop.f32.mrf.mxu1 }
 0x3d6   : > { %11899 = vst [vmem:[#allocation95_spill] sm:$0xff] %v10795_v25  ;;  %v10803_v61 = vadd.f32 %v7126_v40, %v3944_v27  ;;  %v3943_v27 = vadd.f32 %v11906_v10, %v10622_v36  ;;  %v11912_v10 = vld [vmem:[#allocation56_spill] sm:$0xff] }
 0x3d7   : > { %v10801_v43 = vpop.f32.mrf.mxu0  ;;  %v4113_v52 = vpop.f32.mrf.mxu1 }
 0x3d8   : > { %11901 = vst [vmem:[#allocation73_spill] sm:$0xff] %v10801_v43  ;;  %v10809_v5 = vadd.f32 %v4113_v52, %v3942_v23  ;;  %v3948_v23 = vadd.f32 %v11908_v20, %v10629_v49  ;;  %v11914_v20 = vld [vmem:[#allocation11_spill] sm:$0xff] }
 0x3d9   : > { %v10807_v4 = vpop.f32.mrf.mxu0  ;;  %v7127_v37 = vpop.f32.mrf.mxu1 }
 0x3da   : > { %11903 = vst [vmem:[#allocation82_spill] sm:$0xff] %v10807_v4  ;;  %v10815_v12 = vadd.f32 %v7127_v37, %v3945_v18  ;;  %v3946_v18 = vadd.f32 %v11910_v2, %v10636_v38  ;;  %v11916_v2 = vld [vmem:[#allocation79_spill] sm:$0xff] }
 0x3db   : > { %v10813_v25 = vpop.f32.mrf.mxu0  ;;  %v4116_v40 = vpop.f32.mrf.mxu1 }
 0x3dc   : > { %11905 = vst [vmem:[#allocation9_spill] sm:$0xff] %v10813_v25  ;;  %v10821_v42 = vadd.f32 %v4116_v40, %v3943_v27  ;;  %v3949_v27 = vadd.f32 %v11912_v10, %v10642_v31  ;;  %v11918_v10 = vld [vmem:[#allocation55_spill] sm:$0xff] }
 0x3dd   : > { %v10819_v43 = vpop.f32.mrf.mxu0  ;;  %v7130_v52 = vpop.f32.mrf.mxu1 }
 0x3de   : > { %11907 = vst [vmem:[#allocation81_spill] sm:$0xff] %v10819_v43  ;;  %v10827_v44 = vadd.f32 %v7130_v52, %v3948_v23  ;;  %v3947_v23 = vadd.f32 %v11914_v20, %v10648_v39  ;;  %v11920_v20 = vld [vmem:[#allocation76_spill] sm:$0xff] }
 0x3df   : > { %v10825_v4 = vpop.f32.mrf.mxu0  ;;  %v4129_v37 = vpop.f32.mrf.mxu1 }
 0x3e0   : > { %11909 = vst [vmem:[#allocation83_spill] sm:$0xff] %v10825_v4  ;;  %v10833_v36 = vadd.f32 %v4129_v37, %v3946_v18  ;;  %v3952_v18 = vadd.f32 %v11916_v2, %v10655_v34  ;;  %v11922_v2 = vld [vmem:[#allocation66_spill] sm:$0xff] }
 0x3e1   : > { %v10831_v25 = vpop.f32.mrf.mxu0  ;;  %v7131_v40 = vpop.f32.mrf.mxu1 }
 0x3e2   : > { %11911 = vst [vmem:[#allocation86_spill] sm:$0xff] %v10831_v25  ;;  %v10839_v49 = vadd.f32 %v7131_v40, %v3949_v27  ;;  %v3950_v27 = vadd.f32 %v11918_v10, %v10662_v58  ;;  %v11924_v10 = vld [vmem:[#allocation10_spill] sm:$0xff] }
 0x3e3   : > { %v10837_v43 = vpop.f32.mrf.mxu0  ;;  %v4132_v52 = vpop.f32.mrf.mxu1 }
 0x3e4   : > { %11913 = vst [vmem:[#allocation84_spill] sm:$0xff] %v10837_v43  ;;  %v10845_v38 = vadd.f32 %v4132_v52, %v3947_v23  ;;  %v3953_v23 = vadd.f32 %v11920_v20, %v10668_v51  ;;  %v11926_v20 = vld [vmem:[#allocation35_spill] sm:$0xff] }
 0x3e5   : > { %v10843_v4 = vpop.f32.mrf.mxu0  ;;  %v7134_v37 = vpop.f32.mrf.mxu1 }
 0x3e6   : > { %11915 = vst [vmem:[#allocation85_spill] sm:$0xff] %v10843_v4  ;;  %v10851_v31 = vadd.f32 %v7134_v37, %v3952_v18  ;;  %v3951_v18 = vadd.f32 %v11922_v2, %v10674_v57  ;;  %v11928_v2 = vld [vmem:[#allocation20_spill] sm:$0xff] }
 0x3e7   : > { %v10849_v25 = vpop.f32.mrf.mxu0  ;;  %v4145_v40 = vpop.f32.mrf.mxu1 }
 0x3e8   : > { %11917 = vst [vmem:[#allocation39_spill] sm:$0xff] %v10849_v25  ;;  %v10857_v39 = vadd.f32 %v4145_v40, %v3950_v27  ;;  %v3956_v27 = vadd.f32 %v11924_v10, %v10681_v35  ;;  %v11929_v10 = vld [vmem:[#allocation18_spill] sm:$0xff] }
 0x3e9   : > { %v10855_v43 = vpop.f32.mrf.mxu0  ;;  %v7135_v52 = vpop.f32.mrf.mxu1 }
 0x3ea   : > { %11919 = vst [vmem:[#allocation31_spill] sm:$0xff] %v10855_v43  ;;  %v10863_v34 = vadd.f32 %v7135_v52, %v3953_v23  ;;  %v3954_v23 = vadd.f32 %v11926_v20, %v10688_v29  ;;  %v11931_v20 = vld [vmem:[#allocation78_spill] sm:$0xff] }
 0x3eb   : > { %v10861_v4 = vpop.f32.mrf.mxu0  ;;  %v4148_v37 = vpop.f32.mrf.mxu1 }
 0x3ec   : > { %11921 = vst [vmem:[#allocation32_spill] sm:$0xff] %v10861_v4  ;;  %v10869_v58 = vadd.f32 %v4148_v37, %v3951_v18  ;;  %v3957_v18 = vadd.f32 %v11928_v2, %v10694_v55  ;;  %v11933_v2 = vld [vmem:[#allocation48_spill] sm:$0xff] }
 0x3ed   : > { %v10867_v25 = vpop.f32.mrf.mxu0  ;;  %v7138_v40 = vpop.f32.mrf.mxu1 }
 0x3ee   : > { %11923 = vst [vmem:[#allocation25_spill] sm:$0xff] %v10867_v25  ;;  %v10875_v51 = vadd.f32 %v7138_v40, %v3956_v27  ;;  %v3955_v27 = vadd.f32 %v11929_v10, %v10700_v46  ;;  %v11935_v10 = vld [vmem:[#allocation13_spill] sm:$0xff] }
 0x3ef   : > { %v10873_v43 = vpop.f32.mrf.mxu0  ;;  %v4161_v52 = vpop.f32.mrf.mxu1 }
 0x3f0   : > { %11925 = vst [vmem:[#allocation24_spill] sm:$0xff] %v10873_v43  ;;  %v10881_v57 = vadd.f32 %v4161_v52, %v3954_v23  ;;  %v3960_v23 = vadd.f32 %v11931_v20, %v10707_v45  ;;  %v11938_v20 = vld [vmem:[#allocation77_spill] sm:$0xff] }
 0x3f1   : > { %v10879_v4 = vpop.f32.mrf.mxu0  ;;  %v7139_v37 = vpop.f32.mrf.mxu1 }
 0x3f2   : > { %11927 = vst [vmem:[#allocation34_spill] sm:$0xff] %v10879_v4  ;;  %v10887_v35 = vadd.f32 %v7139_v37, %v3957_v18  ;;  %v3958_v18 = vadd.f32 %v11933_v2, %v10714_v16  ;;  %v11940_v16 = vld [vmem:[#allocation38_spill] sm:$0xff] }
 0x3f3   : > { %v10885_v25 = vpop.f32.mrf.mxu0  ;;  %v4164_v40 = vpop.f32.mrf.mxu1  ;;  %v3964_v2 = vadd.f32 %v11940_v16, %v10733_v28  ;;  %v11945_v28 = vld [vmem:[#allocation91_spill] sm:$0xff] }
 0x3f4   : > { %v10893_v29 = vadd.f32 %v4164_v40, %v3955_v27  ;;  %v3961_v27 = vadd.f32 %v11935_v10, %v10720_v26  ;;  %v11941_v26 = vld [vmem:[#allocation67_spill] sm:$0xff]  ;;  %v3963_v16 = vadd.f32 %v11945_v28, %v10749_v32 }
 0x3f5   : > { %v10891_v43 = vpop.f32.mrf.mxu0  ;;  %v7142_v52 = vpop.f32.mrf.mxu1  ;;  %v3962_v10 = vadd.f32 %v11941_v26, %v10739_v9 }
 0x3f6   : > { %11930 = vst [vmem:[#allocation33_spill] sm:$0xff] %v10891_v43  ;;  %v10899_v55 = vadd.f32 %v7142_v52, %v3960_v23  ;;  %v3959_v23 = vadd.f32 %v11938_v20, %v10726_v15 }
 0x3f7   : > { %v10897_v4 = vpop.f32.mrf.mxu0  ;;  %v4177_v37 = vpop.f32.mrf.mxu1 }
 0x3f8   : > { %11932 = vst [vmem:[#allocation50_spill] sm:$0xff] %v10897_v4  ;;  %v10905_v46 = vadd.f32 %v4177_v37, %v3958_v18 }
 0x3f9   : > { %v10903_v21 = vpop.f32.mrf.mxu0  ;;  %v7143_v40 = vpop.f32.mrf.mxu1 }
 0x3fa   : > { %11934 = vst [vmem:[#allocation49_spill] sm:$0xff] %v10903_v21  ;;  %v10911_v45 = vadd.f32 %v7143_v40, %v3961_v27  ;;  %v11942_v40 = vld [vmem:[#allocation87_spill] sm:$0xff] }
 0x3fb   : > { %v10909_v43 = vpop.f32.mrf.mxu0  ;;  %v4180_v52 = vpop.f32.mrf.mxu1  ;;  %v3965_v15 = vadd.f32 %v11942_v40, %v10745_v30  ;;  %v11949_v30 = vld [vmem:[#allocation90_spill] sm:$0xff] }
 0x3fc   : > { %11936 = vst [vmem:[#allocation2_spill] sm:$0xff] %v10909_v43  ;;  %11937 = vst [vmem:[#allocation61_spill] sm:$0xff] %v10911_v45  ;;  %v10915_v4 = vadd.f32 %v4180_v52, %v3959_v23  ;;  %v4470_v40 = vadd.f32 %v11949_v30, %v10761_v1  ;;  %v4476_v1 = vadd.f32 %v10560_v48, %v10779_v11  ;;  %v11975_v45 = vld [vmem:[#allocation95_spill] sm:$0xff] }
 0x3fd   : > { %v10919_v21 = vpop.f32.mrf.mxu0  ;;  %v7146_v18 = vpop.f32.mrf.mxu1  ;;  %v4475_v48 = vadd.f32 %v10580_v8, %v10797_v3  ;;  %v4481_v8 = vadd.f32 %v10599_v60, %v10815_v12  ;;  %v4482_v60 = vadd.f32 %v10618_v63, %v10833_v36  ;;  %v4488_v63 = vadd.f32 %v10638_v56, %v10851_v31 }
 0x3fe   : > { %11939 = vst [vmem:[#allocation60_spill] sm:$0xff] %v10915_v4  ;;  %v10921_v37 = vadd.f32 %v7146_v18, %v3964_v2  ;;  %v11947_v18 = vld [vmem:[#allocation47_spill] sm:$0xff]  ;;  %v4487_v56 = vadd.f32 %v10658_v41, %v10869_v58  ;;  %v4493_v41 = vadd.f32 %v10677_v13, %v10887_v35  ;;  %v11958_v13 = vld [vmem:[#allocation92_spill] sm:$0xff] }
 0x3ff   : > { %v4193_v43 = vpop.f32.mrf.mxu1  ;;  %v10929_v20 = vpop.f32.mrf.mxu0  ;;  %v4472_v9 = vadd.f32 %v11947_v18, %v10755_v24  ;;  %v11951_v24 = vld [vmem:[#allocation30_spill] sm:$0xff]  ;;  %v4494_v35 = vadd.f32 %v11958_v13, %v10905_v46 }
 0x400   : > { %v10925_v27 = vadd.f32 %v4193_v43, %v3962_v10  ;;  %11943 = vst [vmem:[#allocation63_spill] sm:$0xff] %v10929_v20  ;;  %v4471_v18 = vadd.f32 %v11951_v24, %v10773_v19  ;;  %v4477_v19 = vadd.f32 %v10573_v53, %v10791_v22  ;;  %v4478_v53 = vadd.f32 %v10592_v0, %v10809_v5 }
 0x401   : > { %v7147_v23 = vpop.f32.mrf.mxu1  ;;  %v10939_v26 = vpop.f32.mrf.mxu0  ;;  %v4484_v0 = vadd.f32 %v10612_v17, %v10827_v44  ;;  %v11954_v17 = vld [vmem:[#allocation12_spill] sm:$0xff] }
 0x402   : > { %v10931_v52 = vadd.f32 %v7147_v23, %v3965_v15  ;;  %11948 = vst [vmem:[#allocation68_spill] sm:$0xff] %v10939_v26  ;;  %v11950_v23 = vld [vmem:[#allocation45_spill] sm:$0xff]  ;;  %v4483_v44 = vadd.f32 %v11954_v17, %v10845_v38  ;;  %v4489_v38 = vadd.f32 %v10651_v62, %v10863_v34  ;;  %v4490_v62 = vadd.f32 %v10670_v7, %v10881_v57 }
 0x403   : > { %v4196_v4 = vpop.f32.mrf.mxu1  ;;  %v4473_v32 = vadd.f32 %v11950_v23, %v10767_v59  ;;  %v10949_v28 = vpop.f32.mrf.mxu0  ;;  %v4474_v59 = vadd.f32 %v10566_v50, %v10785_v54  ;;  %v4480_v50 = vadd.f32 %v10586_v47, %v10803_v61  ;;  %v11952_v47 = vld [vmem:[#allocation46_spill] sm:$0xff] }
 0x404   : > { %11944 = vst [vmem:[#allocation65_spill] sm:$0xff] %v10931_v52  ;;  %v10935_v2 = vadd.f32 %v4196_v4, %v3963_v16  ;;  %v4479_v61 = vadd.f32 %v11952_v47, %v10821_v42 }
 0x405   : > { %v7214_v43 = vpop.f32.mrf.mxu1 }
 0x406   : > { %11946 = vst [vmem:[#allocation64_spill] sm:$0xff] %v10935_v2  ;;  %v10941_v10 = vadd.f32 %v7214_v43, %v4472_v9  ;;  %v10959_v43 = vpop.f32.mrf.mxu0 }
 0x407   : > { %v4613_v20 = vpop.f32.mrf.mxu1 }
 0x408   : > { %v10945_v15 = vadd.f32 %v4613_v20, %v4470_v40 }
 0x409   : > { %v7215_v4 = vpop.f32.mrf.mxu1 }
 0x40a   : > { %v10951_v16 = vadd.f32 %v7215_v4, %v4473_v32  ;;  %v10969_v32 = vpop.f32.mrf.mxu0 }
 0x40b   : > { %v4616_v26 = vpop.f32.mrf.mxu1 }
 0x40c   : > { %v10955_v9 = vadd.f32 %v4616_v26, %v4471_v18  ;;  %v10979_v54 = vpop.f32.mrf.mxu0 }
 0x40d   : > { %v7218_v20 = vpop.f32.mrf.mxu1 }
 0x40e   : > { %v10961_v30 = vadd.f32 %v7218_v20, %v4476_v1  ;;  %v10989_v3 = vpop.f32.mrf.mxu0 }
 0x40f   : > { %v4629_v40 = vpop.f32.mrf.mxu1 }
 0x410   : > { %v10965_v23 = vadd.f32 %v4629_v40, %v4474_v59  ;;  %v10999_v5 = vpop.f32.mrf.mxu0 }
 0x411   : > { %v7219_v26 = vpop.f32.mrf.mxu1 }
 0x412   : > { %v10971_v4 = vadd.f32 %v7219_v26, %v4477_v19 }
 0x413   : > { %v4632_v11 = vpop.f32.mrf.mxu1 }
 0x414   : > { %v10975_v24 = vadd.f32 %v4632_v11, %v4475_v48 }
 0x415   : > { %v7222_v18 = vpop.f32.mrf.mxu1 }
 0x416   : > { %v10981_v1 = vadd.f32 %v7222_v18, %v4480_v50  ;;  %v11953_v18 = vld [vmem:[#allocation59_spill] sm:$0xff] }
 0x417   : > { %v4645_v22 = vpop.f32.mrf.mxu1  ;;  %v4485_v42 = vadd.f32 %v11953_v18, %v10839_v49  ;;  %v4486_v49 = vadd.f32 %v10644_v14, %v10857_v39  ;;  %v4492_v14 = vadd.f32 %v10664_v6, %v10875_v51  ;;  %v4491_v6 = vadd.f32 %v10684_v33, %v10893_v29  ;;  %v11961_v29 = vld [vmem:[#allocation33_spill] sm:$0xff] }
 0x418   : > { %v10985_v20 = vadd.f32 %v4645_v22, %v4478_v53  ;;  %v11009_v53 = vpop.f32.mrf.mxu0 }
 0x419   : > { %v7223_v59 = vpop.f32.mrf.mxu1 }
 0x41a   : > { %v10991_v40 = vadd.f32 %v7223_v59, %v4481_v8  ;;  %v11019_v36 = vpop.f32.mrf.mxu0 }
 0x41b   : > { %v4648_v19 = vpop.f32.mrf.mxu1 }
 0x41c   : > { %v10995_v26 = vadd.f32 %v4648_v19, %v4479_v61 }
 0x41d   : > { %v7226_v48 = vpop.f32.mrf.mxu1 }
 0x41e   : > { %v11001_v11 = vadd.f32 %v7226_v48, %v4484_v0 }
 0x41f   : > { %v4661_v12 = vpop.f32.mrf.mxu1 }
 0x420   : > { %v11005_v50 = vadd.f32 %v4661_v12, %v4482_v60  ;;  %v11029_v60 = vpop.f32.mrf.mxu0 }
 0x421   : > { %v7227_v22 = vpop.f32.mrf.mxu1 }
 0x422   : > { %v11011_v8 = vadd.f32 %v7227_v22, %v4485_v42  ;;  %v11039_v39 = vpop.f32.mrf.mxu0 }
 0x423   : > { %v4664_v59 = vpop.f32.mrf.mxu1 }
 0x424   : > { %v11015_v47 = vadd.f32 %v4664_v59, %v4483_v44  ;;  %v11049_v58 = vpop.f32.mrf.mxu0 }
 0x425   : > { %v7230_v61 = vpop.f32.mrf.mxu1 }
 0x426   : > { %v11021_v19 = vadd.f32 %v7230_v61, %v4488_v63  ;;  %v11059_v57 = vpop.f32.mrf.mxu0 }
 0x427   : > { %v4677_v0 = vpop.f32.mrf.mxu1 }
 0x428   : > { %v11025_v48 = vadd.f32 %v4677_v0, %v4486_v49  ;;  %v11957_v49 = vld [vmem:[#allocation19_spill] sm:$0xff] }
 0x429   : > { %v7231_v12 = vpop.f32.mrf.mxu1  ;;  %v4496_v7 = vadd.f32 %v11957_v49, %v10899_v55 }
 0x42a   : > { %v11031_v18 = vadd.f32 %v7231_v12, %v4489_v38 }
 0x42b   : > { %v4680_v31 = vpop.f32.mrf.mxu1 }
 0x42c   : > { %v11035_v42 = vadd.f32 %v4680_v31, %v4487_v56 }
 0x42d   : > { %v7234_v22 = vpop.f32.mrf.mxu1 }
 0x42e   : > { %v11041_v17 = vadd.f32 %v7234_v22, %v4492_v14  ;;  %v11066_v14 = vpop.f32.mrf.mxu0 }
 0x42f   : > { %v4693_v34 = vpop.f32.mrf.mxu1 }
 0x430   : > { %v11045_v44 = vadd.f32 %v4693_v34, %v4490_v62  ;;  %v11964_v62 = vld [vmem:[#allocation93_spill] sm:$0xff] }
 0x431   : > { %v7235_v59 = vpop.f32.mrf.mxu1  ;;  %v4500_v34 = vadd.f32 %v11964_v62, %v10921_v37 }
 0x432   : > { %v11051_v63 = vadd.f32 %v7235_v59, %v4493_v41  ;;  %v11077_v41 = vpop.f32.mrf.mxu0 }
 0x433   : > { %v4696_v51 = vpop.f32.mrf.mxu1 }
 0x434   : > { %11955 = vst [vmem:[#allocation14_spill] sm:$0xff] %v11051_v63  ;;  %v11055_v61 = vadd.f32 %v4696_v51, %v4491_v6  ;;  %v11965_v6 = vld [vmem:[#allocation58_spill] sm:$0xff]  ;;  %v5030_v63 = vadd.f32 %v11975_v45, %v10985_v20 }
 0x435   : > { %v7238_v0 = vpop.f32.mrf.mxu1 }
 0x436   : > { %11956 = vst [vmem:[#allocation41_spill] sm:$0xff] %v11055_v61  ;;  %v4766_v38 = vadd.f32 %v7238_v0, %v4496_v7  ;;  %v11966_v7 = vld [vmem:[#allocation2_spill] sm:$0xff] }
 0x437   : > { %v4709_v12 = vpop.f32.mrf.mxu1 }
 0x438   : > { %v4764_v56 = vadd.f32 %v4709_v12, %v4494_v35  ;;  %v11064_v31 = vadd.f32 %v10885_v25, %v4766_v38  ;;  %v4498_v25 = vadd.f32 %v11965_v6, %v10925_v27  ;;  %v11084_v38 = vpop.f32.mrf.mxu0 }
 0x439   : > { %v11068_v33 = vpop.f32.mrf.mxu1 }
 0x43a   : > { %11959 = vst [vmem:[#allocation70_spill] sm:$0xff] %v11064_v31  ;;  %11960 = vst [vmem:[#allocation28_spill] sm:$0xff] %v11068_v33  ;;  %v11071_v22 = vadd.f32 %v11961_v29, %v4764_v56  ;;  %v11093_v12 = vpop.f32.mrf.mxu0 }
 0x43b   : > { %v11073_v55 = vpop.f32.mrf.mxu1 }
 0x43c   : > { %11962 = vst [vmem:[#allocation3_spill] sm:$0xff] %v11071_v22  ;;  %11963 = vst [vmem:[#allocation69_spill] sm:$0xff] %v11073_v55  ;;  %v11095_v62 = vpop.f32.mrf.mxu0  ;;  %v11974_v55 = vld [vmem:[#allocation27_spill] sm:$0xff] }
 0x43d   : > { %v7242_v46 = vpop.f32.mrf.mxu1  ;;  %v5025_v33 = vadd.f32 %v11974_v55, %v10951_v16  ;;  %v11978_v16 = vld [vmem:[#allocation16_spill] sm:$0xff] }
 0x43e   : > { %v4770_v59 = vadd.f32 %v7242_v46, %v4500_v34  ;;  %v11097_v46 = vpop.f32.mrf.mxu0  ;;  %v5028_v45 = vadd.f32 %v11978_v16, %v10961_v30 }
 0x43f   : > { %v4725_v51 = vpop.f32.mrf.mxu1 }
 0x440   : > { %v4768_v49 = vadd.f32 %v4725_v51, %v4498_v25  ;;  %v11082_v0 = vadd.f32 %v11966_v7, %v4770_v59  ;;  %v11099_v25 = vpop.f32.mrf.mxu0  ;;  %v11972_v7 = vld [vmem:[#allocation26_spill] sm:$0xff] }
 0x441   : > { %v11086_v13 = vpop.f32.mrf.mxu1 }
 0x442   : > { %11967 = vst [vmem:[#allocation72_spill] sm:$0xff] %v11082_v0  ;;  %11968 = vst [vmem:[#allocation29_spill] sm:$0xff] %v11086_v13  ;;  %v11089_v35 = vadd.f32 %v10919_v21, %v4768_v49  ;;  %v11971_v21 = vld [vmem:[#allocation6_spill] sm:$0xff]  ;;  %v11107_v52 = vpop.f32.mrf.mxu0 }
 0x443   : > { %v11091_v37 = vpop.f32.mrf.mxu1  ;;  %v5024_v49 = vadd.f32 %v11971_v21, %v10941_v10  ;;  %v11973_v13 = vld [vmem:[#allocation74_spill] sm:$0xff]  ;;  %v11976_v10 = vld [vmem:[#allocation36_spill] sm:$0xff] }
 0x444   : > { %11969 = vst [vmem:[#allocation71_spill] sm:$0xff] %v11089_v35  ;;  %11970 = vst [vmem:[#allocation88_spill] sm:$0xff] %v11091_v37  ;;  %v5022_v35 = vadd.f32 %v11972_v7, %v10945_v15  ;;  %v5032_v2 = vadd.f32 %v11973_v13, %v10981_v1  ;;  %v5023_v21 = vadd.f32 %v11976_v10, %v10955_v9  ;;  %v11119_v7 = vpop.f32.mrf.mxu0  ;;  %v11979_v9 = vld [vmem:[#allocation82_spill] sm:$0xff] }
 0x445   : > { %v7310_v56 = vpop.f32.mrf.mxu1 }
 0x446   : > { %v5294_v37 = vadd.f32 %v7310_v56, %v5024_v49  ;;  %v11977_v56 = vld [vmem:[#allocation73_spill] sm:$0xff] }
 0x447   : > { %v5165_v29 = vpop.f32.mrf.mxu1  ;;  %v5033_v49 = vadd.f32 %v11977_v56, %v10991_v40  ;;  %v11983_v56 = vld [vmem:[#allocation81_spill] sm:$0xff] }
 0x448   : > { %v5292_v22 = vadd.f32 %v5165_v29, %v5022_v35  ;;  %v5564_v1 = vadd.f32 %v10949_v28, %v5294_v37  ;;  %v11981_v37 = vld [vmem:[#allocation9_spill] sm:$0xff] }
 0x449   : > { %v7311_v27 = vpop.f32.mrf.mxu1 }
 0x44a   : > { %v5295_v13 = vadd.f32 %v7311_v27, %v5025_v33 }
 0x44b   : > { %v5168_v34 = vpop.f32.mrf.mxu1 }
 0x44c   : > { %v5293_v55 = vadd.f32 %v5168_v34, %v5023_v21 }
 0x44d   : > { %v7314_v59 = vpop.f32.mrf.mxu1 }
 0x44e   : > { %v5298_v33 = vadd.f32 %v7314_v59, %v5028_v45 }
 0x44f   : > { %v5181_v6 = vpop.f32.mrf.mxu1 }
 0x451   : > { %v7315_v51 = vpop.f32.mrf.mxu1 }
 0x453   : > { %v5184_v0 = vpop.f32.mrf.mxu1 }
 0x455   : > { %v7318_v31 = vpop.f32.mrf.mxu1 }
 0x456   : > { %v5302_v61 = vadd.f32 %v7318_v31, %v5032_v2  ;;  %v5562_v2 = vadd.f32 %v10959_v43, %v5292_v22  ;;  %v5031_v31 = vadd.f32 %v11979_v9, %v10995_v26  ;;  %v5036_v43 = vadd.f32 %v11981_v37, %v11001_v11  ;;  %v11133_v26 = vpop.f32.mrf.mxu0  ;;  %v11988_v37 = vld [vmem:[#allocation85_spill] sm:$0xff] }
 0x457   : > { %v5197_v15 = vpop.f32.mrf.mxu1  ;;  %v5565_v22 = vadd.f32 %v10969_v32, %v5295_v13  ;;  %v5568_v13 = vadd.f32 %v10989_v3, %v5298_v33 }
 0x458   : > { %v5572_v35 = vadd.f32 %v11029_v60, %v5302_v61  ;;  %v5300_v29 = vadd.f32 %v5197_v15, %v5030_v63  ;;  %v11980_v60 = vld [vmem:[#allocation40_spill] sm:$0xff] }
 0x459   : > { %v7319_v20 = vpop.f32.mrf.mxu1  ;;  %v5026_v63 = vadd.f32 %v11980_v60, %v10965_v23  ;;  %v5034_v23 = vadd.f32 %v11983_v56, %v11005_v50 }
 0x45a   : > { %v5596_v10 = vadd.f32 %v5572_v35, %v5564_v1  ;;  %v5570_v40 = vadd.f32 %v11039_v39, %v5300_v29  ;;  %v5303_v28 = vadd.f32 %v7319_v20, %v5033_v49  ;;  %v11982_v39 = vld [vmem:[#allocation21_spill] sm:$0xff]  ;;  %v5563_v49 = vadd.f32 %v10979_v54, %v5293_v55  ;;  %v7379_v20 = vpop.f32.mrf.mxu0 }
 0x45b   : > { %v5200_v61 = vpop.f32.mrf.mxu1  ;;  %v5296_v34 = vadd.f32 %v5181_v6, %v5026_v63  ;;  %v5029_v21 = vadd.f32 %v11982_v39, %v10971_v4  ;;  %v11985_v6 = vld [vmem:[#allocation83_spill] sm:$0xff] }
 0x45c   : > { %v5594_v30 = vadd.f32 %v5570_v40, %v5562_v2  ;;  %v5573_v27 = vadd.f32 %v11049_v58, %v5303_v28  ;;  %v5301_v15 = vadd.f32 %v5200_v61, %v5031_v31  ;;  %v11984_v58 = vld [vmem:[#allocation42_spill] sm:$0xff]  ;;  %v5037_v2 = vadd.f32 %v11985_v6, %v11011_v8  ;;  %v11987_v8 = vld [vmem:[#allocation84_spill] sm:$0xff] }
 0x45d   : > { %v7322_v59 = vpop.f32.mrf.mxu1  ;;  %v5027_v35 = vadd.f32 %v11984_v58, %v10975_v24  ;;  %v5299_v4 = vadd.f32 %v7315_v51, %v5029_v21  ;;  %v5566_v54 = vadd.f32 %v10999_v5, %v5296_v34  ;;  %v5040_v51 = vadd.f32 %v11987_v8, %v11021_v19  ;;  %v5518_v5 = vpop.f32.mrf.mxu0  ;;  %v11989_v34 = vld [vmem:[#allocation39_spill] sm:$0xff] }
 0x45e   : > { %v5597_v1 = vadd.f32 %v5573_v27, %v5565_v22  ;;  %v5571_v11 = vadd.f32 %v11059_v57, %v5301_v15  ;;  %v5306_v32 = vadd.f32 %v7322_v59, %v5036_v43  ;;  %v11986_v57 = vld [vmem:[#allocation86_spill] sm:$0xff] }
 0x45f   : > { %v5213_v29 = vpop.f32.mrf.mxu1  ;;  %v5035_v31 = vadd.f32 %v11986_v57, %v11015_v47  ;;  %v5297_v3 = vadd.f32 %v5184_v0, %v5027_v35  ;;  %v5569_v33 = vadd.f32 %v11009_v53, %v5299_v4  ;;  %v5038_v47 = vadd.f32 %v11988_v37, %v11025_v48  ;;  %v7382_v39 = vpop.f32.mrf.mxu0 }
 0x460   : > { %v5595_v16 = vadd.f32 %v5571_v11, %v5563_v49  ;;  %v5576_v45 = vadd.f32 %v11066_v14, %v5306_v32  ;;  %v5304_v50 = vadd.f32 %v5213_v29, %v5034_v23 }
 0x461   : > { %v7323_v9 = vpop.f32.mrf.mxu1  ;;  %v5567_v0 = vadd.f32 %v11019_v36, %v5297_v3  ;;  %v11990_v36 = vld [vmem:[#allocation31_spill] sm:$0xff]  ;;  %v5531_v58 = vpop.f32.mrf.mxu0 }
 0x462   : > { %v5600_v55 = vadd.f32 %v5576_v45, %v5568_v13  ;;  %v5574_v24 = vadd.f32 %v11077_v41, %v5304_v50  ;;  %v5307_v40 = vadd.f32 %v7323_v9, %v5037_v2  ;;  %v5039_v23 = vadd.f32 %v11990_v36, %v11035_v42  ;;  %v11993_v45 = vld [vmem:[#allocation14_spill] sm:$0xff]  ;;  %v11995_v9 = vld [vmem:[#allocation61_spill] sm:$0xff] }
 0x463   : > { %v5216_v28 = vpop.f32.mrf.mxu1 }
 0x464   : > { %v5598_v14 = vadd.f32 %v5574_v24, %v5566_v54  ;;  %v5577_v60 = vadd.f32 %v11084_v38, %v5307_v40  ;;  %v5305_v63 = vadd.f32 %v5216_v28, %v5035_v31  ;;  %v5041_v38 = vadd.f32 %v11989_v34, %v11031_v18  ;;  %v7383_v54 = vpop.f32.mrf.mxu0  ;;  %v11997_v24 = vld [vmem:[#allocation41_spill] sm:$0xff]  ;;  %v11998_v40 = vld [vmem:[#allocation34_spill] sm:$0xff]  ;;  %v11999_v28 = vld [vmem:[#allocation60_spill] sm:$0xff] }
 0x465   : > { %v7326_v61 = vpop.f32.mrf.mxu1 }
 0x466   : > { %v5601_v43 = vadd.f32 %v5577_v60, %v5569_v33  ;;  %v5575_v41 = vadd.f32 %v11093_v12, %v5305_v63  ;;  %v5310_v22 = vadd.f32 %v7326_v61, %v5040_v51  ;;  %v12001_v51 = vld [vmem:[#allocation28_spill] sm:$0xff]  ;;  %v5534_v37 = vpop.f32.mrf.mxu0 }
 0x467   : > { %v5229_v27 = vpop.f32.mrf.mxu1 }
 0x468   : > { %v5599_v15 = vadd.f32 %v5575_v41, %v5567_v0  ;;  %v5580_v19 = vadd.f32 %v11095_v62, %v5310_v22  ;;  %v5308_v53 = vadd.f32 %v5229_v27, %v5038_v47  ;;  %v11991_v62 = vld [vmem:[#allocation32_spill] sm:$0xff]  ;;  %v12002_v0 = vld [vmem:[#allocation69_spill] sm:$0xff]  ;;  %v7386_v36 = vpop.f32.mrf.mxu0 }
 0x469   : > { %v7327_v21 = vpop.f32.mrf.mxu1  ;;  %v5044_v13 = vadd.f32 %v11991_v62, %v11041_v17  ;;  %v11996_v17 = vld [vmem:[#allocation15_spill] sm:$0xff]  ;;  %v12007_v62 = vld [vmem:[#allocation65_spill] sm:$0xff] }
 0x46a   : > { %v5604_v59 = vadd.f32 %v5596_v10, %v5580_v19  ;;  %v5578_v56 = vadd.f32 %v11097_v46, %v5308_v53  ;;  %v5311_v48 = vadd.f32 %v7327_v21, %v5041_v38  ;;  %v11992_v46 = vld [vmem:[#allocation25_spill] sm:$0xff]  ;;  %v4497_v57 = vadd.f32 %v11996_v17, %v11995_v9  ;;  %v12004_v38 = vld [vmem:[#allocation3_spill] sm:$0xff]  ;;  %v12013_v9 = vld [vmem:[#allocation72_spill] sm:$0xff] }
 0x46b   : > { %v5232_v49 = vpop.f32.mrf.mxu1  ;;  %v5042_v6 = vadd.f32 %v11992_v46, %v11045_v44  ;;  %v5043_v44 = vadd.f32 %v11998_v40, %v11997_v24  ;;  %v12014_v40 = vld [vmem:[#allocation71_spill] sm:$0xff] }
 0x46c   : > { %v5602_v12 = vadd.f32 %v5594_v30, %v5578_v56  ;;  %v5581_v11 = vadd.f32 %v11099_v25, %v5311_v48  ;;  %v5309_v32 = vadd.f32 %v5232_v49, %v5039_v23  ;;  %v11994_v25 = vld [vmem:[#allocation24_spill] sm:$0xff]  ;;  %v4767_v33 = vadd.f32 %v12001_v51, %v4497_v57  ;;  %v12005_v56 = vld [vmem:[#allocation50_spill] sm:$0xff] }
 0x46d   : > { %v7330_v35 = vpop.f32.mrf.mxu1  ;;  %v5045_v50 = vadd.f32 %v11994_v25, %v11993_v45 }
 0x46e   : > { %v5605_v18 = vadd.f32 %v5597_v1, %v5581_v11  ;;  %v5579_v29 = vadd.f32 %v11107_v52, %v5309_v32  ;;  %v5314_v10 = vadd.f32 %v7330_v35, %v5044_v13  ;;  %v5049_v48 = vadd.f32 %v12005_v56, %v4767_v33  ;;  %v12006_v11 = vld [vmem:[#allocation49_spill] sm:$0xff]  ;;  %v12009_v13 = vld [vmem:[#allocation64_spill] sm:$0xff]  ;;  %v12010_v35 = vld [vmem:[#allocation7_spill] sm:$0xff] }
 0x46f   : > { %v5245_v2 = vpop.f32.mrf.mxu1 }
 0x470   : > { %v5603_v4 = vadd.f32 %v5595_v16, %v5579_v29  ;;  %v5584_v42 = vadd.f32 %v11119_v7, %v5314_v10  ;;  %v5312_v30 = vadd.f32 %v5245_v2, %v5042_v6  ;;  %v12000_v16 = vld [vmem:[#allocation53_spill] sm:$0xff]  ;;  %v4499_v29 = vadd.f32 %v12010_v35, %v12009_v13  ;;  %v5547_v2 = vpop.f32.mrf.mxu0 }
 0x471   : > { %v7331_v31 = vpop.f32.mrf.mxu1  ;;  %v4495_v8 = vadd.f32 %v12000_v16, %v11999_v28  ;;  %v12015_v28 = vld [vmem:[#allocation63_spill] sm:$0xff] }
 0x472   : > { %v5608_v1 = vadd.f32 %v5600_v55, %v5584_v42  ;;  %v5582_v52 = vadd.f32 %v11133_v26, %v5312_v30  ;;  %v5315_v3 = vadd.f32 %v7331_v31, %v5045_v50  ;;  %v12003_v26 = vld [vmem:[#allocation70_spill] sm:$0xff]  ;;  %v12012_v42 = vld [vmem:[#allocation88_spill] sm:$0xff] }
 0x473   : > { %v5248_v7 = vpop.f32.mrf.mxu1  ;;  %v4765_v41 = vadd.f32 %v12002_v0, %v4495_v8  ;;  %v4769_v30 = vadd.f32 %v12012_v42, %v4499_v29 }
 0x474   : > { %v5606_v60 = vadd.f32 %v5598_v14, %v5582_v52  ;;  %v5585_v63 = vadd.f32 %v7379_v20, %v5315_v3  ;;  %v5313_v61 = vadd.f32 %v5248_v7, %v5043_v44 }
 0x475   : > { %v7334_v47 = vpop.f32.mrf.mxu1  ;;  %v5047_v32 = vadd.f32 %v12006_v11, %v4765_v41 }
 0x476   : > { %v5609_v55 = vadd.f32 %v5601_v43, %v5585_v63  ;;  %v5583_v22 = vadd.f32 %v5518_v5, %v5313_v61  ;;  %v5318_v27 = vadd.f32 %v7334_v47, %v12003_v26  ;;  %v12008_v43 = vld [vmem:[#allocation8_spill] sm:$0xff] }
 0x477   : > { %v5261_v19 = vpop.f32.mrf.mxu1  ;;  %v4501_v5 = vadd.f32 %v12008_v43, %v12007_v62 }
 0x478   : > { %v5607_v53 = vadd.f32 %v5599_v15, %v5583_v22  ;;  %v5588_v34 = vadd.f32 %v7382_v39, %v5318_v27  ;;  %v5316_v21 = vadd.f32 %v5261_v19, %v12004_v38  ;;  %v6186_v39 = vld [vmem:[%s11213_s6] ss:$0 sm:$0xff] }
 0x479   : > { %v7335_v23 = vpop.f32.mrf.mxu1 }
 0x47a   : > { %v5612_v20 = vadd.f32 %v5604_v59, %v5588_v34  ;;  %v5586_v14 = vadd.f32 %v5531_v58, %v5316_v21  ;;  %v5319_v49 = vadd.f32 %v7335_v23, %v5049_v48  ;;  %v12011_v59 = vld [vmem:[#allocation29_spill] sm:$0xff] }
 0x47b   : > { %v5264_v15 = vpop.f32.mrf.mxu1  ;;  %v4771_v58 = vadd.f32 %v12011_v59, %v4501_v5 }
 0x47c   : > { %v5610_v10 = vadd.f32 %v5602_v12, %v5586_v14  ;;  %v5589_v46 = vadd.f32 %v7383_v54, %v5319_v49  ;;  %v5317_v6 = vadd.f32 %v5264_v15, %v5047_v32  ;;  %v5627_v57 = vadd.f32 %v6186_v39, %v5612_v20  ;;  %v7387_v54 = vpop.f32.mrf.mxu0 }
 0x47d   : > { %v7338_v45 = vpop.f32.mrf.mxu1  ;;  %v5053_v16 = vadd.f32 %v12015_v28, %v4771_v58 }
 0x47e   : > { %v5613_v25 = vadd.f32 %v5605_v18, %v5589_v46  ;;  %v5587_v50 = vadd.f32 %v5534_v37, %v5317_v6  ;;  %v5322_v17 = vadd.f32 %v7338_v45, %v12013_v9  ;;  %v5625_v44 = vadd.f32 %v6186_v39, %v5610_v10  ;;  %v12016_v18 = vld [vmem:[#allocation68_spill] sm:$0xff]  ;;  %v5550_v22 = vpop.f32.mrf.mxu0 }
 0x47f   : > { %v5277_v31 = vpop.f32.mrf.mxu1  ;;  %v5051_v7 = vadd.f32 %v12016_v18, %v4769_v30 }
 0x480   : > { %v5628_v52 = vadd.f32 %v6186_v39, %v5613_v25  ;;  %v5611_v3 = vadd.f32 %v5603_v4, %v5587_v50  ;;  %v5592_v24 = vadd.f32 %v7386_v36, %v5322_v17  ;;  %v5320_v12 = vadd.f32 %v5277_v31, %v12014_v40 }
 0x481   : > { %v7339_v8 = vpop.f32.mrf.mxu1 }
 0x482   : > { %v6215_v51 = vpack.c.bf16 %v5628_v52, %v5627_v57  ;;  %v5626_v33 = vadd.f32 %v6186_v39, %v5611_v3  ;;  %v5616_v63 = vadd.f32 %v5608_v1, %v5592_v24  ;;  %v5590_v61 = vadd.f32 %v5547_v2, %v5320_v12 }
 0x483   : > { %v5323_v37 = vadd.f32 %v7339_v8, %v5053_v16  ;;  %v5280_v4 = vpop.f32.mrf.mxu1 }
 0x484   : > { %6227 = vst [vmem:[%s278_s17 + $0x8] sm:$0xff] %v6215_v51   ;;  %v6210_v47 = vpack.c.bf16 %v5626_v33, %v5625_v44  ;;  %v5614_v0 = vadd.f32 %v5606_v60, %v5590_v61  ;;  %v5321_v41 = vadd.f32 %v5280_v4, %v5051_v7  ;;  %v5631_v38 = vadd.f32 %v6186_v39, %v5616_v63 }
 0x485   : > { %v5593_v26 = vadd.f32 %v7387_v54, %v5323_v37 }
 0x486   : > { %6211 = vst [vmem:[%s278_s17] sm:$0xff] %v6210_v47   ;;  %v5591_v27 = vadd.f32 %v5550_v22, %v5321_v41  ;;  %v5629_v56 = vadd.f32 %v6186_v39, %v5614_v0 }
 0x487   : > { %v5617_v19 = vadd.f32 %v5609_v55, %v5593_v26 }
 0x488   : > { %v5615_v34 = vadd.f32 %v5607_v53, %v5591_v27 }
 0x489   : > { %v5632_v21 = vadd.f32 %v6186_v39, %v5617_v19 }
 0x48a   : > { %v5630_v48 = vadd.f32 %v6186_v39, %v5615_v34 }
 0x48b   : > { %v6225_v36 = vpack.c.bf16 %v5632_v21, %v5631_v38 }
 0x48c   : > { %v6220_v23 = vpack.c.bf16 %v5630_v48, %v5629_v56 }
 0x48d   : > { %6229 = vst [vmem:[%s278_s17 + $0x18] sm:$0xff] %v6225_v36  }
 0x48e   : > { %6228 = vst [vmem:[%s278_s17 + $0x10] sm:$0xff] %v6220_v23  }
 0x48f PF: > { %s17_s24 = sadd.s32 1, %s7506_s24  }
 0x490   : > { %p14_p4 = scmp.ge.s32.totalorder %s17_s24, 4  }
 0x492   :  { %16 = sbr.rel (!%p14_p4) target bundleno = 1 (0x1), region = 104 }

// kernel: optimized_dis_block.1
= control target key start
LH: loop header
LB: loop body
LE: loop exit
PB: predicated region body
PF: predicated region fallthrough
CT: control target
= control target key end

     0   :  { %s7549_s24 = smov 0   ;;  %s11207_s0 = inlined_call_operand.vmem [shape: f32[2,4,64,4], index: 0, kind: input, shape index: {}]   ;;  %s11208_s1 = inlined_call_operand.vmem [shape: f32[9,64,1], index: 1, kind: input, shape index: {}]   ;;  %s11209_s2 = inlined_call_operand.vmem [shape: bf16[9,4,128], index: 2, kind: input, shape index: {}]   ;;  %s11210_s3 = inlined_call_operand.vmem [shape: f32[1,128], index: 3, kind: input, shape index: {}]   ;;  %s11211_s4 = inlined_call_operand.vmem [shape: bf16[9,128,128], index: 4, kind: input, shape index: {}]   ;;  %s11212_s5 = inlined_call_operand.vmem [shape: bf16[4,128], index: 5, kind: input, shape index: {}]   ;;  %s11213_s6 = inlined_call_operand.vmem [shape: f32[1,128], index: 6, kind: input, shape index: {}]   ;;  %s11214_s7 = inlined_call_operand.vmem [shape: bf16[2,64,128], index: 7, kind: output, shape index: {}]  }
   0x1 LB: > { %s5728_s25 = sadd.s32 4294967295, %s7506_s24   ;;  %p5732_p0 = scmp.ge.s32.totalorder %s7506_s24, 1  ;;  %s7506_s24 = sphi %s7549_s24, %s17_s24  }
   0x2   : > { %p237_p1 = scmp.lt.s32.totalorder %s7506_s24, 3 }
   0x4   : > { %p238_p2 = pnand %p5732_p0, %p237_p1 }
   0x6   : > { %241 = sbr.rel (%p238_p2) target bundleno = 1167 (0x48f), region = 48 }
   0xb   : > { %v5739_v0 = vld [vmem:[%s11208_s1 + $0x50] sm:$0xff]  ;;  %v5737_v1 = vld [vmem:[%s11208_s1 + $0x40] sm:$0xff]  ;;  %v7508_v2 = vmov 0   ;;  %v5740_v3 = vld [vmem:[%s11208_s1 + $0x58] sm:$0xff]  ;;  %p269_p3 = scmp.lt.s32.totalorder %s5728_s25, 1  ;;  %vm649_vm0 = vcmask 1041408  }
   0xc   : > { %7411 = vset.pattern.permute.xlu1 %v7508_v2  ;;  %7410 = vset.pattern.permute.xlu0 %v7508_v2  ;;  %v5738_v4 = vld [vmem:[%s11208_s1 + $0x48] sm:$0xff]  ;;  %v5741_v6 = vld [vmem:[%s11208_s1 + $0x60] sm:$0xff]  ;;  %v5744_v7 = vld [vmem:[%s11208_s1 + $0x78] sm:$0xff]  ;;  %vm600_vm1 = vcmask 31744  }
   0xd   : > { %465 = vperm.xlu1 %7411, %v5739_v0   ;;  %455 = vperm.xlu0 %7410, %v5737_v1   ;;  %v5742_v5 = vld [vmem:[%s11208_s1 + $0x68] sm:$0xff]  ;;  %s12018_s25 = smov (!%p269_p3, %s5728_s25), 1  ;;  %v5743_v8 = vld [vmem:[%s11208_s1 + $0x70] sm:$0xff]  ;;  %v280_v10 = vld [vmem:[%s11208_s1] sm:$0xff] }
   0xe   : > { %s6197_s19 = sshll.u32 %s12018_s25, 8  ;;  %v281_v9 = vld [vmem:[%s11208_s1 + $0x8] sm:$0xff]  ;;  %v5817_v11 = vld [vmem:[%s11209_s2 + $0x2] sm:$0x3]  ;;  %v283_v12 = vld [vmem:[%s11208_s1 + $0x18] sm:$0xff]  ;;  %s6198_s14 = sshll.u32 %s12018_s25, 5 }
   0xf   : > { %s7593_s28 = scalar_lea.vmem %s11207_s0, %s6197_s19  ;;  %v282_v13 = vld [vmem:[%s11208_s1 + $0x10] sm:$0xff]  ;;  %7391 = vmatprep.subr.msk.bf16.mxu1 %vm649_vm0, %v5817_v11  ;;  %v651_v14 = vsel %vm649_vm0, %v5817_v11, 0  ;;  %7390 = vmatprep.subr.msk.bf16.mxu0 %vm649_vm0, %v5817_v11  ;;  %v285_v20 = vld [vmem:[%s11208_s1 + $0x28] sm:$0xff]  ;;  %v284_v22 = vld [vmem:[%s11208_s1 + $0x20] sm:$0xff]  ;;  %s278_s17 = scalar_lea.vmem %s11214_s7, %s6198_s14 }
  0x10   : > { %v351_v15 = vld [vmem:[%s7593_s28] sm:$0xff]  ;;  %7389 = vmatpush3.bf16.msra.mxu1 %v651_v14  ;;  %v352_v16 = vld [vmem:[%s7593_s28 + $0x8] sm:$0xff]  ;;  %6617 = vmatpush3.bf16.msra.mxu0 %v651_v14  ;;  %v7612_v18 = vld [vmem:[%s7593_s28 + $0x10] sm:$0xff] }
  0x11   : > { %470 = vperm.xlu1 %7411, %v5740_v3   ;;  %460 = vperm.xlu0 %7410, %v5738_v4   ;;  %v7609_v17 = vpack.c.bf16 %v352_v16, %v351_v15  ;;  %v354_v19 = vld [vmem:[%s7593_s28 + $0x18] sm:$0xff]  ;;  %v355_v23 = vld [vmem:[%s7593_s28 + $0x20] sm:$0xff]  ;;  %v356_v24 = vld [vmem:[%s7593_s28 + $0x28] sm:$0xff] }
  0x12   : > { %v7619_v21 = vpack.c.bf16 %v354_v19, %v7612_v18  ;;  %v7630_v25 = vpack.c.bf16 %v356_v24, %v355_v23  ;;  %v357_v26 = vld [vmem:[%s7593_s28 + $0x30] sm:$0xff]  ;;  %v358_v27 = vld [vmem:[%s7593_s28 + $0x38] sm:$0xff]  ;;  %v581_v28 = vld [vmem:[%s11209_s2] sm:$0x3] }
  0x13   : > { %11403 = vst [vmem:[#allocation2_spill] sm:$0xff] %v7609_v17  ;;  %6634 = vmatprep.mubr.msk.bf16.mxu1 %vm600_vm1, %v7609_v17  ;;  %v287_v29 = vld [vmem:[%s11208_s1 + $0x38] sm:$0xff]  ;;  %v286_v30 = vld [vmem:[%s11208_s1 + $0x30] sm:$0xff]  ;;  %7392 = vmatprep.subr.msk.bf16.mxu1 %vm649_vm0, %v581_v28  ;;  %v839_v31 = vsel %vm649_vm0, %v581_v28, 0  ;;  %v7647_v32 = vpack.c.bf16 %v358_v27, %v357_v26  ;;  %v7650_v33 = vld [vmem:[%s7593_s28 + $0x40] sm:$0xff] }
  0x14   : > { %11404 = vst [vmem:[#allocation3_spill] sm:$0xff] %v7619_v21  ;;  %6635 = vmatmul.mubr.msk.bf16.vlgmr.msra.gmra.mxu1 %vm600_vm1, %v7619_v21  ;;  %11405 = vst [vmem:[#allocation4_spill] sm:$0xff] %v7630_v25  ;;  %v7653_v34 = vld [vmem:[%s7593_s28 + $0x48] sm:$0xff]  ;;  %v7662_v36 = vld [vmem:[%s11209_s2 + $0x4] sm:$0x3] }
  0x15   : > { %480 = vperm.xlu1 %7411, %v5742_v5   ;;  %475 = vperm.xlu0 %7410, %v5741_v6   ;;  %11406 = vst [vmem:[#allocation5_spill] sm:$0xff] %v7647_v32  ;;  %v7657_v35 = vpack.c.bf16 %v7653_v34, %v7650_v33  ;;  %v5746_v37 = vld [vmem:[%s11208_s1 + $0x88] sm:$0xff]  ;;  %v5745_v38 = vld [vmem:[%s11208_s1 + $0x80] sm:$0xff]  ;;  %v7675_v39 = vld [vmem:[%s7593_s28 + $0x50] sm:$0xff] }
  0x16   : > { %6638 = vmatprep.mubr.msk.bf16.mxu1 %vm600_vm1, %v7630_v25  ;;  %6651 = vmatpush3.bf16.msra.mxu1 %v839_v31  ;;  %v7678_v40 = vld [vmem:[%s7593_s28 + $0x58] sm:$0xff]  ;;  %v7686_v42 = vld [vmem:[%s7593_s28 + $0x60] sm:$0xff]  ;;  %v7689_v43 = vld [vmem:[%s7593_s28 + $0x68] sm:$0xff] }
  0x17   : > { %11407 = vst [vmem:[#allocation6_spill] sm:$0xff] %v7657_v35  ;;  %7393 = vmatprep.subr.msk.bf16.mxu0 %vm649_vm0, %v7662_v36  ;;  %v5748_v41 = vld [vmem:[%s11208_s1 + $0x98] sm:$0xff]  ;;  %v5747_v44 = vld [vmem:[%s11208_s1 + $0x90] sm:$0xff]  ;;  %v7696_v45 = vpack.c.bf16 %v7678_v40, %v7675_v39  ;;  %v7701_v46 = vld [vmem:[%s11209_s2 + $0x6] sm:$0x3]  ;;  %v7711_v49 = vpack.c.bf16 %v7689_v43, %v7686_v42 }
  0x18   : > { %v5750_v47 = vld [vmem:[%s11208_s1 + $0xa8] sm:$0xff]  ;;  %v5749_v48 = vld [vmem:[%s11208_s1 + $0xa0] sm:$0xff]  ;;  %7394 = vmatprep.subr.msk.bf16.mxu1 %vm649_vm0, %v7701_v46  ;;  %v7718_v50 = vld [vmem:[%s7593_s28 + $0x70] sm:$0xff] }
  0x19   : > { %490 = vperm.xlu1 %7411, %v5744_v7   ;;  %485 = vperm.xlu0 %7410, %v5743_v8   ;;  %11408 = vst [vmem:[#allocation7_spill] sm:$0xff] %v7696_v45  ;;  %11409 = vst [vmem:[#allocation8_spill] sm:$0xff] %v7711_v49  ;;  %v5752_v51 = vld [vmem:[%s11208_s1 + $0xb8] sm:$0xff]  ;;  %v5751_v52 = vld [vmem:[%s11208_s1 + $0xb0] sm:$0xff] }
  0x1a   : > { %v7729_v53 = vld [vmem:[%s7593_s28 + $0x78] sm:$0xff]  ;;  %v5754_v55 = vld [vmem:[%s11208_s1 + $0xc8] sm:$0xff]  ;;  %v5753_v56 = vld [vmem:[%s11208_s1 + $0xc0] sm:$0xff] }
  0x1b   : > { %v7733_v54 = vpack.c.bf16 %v7729_v53, %v7718_v50  ;;  %v5756_v57 = vld [vmem:[%s11208_s1 + $0xd8] sm:$0xff]  ;;  %v5755_v58 = vld [vmem:[%s11208_s1 + $0xd0] sm:$0xff]  ;;  %v5758_v59 = vld [vmem:[%s11208_s1 + $0xe8] sm:$0xff] }
  0x1c   : > { %6639 = vmatmul.mubr.msk.bf16.gmra.mxu1 %vm600_vm1, %v7647_v32  ;;  %v5757_v60 = vld [vmem:[%s11208_s1 + $0xe0] sm:$0xff]  ;;  %v5760_v61 = vld [vmem:[%s11208_s1 + $0xf8] sm:$0xff]  ;;  %v5759_v62 = vld [vmem:[%s11208_s1 + $0xf0] sm:$0xff] }
  0x1d   : > { %412 = vperm.xlu1 %7411, %v281_v9   ;;  %407 = vperm.xlu0 %7410, %v280_v10   ;;  %11410 = vst [vmem:[#allocation9_spill] sm:$0xff] %v7733_v54  ;;  %v5762_v63 = vld [vmem:[%s11208_s1 + $0x148] sm:$0xff]  ;;  %v5761_v0 = vld [vmem:[%s11208_s1 + $0x140] sm:$0xff]  ;;  %v5764_v1 = vld [vmem:[%s11208_s1 + $0x158] sm:$0xff] }
  0x1e   : > { %6642 = vmatprep.mubr.msk.bf16.mxu1 %vm600_vm1, %v7657_v35  ;;  %v5763_v2 = vld [vmem:[%s11208_s1 + $0x150] sm:$0xff]  ;;  %v5766_v3 = vld [vmem:[%s11208_s1 + $0x168] sm:$0xff]  ;;  %v5765_v4 = vld [vmem:[%s11208_s1 + $0x160] sm:$0xff] }
  0x1f   : > { %v5768_v5 = vld [vmem:[%s11208_s1 + $0x178] sm:$0xff]  ;;  %v5767_v6 = vld [vmem:[%s11208_s1 + $0x170] sm:$0xff]  ;;  %v5770_v7 = vld [vmem:[%s11208_s1 + $0x188] sm:$0xff] }
  0x20   : > { %v5769_v8 = vld [vmem:[%s11208_s1 + $0x180] sm:$0xff]  ;;  %v5772_v9 = vld [vmem:[%s11208_s1 + $0x198] sm:$0xff]  ;;  %v5771_v10 = vld [vmem:[%s11208_s1 + $0x190] sm:$0xff] }
  0x21   : > { %422 = vperm.xlu1 %7411, %v283_v12   ;;  %417 = vperm.xlu0 %7410, %v282_v13   ;;  %v5774_v11 = vld [vmem:[%s11208_s1 + $0x1a8] sm:$0xff]  ;;  %v5773_v12 = vld [vmem:[%s11208_s1 + $0x1a0] sm:$0xff]  ;;  %v5776_v13 = vld [vmem:[%s11208_s1 + $0x1b8] sm:$0xff] }
  0x22   : > { %v5775_v14 = vld [vmem:[%s11208_s1 + $0x1b0] sm:$0xff]  ;;  %v5778_v15 = vld [vmem:[%s11208_s1 + $0x1c8] sm:$0xff]  ;;  %v5777_v16 = vld [vmem:[%s11208_s1 + $0x1c0] sm:$0xff] }
  0x23   : > { %v5780_v19 = vld [vmem:[%s11208_s1 + $0x1d8] sm:$0xff]  ;;  %v5781_v23 = vld [vmem:[%s11208_s1 + $0x1e0] sm:$0xff]  ;;  %v5783_v26 = vld [vmem:[%s11208_s1 + $0x1f0] sm:$0xff] }
  0x24   : > { %6643 = vmatmul.mubr.msk.bf16.gmra.mxu1 %vm600_vm1, %v7696_v45  ;;  %v5784_v24 = vld [vmem:[%s11208_s1 + $0x1f8] sm:$0xff]  ;;  %v5786_v27 = vld [vmem:[%s11208_s1 + $0x208] sm:$0xff]  ;;  %v5785_v28 = vld [vmem:[%s11208_s1 + $0x200] sm:$0xff] }
  0x25   : > { %432 = vperm.xlu1 %7411, %v285_v20   ;;  %427 = vperm.xlu0 %7410, %v284_v22   ;;  %v5779_v20 = vld [vmem:[%s11208_s1 + $0x1d0] sm:$0xff]  ;;  %v5782_v22 = vld [vmem:[%s11208_s1 + $0x1e8] sm:$0xff] }
  0x26   : > { %6646 = vmatprep.mubr.msk.bf16.mxu1 %vm600_vm1, %v7711_v49  ;;  %v5790_v31 = vld [vmem:[%s11208_s1 + $0x228] sm:$0xff] }
  0x29   : > { %442 = vperm.xlu1 %7411, %v287_v29   ;;  %437 = vperm.xlu0 %7410, %v286_v30   ;;  %v5788_v29 = vld [vmem:[%s11208_s1 + $0x218] sm:$0xff]  ;;  %v5787_v30 = vld [vmem:[%s11208_s1 + $0x210] sm:$0xff] }
  0x2c   : > { %6647 = vmatmul.mubr.msk.bf16.gmra.mxu1 %vm600_vm1, %v7733_v54 }
  0x2d   : > { %1026 = vperm.xlu1 %7411, %v5746_v37   ;;  %1021 = vperm.xlu0 %7410, %v5745_v38   ;;  %v5789_v37 = vld [vmem:[%s11208_s1 + $0x220] sm:$0xff]  ;;  %v5792_v38 = vld [vmem:[%s11208_s1 + $0x238] sm:$0xff] }
  0x31   : > { %1036 = vperm.xlu1 %7411, %v5748_v41   ;;  %1031 = vperm.xlu0 %7410, %v5747_v44   ;;  %v5791_v41 = vld [vmem:[%s11208_s1 + $0x230] sm:$0xff] }
  0x35   : > { %1046 = vperm.xlu1 %7411, %v5750_v47   ;;  %1041 = vperm.xlu0 %7410, %v5749_v48   ;;  %v7862_v48 = vld [vmem:[%s7593_s28 + $0x88] sm:$0xff] }
  0x39   : > { %1056 = vperm.xlu1 %7411, %v5752_v51   ;;  %1051 = vperm.xlu0 %7410, %v5751_v52   ;;  %v7865_v51 = vld [vmem:[%s7593_s28 + $0x90] sm:$0xff]  ;;  %v7868_v52 = vld [vmem:[%s7593_s28 + $0x80] sm:$0xff] }
  0x3d   : > { %524 = vperm.xlu1 %7411, %v5754_v55   ;;  %519 = vperm.xlu0 %7410, %v5753_v56   ;;  %v7871_v55 = vld [vmem:[%s7593_s28 + $0xb8] sm:$0xff]  ;;  %v394_v56 = vlaneseq }
  0x41   : > { %534 = vperm.xlu1 %7411, %v5756_v57   ;;  %529 = vperm.xlu0 %7410, %v5755_v58  }
  0x45   : > { %544 = vperm.xlu1 %7411, %v5758_v59   ;;  %539 = vperm.xlu0 %7410, %v5757_v60  }
  0x49   : > { %554 = vperm.xlu1 %7411, %v5760_v61   ;;  %549 = vperm.xlu0 %7410, %v5759_v62  }
  0x4d   : > { %1090 = vperm.xlu1 %7411, %v5762_v63   ;;  %1085 = vperm.xlu0 %7410, %v5761_v0   ;;  %v7886_v63 = vld [vmem:[%s7593_s28 + $0xa0] sm:$0xff]  ;;  %v7889_v0 = vld [vmem:[%s7593_s28 + $0x98] sm:$0xff] }
  0x51   : > { %1100 = vperm.xlu1 %7411, %v5764_v1   ;;  %1095 = vperm.xlu0 %7410, %v5763_v2  }
  0x55   : > { %1110 = vperm.xlu1 %7411, %v5766_v3   ;;  %1105 = vperm.xlu0 %7410, %v5765_v4   ;;  %v7896_v3 = vld [vmem:[%s7593_s28 + $0xf0] sm:$0xff]  ;;  %v7898_v4 = vshrl.u32 %v394_v56, 7 }
  0x56   : > { %11415 = vst [vmem:[#allocation14_spill] sm:$0xff] %v7896_v3 }
  0x57   : > { %11416 = vst [vmem:[#allocation15_spill] sm:$0xff] %v7898_v4  ;;  %vm396_vm2 = vcmp.lt.s32.totalorder %v7898_v4, 1  ;;  %vm1010_vm3 = vcmp.lt.s32.totalorder %v7898_v4, 7 }
  0x59   : > { %1120 = vperm.xlu1 %7411, %v5768_v5   ;;  %1115 = vperm.xlu0 %7410, %v5767_v6  }
  0x5d   : > { %2042 = vperm.xlu1 %7411, %v5770_v7   ;;  %2037 = vperm.xlu0 %7410, %v5769_v8   ;;  %v1166_v7 = vsel %vm649_vm0, %v7662_v36, 0  ;;  %v7907_v8 = vld [vmem:[%s7593_s28 + $0xf8] sm:$0xff]  ;;  %v7924_v36 = vld [vmem:[%s7593_s28 + $0xb0] sm:$0xff] }
  0x5e   : > { %11419 = vst [vmem:[#allocation18_spill] sm:$0xff] %v7907_v8 }
  0x61   : > { %2052 = vperm.xlu1 %7411, %v5772_v9   ;;  %2047 = vperm.xlu0 %7410, %v5771_v10   ;;  %v7910_v9 = vld [vmem:[%s7593_s28 + $0xc0] sm:$0xff] }
  0x62   : > { %11420 = vst [vmem:[#allocation19_spill] sm:$0xff] %v7910_v9 }
  0x65   : > { %2062 = vperm.xlu1 %7411, %v5774_v11   ;;  %2057 = vperm.xlu0 %7410, %v5773_v12   ;;  %v7921_v12 = vld [vmem:[%s11209_s2 + $0x8] sm:$0x3] }
  0x69   : > { %2072 = vperm.xlu1 %7411, %v5776_v13   ;;  %2067 = vperm.xlu0 %7410, %v5775_v14   ;;  %v7929_v13 = vld [vmem:[%s7593_s28 + $0xa8] sm:$0xff]  ;;  %v386_v14 = vrot.slane %v7910_v9, 7 }
  0x6d   : > { %2090 = vperm.xlu1 %7411, %v5778_v15   ;;  %2085 = vperm.xlu0 %7410, %v5777_v16   ;;  %v393_v15 = vrot.slane %v7907_v8, 7  ;;  %v392_v16 = vrot.slane %v7896_v3, 7 }
  0x71   : > { %2100 = vperm.xlu1 %7411, %v5780_v19   ;;  %2095 = vperm.xlu0 %7410, %v5779_v20  }
  0x75   : > { %2110 = vperm.xlu1 %7411, %v5782_v22   ;;  %2105 = vperm.xlu0 %7410, %v5781_v23   ;;  %v7944_v23 = vld [vmem:[%s7593_s28 + $0xc8] sm:$0xff] }
  0x76   : > { %11423 = vst [vmem:[#allocation22_spill] sm:$0xff] %v7944_v23 }
  0x79   : > { %2120 = vperm.xlu1 %7411, %v5784_v24   ;;  %2115 = vperm.xlu0 %7410, %v5783_v26   ;;  %v7947_v24 = vld [vmem:[%s7593_s28 + $0xd0] sm:$0xff] }
  0x7a   : > { %11424 = vst [vmem:[#allocation23_spill] sm:$0xff] %v7947_v24 }
  0x7d   : > { %2590 = vperm.xlu1 %7411, %v5786_v27   ;;  %2585 = vperm.xlu0 %7410, %v5785_v28  }
  0x81   : > { %2600 = vperm.xlu1 %7411, %v5788_v29   ;;  %2595 = vperm.xlu0 %7410, %v5787_v30   ;;  %v7959_v29 = vsel %vm396_vm2, %v393_v15, %v386_v14  ;;  %v7963_v30 = vsel %vm396_vm2, %v392_v16, %v393_v15 }
  0x85   : > { %2610 = vperm.xlu1 %7411, %v5790_v31   ;;  %2605 = vperm.xlu0 %7410, %v5789_v37   ;;  %v387_v31 = vrot.slane %v7944_v23, 7  ;;  %v388_v37 = vrot.slane %v7947_v24, 7 }
  0x87   : > { %v7993_v15 = vsel %vm396_vm2, %v386_v14, %v387_v31 }
  0x88   : > { %v7857_v44 = vpop.permute.xlu1 %465  ;;  %v7859_v47 = vpop.permute.xlu0 %455 }
  0x89   : > { %11411 = vst [vmem:[#allocation10_spill] sm:$0xff] %v7857_v44  ;;  %11412 = vst [vmem:[#allocation11_spill] sm:$0xff] %v7859_v47  ;;  %2620 = vperm.xlu1 %7411, %v5792_v38   ;;  %2615 = vperm.xlu0 %7410, %v5791_v41   ;;  %v495_v59 = vmul.f32 %v7862_v48, %v7857_v44  ;;  %v493_v61 = vmul.f32 %v7871_v55, %v7859_v47 }
  0x8a   : > { %v582_v38 = vmul.f32 %v7907_v8, %v7859_v47 }
  0x8c   : > { %v7873_v57 = vpop.permute.xlu1 %470  ;;  %v7875_v58 = vpop.permute.xlu0 %460 }
  0x8d   : > { %11413 = vst [vmem:[#allocation12_spill] sm:$0xff] %v7873_v57  ;;  %11414 = vst [vmem:[#allocation13_spill] sm:$0xff] %v7875_v58  ;;  %v496_v60 = vmul.f32 %v7865_v51, %v7873_v57  ;;  %v494_v62 = vmul.f32 %v7868_v52, %v7875_v58  ;;  %v583_v26 = vmul.f32 %v7910_v9, %v7875_v58 }
  0x8e   : > { %v584_v58 = vmul.f32 %v7944_v23, %v7857_v44  ;;  %v8036_v44 = vld [vmem:[%s11209_s2 + $0xa] sm:$0x3] }
  0x8f   : > { %v7891_v1 = vpack.c.bf16 %v494_v62, %v493_v61  ;;  %v7893_v2 = vpack.c.bf16 %v496_v60, %v495_v59  ;;  %v7976_v60 = vld [vmem:[%s7593_s28 + $0xe0] sm:$0xff]  ;;  %v7979_v61 = vld [vmem:[%s7593_s28 + $0xd8] sm:$0xff] }
  0x90   : > { %v7900_v5 = vpop.permute.xlu1 %480  ;;  %v7902_v6 = vpop.permute.xlu0 %475  ;;  %11427 = vst [vmem:[#allocation26_spill] sm:$0xff] %v7976_v60  ;;  %11428 = vst [vmem:[#allocation27_spill] sm:$0xff] %v7979_v61 }
  0x91   : > { %11417 = vst [vmem:[#allocation16_spill] sm:$0xff] %v7900_v5  ;;  %11418 = vst [vmem:[#allocation17_spill] sm:$0xff] %v7902_v6  ;;  %v498_v10 = vmul.f32 %v7886_v63, %v7900_v5  ;;  %v497_v11 = vmul.f32 %v7889_v0, %v7902_v6  ;;  %6618 = vmatprep.mubr.msk.bf16.mxu0 %vm600_vm1, %v7891_v1  ;;  %v587_v47 = vmul.f32 %v7976_v60, %v7900_v5 }
  0x92   : > { %6619 = vmatmul.mubr.msk.bf16.vlgmr.msra.gmra.mxu0 %vm600_vm1, %v7893_v2  ;;  %v586_v14 = vmul.f32 %v7979_v61, %v7902_v6 }
  0x93   : > { %6685 = vmatpush3.bf16.msra.mxu0 %v1166_v7  ;;  %v7934_v19 = vpack.c.bf16 %v498_v10, %v497_v11  ;;  %v590_v10 = vpack.c.bf16 %v583_v26, %v582_v38  ;;  %v7989_v11 = vsel %vm396_vm2, %v387_v31, %v388_v37  ;;  %v585_v26 = vmul.f32 %v7947_v24, %v7873_v57  ;;  %v8009_v31 = vld [vmem:[%s7593_s28 + $0xe8] sm:$0xff] }
  0x94   : > { %v7937_v20 = vpop.permute.xlu1 %490  ;;  %v7939_v22 = vpop.permute.xlu0 %485  ;;  %7395 = vmatprep.subr.msk.bf16.mxu0 %vm649_vm0, %v7921_v12  ;;  %11431 = vst [vmem:[#allocation30_spill] sm:$0xff] %v8009_v31  ;;  %v391_v6 = vrot.slane %v8009_v31, 7 }
  0x95   : > { %11421 = vst [vmem:[#allocation20_spill] sm:$0xff] %v7937_v20  ;;  %11422 = vst [vmem:[#allocation21_spill] sm:$0xff] %v7939_v22  ;;  %v500_v27 = vmul.f32 %v7924_v36, %v7937_v20  ;;  %v499_v28 = vmul.f32 %v7929_v13, %v7939_v22  ;;  %6622 = vmatprep.mubr.msk.bf16.mxu0 %vm600_vm1, %v7934_v19 }
  0x97   : > { %v7969_v41 = vpack.c.bf16 %v500_v27, %v499_v28  ;;  %v389_v27 = vrot.slane %v7979_v61, 7  ;;  %v390_v28 = vrot.slane %v7976_v60, 7  ;;  %v591_v60 = vpack.c.bf16 %v585_v26, %v584_v58 }
  0x98   : > { %v7971_v56 = vpop.permute.xlu1 %412  ;;  %v7973_v59 = vpop.permute.xlu0 %407 }
  0x99   : > { %11425 = vst [vmem:[#allocation24_spill] sm:$0xff] %v7971_v56  ;;  %11426 = vst [vmem:[#allocation25_spill] sm:$0xff] %v7973_v59  ;;  %v446_v62 = vmul.f32 %v7971_v56, %v7959_v29  ;;  %v445_v7 = vmul.f32 %v7973_v59, %v7963_v30  ;;  %v8020_v57 = vsel %vm396_vm2, %v389_v27, %v390_v28 }
  0x9a   : > { %6623 = vmatmul.mubr.msk.bf16.gmra.mxu0 %vm600_vm1, %v7969_v41  ;;  %v8024_v5 = vsel %vm396_vm2, %v388_v37, %v389_v27  ;;  %v8050_v58 = vsel %vm396_vm2, %v390_v28, %v391_v6 }
  0x9b   : > { %v565_v56 = vpack.c.bf16 %v446_v62, %v445_v7  ;;  %6626 = vmatprep.mubr.msk.bf16.mxu0 %vm600_vm1, %v590_v10 }
  0x9c   : > { %v8000_v38 = vpop.permute.xlu1 %422  ;;  %v8002_v59 = vpop.permute.xlu0 %417 }
  0x9d   : > { %11429 = vst [vmem:[#allocation28_spill] sm:$0xff] %v8000_v38  ;;  %11430 = vst [vmem:[#allocation29_spill] sm:$0xff] %v8002_v59  ;;  %v448_v62 = vmul.f32 %v8000_v38, %v7989_v11  ;;  %v447_v7 = vmul.f32 %v8002_v59, %v7993_v15  ;;  %6652 = vmatprep.mubr.msk.bf16.mxu1 %vm600_vm1, %v565_v56  ;;  %v1404_v38 = vsel %vm649_vm0, %v7701_v46, 0 }
  0x9e   : > { %v8046_v46 = vsel %vm396_vm2, %v391_v6, %v392_v16 }
  0x9f   : > { %v566_v8 = vpack.c.bf16 %v448_v62, %v447_v7  ;;  %v592_v62 = vpack.c.bf16 %v587_v47, %v586_v14  ;;  %v589_v47 = vmul.f32 %v7896_v3, %v7937_v20  ;;  %v504_v20 = vrot.slane %v7678_v40, 7 }
  0xa0   : > { %v8029_v59 = vpop.permute.xlu1 %432  ;;  %v8031_v56 = vpop.permute.xlu0 %427 }
  0xa1   : > { %11432 = vst [vmem:[#allocation31_spill] sm:$0xff] %v8029_v59  ;;  %11433 = vst [vmem:[#allocation32_spill] sm:$0xff] %v8031_v56  ;;  %v450_v37 = vmul.f32 %v8029_v59, %v8020_v57  ;;  %v449_v27 = vmul.f32 %v8031_v56, %v8024_v5  ;;  %6653 = vmatmul.mubr.msk.bf16.vlgmr.msra.gmra.mxu1 %vm600_vm1, %v566_v8  ;;  %v588_v8 = vmul.f32 %v8009_v31, %v7939_v22  ;;  %v8106_v56 = vld [vmem:[%s11209_s2 + $0xc] sm:$0x3] }
  0xa2   : > { %6627 = vmatmul.mubr.msk.bf16.gmra.mxu0 %vm600_vm1, %v591_v60  ;;  %6719 = vmatpush3.bf16.msra.mxu1 %v1404_v38  ;;  %v502_v59 = vrot.slane %v7653_v34, 7 }
  0xa3   : > { %v567_v26 = vpack.c.bf16 %v450_v37, %v449_v27  ;;  %6630 = vmatprep.mubr.msk.bf16.mxu0 %vm600_vm1, %v592_v62  ;;  %7396 = vmatprep.subr.msk.bf16.mxu1 %vm649_vm0, %v8036_v44  ;;  %v593_v27 = vpack.c.bf16 %v589_v47, %v588_v8 }
  0xa4   : > { %v8059_v14 = vpop.permute.xlu1 %442  ;;  %v8061_v16 = vpop.permute.xlu0 %437 }
  0xa5   : > { %11434 = vst [vmem:[#allocation33_spill] sm:$0xff] %v8059_v14  ;;  %11435 = vst [vmem:[#allocation34_spill] sm:$0xff] %v8061_v16  ;;  %v452_v6 = vmul.f32 %v8059_v14, %v8046_v46  ;;  %v451_v28 = vmul.f32 %v8061_v16, %v8050_v58  ;;  %6656 = vmatprep.mubr.msk.bf16.mxu1 %vm600_vm1, %v567_v26  ;;  %v1002_v26 = vrot.slane %v7868_v52, 1 }
  0xa7   : > { %v568_v38 = vpack.c.bf16 %v452_v6, %v451_v28  ;;  %v1003_v6 = vrot.slane %v7862_v48, 1  ;;  %v11237_v28 = vrot.slane %v7871_v55, 1 }
  0xa8   : > { %v8068_v7 = vpop.permute.xlu1 %1026  ;;  %v8070_v37 = vpop.permute.xlu0 %1021 }
  0xa9   : > { %11436 = vst [vmem:[#allocation35_spill] sm:$0xff] %v8068_v7  ;;  %11437 = vst [vmem:[#allocation36_spill] sm:$0xff] %v8070_v37  ;;  %6657 = vmatmul.mubr.msk.bf16.gmra.mxu1 %vm600_vm1, %v568_v38  ;;  %v8099_v38 = vsel %vm1010_vm3, %v11237_v28, %v1002_v26  ;;  %v1004_v28 = vrot.slane %v7865_v51, 1 }
  0xaa   : > { %6631 = vmatmul.mubr.msk.bf16.gmra.mxu0 %vm600_vm1, %v593_v27  ;;  %6660 = vmatprep.mubr.msk.bf16.mxu1 %vm600_vm1, %v7891_v1  ;;  %v1618_v1 = vsel %vm649_vm0, %v7921_v12, 0  ;;  %v501_v12 = vrot.slane %v7650_v33, 7  ;;  %v1007_v33 = vrot.slane %v7929_v13, 1 }
  0xab   : > { %6686 = vmatprep.mubr.msk.bf16.mxu0 %vm600_vm1, %v590_v10  ;;  %v8093_v10 = vsel %vm1010_vm3, %v1002_v26, %v1003_v6  ;;  %v8147_v61 = vsel %vm1010_vm3, %v1003_v6, %v1004_v28 }
  0xac   : > { %v8077_v14 = vpop.permute.xlu1 %1036  ;;  %v8079_v16 = vpop.permute.xlu0 %1031  ;;  %v1060_v22 = vmul.f32 %v8068_v7, %v8093_v10  ;;  %v503_v7 = vrot.slane %v7675_v39, 7 }
  0xad   : > { %11438 = vst [vmem:[#allocation37_spill] sm:$0xff] %v8077_v14  ;;  %11439 = vst [vmem:[#allocation38_spill] sm:$0xff] %v8079_v16 }
  0xb0   : > { %v8085_v47 = vpop.permute.xlu1 %1046  ;;  %v8087_v8 = vpop.permute.xlu0 %1041 }
  0xb1   : > { %11440 = vst [vmem:[#allocation39_spill] sm:$0xff] %v8085_v47  ;;  %11441 = vst [vmem:[#allocation40_spill] sm:$0xff] %v8087_v8  ;;  %6661 = vmatmul.mubr.msk.bf16.gmra.mxu1 %vm600_vm1, %v7893_v2  ;;  %v1005_v2 = vrot.slane %v7889_v0, 1 }
  0xb2   : > { %6664 = vmatprep.mubr.msk.bf16.mxu1 %vm600_vm1, %v7934_v19  ;;  %6687 = vmatmul.mubr.msk.bf16.vlgmr.msra.gmra.mxu0 %vm600_vm1, %v591_v60  ;;  %v1059_v19 = vmul.f32 %v8070_v37, %v8099_v38  ;;  %v1006_v60 = vrot.slane %v7886_v63, 1 }
  0xb3   : > { %6753 = vmatpush3.bf16.msra.mxu0 %v1618_v1  ;;  %6690 = vmatprep.mubr.msk.bf16.mxu0 %vm600_vm1, %v592_v62  ;;  %v8131_v62 = vsel %vm396_vm2, %v501_v12, %v502_v59  ;;  %v11444_v1 = vrot.slane %v7729_v53, 7  ;;  %v8143_v3 = vsel %vm1010_vm3, %v1004_v28, %v1005_v2 }
  0xb4   : > { %v8123_v34 = vpop.permute.xlu1 %1056  ;;  %v8125_v26 = vpop.permute.xlu0 %1051  ;;  %7397 = vmatprep.subr.msk.bf16.mxu0 %vm649_vm0, %v8106_v56  ;;  %v1131_v31 = vpack.c.bf16 %v1060_v22, %v1059_v19  ;;  %v8151_v24 = vsel %vm1010_vm3, %v1006_v60, %v1007_v33  ;;  %v8178_v19 = vsel %vm396_vm2, %v502_v59, %v503_v7 }
  0xb5   : > { %11442 = vst [vmem:[#allocation41_spill] sm:$0xff] %v8123_v34  ;;  %11443 = vst [vmem:[#allocation42_spill] sm:$0xff] %v8125_v26  ;;  %v8137_v37 = vsel %vm396_vm2, %v11444_v1, %v501_v12  ;;  %v8155_v12 = vsel %vm1010_vm3, %v1005_v2, %v1006_v60  ;;  %v8174_v2 = vsel %vm396_vm2, %v503_v7, %v504_v20  ;;  %v506_v60 = vrot.slane %v7689_v43, 7 }
  0xb6   : > { %v1064_v59 = vmul.f32 %v8085_v47, %v8151_v24 }
  0xb8   : > { %v8157_v39 = vpop.permute.xlu1 %524  ;;  %v8159_v40 = vpop.permute.xlu0 %519 }
  0xb9   : > { %11445 = vst [vmem:[#allocation43_spill] sm:$0xff] %v8157_v39  ;;  %11446 = vst [vmem:[#allocation44_spill] sm:$0xff] %v8159_v40  ;;  %v558_v1 = vmul.f32 %v8157_v39, %v8131_v62  ;;  %v1362_v22 = vmul.f32 %v8157_v39, %v7993_v15  ;;  %v557_v6 = vmul.f32 %v8159_v40, %v8137_v37  ;;  %6665 = vmatmul.mubr.msk.bf16.gmra.mxu1 %vm600_vm1, %v7969_v41 }
  0xba   : > { %v1361_v28 = vmul.f32 %v8159_v40, %v7959_v29  ;;  %6691 = vmatmul.mubr.msk.bf16.gmra.mxu0 %vm600_vm1, %v593_v27  ;;  %v505_v15 = vrot.slane %v7686_v42, 7  ;;  %v1008_v39 = vrot.slane %v7924_v36, 1  ;;  %v1062_v27 = vmul.f32 %v8077_v14, %v8143_v3 }
  0xbb   : > { %6694 = vmatprep.mubr.msk.bf16.mxu0 %vm600_vm1, %v1131_v31  ;;  %v8184_v29 = vpack.c.bf16 %v558_v1, %v557_v6  ;;  %v1061_v40 = vmul.f32 %v8079_v16, %v8147_v61  ;;  %v1063_v42 = vmul.f32 %v8087_v8, %v8155_v12  ;;  %v507_v8 = vrot.slane %v7718_v50, 7 }
  0xbc   : > { %v8186_v41 = vpack.c.bf16 %v1362_v22, %v1361_v28  ;;  %v8196_v43 = vpop.permute.xlu1 %534  ;;  %v8198_v7 = vpop.permute.xlu0 %529  ;;  %v8212_v28 = vsel %vm396_vm2, %v505_v15, %v506_v60  ;;  %v8216_v47 = vsel %vm396_vm2, %v504_v20, %v505_v15  ;;  %v1012_v23 = vsel %vm1010_vm3, %v1007_v33, %v1008_v39 }
  0xbd   : > { %11447 = vst [vmem:[#allocation45_spill] sm:$0xff] %v8196_v43  ;;  %11448 = vst [vmem:[#allocation46_spill] sm:$0xff] %v8198_v7  ;;  %v560_v31 = vmul.f32 %v8196_v43, %v8174_v2  ;;  %v1364_v1 = vmul.f32 %v8196_v43, %v8024_v5  ;;  %v559_v22 = vmul.f32 %v8198_v7, %v8178_v19  ;;  %6668 = vmatprep.mubr.msk.bf16.mxu1 %vm600_vm1, %v8184_v29 }
  0xbe   : > { %v1363_v6 = vmul.f32 %v8198_v7, %v7989_v11  ;;  %v1132_v16 = vpack.c.bf16 %v1062_v27, %v1061_v40  ;;  %v1133_v43 = vpack.c.bf16 %v1064_v59, %v1063_v42  ;;  %v11449_v11 = vrot.slane %v7871_v55, 1 }
  0xbf   : > { %v8219_v5 = vpack.c.bf16 %v560_v31, %v559_v22  ;;  %v11452_v33 = vrot.slane %v7729_v53, 7 }
  0xc0   : > { %v8221_v14 = vpack.c.bf16 %v1364_v1, %v1363_v6  ;;  %v8227_v7 = vsel %vm1010_vm3, %v1008_v39, %v11449_v11  ;;  %v8231_v9 = vpop.permute.xlu1 %544  ;;  %v8233_v20 = vpop.permute.xlu0 %539 }
  0xc1   : > { %11450 = vst [vmem:[#allocation47_spill] sm:$0xff] %v8231_v9  ;;  %11451 = vst [vmem:[#allocation48_spill] sm:$0xff] %v8233_v20  ;;  %v562_v50 = vmul.f32 %v8231_v9, %v8212_v28  ;;  %v1366_v40 = vmul.f32 %v8231_v9, %v8050_v58  ;;  %v561_v15 = vmul.f32 %v8233_v20, %v8216_v47  ;;  %6669 = vmatmul.mubr.msk.bf16.gmra.mxu1 %vm600_vm1, %v8219_v5  ;;  %v8364_v9 = vld [vmem:[%s7593_s28 + $0x28] sm:$0xff] }
  0xc2   : > { %v1365_v27 = vmul.f32 %v8233_v20, %v8020_v57  ;;  %6695 = vmatmul.mubr.msk.bf16.gmra.mxu0 %vm600_vm1, %v1132_v16  ;;  %v8250_v39 = vsel %vm396_vm2, %v507_v8, %v11452_v33  ;;  %v8254_v58 = vsel %vm396_vm2, %v506_v60, %v507_v8  ;;  %v1066_v42 = vmul.f32 %v8123_v34, %v8227_v7 }
  0xc3   : > { %6698 = vmatprep.mubr.msk.bf16.mxu0 %vm600_vm1, %v1133_v43  ;;  %v8257_v59 = vpack.c.bf16 %v562_v50, %v561_v15  ;;  %v1065_v16 = vmul.f32 %v8125_v26, %v1012_v23  ;;  %11466 = vst [vmem:[#allocation62_spill] sm:$0xff] %v8364_v9  ;;  %v1072_v20 = vrot.slane %v8364_v9, 1 }
  0xc4   : > { %v8259_v57 = vpack.c.bf16 %v1366_v40, %v1365_v27  ;;  %v8264_v53 = vpop.permute.xlu1 %554  ;;  %v8266_v31 = vpop.permute.xlu0 %549 }
  0xc5   : > { %11453 = vst [vmem:[#allocation49_spill] sm:$0xff] %v8264_v53  ;;  %11454 = vst [vmem:[#allocation50_spill] sm:$0xff] %v8266_v31  ;;  %v564_v1 = vmul.f32 %v8264_v53, %v8250_v39  ;;  %v1368_v8 = vmul.f32 %v8264_v53, %v7963_v30  ;;  %v563_v60 = vmul.f32 %v8266_v31, %v8254_v58  ;;  %6672 = vmatprep.mubr.msk.bf16.mxu1 %vm600_vm1, %v8257_v59 }
  0xc6   : > { %v1367_v43 = vmul.f32 %v8266_v31, %v8046_v46  ;;  %v1134_v11 = vpack.c.bf16 %v1066_v42, %v1065_v16  ;;  %v8308_v42 = vld [vmem:[%s7593_s28 + $0x8] sm:$0xff] }
  0xc7   : > { %v8278_v22 = vpack.c.bf16 %v564_v1, %v563_v60  ;;  %v1068_v16 = vrot.slane %v8308_v42, 1  ;;  %v1069_v1 = vrot.slane %v7612_v18, 1 }
  0xc8   : > { %v8280_v6 = vpack.c.bf16 %v1368_v8, %v1367_v43  ;;  %v8282_v50 = vpop.permute.xlu1 %1090  ;;  %v8284_v40 = vpop.permute.xlu0 %1085  ;;  %v8313_v8 = vld [vmem:[%s7593_s28] sm:$0xff] }
  0xc9   : > { %11455 = vst [vmem:[#allocation51_spill] sm:$0xff] %v8282_v50  ;;  %11456 = vst [vmem:[#allocation52_spill] sm:$0xff] %v8284_v40  ;;  %v1814_v30 = vmul.f32 %v8282_v50, %v8147_v61  ;;  %v1813_v46 = vmul.f32 %v8284_v40, %v8093_v10  ;;  %6673 = vmatmul.mubr.msk.bf16.gmra.mxu1 %vm600_vm1, %v8278_v22  ;;  %v1067_v60 = vrot.slane %v8313_v8, 1 }
  0xca   : > { %6699 = vmatmul.mubr.msk.bf16.gmra.mxu0 %vm600_vm1, %v1134_v11  ;;  %6676 = vmatprep.mubr.msk.bf16.mxu1 %vm600_vm1, %v7609_v17  ;;  %11459 = vst [vmem:[#allocation55_spill] sm:$0xff] %v8313_v8  ;;  %v8329_v18 = vsel %vm1010_vm3, %v1068_v16, %v1069_v1  ;;  %v8368_v8 = vld [vmem:[%s7593_s28 + $0x30] sm:$0xff] }
  0xcb   : > { %6702 = vmatprep.mubr.msk.bf16.mxu0 %vm600_vm1, %v7657_v35  ;;  %v8297_v15 = vpack.c.bf16 %v1814_v30, %v1813_v46  ;;  %v8333_v46 = vsel %vm1010_vm3, %v1067_v60, %v1068_v16  ;;  %v1124_v34 = vmul.f32 %v8282_v50, %v8329_v18  ;;  %11467 = vst [vmem:[#allocation63_spill] sm:$0xff] %v8368_v8 }
  0xcc   : > { %v8299_v27 = vpop.permute.xlu1 %1100  ;;  %v8301_v33 = vpop.permute.xlu0 %1095  ;;  %v1123_v26 = vmul.f32 %v8284_v40, %v8333_v46 }
  0xcd   : > { %11457 = vst [vmem:[#allocation53_spill] sm:$0xff] %v8299_v27  ;;  %11458 = vst [vmem:[#allocation54_spill] sm:$0xff] %v8301_v33  ;;  %v1816_v61 = vmul.f32 %v8299_v27, %v8155_v12  ;;  %v1815_v10 = vmul.f32 %v8301_v33, %v8143_v3 }
  0xcf   : > { %v8316_v43 = vpack.c.bf16 %v1816_v61, %v1815_v10  ;;  %v8348_v10 = vld [vmem:[%s7593_s28 + $0x20] sm:$0xff] }
  0xd0   : > { %v8318_v11 = vpop.permute.xlu1 %1110  ;;  %v8320_v12 = vpop.permute.xlu0 %1105  ;;  %11463 = vst [vmem:[#allocation59_spill] sm:$0xff] %v8348_v10  ;;  %v1071_v16 = vrot.slane %v8348_v10, 1 }
  0xd1   : > { %11460 = vst [vmem:[#allocation56_spill] sm:$0xff] %v8318_v11  ;;  %11461 = vst [vmem:[#allocation57_spill] sm:$0xff] %v8320_v12  ;;  %v1818_v3 = vmul.f32 %v8318_v11, %v1012_v23  ;;  %v1817_v30 = vmul.f32 %v8320_v12, %v8151_v24  ;;  %6677 = vmatmul.mubr.msk.bf16.gmra.mxu1 %vm600_vm1, %v7619_v21  ;;  %v8344_v24 = vld [vmem:[%s7593_s28 + $0x18] sm:$0xff] }
  0xd2   : > { %6703 = vmatmul.mubr.msk.bf16.gmra.mxu0 %vm600_vm1, %v7696_v45  ;;  %6680 = vmatprep.mubr.msk.bf16.mxu1 %vm600_vm1, %v7630_v25  ;;  %11462 = vst [vmem:[#allocation58_spill] sm:$0xff] %v8344_v24  ;;  %v1070_v61 = vrot.slane %v8344_v24, 1  ;;  %v1073_v24 = vrot.slane %v8368_v8, 1 }
  0xd3   : > { %6706 = vmatprep.mubr.msk.bf16.mxu0 %vm600_vm1, %v7711_v49  ;;  %v8341_v23 = vpack.c.bf16 %v1818_v3, %v1817_v30 }
  0xd4   : > { %v8351_v53 = vpop.permute.xlu1 %1120  ;;  %v8353_v31 = vpop.permute.xlu0 %1115  ;;  %v8375_v50 = vsel %vm1010_vm3, %v1070_v61, %v1071_v16  ;;  %v8399_v8 = vsel %vm1010_vm3, %v1072_v20, %v1073_v24 }
  0xd5   : > { %11464 = vst [vmem:[#allocation60_spill] sm:$0xff] %v8351_v53  ;;  %11465 = vst [vmem:[#allocation61_spill] sm:$0xff] %v8353_v31  ;;  %v1820_v3 = vmul.f32 %v8351_v53, %v8099_v38  ;;  %v1819_v30 = vmul.f32 %v8353_v31, %v8227_v7  ;;  %v8383_v7 = vsel %vm1010_vm3, %v1069_v1, %v1070_v61 }
  0xd6   : > { %v8403_v1 = vsel %vm1010_vm3, %v1071_v16, %v1072_v20 }
  0xd7   : > { %v8371_v10 = vpack.c.bf16 %v1820_v3, %v1819_v30  ;;  %v8395_v30 = vpack.c.bf16 %v1124_v34, %v1123_v26  ;;  %v1126_v26 = vmul.f32 %v8299_v27, %v8375_v50  ;;  %v1125_v34 = vmul.f32 %v8301_v33, %v8383_v7 }
  0xd8   : > { %v8377_v40 = vpop.permute.xlu1 %2042  ;;  %v8379_v38 = vpop.permute.xlu0 %2037 }
  0xd9   : > { %11468 = vst [vmem:[#allocation64_spill] sm:$0xff] %v8377_v40  ;;  %11469 = vst [vmem:[#allocation65_spill] sm:$0xff] %v8379_v38  ;;  %v8387_v9 = vmul.f32 %v8377_v40, %v8178_v19  ;;  %v8391_v3 = vmul.f32 %v8379_v38, %v8131_v62  ;;  %6681 = vmatmul.mubr.msk.bf16.gmra.mxu1 %vm600_vm1, %v7647_v32  ;;  %v8418_v19 = vld [vmem:[%s7593_s28 + $0x38] sm:$0xff]  ;;  %v1127_v62 = vmul.f32 %v8320_v12, %v8403_v1 }
  0xda   : > { %6707 = vmatmul.mubr.msk.bf16.gmra.mxu0 %vm600_vm1, %v7733_v54  ;;  %6720 = vmatprep.mubr.msk.bf16.mxu1 %vm600_vm1, %v8184_v29  ;;  %11470 = vst [vmem:[#allocation66_spill] sm:$0xff] %v8418_v19  ;;  %v1074_v20 = vrot.slane %v8418_v19, 1  ;;  %v1128_v29 = vmul.f32 %v8318_v11, %v8399_v8  ;;  %v8447_v12 = vpack.c.bf16 %v1126_v26, %v1125_v34 }
  0xdb   : > { %6710 = vmatprep.mubr.msk.bf16.mxu0 %vm600_vm1, %v8395_v30 }
  0xdc   : > { %v8421_v61 = vpop.permute.xlu1 %2052  ;;  %v8423_v16 = vpop.permute.xlu0 %2047  ;;  %v8441_v27 = vsel %vm1010_vm3, %v1074_v20, %v1067_v60  ;;  %v8463_v38 = vpack.c.bf16 %v1128_v29, %v1127_v62 }
  0xdd   : > { %11471 = vst [vmem:[#allocation67_spill] sm:$0xff] %v8421_v61  ;;  %11472 = vst [vmem:[#allocation68_spill] sm:$0xff] %v8423_v16  ;;  %v8431_v40 = vmul.f32 %v8421_v61, %v8216_v47  ;;  %v8435_v33 = vmul.f32 %v8423_v16, %v8174_v2  ;;  %v1840_v47 = vsel %vm649_vm0, %v8036_v44, 0  ;;  %v1075_v2 = vsel %vm1010_vm3, %v1073_v24, %v1074_v20  ;;  %v8468_v44 = vld [vmem:[%s11209_s2 + $0xe] sm:$0x3] }
  0xe0   : > { %v8443_v19 = vpop.permute.xlu1 %2062  ;;  %v8445_v11 = vpop.permute.xlu0 %2057 }
  0xe1   : > { %11473 = vst [vmem:[#allocation69_spill] sm:$0xff] %v8443_v19  ;;  %11474 = vst [vmem:[#allocation70_spill] sm:$0xff] %v8445_v11  ;;  %v8455_v16 = vmul.f32 %v8443_v19, %v8254_v58  ;;  %v8459_v60 = vmul.f32 %v8445_v11, %v8212_v28  ;;  %6721 = vmatmul.mubr.msk.bf16.vlgmr.msra.gmra.mxu1 %vm600_vm1, %v8219_v5  ;;  %v1130_v5 = vmul.f32 %v8351_v53, %v8441_v27 }
  0xe2   : > { %6711 = vmatmul.mubr.msk.bf16.gmra.mxu0 %vm600_vm1, %v8447_v12  ;;  %6724 = vmatprep.mubr.msk.bf16.mxu1 %vm600_vm1, %v8257_v59  ;;  %v1129_v58 = vmul.f32 %v8353_v31, %v1075_v2 }
  0xe3   : > { %6714 = vmatprep.mubr.msk.bf16.mxu0 %vm600_vm1, %v8463_v38  ;;  %6787 = vmatpush3.bf16.msra.mxu1 %v1840_v47 }
  0xe4   : > { %v8481_v24 = vpop.permute.xlu1 %2072  ;;  %v8483_v62 = vpop.permute.xlu0 %2067  ;;  %7398 = vmatprep.subr.msk.bf16.mxu1 %vm649_vm0, %v8468_v44  ;;  %v8501_v47 = vpack.c.bf16 %v1130_v5, %v1129_v58  ;;  %v8526_v58 = vld [vmem:[%s11209_s2 + $0x10] sm:$0x3] }
  0xe5   : > { %11475 = vst [vmem:[#allocation71_spill] sm:$0xff] %v8481_v24  ;;  %11476 = vst [vmem:[#allocation72_spill] sm:$0xff] %v8483_v62  ;;  %v8489_v59 = vmul.f32 %v8481_v24, %v8137_v37  ;;  %v8493_v26 = vmul.f32 %v8483_v62, %v8250_v39 }
  0xe8   : > { %v8497_v20 = vpop.permute.xlu1 %2090  ;;  %v8499_v29 = vpop.permute.xlu0 %2085 }
  0xe9   : > { %11477 = vst [vmem:[#allocation73_spill] sm:$0xff] %v8497_v20  ;;  %11478 = vst [vmem:[#allocation74_spill] sm:$0xff] %v8499_v29  ;;  %6725 = vmatmul.mubr.msk.bf16.gmra.mxu1 %vm600_vm1, %v8278_v22  ;;  %v2166_v22 = vsel %vm649_vm0, %v8106_v56, 0 }
  0xea   : > { %6715 = vmatmul.mubr.msk.bf16.gmra.mxu0 %vm600_vm1, %v8501_v47  ;;  %6728 = vmatprep.mubr.msk.bf16.mxu1 %vm600_vm1, %v7609_v17 }
  0xeb   : > { %6754 = vmatprep.mubr.msk.bf16.mxu0 %vm600_vm1, %v7609_v17 }
  0xec   : > { %v8511_v37 = vpop.permute.xlu1 %2100  ;;  %v8513_v39 = vpop.permute.xlu0 %2095 }
  0xed   : > { %11479 = vst [vmem:[#allocation75_spill] sm:$0xff] %v8511_v37  ;;  %11480 = vst [vmem:[#allocation76_spill] sm:$0xff] %v8513_v39 }
  0xf0   : > { %v8515_v34 = vpop.permute.xlu1 %2110  ;;  %v8517_v5 = vpop.permute.xlu0 %2105 }
  0xf1   : > { %11481 = vst [vmem:[#allocation77_spill] sm:$0xff] %v8515_v34  ;;  %11482 = vst [vmem:[#allocation78_spill] sm:$0xff] %v8517_v5  ;;  %6729 = vmatmul.mubr.msk.bf16.gmra.mxu1 %vm600_vm1, %v7619_v21 }
  0xf2   : > { %6755 = vmatmul.mubr.msk.bf16.vlgmr.msra.gmra.mxu0 %vm600_vm1, %v7619_v21  ;;  %6732 = vmatprep.mubr.msk.bf16.mxu1 %vm600_vm1, %v7630_v25 }
  0xf3   : > { %6821 = vmatpush3.bf16.msra.mxu0 %v2166_v22  ;;  %6758 = vmatprep.mubr.msk.bf16.mxu0 %vm600_vm1, %v7630_v25 }
  0xf4   : > { %v8534_v28 = vpop.permute.xlu1 %2120  ;;  %v8536_v56 = vpop.permute.xlu0 %2115  ;;  %7399 = vmatprep.subr.msk.bf16.mxu0 %vm649_vm0, %v8526_v58 }
  0xf5   : > { %11483 = vst [vmem:[#allocation79_spill] sm:$0xff] %v8534_v28  ;;  %11484 = vst [vmem:[#allocation80_spill] sm:$0xff] %v8536_v56 }
  0xf8   : > { %v8540_v62 = vpop.permute.xlu1 %2590  ;;  %v8542_v19 = vpop.permute.xlu0 %2585 }
  0xf9   : > { %11485 = vst [vmem:[#allocation81_spill] sm:$0xff] %v8540_v62  ;;  %11486 = vst [vmem:[#allocation82_spill] sm:$0xff] %v8542_v19  ;;  %v8546_v11 = vmul.f32 %v8540_v62, %v8383_v7  ;;  %v8550_v22 = vmul.f32 %v8542_v19, %v8329_v18  ;;  %6733 = vmatmul.mubr.msk.bf16.gmra.mxu1 %vm600_vm1, %v7647_v32 }
  0xfa   : > { %6736 = vmatprep.mubr.msk.bf16.mxu1 %vm600_vm1, %v8186_v41  ;;  %6759 = vmatmul.mubr.msk.bf16.gmra.mxu0 %vm600_vm1, %v7647_v32 }
  0xfb   : > { %6762 = vmatprep.mubr.msk.bf16.mxu0 %vm600_vm1, %v7657_v35 }
  0xfc   : > { %v8562_v7 = vpop.permute.xlu1 %2600  ;;  %v8564_v62 = vpop.permute.xlu0 %2595 }
  0xfd   : > { %11487 = vst [vmem:[#allocation83_spill] sm:$0xff] %v8562_v7  ;;  %11488 = vst [vmem:[#allocation84_spill] sm:$0xff] %v8564_v62  ;;  %v8568_v18 = vmul.f32 %v8562_v7, %v8403_v1  ;;  %v8572_v19 = vmul.f32 %v8564_v62, %v8375_v50  ;;  %v11506_v50 = vld [vmem:[#allocation30_spill] sm:$0xff]  ;;  %v8667_v62 = vpop.f32.mrf.mxu1 }
 0x100   : > { %v8576_v61 = vpop.permute.xlu1 %2610  ;;  %v8578_v53 = vpop.permute.xlu0 %2605 }
 0x101   : > { %11489 = vst [vmem:[#allocation85_spill] sm:$0xff] %v8576_v61  ;;  %11490 = vst [vmem:[#allocation86_spill] sm:$0xff] %v8578_v53  ;;  %v8581_v24 = vmul.f32 %v8576_v61, %v1075_v2  ;;  %v8585_v4 = vmul.f32 %v8578_v53, %v8399_v8  ;;  %6737 = vmatmul.mubr.msk.bf16.gmra.mxu1 %vm600_vm1, %v8221_v14  ;;  %v8611_v61 = vpack.c.bf16 %v7862_v48, %v7868_v52  ;;  %v11499_v52 = vld [vmem:[#allocation19_spill] sm:$0xff] }
 0x102   : > { %6740 = vmatprep.mubr.msk.bf16.mxu1 %vm600_vm1, %v8259_v57  ;;  %6763 = vmatmul.mubr.msk.bf16.gmra.mxu0 %vm600_vm1, %v7696_v45  ;;  %v8629_v48 = vpack.c.bf16 %v7929_v13, %v7886_v63  ;;  %v11502_v13 = vld [vmem:[#allocation23_spill] sm:$0xff]  ;;  %v11514_v53 = vpack.c.bf16 %v8431_v40, %v8435_v33 }
 0x103   : > { %6766 = vmatprep.mubr.msk.bf16.mxu0 %vm600_vm1, %v7711_v49  ;;  %11495 = vst [vmem:[#allocation91_spill] sm:$0xff] %v8611_v61 }
 0x104   : > { %v8597_v1 = vpop.permute.xlu1 %2620  ;;  %v8599_v2 = vpop.permute.xlu0 %2615  ;;  %11497 = vst [vmem:[#allocation93_spill] sm:$0xff] %v8629_v48 }
 0x105   : > { %11491 = vst [vmem:[#allocation87_spill] sm:$0xff] %v8597_v1  ;;  %11492 = vst [vmem:[#allocation88_spill] sm:$0xff] %v8599_v2  ;;  %v8603_v8 = vmul.f32 %v8597_v1, %v8333_v46  ;;  %v8607_v31 = vmul.f32 %v8599_v2, %v8441_v27  ;;  %v8625_v27 = vpack.c.bf16 %v7889_v0, %v7865_v51  ;;  %v11500_v0 = vld [vmem:[#allocation22_spill] sm:$0xff]  ;;  %v11503_v46 = vld [vmem:[#allocation27_spill] sm:$0xff] }
 0x106   : > { %v8641_v51 = vpack.c.bf16 %v7871_v55, %v7924_v36  ;;  %v8645_v63 = vpack.c.bf16 %v11500_v0, %v11499_v52  ;;  %v8657_v55 = vpack.c.bf16 %v11503_v46, %v11502_v13  ;;  %v11505_v36 = vld [vmem:[#allocation26_spill] sm:$0xff]  ;;  %v2388_v0 = vsel %vm649_vm0, %v8468_v44, 0 }
 0x107   : > { %11493 = vst [vmem:[#allocation89_spill] sm:$0xff] %v8603_v8  ;;  %11494 = vst [vmem:[#allocation90_spill] sm:$0xff] %v8607_v31  ;;  %v8661_v52 = vpack.c.bf16 %v11506_v50, %v11505_v36  ;;  %v8675_v50 = vpop.f32.mrf.mxu1  ;;  %v11508_v13 = vld [vmem:[#allocation14_spill] sm:$0xff]  ;;  %v2123_v2 = vmul.f32 %v8308_v42, %v8499_v29  ;;  %v11519_v42 = vld [vmem:[#allocation59_spill] sm:$0xff] }
 0x108   : > { %11496 = vst [vmem:[#allocation92_spill] sm:$0xff] %v8625_v27  ;;  %11498 = vst [vmem:[#allocation94_spill] sm:$0xff] %v8641_v51  ;;  %v11509_v46 = vld [vmem:[#allocation18_spill] sm:$0xff] }
 0x109   : > { %6741 = vmatmul.mubr.msk.bf16.gmra.mxu1 %vm600_vm1, %v8280_v6  ;;  %11501 = vst [vmem:[#allocation19_spill] sm:$0xff] %v8645_v63  ;;  %11504 = vst [vmem:[#allocation22_spill] sm:$0xff] %v8657_v55  ;;  %v8679_v44 = vpack.c.bf16 %v11509_v46, %v11508_v13  ;;  %v8683_v36 = vpop.f32.mrf.mxu1  ;;  %v2650_v13 = vsel %vm649_vm0, %v8526_v58, 0 }
 0x10a   : > { %6767 = vmatmul.mubr.msk.bf16.gmra.mxu0 %vm600_vm1, %v7733_v54  ;;  %6744 = vmatprep.mubr.msk.bf16.mxu1 %vm600_vm1, %v8611_v61  ;;  %11507 = vst [vmem:[#allocation23_spill] sm:$0xff] %v8661_v52 }
 0x10b   : > { %6770 = vmatprep.mubr.msk.bf16.mxu0 %vm600_vm1, %v8611_v61 }
 0x111   : > { %6745 = vmatmul.mubr.msk.bf16.gmra.mxu1 %vm600_vm1, %v8625_v27 }
 0x112   : > { %6771 = vmatmul.mubr.msk.bf16.gmra.mxu0 %vm600_vm1, %v8625_v27  ;;  %6748 = vmatprep.mubr.msk.bf16.mxu1 %vm600_vm1, %v8629_v48 }
 0x113   : > { %6774 = vmatprep.mubr.msk.bf16.mxu0 %vm600_vm1, %v8629_v48 }
 0x119   : > { %6749 = vmatmul.mubr.msk.bf16.gmra.mxu1 %vm600_vm1, %v8641_v51 }
 0x11a   : > { %6775 = vmatmul.mubr.msk.bf16.gmra.mxu0 %vm600_vm1, %v8641_v51  ;;  %6788 = vmatprep.mubr.msk.bf16.mxu1 %vm600_vm1, %v7657_v35 }
 0x11b   : > { %6778 = vmatprep.mubr.msk.bf16.mxu0 %vm600_vm1, %v8645_v63 }
 0x121   : > { %6789 = vmatmul.mubr.msk.bf16.vlgmr.msra.gmra.mxu1 %vm600_vm1, %v7696_v45 }
 0x122   : > { %6779 = vmatmul.mubr.msk.bf16.gmra.mxu0 %vm600_vm1, %v8657_v55  ;;  %6792 = vmatprep.mubr.msk.bf16.mxu1 %vm600_vm1, %v7711_v49 }
 0x123   : > { %6782 = vmatprep.mubr.msk.bf16.mxu0 %vm600_vm1, %v8661_v52  ;;  %6855 = vmatpush3.bf16.msra.mxu1 %v2388_v0  ;;  %v8691_v0 = vpop.f32.mrf.mxu1 }
 0x124   : > { %11510 = vst [vmem:[#allocation27_spill] sm:$0xff] %v8691_v0 }
 0x125   : > { %v8697_v46 = vpop.f32.mrf.mxu1 }
 0x129   : > { %6793 = vmatmul.mubr.msk.bf16.gmra.mxu1 %vm600_vm1, %v7733_v54 }
 0x12a   : > { %6783 = vmatmul.mubr.msk.bf16.gmra.mxu0 %vm600_vm1, %v8679_v44  ;;  %6796 = vmatprep.mubr.msk.bf16.mxu1 %vm600_vm1, %v8395_v30 }
 0x12b   : > { %6822 = vmatprep.mubr.msk.bf16.mxu0 %vm600_vm1, %v8186_v41  ;;  %v8705_v41 = vpop.f32.mrf.mxu1 }
 0x12d   : > { %v8709_v30 = vpop.f32.mrf.mxu1 }
 0x131   : > { %6797 = vmatmul.mubr.msk.bf16.gmra.mxu1 %vm600_vm1, %v8447_v12 }
 0x132   : > { %6800 = vmatprep.mubr.msk.bf16.mxu1 %vm600_vm1, %v8463_v38  ;;  %6823 = vmatmul.mubr.msk.bf16.vlgmr.msra.gmra.mxu0 %vm600_vm1, %v8221_v14  ;;  %v8717_v14 = vpop.f32.mrf.mxu1  ;;  %v11512_v38 = vpack.c.bf16 %v8387_v9, %v8391_v3  ;;  %v11515_v9 = vpack.c.bf16 %v8455_v16, %v8459_v60  ;;  %v11518_v16 = vpack.c.bf16 %v8489_v59, %v8493_v26  ;;  %v11522_v59 = vld [vmem:[#allocation62_spill] sm:$0xff] }
 0x133   : > { %6889 = vmatpush3.bf16.msra.mxu0 %v2650_v13  ;;  %6826 = vmatprep.mubr.msk.bf16.mxu0 %vm600_vm1, %v8259_v57  ;;  %11511 = vst [vmem:[#allocation26_spill] sm:$0xff] %v8717_v14  ;;  %v2126_v60 = vmul.f32 %v11519_v42, %v8511_v37  ;;  %v2127_v26 = vmul.f32 %v11522_v59, %v8517_v5  ;;  %v11525_v59 = vld [vmem:[#allocation66_spill] sm:$0xff] }
 0x134   : > { %v8721_v57 = vpop.f32.mrf.mxu1 }
 0x139   : > { %6801 = vmatmul.mubr.msk.bf16.gmra.mxu1 %vm600_vm1, %v8501_v47 }
 0x13a   : > { %6827 = vmatmul.mubr.msk.bf16.gmra.mxu0 %vm600_vm1, %v8280_v6  ;;  %6804 = vmatprep.mubr.msk.bf16.mxu1 %vm600_vm1, %v8645_v63  ;;  %v8729_v6 = vpop.f32.mrf.mxu1 }
 0x13b   : > { %6830 = vmatprep.mubr.msk.bf16.mxu0 %vm600_vm1, %v8611_v61 }
 0x13c   : > { %v8733_v12 = vpop.f32.mrf.mxu1 }
 0x13e   : > { %v8743_v47 = vpop.f32.mrf.mxu1 }
 0x13f   : > { %11513 = vst [vmem:[#allocation30_spill] sm:$0xff] %v8743_v47 }
 0x140   : > { %v8747_v58 = vpop.f32.mrf.mxu1 }
 0x141   : > { %6805 = vmatmul.mubr.msk.bf16.gmra.mxu1 %vm600_vm1, %v8657_v55 }
 0x142   : > { %6831 = vmatmul.mubr.msk.bf16.gmra.mxu0 %vm600_vm1, %v8625_v27  ;;  %6808 = vmatprep.mubr.msk.bf16.mxu1 %vm600_vm1, %v8661_v52  ;;  %v8763_v1 = vpop.f32.mrf.mxu1 }
 0x143   : > { %6834 = vmatprep.mubr.msk.bf16.mxu0 %vm600_vm1, %v8629_v48  ;;  %11516 = vst [vmem:[#allocation14_spill] sm:$0xff] %v8763_v1 }
 0x144   : > { %v8769_v40 = vpop.f32.mrf.mxu1 }
 0x145   : > { %11517 = vst [vmem:[#allocation18_spill] sm:$0xff] %v8769_v40 }
 0x149   : > { %6809 = vmatmul.mubr.msk.bf16.gmra.mxu1 %vm600_vm1, %v8679_v44 }
 0x14a   : > { %6812 = vmatprep.mubr.msk.bf16.mxu1 %vm600_vm1, %v8297_v15  ;;  %6835 = vmatmul.mubr.msk.bf16.gmra.mxu0 %vm600_vm1, %v8641_v51 }
 0x14b   : > { %6838 = vmatprep.mubr.msk.bf16.mxu0 %vm600_vm1, %v11512_v38  ;;  %v7491_v38 = vld [vmem:[%s7593_s28 + $0x10] sm:$0xff] }
 0x14c   : > { %v2124_v7 = vmul.f32 %v7491_v38, %v8497_v20  ;;  %v11521_v38 = vld [vmem:[#allocation63_spill] sm:$0xff] }
 0x14d   : > { %v2128_v0 = vmul.f32 %v11521_v38, %v8515_v34 }
 0x14f   : > { %v8793_v42 = vpack.c.bf16 %v2128_v0, %v2127_v26 }
 0x151   : > { %6813 = vmatmul.mubr.msk.bf16.gmra.mxu1 %vm600_vm1, %v8316_v43 }
 0x152   : > { %v6620_v13 = vpop.f32.mrf.mxu0  ;;  %6816 = vmatprep.mubr.msk.bf16.mxu1 %vm600_vm1, %v8341_v23  ;;  %6839 = vmatmul.mubr.msk.bf16.gmra.mxu0 %vm600_vm1, %v11514_v53  ;;  %v8767_v53 = vpack.c.bf16 %v2124_v7, %v2123_v2  ;;  %v11520_v7 = vld [vmem:[#allocation58_spill] sm:$0xff] }
 0x153   : > { %6842 = vmatprep.mubr.msk.bf16.mxu0 %vm600_vm1, %v11515_v9  ;;  %v2125_v2 = vmul.f32 %v11520_v7, %v8513_v39 }
 0x154   : > { %v687_v3 = vpop.f32.mrf.mxu0 }
 0x155   : > { %v8789_v49 = vpack.c.bf16 %v2126_v60, %v2125_v2  ;;  %v11524_v60 = vld [vmem:[#allocation55_spill] sm:$0xff] }
 0x156   : > { %v6621_v47 = vpop.f32.mrf.mxu0  ;;  %v2130_v2 = vmul.f32 %v11524_v60, %v8534_v28 }
 0x158   : > { %v690_v14 = vpop.f32.mrf.mxu0 }
 0x159   : > { %6817 = vmatmul.mubr.msk.bf16.gmra.mxu1 %vm600_vm1, %v8371_v10 }
 0x15a   : > { %v6624_v33 = vpop.f32.mrf.mxu0  ;;  %6843 = vmatmul.mubr.msk.bf16.gmra.mxu0 %vm600_vm1, %v11518_v16  ;;  %6856 = vmatprep.mubr.msk.bf16.mxu1 %vm600_vm1, %v8611_v61  ;;  %v8787_v16 = vpop.f32.mrf.mxu1 }
 0x15b   : > { %6846 = vmatprep.mubr.msk.bf16.mxu0 %vm600_vm1, %v8767_v53  ;;  %11523 = vst [vmem:[#allocation59_spill] sm:$0xff] %v8787_v16 }
 0x15c   : > { %v703_v9 = vpop.f32.mrf.mxu0 }
 0x15e   : > { %v6625_v54 = vpop.f32.mrf.mxu0 }
 0x160   : > { %v706_v61 = vpop.f32.mrf.mxu0 }
 0x161   : > { %v6654_v45 = vpop.f32.mrf.mxu1  ;;  %6857 = vmatmul.mubr.msk.bf16.vlgmr.msra.gmra.mxu1 %vm600_vm1, %v8625_v27  ;;  %v2129_v27 = vmul.f32 %v11525_v59, %v8536_v56 }
 0x162   : > { %v884_v7 = vadd.f32 %v6654_v45, %v6620_v13  ;;  %v6628_v35 = vpop.f32.mrf.mxu0  ;;  %6847 = vmatmul.mubr.msk.bf16.gmra.mxu0 %vm600_vm1, %v8789_v49  ;;  %6860 = vmatprep.mubr.msk.bf16.mxu1 %vm600_vm1, %v8629_v48 }
 0x163   : > { %v875_v38 = vpop.f32.mrf.mxu1  ;;  %6850 = vmatprep.mubr.msk.bf16.mxu0 %vm600_vm1, %v8793_v42  ;;  %v8805_v40 = vpack.c.bf16 %v2130_v2, %v2129_v27 }
 0x164   : > { %v876_v0 = vadd.f32 %v875_v38, %v687_v3  ;;  %v719_v26 = vpop.f32.mrf.mxu0 }
 0x165   : > { %v6655_v45 = vpop.f32.mrf.mxu1 }
 0x166   : > { %v887_v13 = vadd.f32 %v6655_v45, %v6621_v47  ;;  %v6629_v32 = vpop.f32.mrf.mxu0 }
 0x167   : > { %v878_v25 = vpop.f32.mrf.mxu1 }
 0x168   : > { %v879_v21 = vadd.f32 %v878_v25, %v690_v14  ;;  %v722_v16 = vpop.f32.mrf.mxu0 }
 0x169   : > { %v6658_v48 = vpop.f32.mrf.mxu1  ;;  %6861 = vmatmul.mubr.msk.bf16.gmra.mxu1 %vm600_vm1, %v8641_v51 }
 0x16a   : > { %v900_v17 = vadd.f32 %v6658_v48, %v6624_v33  ;;  %v6632_v1 = vpop.f32.mrf.mxu0  ;;  %6851 = vmatmul.mubr.msk.bf16.gmra.mxu0 %vm600_vm1, %v8805_v40  ;;  %6864 = vmatprep.mubr.msk.bf16.mxu1 %vm600_vm1, %v8645_v63 }
 0x16b   : > { %v891_v3 = vpop.f32.mrf.mxu1  ;;  %6890 = vmatprep.mubr.msk.bf16.mxu0 %vm600_vm1, %v8645_v63 }
 0x16c   : > { %v892_v25 = vadd.f32 %v891_v3, %v703_v9  ;;  %v735_v14 = vpop.f32.mrf.mxu0 }
 0x16d   : > { %v6659_v27 = vpop.f32.mrf.mxu1 }
 0x16e   : > { %v903_v47 = vadd.f32 %v6659_v27, %v6625_v54  ;;  %v6633_v38 = vpop.f32.mrf.mxu0 }
 0x16f   : > { %v894_v60 = vpop.f32.mrf.mxu1 }
 0x170   : > { %v895_v2 = vadd.f32 %v894_v60, %v706_v61  ;;  %v738_v59 = vpop.f32.mrf.mxu0 }
 0x171   : > { %v6662_v48 = vpop.f32.mrf.mxu1  ;;  %6865 = vmatmul.mubr.msk.bf16.gmra.mxu1 %vm600_vm1, %v8657_v55 }
 0x172   : > { %v916_v33 = vadd.f32 %v6662_v48, %v6628_v35  ;;  %v6688_v45 = vpop.f32.mrf.mxu0  ;;  %6891 = vmatmul.mubr.msk.bf16.vlgmr.msra.gmra.mxu0 %vm600_vm1, %v8657_v55  ;;  %6868 = vmatprep.mubr.msk.bf16.mxu1 %vm600_vm1, %v8661_v52 }
 0x173   : > { %v8821_v9 = vadd.f32 %v6688_v45, %v884_v7  ;;  %v907_v3 = vpop.f32.mrf.mxu1  ;;  %6894 = vmatprep.mubr.msk.bf16.mxu0 %vm600_vm1, %v8661_v52 }
 0x174   : > { %v908_v54 = vadd.f32 %v907_v3, %v719_v26  ;;  %v1202_v61 = vpop.f32.mrf.mxu0 }
 0x175   : > { %v8825_v27 = vadd.f32 %v1202_v61, %v876_v0  ;;  %v6663_v60 = vpop.f32.mrf.mxu1 }
 0x176   : > { %v919_v63 = vadd.f32 %v6663_v60, %v6629_v32  ;;  %v6689_v35 = vpop.f32.mrf.mxu0 }
 0x177   : > { %v8827_v48 = vadd.f32 %v6689_v35, %v887_v13  ;;  %v910_v51 = vpop.f32.mrf.mxu1 }
 0x178   : > { %v911_v55 = vadd.f32 %v910_v51, %v722_v16  ;;  %v1205_v31 = vpop.f32.mrf.mxu0 }
 0x179   : > { %v8829_v8 = vadd.f32 %v1205_v31, %v879_v21  ;;  %v6666_v7 = vpop.f32.mrf.mxu1  ;;  %6869 = vmatmul.mubr.msk.bf16.gmra.mxu1 %vm600_vm1, %v8679_v44 }
 0x17a   : > { %v932_v45 = vadd.f32 %v6666_v7, %v6632_v1  ;;  %v6692_v52 = vpop.f32.mrf.mxu0  ;;  %6872 = vmatprep.mubr.msk.bf16.mxu1 %vm600_vm1, %v8767_v53  ;;  %6895 = vmatmul.mubr.msk.bf16.gmra.mxu0 %vm600_vm1, %v8679_v44 }
 0x17b   : > { %v8837_v32 = vadd.f32 %v6692_v52, %v900_v17  ;;  %v923_v0 = vpop.f32.mrf.mxu1  ;;  %6898 = vmatprep.mubr.msk.bf16.mxu0 %vm600_vm1, %v8297_v15 }
 0x17c   : > { %v924_v21 = vadd.f32 %v923_v0, %v735_v14  ;;  %v1218_v31 = vpop.f32.mrf.mxu0 }
 0x17d   : > { %v8841_v51 = vadd.f32 %v1218_v31, %v892_v25  ;;  %v6667_v16 = vpop.f32.mrf.mxu1 }
 0x17e   : > { %v935_v1 = vadd.f32 %v6667_v16, %v6633_v38  ;;  %v6693_v26 = vpop.f32.mrf.mxu0 }
 0x17f   : > { %v8843_v13 = vadd.f32 %v6693_v26, %v903_v47  ;;  %v926_v53 = vpop.f32.mrf.mxu1  ;;  %v7492_v47 = vld [vmem:[%s7593_s28 + $0x50] sm:$0xff]  ;;  %v7495_v26 = vld [vmem:[%s7593_s28 + $0x58] sm:$0xff] }
 0x180   : > { %v927_v3 = vadd.f32 %v926_v53, %v738_v59  ;;  %v1221_v61 = vpop.f32.mrf.mxu0  ;;  %v2362_v38 = vmul.f32 %v7492_v47, %v8497_v20  ;;  %v2363_v53 = vmul.f32 %v7495_v26, %v8513_v39  ;;  %v7497_v47 = vld [vmem:[%s7593_s28 + $0x68] sm:$0xff] }
 0x181   : > { %v8845_v17 = vadd.f32 %v1221_v61, %v895_v2  ;;  %v6670_v52 = vpop.f32.mrf.mxu1  ;;  %6873 = vmatmul.mubr.msk.bf16.gmra.mxu1 %vm600_vm1, %v8789_v49  ;;  %v7493_v2 = vld [vmem:[%s7593_s28 + $0x48] sm:$0xff] }
 0x182   : > { %v6696_v15 = vpop.f32.mrf.mxu0  ;;  %6876 = vmatprep.mubr.msk.bf16.mxu1 %vm600_vm1, %v8793_v42  ;;  %6899 = vmatmul.mubr.msk.bf16.gmra.mxu0 %vm600_vm1, %v8316_v43  ;;  %v2361_v49 = vmul.f32 %v7493_v2, %v8499_v29 }
 0x183   : > { %v8853_v25 = vadd.f32 %v6696_v15, %v916_v33  ;;  %v939_v14 = vpop.f32.mrf.mxu1  ;;  %6902 = vmatprep.mubr.msk.bf16.mxu0 %vm600_vm1, %v8341_v23  ;;  %v7496_v15 = vld [vmem:[%s7593_s28 + $0x70] sm:$0xff] }
 0x184   : > { %v1234_v59 = vpop.f32.mrf.mxu0  ;;  %v2369_v23 = vpack.c.bf16 %v2362_v38, %v2361_v49  ;;  %v2365_v38 = vmul.f32 %v7497_v47, %v8517_v5 }
 0x185   : > { %v8861_v60 = vadd.f32 %v1234_v59, %v908_v54  ;;  %v6671_v42 = vpop.f32.mrf.mxu1 }
 0x186   : > { %v6697_v35 = vpop.f32.mrf.mxu0 }
 0x187   : > { %v8863_v43 = vadd.f32 %v6697_v35, %v919_v63  ;;  %v8865_v33 = vpop.f32.mrf.mxu1  ;;  %v7494_v63 = vld [vmem:[%s7593_s28 + $0x60] sm:$0xff] }
 0x188   : > { %v1237_v7 = vpop.f32.mrf.mxu0  ;;  %v2364_v54 = vmul.f32 %v7494_v63, %v8511_v37  ;;  %v948_v63 = vadd.f32 %v6670_v52, %v8667_v62  ;;  %v951_v52 = vadd.f32 %v6671_v42, %v8683_v36 }
 0x189   : > { %v8867_v0 = vadd.f32 %v1237_v7, %v911_v55  ;;  %v6674_v31 = vpop.f32.mrf.mxu1  ;;  %6877 = vmatmul.mubr.msk.bf16.gmra.mxu1 %vm600_vm1, %v8805_v40  ;;  %v2366_v40 = vmul.f32 %v7496_v15, %v8515_v34 }
 0x18a   : > { %v6700_v16 = vpop.f32.mrf.mxu0  ;;  %6880 = vmatprep.mubr.msk.bf16.mxu1 %vm600_vm1, %v2369_v23  ;;  %6903 = vmatmul.mubr.msk.bf16.gmra.mxu0 %vm600_vm1, %v8371_v10  ;;  %v2370_v35 = vpack.c.bf16 %v2364_v54, %v2363_v53  ;;  %v7499_v54 = vld [vmem:[%s7593_s28 + $0x78] sm:$0xff] }
 0x18b   : > { %v8878_v61 = vadd.f32 %v6700_v16, %v932_v45  ;;  %v955_v55 = vpop.f32.mrf.mxu1  ;;  %6906 = vmatprep.mubr.msk.bf16.mxu0 %vm600_vm1, %v2369_v23  ;;  %v2371_v23 = vpack.c.bf16 %v2366_v40, %v2365_v38  ;;  %v2367_v53 = vmul.f32 %v7499_v54, %v8536_v56  ;;  %v940_v40 = vadd.f32 %v939_v14, %v8675_v50 }
 0x18c   : > { %v1250_v2 = vpop.f32.mrf.mxu0  ;;  %v964_v50 = vadd.f32 %v6674_v31, %v8697_v46  ;;  %v956_v36 = vadd.f32 %v955_v55, %v8705_v41 }
 0x18d   : > { %v8885_v10 = vadd.f32 %v1250_v2, %v924_v21  ;;  %v6675_v49 = vpop.f32.mrf.mxu1  ;;  %v7498_v21 = vld [vmem:[%s7593_s28 + $0x40] sm:$0xff] }
 0x18e   : > { %v6701_v59 = vpop.f32.mrf.mxu0 }
 0x18f   : > { %v8887_v7 = vadd.f32 %v6701_v59, %v935_v1  ;;  %v8889_v45 = vpop.f32.mrf.mxu1  ;;  %v2368_v1 = vmul.f32 %v7498_v21, %v8534_v28 }
 0x190   : > { %v1253_v16 = vpop.f32.mrf.mxu0 }
 0x191   : > { %v8892_v26 = vadd.f32 %v1253_v16, %v927_v3  ;;  %v6678_v15 = vpop.f32.mrf.mxu1  ;;  %6881 = vmatmul.mubr.msk.bf16.gmra.mxu1 %vm600_vm1, %v2370_v35  ;;  %v2372_v16 = vpack.c.bf16 %v2368_v1, %v2367_v53  ;;  %v967_v53 = vadd.f32 %v6675_v49, %v8709_v30 }
 0x192   : > { %v6704_v47 = vpop.f32.mrf.mxu0  ;;  %6884 = vmatprep.mubr.msk.bf16.mxu1 %vm600_vm1, %v2371_v23  ;;  %6907 = vmatmul.mubr.msk.bf16.gmra.mxu0 %vm600_vm1, %v2370_v35  ;;  %v980_v41 = vadd.f32 %v6678_v15, %v8721_v57 }
 0x193   : > { %v8902_v38 = vadd.f32 %v6704_v47, %v948_v63  ;;  %v971_v62 = vpop.f32.mrf.mxu1  ;;  %6910 = vmatprep.mubr.msk.bf16.mxu0 %vm600_vm1, %v2371_v23  ;;  %v11526_v47 = vpack.c.bf16 %v8546_v11, %v8550_v22  ;;  %v11527_v22 = vpack.c.bf16 %v8568_v18, %v8572_v19 }
 0x194   : > { %v1266_v3 = vpop.f32.mrf.mxu0  ;;  %v972_v30 = vadd.f32 %v971_v62, %v8729_v6 }
 0x195   : > { %v8906_v2 = vadd.f32 %v1266_v3, %v940_v40  ;;  %v6679_v59 = vpop.f32.mrf.mxu1 }
 0x196   : > { %v6705_v35 = vpop.f32.mrf.mxu0 }
 0x197   : > { %v8908_v34 = vadd.f32 %v6705_v35, %v951_v52  ;;  %v8910_v21 = vpop.f32.mrf.mxu1 }
 0x198   : > { %v8912_v54 = vpop.f32.mrf.mxu0 }
 0x199   : > { %v6682_v14 = vpop.f32.mrf.mxu1  ;;  %6885 = vmatmul.mubr.msk.bf16.gmra.mxu1 %vm600_vm1, %v2372_v16 }
 0x19a   : > { %v6708_v23 = vpop.f32.mrf.mxu0  ;;  %6911 = vmatmul.mubr.msk.bf16.gmra.mxu0 %vm600_vm1, %v2372_v16 }
 0x19b   : > { %v8918_v42 = vadd.f32 %v6708_v23, %v964_v50  ;;  %v987_v63 = vpop.f32.mrf.mxu1  ;;  %6914 = vmatprep.mubr.msk.bf16.mxu0 %vm600_vm1, %v11526_v47  ;;  %v11528_v23 = vpack.c.bf16 %v8581_v24, %v8585_v4  ;;  %v996_v4 = vadd.f32 %v6682_v14, %v8747_v58  ;;  %v11534_v14 = vld [vmem:[#allocation18_spill] sm:$0xff] }
 0x19c   : > { %v1282_v1 = vpop.f32.mrf.mxu0 }
 0x19d   : > { %v8925_v46 = vadd.f32 %v1282_v1, %v956_v36  ;;  %v6683_v31 = vpop.f32.mrf.mxu1 }
 0x19e   : > { %v6709_v40 = vpop.f32.mrf.mxu0 }
 0x19f   : > { %v8927_v3 = vadd.f32 %v6709_v40, %v967_v53  ;;  %v990_v52 = vpop.f32.mrf.mxu1  ;;  %v11529_v40 = vld [vmem:[#allocation89_spill] sm:$0xff] }
 0x1a0   : > { %v8929_v35 = vpop.f32.mrf.mxu0 }
 0x1a1   : > { %v6722_v55 = vpop.f32.mrf.mxu1 }
 0x1a2   : > { %v1569_v16 = vadd.f32 %v6722_v55, %v8821_v9  ;;  %v6712_v11 = vpop.f32.mrf.mxu0  ;;  %6915 = vmatmul.mubr.msk.bf16.gmra.mxu0 %vm600_vm1, %v11527_v22  ;;  %v983_v9 = vadd.f32 %v6679_v59, %v8733_v12  ;;  %v11532_v59 = vld [vmem:[#allocation14_spill] sm:$0xff] }
 0x1a3   : > { %v8938_v49 = vadd.f32 %v6712_v11, %v980_v41  ;;  %v1440_v50 = vpop.f32.mrf.mxu1  ;;  %6918 = vmatprep.mubr.msk.bf16.mxu0 %vm600_vm1, %v11528_v23  ;;  %v11530_v41 = vld [vmem:[#allocation90_spill] sm:$0xff]  ;;  %v988_v55 = vadd.f32 %v987_v63, %v11532_v59 }
 0x1a4   : > { %v1567_v57 = vadd.f32 %v1440_v50, %v8825_v27  ;;  %v1298_v15 = vpop.f32.mrf.mxu0  ;;  %v11531_v12 = vpack.c.bf16 %v11529_v40, %v11530_v41  ;;  %v11533_v22 = vld [vmem:[#allocation2_spill] sm:$0xff]  ;;  %v999_v50 = vadd.f32 %v6683_v31, %v11534_v14 }
 0x1a5   : > { %v8946_v36 = vadd.f32 %v1298_v15, %v972_v30  ;;  %v6723_v19 = vpop.f32.mrf.mxu1 }
 0x1a6   : > { %v1570_v18 = vadd.f32 %v6723_v19, %v8827_v48  ;;  %v6713_v47 = vpop.f32.mrf.mxu0  ;;  %v11535_v19 = vld [vmem:[#allocation59_spill] sm:$0xff] }
 0x1a7   : > { %v8949_v6 = vadd.f32 %v6713_v47, %v983_v9  ;;  %v1443_v62 = vpop.f32.mrf.mxu1  ;;  %v991_v47 = vadd.f32 %v990_v52, %v11535_v19 }
 0x1a8   : > { %v8951_v1 = vpop.f32.mrf.mxu0  ;;  %v1568_v14 = vadd.f32 %v1443_v62, %v8829_v8  ;;  %v11537_v62 = vld [vmem:[#allocation4_spill] sm:$0xff] }
 0x1a9   : > { %v6726_v24 = vpop.f32.mrf.mxu1 }
 0x1aa   : > { %v1573_v53 = vadd.f32 %v6726_v24, %v8837_v32  ;;  %v6716_v27 = vpop.f32.mrf.mxu0  ;;  %6919 = vmatmul.mubr.msk.bf16.gmra.mxu0 %vm600_vm1, %v11531_v12 }
 0x1ab   : > { %v8960_v48 = vadd.f32 %v6716_v27, %v996_v4  ;;  %v1456_v11 = vpop.f32.mrf.mxu1  ;;  %6972 = vmatprep.mubr.msk.bf16.mxu0 %vm600_vm1, %v11533_v22 }
 0x1ac   : > { %v1571_v30 = vadd.f32 %v1456_v11, %v8841_v51  ;;  %v1314_v58 = vpop.f32.mrf.mxu0 }
 0x1ad   : > { %v8966_v32 = vadd.f32 %v1314_v58, %v988_v55  ;;  %v6727_v23 = vpop.f32.mrf.mxu1  ;;  %v2916_v58 = vld [vmem:[%s11212_s5] sm:$0x3] }
 0x1ae   : > { %v1574_v15 = vadd.f32 %v6727_v23, %v8843_v13  ;;  %v6717_v9 = vpop.f32.mrf.mxu0  ;;  %7400 = vmatprep.subr.msk.bf16.mxu0 %vm649_vm0, %v2916_v58 }
 0x1af   : > { %v8970_v63 = vadd.f32 %v6717_v9, %v999_v50  ;;  %v1459_v4 = vpop.f32.mrf.mxu1 }
 0x1b0   : > { %v1317_v24 = vpop.f32.mrf.mxu0 }
 0x1b1   : > { %v8972_v27 = vadd.f32 %v1317_v24, %v991_v47  ;;  %v6730_v40 = vpop.f32.mrf.mxu1  ;;  %v11536_v24 = vld [vmem:[#allocation3_spill] sm:$0xff] }
 0x1b2   : > { %v1577_v51 = vadd.f32 %v6730_v40, %v8853_v25  ;;  %v6756_v41 = vpop.f32.mrf.mxu0 }
 0x1b3   : > { %v8975_v12 = vadd.f32 %v6756_v41, %v1569_v16  ;;  %v1472_v31 = vpop.f32.mrf.mxu1 }
 0x1b4   : > { %v1575_v59 = vadd.f32 %v1472_v31, %v8861_v60  ;;  %v1654_v55 = vpop.f32.mrf.mxu0  ;;  %v3215_v60 = vsel %vm649_vm0, %v2916_v58, 0 }
 0x1b5   : > { %v8978_v13 = vadd.f32 %v1654_v55, %v1567_v57  ;;  %v6731_v11 = vpop.f32.mrf.mxu1  ;;  %6971 = vmatpush3.bf16.msra.mxu0 %v3215_v60 }
 0x1b6   : > { %v1578_v52 = vadd.f32 %v6731_v11, %v8863_v43  ;;  %v6757_v22 = vpop.f32.mrf.mxu0 }
 0x1b7   : > { %v8985_v25 = vadd.f32 %v6757_v22, %v1570_v18  ;;  %v1475_v16 = vpop.f32.mrf.mxu1 }
 0x1b8   : > { %v1657_v50 = vpop.f32.mrf.mxu0  ;;  %6973 = vmatmul.mubr.msk.bf16.vlgmr.msra.gmra.mxu0 %vm600_vm1, %v11536_v24  ;;  %v1576_v24 = vadd.f32 %v1475_v16, %v8867_v0  ;;  %v11541_v16 = vld [vmem:[#allocation8_spill] sm:$0xff] }
 0x1b9   : > { %v8989_v57 = vadd.f32 %v1657_v50, %v1568_v14  ;;  %v6734_v23 = vpop.f32.mrf.mxu1  ;;  %6976 = vmatprep.mubr.msk.bf16.mxu0 %vm600_vm1, %v11537_v62 }
 0x1ba   : > { %v1581_v43 = vadd.f32 %v6734_v23, %v8878_v61  ;;  %v6760_v9 = vpop.f32.mrf.mxu0  ;;  %v1572_v61 = vadd.f32 %v1459_v4, %v8845_v17  ;;  %v11538_v23 = vld [vmem:[#allocation5_spill] sm:$0xff]  ;;  %v11539_v4 = vld [vmem:[#allocation6_spill] sm:$0xff] }
 0x1bb   : > { %v8992_v19 = vadd.f32 %v6760_v9, %v1573_v53  ;;  %v1488_v47 = vpop.f32.mrf.mxu1 }
 0x1bc   : > { %v1579_v8 = vadd.f32 %v1488_v47, %v8885_v10  ;;  %v1670_v18 = vpop.f32.mrf.mxu0 }
 0x1bd   : > { %v8999_v40 = vadd.f32 %v1670_v18, %v1571_v30  ;;  %v6735_v41 = vpop.f32.mrf.mxu1 }
 0x1be   : > { %v1582_v31 = vadd.f32 %v6735_v41, %v8887_v7  ;;  %v6761_v55 = vpop.f32.mrf.mxu0  ;;  %v7412_v7 = vld [vmem:[%s11211_s4 + $0x38] sm:$0xff]  }
 0x1bf   : > { %v9003_v53 = vadd.f32 %v6761_v55, %v1574_v15  ;;  %v1491_v11 = vpop.f32.mrf.mxu1  ;;  %6922 = vmatprep.subr.bf16.mxu1 %v7412_v7 }
 0x1c0   : > { %v1673_v22 = vpop.f32.mrf.mxu0  ;;  %6977 = vmatmul.mubr.msk.bf16.gmra.mxu0 %vm600_vm1, %v11538_v23  ;;  %6923 = vmatpush3.bf16.msra.mxu1 %v7412_v7  ;;  %v1580_v23 = vadd.f32 %v1491_v11, %v8892_v26  ;;  %v11543_v11 = vld [vmem:[#allocation91_spill] sm:$0xff] }
 0x1c1   : > { %v9005_v58 = vadd.f32 %v1673_v22, %v1572_v61  ;;  %v6738_v14 = vpop.f32.mrf.mxu1  ;;  %6980 = vmatprep.mubr.msk.bf16.mxu0 %vm600_vm1, %v11539_v4 }
 0x1c2   : > { %v1585_v10 = vadd.f32 %v6738_v14, %v8902_v38  ;;  %v6764_v60 = vpop.f32.mrf.mxu0 }
 0x1c3   : > { %v9008_v50 = vadd.f32 %v6764_v60, %v1577_v51  ;;  %v1504_v30 = vpop.f32.mrf.mxu1  ;;  %v11540_v60 = vld [vmem:[#allocation7_spill] sm:$0xff] }
 0x1c4   : > { %v1583_v17 = vadd.f32 %v1504_v30, %v8906_v2  ;;  %v1686_v15 = vpop.f32.mrf.mxu0 }
 0x1c5   : > { %v9018_v9 = vadd.f32 %v1686_v15, %v1575_v59  ;;  %v6739_v38 = vpop.f32.mrf.mxu1 }
 0x1c6   : > { %v1586_v51 = vadd.f32 %v6739_v38, %v8908_v34  ;;  %v6765_v47 = vpop.f32.mrf.mxu0  ;;  %v7413_v34 = vld [vmem:[%s11211_s4 + $0x30] sm:$0xff]  }
 0x1c7   : > { %v9022_v18 = vadd.f32 %v6765_v47, %v1578_v52  ;;  %v9024_v62 = vpop.f32.mrf.mxu1  ;;  %6924 = vmatprep.subr.bf16.mxu1 %v7413_v34 }
 0x1c8   : > { %v1689_v41 = vpop.f32.mrf.mxu0  ;;  %6981 = vmatmul.mubr.msk.bf16.gmra.mxu0 %vm600_vm1, %v11540_v60  ;;  %6925 = vmatpush3.bf16.msra.mxu1 %v7413_v34 }
 0x1c9   : > { %v9026_v2 = vadd.f32 %v1689_v41, %v1576_v24  ;;  %v6742_v55 = vpop.f32.mrf.mxu1  ;;  %6984 = vmatprep.mubr.msk.bf16.mxu0 %vm600_vm1, %v11541_v16 }
 0x1ca   : > { %v1589_v61 = vadd.f32 %v6742_v55, %v8918_v42  ;;  %v6768_v59 = vpop.f32.mrf.mxu0 }
 0x1cb   : > { %v9029_v22 = vadd.f32 %v6768_v59, %v1581_v43  ;;  %v1520_v14 = vpop.f32.mrf.mxu1  ;;  %v11542_v59 = vld [vmem:[#allocation9_spill] sm:$0xff] }
 0x1cc   : > { %v1587_v0 = vadd.f32 %v1520_v14, %v8925_v46  ;;  %v1702_v52 = vpop.f32.mrf.mxu0 }
 0x1cd   : > { %v9039_v30 = vadd.f32 %v1702_v52, %v1579_v8  ;;  %v6743_v42 = vpop.f32.mrf.mxu1 }
 0x1ce   : > { %v1590_v43 = vadd.f32 %v6743_v42, %v8927_v3  ;;  %v6769_v7 = vpop.f32.mrf.mxu0  ;;  %v7414_v3 = vld [vmem:[%s11211_s4 + $0x28] sm:$0xff]  }
 0x1cf   : > { %v9043_v15 = vadd.f32 %v6769_v7, %v1582_v31  ;;  %v9045_v4 = vpop.f32.mrf.mxu1  ;;  %6926 = vmatprep.subr.bf16.mxu1 %v7414_v3 }
 0x1d0   : > { %v1705_v38 = vpop.f32.mrf.mxu0  ;;  %6985 = vmatmul.mubr.msk.bf16.gmra.mxu0 %vm600_vm1, %v11542_v59  ;;  %6927 = vmatpush3.bf16.msra.mxu1 %v7414_v3  ;;  %v7418_v3 = vld [vmem:[%s11211_s4 + $0xb0] sm:$0xff]  }
 0x1d1   : > { %v9047_v46 = vadd.f32 %v1705_v38, %v1580_v23  ;;  %v6746_v47 = vpop.f32.mrf.mxu1  ;;  %6988 = vmatprep.mubr.msk.bf16.mxu0 %vm600_vm1, %v11543_v11 }
 0x1d2   : > { %v1593_v24 = vadd.f32 %v6746_v47, %v8938_v49  ;;  %v6772_v8 = vpop.f32.mrf.mxu0 }
 0x1d3   : > { %v9050_v41 = vadd.f32 %v6772_v8, %v1585_v10  ;;  %v1536_v55 = vpop.f32.mrf.mxu1 }
 0x1d4   : > { %v1591_v26 = vadd.f32 %v1536_v55, %v8946_v36  ;;  %v1718_v31 = vpop.f32.mrf.mxu0  ;;  %v7416_v36 = vld [vmem:[%s11211_s4 + $0xb8] sm:$0xff]  }
 0x1d5   : > { %v9060_v14 = vadd.f32 %v1718_v31, %v1583_v17  ;;  %v6747_v49 = vpop.f32.mrf.mxu1  ;;  %7052 = vmatprep.subr.bf16.mxu0 %v7416_v36  ;;  %v11545_v55 = vld [vmem:[#allocation93_spill] sm:$0xff] }
 0x1d6   : > { %v1594_v10 = vadd.f32 %v6747_v49, %v8949_v6  ;;  %v6773_v34 = vpop.f32.mrf.mxu0  ;;  %v7415_v6 = vld [vmem:[%s11211_s4 + $0x20] sm:$0xff]   ;;  %7053 = vmatpush3.bf16.msra.mxu0 %v7416_v36 }
 0x1d7   : > { %v9063_v60 = vadd.f32 %v6773_v34, %v1586_v51  ;;  %v9065_v52 = vpop.f32.mrf.mxu1  ;;  %v11544_v51 = vld [vmem:[#allocation92_spill] sm:$0xff]  ;;  %6928 = vmatprep.subr.bf16.mxu1 %v7415_v6  ;;  %7054 = vmatprep.subr.bf16.mxu0 %v7418_v3  ;;  %v7419_v34 = vld [vmem:[%s11211_s4 + $0xa8] sm:$0xff]  }
 0x1d8   : > { %v9067_v16 = vpop.f32.mrf.mxu0  ;;  %6989 = vmatmul.mubr.msk.bf16.gmra.mxu0 %vm600_vm1, %v11544_v51  ;;  %6929 = vmatpush3.bf16.msra.mxu1 %v7415_v6 }
 0x1d9   : > { %v6750_v42 = vpop.f32.mrf.mxu1  ;;  %6992 = vmatprep.mubr.msk.bf16.mxu0 %vm600_vm1, %v11545_v55  ;;  %v7421_v55 = vld [vmem:[%s11211_s4 + $0xa0] sm:$0xff]  }
 0x1da   : > { %v1597_v17 = vadd.f32 %v6750_v42, %v8960_v48  ;;  %v6776_v7 = vpop.f32.mrf.mxu0  ;;  %7055 = vmatpush3.bf16.msra.mxu0 %v7418_v3 }
 0x1db   : > { %v9073_v23 = vadd.f32 %v6776_v7, %v1589_v61  ;;  %v1552_v38 = vpop.f32.mrf.mxu1  ;;  %7056 = vmatprep.subr.bf16.mxu0 %v7419_v34 }
 0x1dc   : > { %v1595_v47 = vadd.f32 %v1552_v38, %v8966_v32  ;;  %v1734_v8 = vpop.f32.mrf.mxu0  ;;  %v11546_v38 = vld [vmem:[#allocation94_spill] sm:$0xff] }
 0x1dd   : > { %v9083_v48 = vadd.f32 %v1734_v8, %v1587_v0  ;;  %v6751_v61 = vpop.f32.mrf.mxu1  ;;  %v11547_v8 = vld [vmem:[#allocation19_spill] sm:$0xff] }
 0x1de   : > { %v1598_v59 = vadd.f32 %v6751_v61, %v8970_v63  ;;  %v6777_v31 = vpop.f32.mrf.mxu0  ;;  %7057 = vmatpush3.bf16.msra.mxu0 %v7419_v34  ;;  %v7422_v34 = vld [vmem:[%s11211_s4 + $0x98] sm:$0xff]  }
 0x1df   : > { %v9089_v11 = vadd.f32 %v6777_v31, %v1590_v43  ;;  %v9091_v32 = vpop.f32.mrf.mxu1  ;;  %v7417_v43 = vld [vmem:[%s11211_s4 + $0x18] sm:$0xff]   ;;  %7058 = vmatprep.subr.bf16.mxu0 %v7421_v55 }
 0x1e0   : > { %v9093_v49 = vpop.f32.mrf.mxu0  ;;  %6993 = vmatmul.mubr.msk.bf16.gmra.mxu0 %vm600_vm1, %v11546_v38  ;;  %6930 = vmatprep.subr.bf16.mxu1 %v7417_v43 }
 0x1e1   : > { %v6790_v0 = vpop.f32.mrf.mxu1  ;;  %6996 = vmatprep.mubr.msk.bf16.mxu0 %vm600_vm1, %v11547_v8  ;;  %6931 = vmatpush3.bf16.msra.mxu1 %v7417_v43  ;;  %v11548_v43 = vld [vmem:[#allocation22_spill] sm:$0xff] }
 0x1e2   : > { %v2005_v42 = vadd.f32 %v6790_v0, %v8975_v12  ;;  %v6780_v36 = vpop.f32.mrf.mxu0  ;;  %7059 = vmatpush3.bf16.msra.mxu0 %v7421_v55 }
 0x1e3   : > { %v9099_v7 = vadd.f32 %v6780_v36, %v1593_v24  ;;  %v1876_v63 = vpop.f32.mrf.mxu1  ;;  %7060 = vmatprep.subr.bf16.mxu0 %v7422_v34 }
 0x1e4   : > { %v2003_v6 = vadd.f32 %v1876_v63, %v8978_v13  ;;  %v1750_v51 = vpop.f32.mrf.mxu0 }
 0x1e5   : > { %v9109_v12 = vadd.f32 %v1750_v51, %v1591_v26  ;;  %v6791_v24 = vpop.f32.mrf.mxu1 }
 0x1e6   : > { %v2006_v61 = vadd.f32 %v6791_v24, %v8985_v25  ;;  %v6781_v3 = vpop.f32.mrf.mxu0  ;;  %7061 = vmatpush3.bf16.msra.mxu0 %v7422_v34  ;;  %v11549_v24 = vld [vmem:[#allocation23_spill] sm:$0xff] }
 0x1e7   : > { %v9115_v31 = vadd.f32 %v6781_v3, %v1594_v10  ;;  %v9117_v13 = vpop.f32.mrf.mxu1  ;;  %v7420_v10 = vld [vmem:[%s11211_s4 + $0x10] sm:$0xff]  }
 0x1e8   : > { %v9119_v0 = vpop.f32.mrf.mxu0  ;;  %6997 = vmatmul.mubr.msk.bf16.gmra.mxu0 %vm600_vm1, %v11548_v43  ;;  %6932 = vmatprep.subr.bf16.mxu1 %v7420_v10 }
 0x1e9   : > { %v6794_v26 = vpop.f32.mrf.mxu1  ;;  %7000 = vmatprep.mubr.msk.bf16.mxu0 %vm600_vm1, %v11549_v24  ;;  %6933 = vmatpush3.bf16.msra.mxu1 %v7420_v10 }
 0x1ea   : > { %v2009_v36 = vadd.f32 %v6794_v26, %v8992_v19  ;;  %v6784_v63 = vpop.f32.mrf.mxu0  ;;  %v7424_v26 = vld [vmem:[%s11211_s4 + $0x90] sm:$0xff]  }
 0x1eb   : > { %v9125_v38 = vadd.f32 %v6784_v63, %v1597_v17  ;;  %v1892_v25 = vpop.f32.mrf.mxu1  ;;  %7062 = vmatprep.subr.bf16.mxu0 %v7424_v26 }
 0x1ec   : > { %v2007_v51 = vadd.f32 %v1892_v25, %v8999_v40  ;;  %v1766_v8 = vpop.f32.mrf.mxu0  ;;  %7063 = vmatpush3.bf16.msra.mxu0 %v7424_v26 }
 0x1ed   : > { %v9135_v19 = vadd.f32 %v1766_v8, %v1595_v47  ;;  %v6795_v17 = vpop.f32.mrf.mxu1 }
 0x1ee   : > { %v2010_v55 = vadd.f32 %v6795_v17, %v9003_v53  ;;  %v6785_v3 = vpop.f32.mrf.mxu0  ;;  %v7425_v53 = vld [vmem:[%s11211_s4 + $0x88] sm:$0xff]  }
 0x1ef   : > { %v9141_v63 = vadd.f32 %v6785_v3, %v1598_v59  ;;  %v9143_v40 = vpop.f32.mrf.mxu1  ;;  %v7423_v17 = vld [vmem:[%s11211_s4 + $0x8] sm:$0xff]   ;;  %7064 = vmatprep.subr.bf16.mxu0 %v7425_v53 }
 0x1f0   : > { %v9145_v34 = vpop.f32.mrf.mxu0  ;;  %7001 = vmatmul.mubr.msk.bf16.gmra.mxu0 %vm600_vm1, %v8679_v44  ;;  %6934 = vmatprep.subr.bf16.mxu1 %v7423_v17  ;;  %v7427_v44 = vld [vmem:[%s11211_s4 + $0x80] sm:$0xff]  }
 0x1f1   : > { %11550 = vst [vmem:[#allocation58_spill] sm:$0xff] %v9141_v63  ;;  %v6798_v25 = vpop.f32.mrf.mxu1  ;;  %7065 = vmatpush3.bf16.msra.mxu0 %v7425_v53  ;;  %6935 = vmatpush3.bf16.msra.mxu1 %v7423_v17  ;;  %v7426_v53 = vld [vmem:[%s11211_s4] sm:$0xff]  }
 0x1f2   : > { %v2013_v47 = vadd.f32 %v6798_v25, %v9008_v50  ;;  %v6824_v43 = vpop.f32.mrf.mxu0  ;;  %7066 = vmatprep.subr.bf16.mxu0 %v7427_v44  ;;  %6936 = vmatprep.subr.bf16.mxu1 %v7426_v53 }
 0x1f3   : > { %v9151_v10 = vadd.f32 %v6824_v43, %v2005_v42  ;;  %v1908_v8 = vpop.f32.mrf.mxu1 }
 0x1f4   : > { %v2011_v59 = vadd.f32 %v1908_v8, %v9018_v9  ;;  %v2202_v24 = vpop.f32.mrf.mxu0 }
 0x1f5   : > { %v9159_v50 = vadd.f32 %v2202_v24, %v2003_v6  ;;  %v6799_v3 = vpop.f32.mrf.mxu1  ;;  %7067 = vmatpush3.bf16.msra.mxu0 %v7427_v44  ;;  %6937 = vmatpush3.bf16.msra.mxu1 %v7426_v53 }
 0x1f6   : > { %v2014_v26 = vadd.f32 %v6799_v3, %v9022_v18  ;;  %v6825_v42 = vpop.f32.mrf.mxu0 }
 0x1f7   : > { %v9165_v25 = vadd.f32 %v6825_v42, %v2006_v61  ;;  %v9167_v9 = vpop.f32.mrf.mxu1 }
 0x1f8   : > { %v9169_v43 = vpop.f32.mrf.mxu0 }
 0x1f9   : > { %v6802_v6 = vpop.f32.mrf.mxu1 }
 0x1fa   : > { %v2017_v18 = vadd.f32 %v6802_v6, %v9029_v22  ;;  %v6828_v8 = vpop.f32.mrf.mxu0  ;;  %v9188_v22 = vld [vmem:[%s11211_s4 + $0x78] sm:$0xff]  }
 0x1fb   : > { %v9175_v24 = vadd.f32 %v6828_v8, %v2009_v36  ;;  %v1924_v3 = vpop.f32.mrf.mxu1  ;;  %11551 = vst [vmem:[#allocation63_spill] sm:$0xff] %v9188_v22  ;;  %7004 = vmatprep.subr.bf16.mxu1 %v9188_v22 }
 0x1fc   : > { %v2015_v61 = vadd.f32 %v1924_v3, %v9039_v30  ;;  %v2218_v42 = vpop.f32.mrf.mxu0 }
 0x1fd   : > { %v9178_v17 = vadd.f32 %v2218_v42, %v2007_v51  ;;  %v6803_v5 = vpop.f32.mrf.mxu1 }
 0x1fe   : > { %v2018_v56 = vadd.f32 %v6803_v5, %v9043_v15  ;;  %v6829_v37 = vpop.f32.mrf.mxu0 }
 0x1ff   : > { %v9181_v29 = vadd.f32 %v6829_v37, %v2010_v55  ;;  %v9183_v44 = vpop.f32.mrf.mxu1 }
 0x200   : > { %v9190_v36 = vpop.f32.mrf.mxu0 }
 0x201   : > { %v6806_v30 = vpop.f32.mrf.mxu1 }
 0x202   : > { %v2021_v51 = vadd.f32 %v6806_v30, %v9050_v41  ;;  %v6832_v6 = vpop.f32.mrf.mxu0 }
 0x203   : > { %v9194_v53 = vadd.f32 %v6832_v6, %v2013_v47  ;;  %v1940_v5 = vpop.f32.mrf.mxu1 }
 0x204   : > { %v2019_v37 = vadd.f32 %v1940_v5, %v9060_v14  ;;  %v2234_v15 = vpop.f32.mrf.mxu0 }
 0x205   : > { %v9197_v55 = vadd.f32 %v2234_v15, %v2011_v59  ;;  %v6807_v8 = vpop.f32.mrf.mxu1 }
 0x206   : > { %v2022_v3 = vadd.f32 %v6807_v8, %v9063_v60  ;;  %v6833_v42 = vpop.f32.mrf.mxu0 }
 0x207   : > { %v9200_v39 = vadd.f32 %v6833_v42, %v2014_v26  ;;  %v9202_v28 = vpop.f32.mrf.mxu1 }
 0x208   : > { %v9204_v22 = vpop.f32.mrf.mxu0 }
 0x209   : > { %v6810_v41 = vpop.f32.mrf.mxu1 }
 0x20a   : > { %v2025_v47 = vadd.f32 %v6810_v41, %v9073_v23  ;;  %v6836_v30 = vpop.f32.mrf.mxu0 }
 0x20b   : > { %v9207_v6 = vadd.f32 %v6836_v30, %v2017_v18  ;;  %v1956_v14 = vpop.f32.mrf.mxu1 }
 0x20c   : > { %v2023_v59 = vadd.f32 %v1956_v14, %v9083_v48  ;;  %v2250_v5 = vpop.f32.mrf.mxu0 }
 0x20d   : > { %v9210_v15 = vadd.f32 %v2250_v5, %v2015_v61  ;;  %v6811_v60 = vpop.f32.mrf.mxu1 }
 0x20e   : > { %v2026_v26 = vadd.f32 %v6811_v60, %v9089_v11  ;;  %v6837_v8 = vpop.f32.mrf.mxu0 }
 0x20f   : > { %v9213_v42 = vadd.f32 %v6837_v8, %v2018_v56  ;;  %v9215_v20 = vpop.f32.mrf.mxu1 }
 0x210   : > { %v9217_v63 = vpop.f32.mrf.mxu0 }
 0x211   : > { %11552 = vst [vmem:[#allocation62_spill] sm:$0xff] %v9213_v42  ;;  %11553 = vst [vmem:[#allocation55_spill] sm:$0xff] %v9217_v63  ;;  %v6814_v23 = vpop.f32.mrf.mxu1 }
 0x212   : > { %v2029_v18 = vadd.f32 %v6814_v23, %v9099_v7  ;;  %v6840_v41 = vpop.f32.mrf.mxu0 }
 0x213   : > { %v9220_v30 = vadd.f32 %v6840_v41, %v2021_v51  ;;  %v1972_v48 = vpop.f32.mrf.mxu1 }
 0x214   : > { %v2027_v61 = vadd.f32 %v1972_v48, %v9109_v12  ;;  %v2266_v14 = vpop.f32.mrf.mxu0 }
 0x215   : > { %11554 = vst [vmem:[#allocation66_spill] sm:$0xff] %v9220_v30  ;;  %v9223_v5 = vadd.f32 %v2266_v14, %v2019_v37  ;;  %v6815_v11 = vpop.f32.mrf.mxu1 }
 0x216   : > { %v2030_v56 = vadd.f32 %v6815_v11, %v9115_v31  ;;  %v6841_v60 = vpop.f32.mrf.mxu0  ;;  %v9239_v31 = vld [vmem:[%s11211_s4 + $0x138] sm:$0xff]  }
 0x217   : > { %11555 = vst [vmem:[#allocation89_spill] sm:$0xff] %v9223_v5  ;;  %v9226_v8 = vadd.f32 %v6841_v60, %v2022_v3  ;;  %v9228_v42 = vpop.f32.mrf.mxu1  ;;  %11558 = vst [vmem:[#allocation2_spill] sm:$0xff] %v9239_v31  ;;  %7148 = vmatprep.subr.bf16.mxu0 %v9239_v31 }
 0x218   : > { %v9230_v63 = vpop.f32.mrf.mxu0 }
 0x219   : > { %11556 = vst [vmem:[#allocation90_spill] sm:$0xff] %v9226_v8  ;;  %v6818_v7 = vpop.f32.mrf.mxu1 }
 0x21a   : > { %v2033_v51 = vadd.f32 %v6818_v7, %v9125_v38  ;;  %v6844_v23 = vpop.f32.mrf.mxu0 }
 0x21b   : > { %v9233_v41 = vadd.f32 %v6844_v23, %v2025_v47  ;;  %v1988_v12 = vpop.f32.mrf.mxu1 }
 0x21c   : > { %v2031_v37 = vadd.f32 %v1988_v12, %v9135_v19  ;;  %v2282_v48 = vpop.f32.mrf.mxu0 }
 0x21d   : > { %11557 = vst [vmem:[#allocation14_spill] sm:$0xff] %v9233_v41  ;;  %v9241_v3 = vadd.f32 %v2282_v48, %v2023_v59  ;;  %v9243_v14 = vpop.f32.mrf.mxu1 }
 0x21e   : > { %v6845_v11 = vpop.f32.mrf.mxu0 }
 0x21f   : > { %11559 = vst [vmem:[#allocation18_spill] sm:$0xff] %v9241_v3  ;;  %v9246_v38 = vadd.f32 %v6845_v11, %v2026_v26  ;;  %v9248_v47 = vpop.f32.mrf.mxu1 }
 0x220   : > { %v9250_v60 = vpop.f32.mrf.mxu0 }
 0x221   : > { %11560 = vst [vmem:[#allocation59_spill] sm:$0xff] %v9246_v38  ;;  %v6858_v19 = vpop.f32.mrf.mxu1 }
 0x222   : > { %v2553_v7 = vadd.f32 %v6858_v19, %v9151_v10  ;;  %v6848_v23 = vpop.f32.mrf.mxu0 }
 0x223   : > { %v9253_v12 = vadd.f32 %v6848_v23, %v2029_v18  ;;  %v2424_v41 = vpop.f32.mrf.mxu1 }
 0x224   : > { %v2551_v59 = vadd.f32 %v2424_v41, %v9159_v50  ;;  %v2298_v48 = vpop.f32.mrf.mxu0 }
 0x225   : > { %v9256_v3 = vadd.f32 %v2298_v48, %v2027_v61  ;;  %v6859_v8 = vpop.f32.mrf.mxu1 }
 0x226   : > { %v2554_v26 = vadd.f32 %v6859_v8, %v9165_v25  ;;  %v6849_v11 = vpop.f32.mrf.mxu0 }
 0x227   : > { %v9259_v31 = vadd.f32 %v6849_v11, %v2030_v56  ;;  %v2427_v38 = vpop.f32.mrf.mxu1 }
 0x228   : > { %v9261_v5 = vpop.f32.mrf.mxu0 }
 0x229   : > { %11561 = vst [vmem:[#allocation3_spill] sm:$0xff] %v9259_v31  ;;  %v6862_v30 = vpop.f32.mrf.mxu1 }
 0x22a   : > { %v2557_v10 = vadd.f32 %v6862_v30, %v9175_v24  ;;  %v6852_v18 = vpop.f32.mrf.mxu0  ;;  %v11564_v24 = vld [vmem:[#allocation27_spill] sm:$0xff] }
 0x22b   : > { %v9264_v19 = vadd.f32 %v6852_v18, %v2033_v51  ;;  %v2440_v23 = vpop.f32.mrf.mxu1  ;;  %v943_v30 = vadd.f32 %v8865_v33, %v11564_v24  ;;  %v11565_v18 = vld [vmem:[#allocation26_spill] sm:$0xff] }
 0x22c   : > { %v2555_v50 = vadd.f32 %v2440_v23, %v9178_v17  ;;  %v2314_v61 = vpop.f32.mrf.mxu0 }
 0x22d   : > { %11562 = vst [vmem:[#allocation4_spill] sm:$0xff] %v9264_v19  ;;  %v9267_v41 = vadd.f32 %v2314_v61, %v2031_v37  ;;  %v6863_v48 = vpop.f32.mrf.mxu1  ;;  %v959_v37 = vadd.f32 %v8889_v45, %v11565_v18  ;;  %v9288_v61 = vld [vmem:[%s11210_s3] ss:$0 sm:$0xff] }
 0x22e   : > { %v9270_v25 = vadd.f32 %v6863_v48, %v9181_v29  ;;  %v9272_v56 = vpop.f32.mrf.mxu0  ;;  %v2004_v29 = vadd.f32 %v9117_v13, %v8989_v57 }
 0x22f   : > { %11563 = vst [vmem:[#allocation5_spill] sm:$0xff] %v9267_v41  ;;  %v2443_v8 = vpop.f32.mrf.mxu1  ;;  %v11566_v41 = vld [vmem:[#allocation30_spill] sm:$0xff]  ;;  %v1350_v45 = vadd.f32 %v8929_v35, %v959_v37 }
 0x230   : > { %v9274_v11 = vpop.f32.mrf.mxu0  ;;  %v975_v33 = vadd.f32 %v8910_v21, %v11566_v41  ;;  %v2330_v57 = vadd.f32 %v9169_v43, %v2004_v29 }
 0x231   : > { %v6866_v31 = vpop.f32.mrf.mxu1 }
 0x232   : > { %v9279_v51 = vadd.f32 %v6866_v31, %v9194_v53  ;;  %v6892_v17 = vpop.f32.mrf.mxu0  ;;  %v1346_v53 = vadd.f32 %v8912_v54, %v943_v30  ;;  %v2552_v41 = vadd.f32 %v2427_v38, %v2330_v57 }
 0x233   : > { %v2815_v23 = vadd.f32 %v6892_v17, %v2553_v7  ;;  %v2456_v48 = vpop.f32.mrf.mxu1  ;;  %v1354_v17 = vadd.f32 %v8951_v1, %v975_v33 }
 0x234   : > { %v9294_v31 = vadd.f32 %v2456_v48, %v9197_v55  ;;  %v2686_v24 = vpop.f32.mrf.mxu0  ;;  %v1584_v18 = vadd.f32 %v9024_v62, %v1346_v53  ;;  %v1588_v55 = vadd.f32 %v9045_v4, %v1350_v45  ;;  %v1596_v62 = vadd.f32 %v9091_v32, %v8972_v27 }
 0x235   : > { %v2813_v13 = vadd.f32 %v2686_v24, %v2551_v59  ;;  %v6867_v7 = vpop.f32.mrf.mxu1  ;;  %v2854_v19 = vadd.f32 %v9288_v61, %v2815_v23  ;;  %v1592_v35 = vadd.f32 %v9065_v52, %v1354_v17  ;;  %v2012_v27 = vadd.f32 %v9167_v9, %v9026_v2 }
 0x236   : > { %v9302_v21 = vadd.f32 %v6867_v7, %v9200_v39  ;;  %v6893_v54 = vpop.f32.mrf.mxu0  ;;  %v1798_v43 = vadd.f32 %v9067_v16, %v1584_v18  ;;  %v1802_v39 = vadd.f32 %v9093_v49, %v1588_v55  ;;  %v1810_v33 = vadd.f32 %v9145_v34, %v1596_v62  ;;  %v11573_v62 = vld [vmem:[#allocation58_spill] sm:$0xff]  ;;  %v7429_v55 = vld [vmem:[%s11211_s4 + $0x70] sm:$0xff]  }
 0x237   : > { %v2816_v30 = vadd.f32 %v6893_v54, %v2554_v26  ;;  %v9305_v48 = vpop.f32.mrf.mxu1  ;;  %v2852_v1 = vadd.f32 %v9288_v61, %v2813_v13  ;;  %v1806_v38 = vadd.f32 %v9119_v0, %v1592_v35  ;;  %v2008_v26 = vadd.f32 %v9143_v40, %v9005_v58 }
 0x238   : > { %v2689_v59 = vpop.f32.mrf.mxu0  ;;  %v9317_v52 = vmax.f32 %v2854_v19, 0.0  ;;  %v2016_v34 = vadd.f32 %v9183_v44, %v9047_v46  ;;  %v2020_v57 = vadd.f32 %v9202_v28, %v1798_v43  ;;  %v2338_v28 = vadd.f32 %v9204_v22, %v2012_v27 }
 0x239   : > { %v2855_v37 = vadd.f32 %v9288_v61, %v2816_v30  ;;  %v2814_v29 = vadd.f32 %v2689_v59, %v2552_v41  ;;  %v6870_v4 = vpop.f32.mrf.mxu1  ;;  %v2334_v0 = vadd.f32 %v9190_v36, %v2008_v26  ;;  %v9329_v24 = vmax.f32 %v2852_v1, 0.0  ;;  %v11571_v30 = vld [vmem:[#allocation55_spill] sm:$0xff] }
 0x23a   : > { %v9320_v16 = vadd.f32 %v6870_v4, %v9207_v6  ;;  %v6896_v23 = vpop.f32.mrf.mxu0  ;;  %v3678_v36 = vrot.slane %v9317_v52, 1  ;;  %v2342_v35 = vadd.f32 %v11571_v30, %v2016_v34  ;;  %v2028_v22 = vadd.f32 %v9228_v42, %v1806_v38 }
 0x23b   : > { %v9325_v32 = vmax.f32 %v2855_v37, 0.0  ;;  %v2853_v49 = vadd.f32 %v9288_v61, %v2814_v29  ;;  %v2472_v53 = vpop.f32.mrf.mxu1  ;;  %v2819_v58 = vadd.f32 %v6896_v23, %v2557_v10  ;;  %v2556_v13 = vadd.f32 %v2443_v8, %v2334_v0 }
 0x23c   : > { %v9332_v40 = vadd.f32 %v2472_v53, %v9210_v15  ;;  %v2702_v6 = vpop.f32.mrf.mxu0  ;;  %v2024_v8 = vadd.f32 %v9215_v20, %v1802_v39  ;;  %v11348_v18 = vrot.slane %v9329_v24, 1  ;;  %v9366_v20 = vadd.f32 %v9230_v63, %v2020_v57 }
 0x23d   : > { %v3679_v19 = vrot.slane %v9325_v32, 1  ;;  %v9337_v2 = vmax.f32 %v2853_v49, 0.0  ;;  %v2817_v9 = vadd.f32 %v2702_v6, %v2555_v50  ;;  %v6871_v45 = vpop.f32.mrf.mxu1  ;;  %v9343_v15 = vpack.c.bf16 %v9325_v32, %v9317_v52 }
 0x23e   : > { %v6897_v7 = vpop.f32.mrf.mxu0  ;;  %v2034_v39 = vadd.f32 %v9243_v14, %v11573_v62  ;;  %v2032_v4 = vadd.f32 %v9248_v47, %v1810_v33  ;;  %v2858_v26 = vadd.f32 %v9288_v61, %v2819_v58  ;;  %v9380_v63 = vadd.f32 %v9250_v60, %v2024_v8 }
 0x23f   : > { %11567 = vst [vmem:[#allocation6_spill] sm:$0xff] %v9343_v15  ;;  %v3677_v10 = vrot.slane %v9337_v2, 1  ;;  %v2856_v46 = vadd.f32 %v9288_v61, %v2817_v9  ;;  %v2820_v44 = vadd.f32 %v6897_v7, %v9270_v25  ;;  %v2475_v17 = vpop.f32.mrf.mxu1  ;;  %v9350_v50 = vpack.c.bf16 %v9337_v2, %v9329_v24  ;;  %v11577_v9 = vld [vmem:[#allocation73_spill] sm:$0xff] }
 0x240   : > { %v2705_v54 = vpop.f32.mrf.mxu0  ;;  %v9357_v41 = vsel %vm1010_vm3, %v3678_v36, %v3679_v19  ;;  %v9383_v14 = vadd.f32 %v9261_v5, %v2028_v22  ;;  %v9388_v0 = vadd.f32 %v9272_v56, %v2034_v39  ;;  %v9391_v47 = vadd.f32 %v9274_v11, %v2032_v4 }
 0x241   : > { %11568 = vst [vmem:[#allocation7_spill] sm:$0xff] %v9350_v50  ;;  %11570 = vst [vmem:[#allocation8_spill] sm:$0xff] %v9357_v41  ;;  %v2888_v43 = vmax.f32 %v2856_v46, 0.0  ;;  %v2818_v25 = vadd.f32 %v2705_v54, %v2556_v13  ;;  %v6874_v1 = vpop.f32.mrf.mxu1  ;;  %v9362_v59 = vsel %vm1010_vm3, %v3677_v10, %v3678_v36  ;;  %v9374_v29 = vsel %vm1010_vm3, %v11348_v18, %v3677_v10  ;;  %v11580_v36 = vld [vmem:[#allocation79_spill] sm:$0xff]  ;;  %v11582_v10 = vld [vmem:[#allocation76_spill] sm:$0xff] }
 0x242   : > { %11572 = vst [vmem:[#allocation9_spill] sm:$0xff] %v9362_v59  ;;  %v6900_v37 = vpop.f32.mrf.mxu0  ;;  %11574 = vst [vmem:[#allocation91_spill] sm:$0xff] %v9374_v29  ;;  %v2859_v27 = vadd.f32 %v9288_v61, %v2820_v44  ;;  %v2560_v6 = vadd.f32 %v9305_v48, %v2338_v28  ;;  %v9404_v56 = vmul.f32 %v9317_v52, %v11577_v9  ;;  %v9406_v11 = vmax.f32 %v2858_v26, 0.0  ;;  %v11586_v28 = vld [vmem:[#allocation62_spill] sm:$0xff]  ;;  %v11608_v50 = vld [vmem:[#allocation43_spill] sm:$0xff] }
 0x243   : > { %v3680_v23 = vrot.slane %v2888_v43, 1  ;;  %v2857_v42 = vadd.f32 %v9288_v61, %v2818_v25  ;;  %v2488_v38 = vpop.f32.mrf.mxu1  ;;  %v2823_v49 = vadd.f32 %v6900_v37, %v9279_v51  ;;  %v9413_v7 = vmul.f32 %v9329_v24, %v11580_v36  ;;  %v11590_v37 = vld [vmem:[#allocation74_spill] sm:$0xff] }
 0x244   : > { %v2718_v53 = vpop.f32.mrf.mxu0  ;;  %11578 = vst [vmem:[#allocation94_spill] sm:$0xff] %v9404_v56  ;;  %11579 = vst [vmem:[#allocation19_spill] sm:$0xff] %v9406_v11  ;;  %v9419_v46 = vmax.f32 %v2859_v27, 0.0  ;;  %v2566_v8 = vadd.f32 %v6871_v45, %v11586_v28  ;;  %v2564_v54 = vadd.f32 %v2475_v17, %v2342_v35  ;;  %v9438_v4 = vmul.f32 %v9337_v2, %v11590_v37  ;;  %v11592_v17 = vld [vmem:[#allocation66_spill] sm:$0xff] }
 0x245   : > { %v9393_v33 = vmax.f32 %v2857_v42, 0.0  ;;  %v2821_v58 = vadd.f32 %v2718_v53, %v9294_v31  ;;  %v6875_v60 = vpop.f32.mrf.mxu1  ;;  %v2862_v5 = vadd.f32 %v9288_v61, %v2823_v49  ;;  %v9400_v51 = vsel %vm1010_vm3, %v3679_v19, %v3680_v23  ;;  %11581 = vst [vmem:[#allocation22_spill] sm:$0xff] %v9413_v7  ;;  %v11594_v49 = vld [vmem:[#allocation75_spill] sm:$0xff] }
 0x246   : > { %v6901_v34 = vpop.f32.mrf.mxu0  ;;  %11576 = vst [vmem:[#allocation93_spill] sm:$0xff] %v9400_v51  ;;  %v9417_v19 = vmul.f32 %v9325_v32, %v11582_v10  ;;  %11584 = vst [vmem:[#allocation27_spill] sm:$0xff] %v9419_v46  ;;  %v2569_v35 = vadd.f32 %v6874_v1, %v11592_v17  ;;  %v9446_v53 = vmul.f32 %v2888_v43, %v11594_v49 }
 0x247   : > { %11575 = vst [vmem:[#allocation92_spill] sm:$0xff] %v9393_v33  ;;  %v11347_v57 = vrot.slane %v9393_v33, 1  ;;  %v2860_v31 = vadd.f32 %v9288_v61, %v2821_v58  ;;  %v2824_v13 = vadd.f32 %v6901_v34, %v9302_v21  ;;  %v2491_v48 = vpop.f32.mrf.mxu1  ;;  %v9422_v44 = vpack.c.bf16 %v9393_v33, %v2888_v43  ;;  %11591 = vst [vmem:[#allocation62_spill] sm:$0xff] %v9438_v4  ;;  %v11597_v34 = vld [vmem:[#allocation80_spill] sm:$0xff] }
 0x248   : > { %11583 = vst [vmem:[#allocation23_spill] sm:$0xff] %v9417_v19  ;;  %v2721_v52 = vpop.f32.mrf.mxu0  ;;  %v9426_v22 = vmax.f32 %v2862_v5, 0.0  ;;  %11595 = vst [vmem:[#allocation75_spill] sm:$0xff] %v9446_v53  ;;  %v11613_v33 = vld [vmem:[#allocation44_spill] sm:$0xff] }
 0x249   : > { %11585 = vst [vmem:[#allocation26_spill] sm:$0xff] %v9422_v44  ;;  %v2863_v21 = vadd.f32 %v9288_v61, %v2824_v13  ;;  %v2822_v30 = vadd.f32 %v2721_v52, %v2560_v6  ;;  %v6878_v25 = vpop.f32.mrf.mxu1  ;;  %v9428_v62 = vmax.f32 %v2860_v31, 0.0  ;;  %v9434_v32 = vsel %vm1010_vm3, %v3680_v23, %v11347_v57  ;;  %v11596_v23 = vld [vmem:[#allocation89_spill] sm:$0xff]  ;;  %v11632_v19 = vld [vmem:[#allocation20_spill] sm:$0xff] }
 0x24a   : > { %11587 = vst [vmem:[#allocation30_spill] sm:$0xff] %v9426_v22  ;;  %v6904_v39 = vpop.f32.mrf.mxu0  ;;  %11589 = vst [vmem:[#allocation58_spill] sm:$0xff] %v9434_v32  ;;  %v2567_v6 = vadd.f32 %v2488_v38, %v11596_v23  ;;  %v9453_v31 = vmul.f32 %v9419_v46, %v11597_v34  ;;  %v2951_v43 = vrot.slane %v9426_v22, 7  ;;  %v11619_v22 = vld [vmem:[#allocation4_spill] sm:$0xff]  ;;  %v11630_v34 = vld [vmem:[#allocation67_spill] sm:$0xff] }
 0x24b   : > { %11588 = vst [vmem:[#allocation55_spill] sm:$0xff] %v9428_v62  ;;  %v9442_v26 = vmax.f32 %v2863_v21, 0.0  ;;  %v2861_v42 = vadd.f32 %v9288_v61, %v2822_v30  ;;  %v2504_v27 = vpop.f32.mrf.mxu1  ;;  %v2827_v5 = vadd.f32 %v6904_v39, %v9320_v16  ;;  %v2949_v21 = vrot.slane %v9428_v62, 7  ;;  %v11600_v30 = vld [vmem:[#allocation90_spill] sm:$0xff] }
 0x24c   : > { %v2734_v2 = vpop.f32.mrf.mxu0  ;;  %11598 = vst [vmem:[#allocation89_spill] sm:$0xff] %v9453_v31  ;;  %v2570_v38 = vadd.f32 %v6875_v60, %v11600_v30 }
 0x24d   : > { %11593 = vst [vmem:[#allocation66_spill] sm:$0xff] %v9442_v26  ;;  %v2952_v1 = vrot.slane %v9442_v26, 7  ;;  %v9456_v13 = vmax.f32 %v2861_v42, 0.0  ;;  %v2825_v52 = vadd.f32 %v2734_v2, %v9332_v40  ;;  %v6879_v28 = vpop.f32.mrf.mxu1  ;;  %v2866_v16 = vadd.f32 %v9288_v61, %v2827_v5  ;;  %v11602_v2 = vld [vmem:[#allocation14_spill] sm:$0xff] }
 0x24e   : > { %v6905_v39 = vpop.f32.mrf.mxu0  ;;  %v2568_v40 = vadd.f32 %v2491_v48, %v9366_v20  ;;  %v2573_v58 = vadd.f32 %v6878_v25, %v11602_v2  ;;  %v11605_v48 = vld [vmem:[#allocation59_spill] sm:$0xff] }
 0x24f   : > { %11599 = vst [vmem:[#allocation95_spill] sm:$0xff] %v9456_v13  ;;  %v2950_v17 = vrot.slane %v9456_v13, 7  ;;  %v2864_v23 = vadd.f32 %v9288_v61, %v2825_v52  ;;  %v2828_v57 = vadd.f32 %v6905_v39, %v2566_v8  ;;  %v2507_v45 = vpop.f32.mrf.mxu1  ;;  %v9467_v42 = vpack.c.bf16 %v9456_v13, %v9428_v62  ;;  %v11604_v13 = vld [vmem:[#allocation18_spill] sm:$0xff] }
 0x250   : > { %v9471_v18 = vmax.f32 %v2866_v16, 0.0  ;;  %v2737_v60 = vpop.f32.mrf.mxu0  ;;  %v9475_v5 = vsel %vm396_vm2, %v2951_v43, %v2952_v1  ;;  %v2571_v20 = vadd.f32 %v2504_v27, %v11604_v13  ;;  %v9484_v25 = vadd.f32 %v6879_v28, %v11605_v48  ;;  %v11607_v48 = vld [vmem:[#allocation45_spill] sm:$0xff] }
 0x251   : > { %11601 = vst [vmem:[#allocation90_spill] sm:$0xff] %v9467_v42  ;;  %11603 = vst [vmem:[#allocation14_spill] sm:$0xff] %v9475_v5  ;;  %v2896_v30 = vmax.f32 %v2864_v23, 0.0  ;;  %v2867_v52 = vadd.f32 %v9288_v61, %v2828_v57  ;;  %v2826_v8 = vadd.f32 %v2737_v60, %v2564_v54  ;;  %v6882_v39 = vpop.f32.mrf.mxu1  ;;  %v9480_v9 = vsel %vm396_vm2, %v2949_v21, %v2950_v17 }
 0x252   : > { %v9487_v16 = vadd.f32 %v2507_v45, %v9380_v63  ;;  %v6908_v2 = vpop.f32.mrf.mxu0  ;;  %v9491_v23 = vsel %vm396_vm2, %v2950_v17, %v2951_v43  ;;  %v9498_v27 = vadd.f32 %v6882_v39, %v9253_v12  ;;  %v11606_v63 = vld [vmem:[#allocation46_spill] sm:$0xff]  ;;  %v2968_v43 = vmul.f32 %v9475_v5, %v11607_v48 }
 0x253   : > { %v2953_v54 = vrot.slane %v2896_v30, 7  ;;  %v9494_v60 = vmax.f32 %v2867_v52, 0.0  ;;  %v2865_v37 = vadd.f32 %v9288_v61, %v2826_v8  ;;  %v2520_v44 = vpop.f32.mrf.mxu1  ;;  %v2831_v13 = vadd.f32 %v6908_v2, %v2569_v35 }
 0x254   : > { %v2750_v28 = vpop.f32.mrf.mxu0  ;;  %v2967_v45 = vmul.f32 %v9491_v23, %v11606_v63  ;;  %v2966_v8 = vmul.f32 %v9480_v9, %v11608_v50  ;;  %v9510_v12 = vmul.f32 %v2896_v30, %v11594_v49  ;;  %v9518_v17 = vadd.f32 %v2520_v44, %v9256_v3 }
 0x255   : > { %v9505_v57 = vmax.f32 %v2865_v37, 0.0  ;;  %v2829_v52 = vadd.f32 %v2750_v28, %v2567_v6  ;;  %v6883_v15 = vpop.f32.mrf.mxu1  ;;  %v2870_v35 = vadd.f32 %v9288_v61, %v2831_v13  ;;  %v2960_v41 = vsel %vm396_vm2, %v2952_v1, %v2953_v54  ;;  %v11617_v13 = vld [vmem:[#allocation71_spill] sm:$0xff] }
 0x256   : > { %11609 = vst [vmem:[#allocation18_spill] sm:$0xff] %v9510_v12  ;;  %v6909_v39 = vpop.f32.mrf.mxu0  ;;  %v9513_v2 = vpack.c.bf16 %v2968_v43, %v2967_v45  ;;  %v11611_v32 = vrot.slane %v9494_v60, 7  ;;  %v11612_v45 = vld [vmem:[#allocation3_spill] sm:$0xff]  ;;  %v9599_v53 = vmul.f32 %v2960_v41, %v11630_v34 }
 0x257   : > { %v2868_v37 = vadd.f32 %v9288_v61, %v2829_v52  ;;  %v2832_v6 = vadd.f32 %v6909_v39, %v2570_v38  ;;  %v2523_v28 = vpop.f32.mrf.mxu1  ;;  %v9526_v51 = vmax.f32 %v2870_v35, 0.0  ;;  %v9529_v43 = vadd.f32 %v6883_v15, %v11612_v45  ;;  %v11625_v12 = vld [vmem:[#allocation47_spill] sm:$0xff] }
 0x258   : > { %11610 = vst [vmem:[#allocation59_spill] sm:$0xff] %v9513_v2  ;;  %v2964_v49 = vsel %vm396_vm2, %v11611_v32, %v2949_v21  ;;  %v2753_v1 = vpop.f32.mrf.mxu0  ;;  %v9536_v2 = vpack.c.bf16 %v9505_v57, %v2896_v30  ;;  %v11615_v32 = vld [vmem:[#allocation12_spill] sm:$0xff]  ;;  %v9541_v35 = vadd.f32 %v2523_v28, %v9383_v14  ;;  %v11620_v14 = vld [vmem:[#allocation5_spill] sm:$0xff]  ;;  %11631 = vst [vmem:[#allocation71_spill] sm:$0xff] %v9599_v53 }
 0x259   : > { %v2965_v3 = vmul.f32 %v2964_v49, %v11613_v33  ;;  %v9532_v44 = vmax.f32 %v2868_v37, 0.0  ;;  %v2871_v38 = vadd.f32 %v9288_v61, %v2832_v6  ;;  %v2830_v52 = vadd.f32 %v2753_v1, %v2568_v40  ;;  %v6886_v39 = vpop.f32.mrf.mxu1  ;;  %v11645_v53 = vld [vmem:[#allocation40_spill] sm:$0xff] }
 0x25a   : > { %11614 = vst [vmem:[#allocation46_spill] sm:$0xff] %v9536_v2  ;;  %v2944_v21 = vmul.f32 %v9526_v51, %v11615_v32  ;;  %v6912_v15 = vpop.f32.mrf.mxu0  ;;  %v9546_v59 = vmul.f32 %v2964_v49, %v11617_v13  ;;  %v3654_v37 = vrot.slane %v9526_v51, 1  ;;  %v9554_v42 = vadd.f32 %v6886_v39, %v11619_v22 }
 0x25b   : > { %v9543_v45 = vpack.c.bf16 %v2966_v8, %v2965_v3  ;;  %v9549_v6 = vmax.f32 %v2871_v38, 0.0  ;;  %v2869_v40 = vadd.f32 %v9288_v61, %v2830_v52  ;;  %v2835_v30 = vadd.f32 %v6912_v15, %v2573_v58  ;;  %v2536_v1 = vpop.f32.mrf.mxu1 }
 0x25c   : > { %11618 = vst [vmem:[#allocation43_spill] sm:$0xff] %v9546_v59  ;;  %v3652_v2 = vrot.slane %v9532_v44, 1  ;;  %v9557_v28 = vadd.f32 %v2536_v1, %v11620_v14  ;;  %v2766_v8 = vpop.f32.mrf.mxu0  ;;  %v11621_v49 = vrot.slane %v9505_v57, 7  ;;  %v11623_v1 = vld [vmem:[#allocation13_spill] sm:$0xff] }
 0x25d   : > { %11616 = vst [vmem:[#allocation45_spill] sm:$0xff] %v9543_v45  ;;  %v3655_v3 = vrot.slane %v9549_v6, 1  ;;  %v9566_v38 = vmax.f32 %v2869_v40, 0.0  ;;  %v2874_v58 = vadd.f32 %v9288_v61, %v2835_v30  ;;  %v2833_v52 = vadd.f32 %v2766_v8, %v2571_v20  ;;  %v6887_v15 = vpop.f32.mrf.mxu1  ;;  %v11624_v45 = vld [vmem:[#allocation48_spill] sm:$0xff]  ;;  %v11626_v8 = vld [vmem:[#allocation17_spill] sm:$0xff] }
 0x25e   : > { %v9563_v13 = vsel %vm396_vm2, %v2953_v54, %v11621_v49  ;;  %v9570_v22 = vadd.f32 %v6887_v15, %v9388_v0  ;;  %v6913_v39 = vpop.f32.mrf.mxu0  ;;  %v2942_v14 = vmul.f32 %v9532_v44, %v11623_v1  ;;  %v2969_v29 = vmul.f32 %v2960_v41, %v11624_v45  ;;  %v11627_v15 = vld [vmem:[#allocation10_spill] sm:$0xff] }
 0x25f   : > { %11622 = vst [vmem:[#allocation3_spill] sm:$0xff] %v9563_v13  ;;  %v2970_v54 = vmul.f32 %v9563_v13, %v11625_v12  ;;  %v3653_v49 = vrot.slane %v9566_v38, 1  ;;  %v9578_v40 = vmax.f32 %v2874_v58, 0.0  ;;  %v2872_v30 = vadd.f32 %v9288_v61, %v2833_v52  ;;  %v2539_v20 = vpop.f32.mrf.mxu1  ;;  %v11648_v13 = vld [vmem:[#allocation53_spill] sm:$0xff] }
 0x260   : > { %v2945_v0 = vmul.f32 %v9549_v6, %v11626_v8  ;;  %v2943_v26 = vmul.f32 %v9566_v38, %v11627_v15  ;;  %v2836_v10 = vadd.f32 %v6913_v39, %v9484_v25  ;;  %v2769_v62 = vpop.f32.mrf.mxu0  ;;  %v9588_v36 = vsel %vm1010_vm3, %v3654_v37, %v3655_v3 }
 0x261   : > { %11628 = vst [vmem:[#allocation44_spill] sm:$0xff] %v9588_v36  ;;  %v9590_v7 = vpack.c.bf16 %v2970_v54, %v2969_v29  ;;  %v9592_v58 = vmax.f32 %v2872_v30, 0.0  ;;  %v9595_v52 = vadd.f32 %v2539_v20, %v9391_v47  ;;  %v2834_v31 = vadd.f32 %v2769_v62, %v9487_v16  ;;  %v11635_v30 = vld [vmem:[#allocation38_spill] sm:$0xff] }
 0x262   : > { %v9603_v25 = vmul.f32 %v9578_v40, %v11632_v19  ;;  %v2875_v39 = vadd.f32 %v9288_v61, %v2836_v10  ;;  %v6916_v59 = vpop.f32.mrf.mxu0  ;;  %v9608_v29 = vsel %vm1010_vm3, %v3652_v2, %v3653_v49  ;;  %v9612_v47 = vsel %vm1010_vm3, %v3653_v49, %v3654_v37 }
 0x263   : > { %11629 = vst [vmem:[#allocation12_spill] sm:$0xff] %v9590_v7  ;;  %11633 = vst [vmem:[#allocation4_spill] sm:$0xff] %v9608_v29  ;;  %v3658_v62 = vrot.slane %v9578_v40, 1  ;;  %v3656_v41 = vrot.slane %v9592_v58, 1  ;;  %v2873_v34 = vadd.f32 %v9288_v61, %v2834_v31  ;;  %v2839_v16 = vadd.f32 %v6916_v59, %v9498_v27  ;;  %v11637_v7 = vld [vmem:[#allocation37_spill] sm:$0xff] }
 0x264   : > { %11634 = vst [vmem:[#allocation5_spill] sm:$0xff] %v9612_v47  ;;  %v9618_v54 = vmax.f32 %v2875_v39, 0.0  ;;  %v2782_v10 = vpop.f32.mrf.mxu0  ;;  %v9622_v20 = vmul.f32 %v9612_v47, %v11635_v30  ;;  %v9626_v56 = vmul.f32 %v9588_v36, %v11637_v7  ;;  %v9628_v37 = vpack.c.bf16 %v2944_v21, %v2943_v26  ;;  %v11640_v30 = vld [vmem:[#allocation35_spill] sm:$0xff] }
 0x265   : > { %v9630_v49 = vmax.f32 %v2873_v34, 0.0  ;;  %v2878_v4 = vadd.f32 %v9288_v61, %v2839_v16  ;;  %v2837_v31 = vadd.f32 %v2782_v10, %v9518_v17  ;;  %v3663_v59 = vsel %vm1010_vm3, %v3655_v3, %v3656_v41  ;;  %v11641_v7 = vld [vmem:[#allocation11_spill] sm:$0xff]  ;;  %v11642_v3 = vld [vmem:[#allocation16_spill] sm:$0xff] }
 0x266   : > { %11636 = vst [vmem:[#allocation13_spill] sm:$0xff] %v9622_v20  ;;  %11638 = vst [vmem:[#allocation48_spill] sm:$0xff] %v9626_v56  ;;  %v3659_v27 = vrot.slane %v9618_v54, 1  ;;  %v6917_v39 = vpop.f32.mrf.mxu0  ;;  %v9639_v47 = vmul.f32 %v9608_v29, %v11640_v30  ;;  %v2941_v26 = vmul.f32 %v9618_v54, %v11641_v7  ;;  %v2946_v10 = vmul.f32 %v9592_v58, %v11642_v3  ;;  %v11647_v20 = vld [vmem:[#allocation21_spill] sm:$0xff] }
 0x267   : > { %11639 = vst [vmem:[#allocation47_spill] sm:$0xff] %v9628_v37  ;;  %v3657_v34 = vrot.slane %v9630_v49, 1  ;;  %v9646_v16 = vmax.f32 %v2878_v4, 0.0  ;;  %v2876_v17 = vadd.f32 %v9288_v61, %v2837_v31  ;;  %v2840_v37 = vadd.f32 %v6917_v39, %v9529_v43 }
 0x268   : > { %v2785_v36 = vpop.f32.mrf.mxu0  ;;  %v9654_v30 = vsel %vm1010_vm3, %v3659_v27, %v3652_v2  ;;  %v9656_v29 = vpack.c.bf16 %v2942_v14, %v2941_v26  ;;  %v9659_v21 = vmul.f32 %v3663_v59, %v11645_v53  ;;  %v2947_v4 = vmul.f32 %v9630_v49, %v11647_v20  ;;  %v11650_v14 = vld [vmem:[#allocation36_spill] sm:$0xff] }
 0x269   : > { %11643 = vst [vmem:[#allocation17_spill] sm:$0xff] %v9654_v30  ;;  %v9663_v56 = vmax.f32 %v2876_v17, 0.0  ;;  %v2838_v31 = vadd.f32 %v2785_v36, %v9541_v35  ;;  %v9667_v5 = vmul.f32 %v3663_v59, %v11648_v13  ;;  %v2919_v43 = vrot.slane %v9646_v16, 7 }
 0x26a   : > { %11644 = vst [vmem:[#allocation10_spill] sm:$0xff] %v9656_v29  ;;  %11646 = vst [vmem:[#allocation67_spill] sm:$0xff] %v9659_v21  ;;  %v2879_v2 = vadd.f32 %v9288_v61, %v2840_v37  ;;  %v6920_v39 = vpop.f32.mrf.mxu0  ;;  %v9673_v26 = vmul.f32 %v9654_v30, %v11650_v14  ;;  %v9677_v53 = vsel %vm1010_vm3, %v3656_v41, %v3657_v34 }
 0x26b   : > { %11649 = vst [vmem:[#allocation20_spill] sm:$0xff] %v9667_v5  ;;  %v3381_v17 = vmul.f32 %v9646_v16, %v11615_v32  ;;  %v11385_v36 = vrot.slane %v9663_v56, 7  ;;  %v2877_v35 = vadd.f32 %v9288_v61, %v2838_v31  ;;  %v2843_v59 = vadd.f32 %v6920_v39, %v9554_v42  ;;  %v11651_v5 = vld [vmem:[#allocation39_spill] sm:$0xff] }
 0x26c   : > { %v9684_v13 = vmax.f32 %v2879_v2, 0.0  ;;  %v2798_v37 = vpop.f32.mrf.mxu0  ;;  %v9690_v29 = vmul.f32 %v9677_v53, %v11651_v5  ;;  %v9692_v41 = vpack.c.bf16 %v2946_v10, %v2945_v0  ;;  %v9700_v42 = vsel %vm1010_vm3, %v3658_v62, %v3659_v27 }
 0x26d   : > { %v9694_v30 = vmax.f32 %v2877_v35, 0.0  ;;  %v2882_v32 = vadd.f32 %v9288_v61, %v2843_v59  ;;  %v2841_v31 = vadd.f32 %v2798_v37, %v9557_v28  ;;  %11654 = vst [vmem:[#allocation35_spill] sm:$0xff] %v9700_v42  ;;  %v3379_v14 = vmul.f32 %v9663_v56, %v11623_v1 }
 0x26e   : > { %11652 = vst [vmem:[#allocation38_spill] sm:$0xff] %v9690_v29  ;;  %11653 = vst [vmem:[#allocation37_spill] sm:$0xff] %v9692_v41  ;;  %v2920_v2 = vrot.slane %v9684_v13, 7  ;;  %v6921_v39 = vpop.f32.mrf.mxu0  ;;  %v9709_v0 = vsel %vm1010_vm3, %v3657_v34, %v3658_v62  ;;  %v3382_v1 = vmul.f32 %v9684_v13, %v11626_v8  ;;  %v11656_v62 = vld [vmem:[#allocation42_spill] sm:$0xff] }
 0x26f   : > { %11655 = vst [vmem:[#allocation11_spill] sm:$0xff] %v9709_v0  ;;  %v2918_v10 = vrot.slane %v9694_v30, 7  ;;  %v3380_v28 = vmul.f32 %v9694_v30, %v11627_v15  ;;  %v9714_v27 = vmax.f32 %v2882_v32, 0.0  ;;  %v2880_v35 = vadd.f32 %v9288_v61, %v2841_v31  ;;  %v11658_v31 = vld [vmem:[#allocation41_spill] sm:$0xff] }
 0x270   : > { %v2844_v59 = vadd.f32 %v6921_v39, %v9570_v22  ;;  %v2801_v37 = vpop.f32.mrf.mxu0  ;;  %v2929_v5 = vsel %vm396_vm2, %v2919_v43, %v2920_v2  ;;  %v9724_v34 = vmul.f32 %v9709_v0, %v11656_v62  ;;  %v9738_v8 = vmul.f32 %v9700_v42, %v11658_v31  ;;  %v11659_v39 = vld [vmem:[#allocation29_spill] sm:$0xff]  ;;  %v11660_v62 = vld [vmem:[#allocation28_spill] sm:$0xff] }
 0x271   : > { %v2930_v15 = vsel %vm396_vm2, %v2918_v10, %v2919_v43  ;;  %v9732_v32 = vsel %vm396_vm2, %v11385_v36, %v2918_v10  ;;  %v9734_v22 = vpack.c.bf16 %v3381_v17, %v3380_v28  ;;  %v2923_v43 = vrot.slane %v9714_v27, 7 }
 0x272   : > { %v9742_v41 = vmul.f32 %v9732_v32, %v11659_v39  ;;  %v9745_v21 = vmul.f32 %v2930_v15, %v11660_v62  ;;  %v9748_v29 = vmax.f32 %v2880_v35, 0.0  ;;  %v3385_v10 = vmul.f32 %v9714_v27, %v11632_v19 }
 0x273   : > { %11657 = vst [vmem:[#allocation16_spill] sm:$0xff] %v9734_v22  ;;  %v2883_v17 = vadd.f32 %v9288_v61, %v2844_v59  ;;  %v2842_v28 = vadd.f32 %v2801_v37, %v9595_v52  ;;  %v3968_v31 = vmul.f32 %v2930_v15, %v11606_v63  ;;  %v3969_v35 = vmul.f32 %v2929_v5, %v11607_v48  ;;  %v11663_v37 = vld [vmem:[#allocation31_spill] sm:$0xff] }
 0x274   : > { %v2974_v39 = vpack.c.bf16 %v9745_v21, %v9742_v41  ;;  %v2921_v36 = vrot.slane %v9748_v29, 7  ;;  %v3383_v62 = vmul.f32 %v9748_v29, %v11642_v3  ;;  %v9765_v52 = vpack.c.bf16 %v9603_v25, %v2947_v4 }
 0x275   : > { %v2915_v42 = vmax.f32 %v2883_v17, 0.0  ;;  %v2881_v0 = vadd.f32 %v9288_v61, %v2842_v28  ;;  %v9771_v41 = vpack.c.bf16 %v3969_v35, %v3968_v31  ;;  %v9775_v3 = vpack.c.bf16 %v9494_v60, %v9471_v18  ;;  %v11664_v17 = vld [vmem:[#allocation32_spill] sm:$0xff] }
 0x276   : > { %v9767_v63 = vpack.c.bf16 %v3383_v62, %v3382_v1  ;;  %v2928_v21 = vsel %vm396_vm2, %v2920_v2, %v2921_v36  ;;  %v2937_v25 = vmul.f32 %v2929_v5, %v11664_v17  ;;  %v11665_v4 = vrot.slane %v9494_v60, 7 }
 0x277   : > { %11662 = vst [vmem:[#allocation21_spill] sm:$0xff] %v9771_v41  ;;  %v2924_v48 = vrot.slane %v2915_v42, 7  ;;  %v2913_v59 = vmax.f32 %v2881_v0, 0.0  ;;  %v3378_v61 = vmul.f32 %v2915_v42, %v11641_v7  ;;  %v2938_v15 = vmul.f32 %v2928_v21, %v11663_v37 }
 0x278   : > { %11661 = vst [vmem:[#allocation40_spill] sm:$0xff] %v9767_v63  ;;  %v11666_v1 = vrot.slane %v9471_v18, 7  ;;  %v11668_v31 = vrot.slane %v9505_v57, 7  ;;  %v11669_v7 = vrot.slane %v9329_v24, 1  ;;  %v11670_v5 = vrot.slane %v9419_v46, 1  ;;  %v11673_v24 = vld [vmem:[#allocation25_spill] sm:$0xff] }
 0x279   : > { %v2922_v35 = vrot.slane %v2913_v59, 7  ;;  %v3384_v37 = vmul.f32 %v2913_v59, %v11647_v20  ;;  %v9805_v17 = vpack.c.bf16 %v3379_v14, %v3378_v61  ;;  %v2975_v19 = vpack.c.bf16 %v2938_v15, %v2937_v25  ;;  %v11676_v61 = vld [vmem:[#allocation24_spill] sm:$0xff]  ;;  %v11678_v46 = vld [vmem:[#allocation33_spill] sm:$0xff] }
 0x27a   : > { %v9786_v2 = vsel %vm396_vm2, %v11666_v1, %v11665_v4  ;;  %v11667_v28 = vmov %v11666_v1  ;;  %v9802_v62 = vsel %vm1010_vm3, %v11670_v5, %v11669_v7  ;;  %v2925_v4 = vsel %vm396_vm2, %v2923_v43, %v2924_v48  ;;  %v7434_v7 = vld [vmem:[%s11211_s4 + $0x130] sm:$0xff]  }
 0x27b   : > { %v9794_v0 = vsel %vm396_vm2, %v11668_v31, %v11667_v28  ;;  %11671 = vst [vmem:[#allocation36_spill] sm:$0xff] %v9805_v17  ;;  %v11672_v1 = vrot.slane %v9663_v56, 7  ;;  %v2933_v31 = vmul.f32 %v2925_v4, %v11673_v24  ;;  %v11674_v20 = vrot.slane %v9406_v11, 1  ;;  %7068 = vmatprep.mubr.bf16.mxu0 %v9805_v17 }
 0x27c   : > { %v2926_v15 = vsel %vm396_vm2, %v2922_v35, %v2923_v43  ;;  %v2927_v25 = vsel %vm396_vm2, %v2921_v36, %v2922_v35  ;;  %7069 = vmatmul.mubr.bf16.vlgmr.msra.gmra.mxu0 %v9734_v22  ;;  %v11682_v36 = vld [vmem:[#allocation61_spill] sm:$0xff]  ;;  %v11683_v22 = vld [vmem:[#allocation60_spill] sm:$0xff] }
 0x27d   : > { %v2932_v28 = vsel %vm396_vm2, %v2924_v48, %v11672_v1  ;;  %v9823_v14 = vsel %vm1010_vm3, %v11674_v20, %v11670_v5  ;;  %v9827_v48 = vpack.c.bf16 %v3385_v10, %v3384_v37  ;;  %v11677_v1 = vld [vmem:[#allocation34_spill] sm:$0xff]  ;;  %v9838_v5 = vmul.f32 %v2926_v15, %v11678_v46  ;;  %7072 = vmatprep.mubr.bf16.mxu0 %v9767_v63 }
 0x27e   : > { %11675 = vst [vmem:[#allocation39_spill] sm:$0xff] %v9823_v14  ;;  %v2934_v41 = vmul.f32 %v2932_v28, %v11676_v61  ;;  %v9835_v24 = vmul.f32 %v2927_v25, %v11677_v1  ;;  %v11679_v20 = vld [vmem:[#allocation50_spill] sm:$0xff]  ;;  %v11680_v61 = vld [vmem:[#allocation49_spill] sm:$0xff]  ;;  %v3698_v35 = vmul.f32 %v9823_v14, %v11682_v36  ;;  %v3699_v1 = vmul.f32 %v9802_v62, %v11683_v22  ;;  %v11730_v14 = vld [vmem:[#allocation67_spill] sm:$0xff] }
 0x27f   : > { %v2971_v17 = vmul.f32 %v9794_v0, %v11679_v20  ;;  %v2972_v10 = vmul.f32 %v9786_v2, %v11680_v61  ;;  %v11681_v37 = vld [vmem:[#allocation2_spill] sm:$0xff]  ;;  %v3973_v46 = vmul.f32 %v2925_v4, %v11680_v61  ;;  %v9869_v61 = vpack.c.bf16 %v9549_v6, %v9526_v51 }
 0x280   : > { %v2973_v43 = vpack.c.bf16 %v2934_v41, %v2933_v31  ;;  %7149 = vmatpush3.bf16.msra.mxu0 %v11681_v37  ;;  %v2976_v11 = vpack.c.bf16 %v9838_v5, %v9835_v24  ;;  %v9860_v41 = vpack.c.bf16 %v9566_v38, %v9532_v44  ;;  %v7435_v31 = vld [vmem:[%s11211_s4 + $0x128] sm:$0xff]   ;;  %v9865_v4 = vpack.c.bf16 %v3699_v1, %v3698_v35  ;;  %v11696_v37 = vld [vmem:[#allocation94_spill] sm:$0xff] }
 0x281   : > { %7150 = vmatprep.subr.bf16.mxu0 %v7434_v7  ;;  %v9856_v63 = vpack.c.bf16 %v2972_v10, %v2971_v17  ;;  %v9873_v24 = vpack.c.bf16 %v9630_v49, %v9592_v58  ;;  %v9877_v17 = vpack.c.bf16 %v9618_v54, %v9578_v40  ;;  %v9881_v44 = vpack.c.bf16 %v9694_v30, %v9663_v56  ;;  %v11684_v58 = vld [vmem:[#allocation63_spill] sm:$0xff] }
 0x282   : > { %6938 = vmatprep.mubr.bf16.mxu1 %v2973_v43  ;;  %v9885_v38 = vpack.c.bf16 %v9684_v13, %v9646_v16  ;;  %v9888_v51 = vpack.c.bf16 %v2913_v59, %v9748_v29  ;;  %v9891_v6 = vpack.c.bf16 %v2915_v42, %v9714_v27  ;;  %v3966_v40 = vmul.f32 %v2932_v28, %v11613_v33  ;;  %v7430_v13 = vld [vmem:[%s11211_s4 + $0x68] sm:$0xff]   ;;  %v11685_v16 = vld [vmem:[#allocation65_spill] sm:$0xff]  ;;  %v11687_v27 = vld [vmem:[#allocation68_spill] sm:$0xff] }
 0x283   : > { %6939 = vmatmul.mubr.bf16.vlgmr.msra.gmra.mxu1 %v2974_v39  ;;  %v3967_v54 = vmul.f32 %v9732_v32, %v11608_v50  ;;  %v3970_v56 = vmul.f32 %v2928_v21, %v11624_v45  ;;  %v3971_v29 = vmul.f32 %v2927_v25, %v11625_v12  ;;  %v3972_v49 = vmul.f32 %v2926_v15, %v11679_v20  ;;  %v7437_v50 = vld [vmem:[%s11211_s4 + $0x120] sm:$0xff]   ;;  %v11686_v45 = vld [vmem:[#allocation64_spill] sm:$0xff]  ;;  %v11691_v28 = vld [vmem:[#allocation69_spill] sm:$0xff] }
 0x284   : > { %7005 = vmatpush3.bf16.msra.mxu1 %v11684_v58  ;;  %6942 = vmatprep.mubr.bf16.mxu1 %v2975_v19  ;;  %v9905_v30 = vmul.f32 %v9480_v9, %v11685_v16  ;;  %v9914_v42 = vmul.f32 %v9491_v23, %v11686_v45  ;;  %v11688_v32 = vld [vmem:[#allocation14_spill] sm:$0xff]  ;;  %v11690_v19 = vld [vmem:[#allocation3_spill] sm:$0xff]  ;;  %v11692_v23 = vld [vmem:[#allocation72_spill] sm:$0xff]  ;;  %v11693_v25 = vpack.c.bf16 %v9639_v47, %v9673_v26 }
 0x285   : > { %7006 = vmatprep.subr.bf16.mxu1 %v7429_v55  ;;  %7151 = vmatpush3.bf16.msra.mxu0 %v7434_v7  ;;  %v9910_v33 = vpack.c.bf16 %v3967_v54, %v3966_v40  ;;  %v9918_v12 = vmul.f32 %v11688_v32, %v11687_v27  ;;  %v11689_v39 = vld [vmem:[#allocation70_spill] sm:$0xff]  ;;  %v9925_v9 = vpack.c.bf16 %v3971_v29, %v3970_v56  ;;  %v11694_v20 = vld [vmem:[#allocation71_spill] sm:$0xff]  ;;  %v11700_v58 = vld [vmem:[#allocation80_spill] sm:$0xff] }
 0x286   : > { %7152 = vmatprep.subr.bf16.mxu0 %v7435_v31  ;;  %v9922_v21 = vmul.f32 %v11690_v19, %v11689_v39  ;;  %7073 = vmatmul.mubr.bf16.gmra.mxu0 %v9827_v48  ;;  %v9927_v59 = vpack.c.bf16 %v3973_v46, %v3972_v49  ;;  %v9931_v7 = vmul.f32 %v9794_v0, %v11691_v28  ;;  %v11695_v43 = vld [vmem:[#allocation62_spill] sm:$0xff]  ;;  %v11698_v0 = vld [vmem:[#allocation23_spill] sm:$0xff]  ;;  %v11701_v54 = vld [vmem:[#allocation17_spill] sm:$0xff] }
 0x287   : > { %v9935_v15 = vmul.f32 %v9786_v2, %v11692_v23  ;;  %7076 = vmatprep.mubr.bf16.mxu0 %v11693_v25  ;;  %v9946_v35 = vpack.c.bf16 %v11696_v37, %v11695_v43  ;;  %v7431_v2 = vld [vmem:[%s11211_s4 + $0x60] sm:$0xff]   ;;  %v11699_v1 = vld [vmem:[#allocation75_spill] sm:$0xff]  ;;  %v5060_v40 = vmul.f32 %v9494_v60, %v11700_v58  ;;  %v4509_v56 = vmul.f32 %v11701_v54, %v11683_v22  ;;  %v11702_v29 = vld [vmem:[#allocation89_spill] sm:$0xff] }
 0x288   : > { %7007 = vmatpush3.bf16.msra.mxu1 %v7429_v55  ;;  %v11697_v55 = vld [vmem:[#allocation43_spill] sm:$0xff]  ;;  %v9957_v46 = vpack.c.bf16 %v11699_v1, %v11698_v0  ;;  %v11703_v49 = vld [vmem:[#allocation22_spill] sm:$0xff]  ;;  %v11704_v45 = vld [vmem:[#allocation52_spill] sm:$0xff] }
 0x289   : > { %7008 = vmatprep.subr.bf16.mxu1 %v7430_v13  ;;  %7153 = vmatpush3.bf16.msra.mxu0 %v7435_v31  ;;  %v7438_v31 = vld [vmem:[%s11211_s4 + $0x118] sm:$0xff]   ;;  %v9968_v16 = vpack.c.bf16 %v11703_v49, %v11702_v29  ;;  %v11705_v27 = vld [vmem:[#allocation4_spill] sm:$0xff]  ;;  %v11706_v39 = vld [vmem:[#allocation51_spill] sm:$0xff] }
 0x28a   : > { %7154 = vmatprep.subr.bf16.mxu0 %v7437_v50  ;;  %v4502_v32 = vmul.f32 %v11705_v27, %v11704_v45  ;;  %v11707_v19 = vld [vmem:[#allocation5_spill] sm:$0xff]  ;;  %v11708_v60 = vld [vmem:[#allocation54_spill] sm:$0xff]  ;;  %v11709_v23 = vld [vmem:[#allocation44_spill] sm:$0xff] }
 0x28b   : > { %6943 = vmatmul.mubr.bf16.gmra.mxu1 %v2976_v11  ;;  %v4503_v28 = vmul.f32 %v11707_v19, %v11706_v39  ;;  %v4504_v25 = vmul.f32 %v11709_v23, %v11708_v60  ;;  %v11710_v22 = vld [vmem:[#allocation57_spill] sm:$0xff]  ;;  %v11711_v37 = vld [vmem:[#allocation56_spill] sm:$0xff]  ;;  %v11712_v0 = vld [vmem:[#allocation11_spill] sm:$0xff] }
 0x28c   : > { %v4506_v43 = vmul.f32 %v9677_v53, %v11710_v22  ;;  %v4507_v1 = vmul.f32 %v11712_v0, %v11711_v37  ;;  %v11713_v58 = vld [vmem:[#allocation79_spill] sm:$0xff]  ;;  %v11715_v49 = vld [vmem:[#allocation76_spill] sm:$0xff]  ;;  %v11716_v26 = vld [vmem:[#allocation66_spill] sm:$0xff]  ;;  %7009 = vmatpush3.bf16.msra.mxu1 %v7430_v13 }
 0x28d   : > { %v11714_v54 = vld [vmem:[#allocation55_spill] sm:$0xff]  ;;  %v5056_v47 = vmul.f32 %v11716_v26, %v11715_v49  ;;  %v11717_v27 = vld [vmem:[#allocation10_spill] sm:$0xff]  ;;  %7010 = vmatprep.subr.bf16.mxu1 %v7431_v2  ;;  %v7433_v53 = vld [vmem:[%s11211_s4 + $0x58] sm:$0xff]   ;;  %7155 = vmatpush3.bf16.msra.mxu0 %v7437_v50  ;;  %v9990_v23 = vpack.c.bf16 %v4503_v28, %v4502_v32 }
 0x28e   : > { %v5061_v29 = vmul.f32 %v11714_v54, %v11713_v58  ;;  %6946 = vmatprep.mubr.bf16.mxu1 %v11717_v27  ;;  %v11718_v11 = vld [vmem:[#allocation35_spill] sm:$0xff]  ;;  %v11719_v0 = vld [vmem:[#allocation20_spill] sm:$0xff]  ;;  %v9995_v58 = vpack.c.bf16 %v4507_v1, %v4506_v43  ;;  %7156 = vmatprep.subr.bf16.mxu0 %v7438_v31  ;;  %v11725_v28 = vld [vmem:[#allocation13_spill] sm:$0xff] }
 0x28f   : > { %v4508_v19 = vmul.f32 %v11718_v11, %v11682_v36  ;;  %v9993_v10 = vpack.c.bf16 %v11719_v0, %v4504_v25  ;;  %v7440_v13 = vld [vmem:[%s11211_s4 + $0x110] sm:$0xff]   ;;  %v11721_v36 = vld [vmem:[#allocation18_spill] sm:$0xff]  ;;  %v11727_v25 = vld [vmem:[#allocation77_spill] sm:$0xff] }
 0x290   : > { %11720 = vst [vmem:[#allocation42_spill] sm:$0xff] %v9995_v58  ;;  %v10003_v49 = vpack.c.bf16 %v11721_v36, %v5056_v47  ;;  %v11723_v11 = vld [vmem:[#allocation78_spill] sm:$0xff]  ;;  %v11724_v32 = vld [vmem:[#allocation48_spill] sm:$0xff]  ;;  %v5059_v43 = vmul.f32 %v9471_v18, %v11727_v25  ;;  %v10012_v1 = vpack.c.bf16 %v5061_v29, %v5060_v40  ;;  %7011 = vmatpush3.bf16.msra.mxu1 %v7431_v2  ;;  %v7441_v18 = vld [vmem:[%s11211_s4 + $0x108] sm:$0xff]  }
 0x291   : > { %v10000_v54 = vpack.c.bf16 %v4509_v56, %v4508_v19  ;;  %v5058_v50 = vmul.f32 %v9505_v57, %v11723_v11  ;;  %v11726_v5 = vpack.c.bf16 %v11724_v32, %v11725_v28  ;;  %v11729_v0 = vld [vmem:[#allocation38_spill] sm:$0xff]  ;;  %7012 = vmatprep.subr.bf16.mxu1 %v7433_v53  ;;  %v7436_v47 = vld [vmem:[%s11211_s4 + $0x50] sm:$0xff]   ;;  %7157 = vmatpush3.bf16.msra.mxu0 %v7438_v31  ;;  %v11733_v56 = vld [vmem:[#allocation87_spill] sm:$0xff] }
 0x292   : > { %11722 = vst [vmem:[#allocation41_spill] sm:$0xff] %v10003_v49  ;;  %11728 = vst [vmem:[#allocation29_spill] sm:$0xff] %v10012_v1  ;;  %v11731_v58 = vpack.c.bf16 %v11729_v0, %v11730_v14  ;;  %7158 = vmatprep.subr.bf16.mxu0 %v7440_v13  ;;  %v11736_v14 = vld [vmem:[#allocation88_spill] sm:$0xff]  ;;  %v11738_v40 = vld [vmem:[#allocation47_spill] sm:$0xff]  ;;  %v11740_v36 = vpack.c.bf16 %v9738_v8, %v9724_v34 }
 0x293   : > { %7077 = vmatmul.mubr.bf16.gmra.mxu0 %v11726_v5  ;;  %v10020_v57 = vpack.c.bf16 %v5059_v43, %v5058_v50  ;;  %v11734_v5 = vld [vmem:[#allocation91_spill] sm:$0xff]  ;;  %v10031_v2 = vmul.f32 %v9802_v62, %v11736_v14  ;;  %6947 = vmatmul.mubr.bf16.gmra.mxu1 %v11738_v40  ;;  %v11739_v29 = vld [vmem:[#allocation37_spill] sm:$0xff]  ;;  %v7443_v62 = vld [vmem:[%s11211_s4 + $0x100] sm:$0xff]  }
 0x294   : > { %7080 = vmatprep.mubr.bf16.mxu0 %v11731_v58  ;;  %v10024_v19 = vmul.f32 %v11734_v5, %v11733_v56  ;;  %6950 = vmatprep.mubr.bf16.mxu1 %v11739_v29  ;;  %v7439_v58 = vld [vmem:[%s11211_s4 + $0x48] sm:$0xff]   ;;  %v11741_v50 = vld [vmem:[#allocation90_spill] sm:$0xff]  ;;  %v11742_v32 = vld [vmem:[#allocation45_spill] sm:$0xff]  ;;  %v3692_v0 = vmul.f32 %v11734_v5, %v11704_v45 }
 0x295   : > { %11732 = vst [vmem:[#allocation28_spill] sm:$0xff] %v10020_v57  ;;  %11737 = vst [vmem:[#allocation32_spill] sm:$0xff] %v10031_v2  ;;  %7013 = vmatpush3.bf16.msra.mxu1 %v7433_v53  ;;  %7159 = vmatpush3.bf16.msra.mxu0 %v7440_v13  ;;  %v7442_v53 = vld [vmem:[%s11211_s4 + $0x40] sm:$0xff]   ;;  %v7448_v13 = vld [vmem:[%s11211_s4 + $0x1b8] sm:$0xff]  }
 0x296   : > { %11735 = vst [vmem:[#allocation31_spill] sm:$0xff] %v10024_v19  ;;  %7014 = vmatprep.subr.bf16.mxu1 %v7436_v47  ;;  %7160 = vmatprep.subr.bf16.mxu0 %v7441_v18  ;;  %v11743_v34 = vld [vmem:[#allocation30_spill] sm:$0xff]  ;;  %v7444_v28 = vld [vmem:[%s11211_s4 + $0xf8] sm:$0xff]   ;;  %v11746_v56 = vld [vmem:[#allocation59_spill] sm:$0xff] }
 0x297   : > { %v10057_v8 = vpack.c.bf16 %v11716_v26, %v11743_v34  ;;  %v11744_v43 = vld [vmem:[#allocation46_spill] sm:$0xff]  ;;  %v11753_v45 = vld [vmem:[#allocation53_spill] sm:$0xff]  ;;  %v11757_v57 = vld [vmem:[#allocation7_spill] sm:$0xff] }
 0x298   : > { %v11755_v19 = vld [vmem:[#allocation58_spill] sm:$0xff] }
 0x299   : > { %7015 = vmatpush3.bf16.msra.mxu1 %v7436_v47  ;;  %7161 = vmatpush3.bf16.msra.mxu0 %v7441_v18  ;;  %v11745_v47 = vld [vmem:[#allocation9_spill] sm:$0xff]  ;;  %v11747_v18 = vld [vmem:[#allocation12_spill] sm:$0xff]  ;;  %v3696_v1 = vmul.f32 %v11755_v19, %v11710_v22  ;;  %v11759_v22 = vld [vmem:[#allocation26_spill] sm:$0xff] }
 0x29a   : > { %7016 = vmatprep.subr.bf16.mxu1 %v7439_v58  ;;  %7162 = vmatprep.subr.bf16.mxu0 %v7443_v62  ;;  %v3693_v26 = vmul.f32 %v11745_v47, %v11706_v39  ;;  %v11754_v39 = vld [vmem:[#allocation93_spill] sm:$0xff] }
 0x29b   : > { %7081 = vmatmul.mubr.bf16.gmra.mxu0 %v11740_v36  ;;  %6951 = vmatmul.mubr.bf16.gmra.mxu1 %v9765_v52  ;;  %v11750_v36 = vld [vmem:[#allocation92_spill] sm:$0xff]  ;;  %v3695_v5 = vmul.f32 %v11754_v39, %v11753_v45 }
 0x29c   : > { %7084 = vmatprep.mubr.bf16.mxu0 %v11741_v50  ;;  %6954 = vmatprep.mubr.bf16.mxu1 %v11742_v32  ;;  %v10070_v14 = vpack.c.bf16 %v3693_v26, %v3692_v0  ;;  %v11751_v31 = vrot.slane %v11750_v36, 1  ;;  %v11756_v26 = vld [vmem:[#allocation8_spill] sm:$0xff] }
 0x29d   : > { %7017 = vmatpush3.bf16.msra.mxu1 %v7439_v58  ;;  %7163 = vmatpush3.bf16.msra.mxu0 %v7443_v62  ;;  %v11748_v58 = vld [vmem:[#allocation19_spill] sm:$0xff]  ;;  %v3694_v47 = vmul.f32 %v11756_v26, %v11708_v60  ;;  %v7445_v45 = vld [vmem:[%s11211_s4 + $0xf0] sm:$0xff]  }
 0x29e   : > { %7018 = vmatprep.subr.bf16.mxu1 %v7442_v53  ;;  %7244 = vmatprep.subr.bf16.mxu0 %v7448_v13  ;;  %v11749_v62 = vrot.slane %v11748_v58, 1  ;;  %v11760_v60 = vld [vmem:[#allocation27_spill] sm:$0xff] }
 0x2a0   : > { %v10079_v2 = vsel %vm1010_vm3, %v11751_v31, %v11749_v62  ;;  %v10092_v31 = vpack.c.bf16 %v3695_v5, %v3694_v47  ;;  %v10112_v47 = vpop.f32.mrf.mxu0 }
 0x2a1   : > { %7019 = vmatpush3.bf16.msra.mxu1 %v7442_v53  ;;  %v3697_v0 = vmul.f32 %v10079_v2, %v11711_v37  ;;  %v11758_v53 = vld [vmem:[#allocation6_spill] sm:$0xff]  ;;  %v10104_v37 = vpack.c.bf16 %v11760_v60, %v11748_v58 }
 0x2a2   : > { %7100 = vmatprep.subr.bf16.mxu1 %v7444_v28  ;;  %v10122_v5 = vpop.f32.mrf.mxu0 }
 0x2a3   : > { %7085 = vmatmul.mubr.bf16.gmra.mxu0 %v10057_v8  ;;  %6955 = vmatmul.mubr.bf16.gmra.mxu1 %v11746_v56  ;;  %v10094_v62 = vpack.c.bf16 %v3697_v0, %v3696_v1  ;;  %v7450_v1 = vld [vmem:[%s11211_s4 + $0x1b0] sm:$0xff]   ;;  %v7453_v0 = vld [vmem:[%s11211_s4 + $0x1a0] sm:$0xff]  }
 0x2a4   : > { %7088 = vmatprep.mubr.bf16.mxu0 %v11744_v43  ;;  %6958 = vmatprep.mubr.bf16.mxu1 %v11747_v18  ;;  %v10132_v60 = vpop.f32.mrf.mxu0 }
 0x2a5   : > { %11761 = vst [vmem:[#allocation25_spill] sm:$0xff] %v10132_v60 }
 0x2ab   : > { %7089 = vmatmul.mubr.bf16.gmra.mxu0 %v9775_v3  ;;  %6959 = vmatmul.mubr.bf16.gmra.mxu1 %v9856_v63 }
 0x2ac   : > { %7092 = vmatprep.mubr.bf16.mxu0 %v10070_v14  ;;  %6962 = vmatprep.mubr.bf16.mxu1 %v11757_v57 }
 0x2b3   : > { %7093 = vmatmul.mubr.bf16.gmra.mxu0 %v10092_v31  ;;  %6963 = vmatmul.mubr.bf16.gmra.mxu1 %v11758_v53 }
 0x2b4   : > { %7096 = vmatprep.mubr.bf16.mxu0 %v10094_v62  ;;  %6966 = vmatprep.mubr.bf16.mxu1 %v11759_v22 }
 0x2bb   : > { %7097 = vmatmul.mubr.bf16.gmra.mxu0 %v9865_v4  ;;  %6967 = vmatmul.mubr.bf16.gmra.mxu1 %v10104_v37 }
 0x2bc   : > { %7164 = vmatprep.mubr.bf16.mxu0 %v11757_v57  ;;  %7020 = vmatprep.mubr.bf16.mxu1 %v11717_v27  ;;  %v7451_v27 = vld [vmem:[%s11211_s4 + $0x1a8] sm:$0xff]  }
 0x2c3   : > { %7165 = vmatmul.mubr.bf16.vlgmr.msra.gmra.mxu0 %v11758_v53  ;;  %7021 = vmatmul.mubr.bf16.vlgmr.msra.gmra.mxu1 %v11738_v40  ;;  %v7447_v40 = vld [vmem:[%s11211_s4 + $0xe0] sm:$0xff]  }
 0x2c4   : > { %7168 = vmatprep.mubr.bf16.mxu0 %v11759_v22  ;;  %7245 = vmatpush3.bf16.msra.mxu0 %v7448_v13  ;;  %v7446_v13 = vld [vmem:[%s11211_s4 + $0xe8] sm:$0xff]  }
 0x2c5   : > { %7246 = vmatprep.subr.bf16.mxu0 %v7450_v1  ;;  %7101 = vmatpush3.bf16.msra.mxu1 %v7444_v28  ;;  %v10142_v28 = vpop.f32.mrf.mxu0 }
 0x2c6   : > { %7024 = vmatprep.mubr.bf16.mxu1 %v11739_v29  ;;  %7102 = vmatprep.subr.bf16.mxu1 %v7445_v45  ;;  %v7454_v29 = vld [vmem:[%s11211_s4 + $0x198] sm:$0xff]   ;;  %11762 = vst [vmem:[#allocation24_spill] sm:$0xff] %v10142_v28  ;;  %v11766_v28 = vld [vmem:[#allocation40_spill] sm:$0xff] }
 0x2c7   : > { %v10152_v60 = vpop.f32.mrf.mxu0 }
 0x2c8   : > { %7247 = vmatpush3.bf16.msra.mxu0 %v7450_v1  ;;  %v11763_v1 = vld [vmem:[#allocation36_spill] sm:$0xff]  ;;  %11764 = vst [vmem:[#allocation34_spill] sm:$0xff] %v10152_v60 }
 0x2c9   : > { %7248 = vmatprep.subr.bf16.mxu0 %v7451_v27  ;;  %7103 = vmatpush3.bf16.msra.mxu1 %v7445_v45  ;;  %v7449_v45 = vld [vmem:[%s11211_s4 + $0xd8] sm:$0xff]  }
 0x2ca   : > { %7104 = vmatprep.subr.bf16.mxu1 %v7446_v13 }
 0x2cb   : > { %7169 = vmatmul.mubr.bf16.gmra.mxu0 %v10104_v37  ;;  %7025 = vmatmul.mubr.bf16.gmra.mxu1 %v9765_v52  ;;  %v7452_v52 = vld [vmem:[%s11211_s4 + $0xd0] sm:$0xff]  }
 0x2cc   : > { %7172 = vmatprep.mubr.bf16.mxu0 %v11741_v50  ;;  %7249 = vmatpush3.bf16.msra.mxu0 %v7451_v27  ;;  %v7456_v27 = vld [vmem:[%s11211_s4 + $0x190] sm:$0xff]  }
 0x2cd   : > { %7250 = vmatprep.subr.bf16.mxu0 %v7453_v0  ;;  %7028 = vmatprep.mubr.bf16.mxu1 %v11763_v1  ;;  %v10162_v1 = vpop.f32.mrf.mxu0 }
 0x2ce   : > { %7105 = vmatpush3.bf16.msra.mxu1 %v7446_v13  ;;  %v7457_v13 = vld [vmem:[%s11211_s4 + $0x188] sm:$0xff]  }
 0x2cf   : > { %7106 = vmatprep.subr.bf16.mxu1 %v7447_v40  ;;  %v10172_v60 = vpop.f32.mrf.mxu0 }
 0x2d0   : > { %7251 = vmatpush3.bf16.msra.mxu0 %v7453_v0  ;;  %v11765_v0 = vld [vmem:[#allocation16_spill] sm:$0xff] }
 0x2d1   : > { %7252 = vmatprep.subr.bf16.mxu0 %v7454_v29 }
 0x2d2   : > { %7107 = vmatpush3.bf16.msra.mxu1 %v7447_v40  ;;  %v7455_v40 = vld [vmem:[%s11211_s4 + $0xc8] sm:$0xff]  }
 0x2d3   : > { %7173 = vmatmul.mubr.bf16.gmra.mxu0 %v10057_v8  ;;  %7108 = vmatprep.subr.bf16.mxu1 %v7449_v45 }
 0x2d4   : > { %7176 = vmatprep.mubr.bf16.mxu0 %v11744_v43  ;;  %7253 = vmatpush3.bf16.msra.mxu0 %v7454_v29  ;;  %v7459_v29 = vld [vmem:[%s11211_s4 + $0x180] sm:$0xff]  }
 0x2d5   : > { %7254 = vmatprep.subr.bf16.mxu0 %v7456_v27  ;;  %7029 = vmatmul.mubr.bf16.gmra.mxu1 %v11765_v0 }
 0x2d6   : > { %7032 = vmatprep.mubr.bf16.mxu1 %v11766_v28  ;;  %7109 = vmatpush3.bf16.msra.mxu1 %v7449_v45  ;;  %v7458_v28 = vld [vmem:[%s11211_s4 + $0xc0] sm:$0xff]   ;;  %v7464_v45 = vld [vmem:[%s11211_s4 + $0x238] sm:$0xff]  }
 0x2d7   : > { %7110 = vmatprep.subr.bf16.mxu1 %v7452_v52 }
 0x2d8   : > { %7255 = vmatpush3.bf16.msra.mxu0 %v7456_v27  ;;  %v10182_v27 = vpop.f32.mrf.mxu0 }
 0x2d9   : > { %7256 = vmatprep.subr.bf16.mxu0 %v7457_v13 }
 0x2da   : > { %7111 = vmatpush3.bf16.msra.mxu1 %v7452_v52  ;;  %v7460_v52 = vld [vmem:[%s11211_s4 + $0x178] sm:$0xff]  }
 0x2db   : > { %7177 = vmatmul.mubr.bf16.gmra.mxu0 %v9775_v3  ;;  %7112 = vmatprep.subr.bf16.mxu1 %v7455_v40 }
 0x2dc   : > { %7180 = vmatprep.mubr.bf16.mxu0 %v9860_v41  ;;  %7257 = vmatpush3.bf16.msra.mxu0 %v7457_v13  ;;  %v10189_v13 = vpop.f32.mrf.mxu0 }
 0x2dd   : > { %7258 = vmatprep.subr.bf16.mxu0 %v7459_v29  ;;  %7033 = vmatmul.mubr.bf16.gmra.mxu1 %v9827_v48  ;;  %11767 = vst [vmem:[#allocation33_spill] sm:$0xff] %v10189_v13 }
 0x2de   : > { %7036 = vmatprep.mubr.bf16.mxu1 %v11757_v57  ;;  %7113 = vmatpush3.bf16.msra.mxu1 %v7455_v40  ;;  %v10193_v48 = vpop.f32.mrf.mxu0 }
 0x2df   : > { %7114 = vmatprep.subr.bf16.mxu1 %v7458_v28  ;;  %11768 = vst [vmem:[#allocation50_spill] sm:$0xff] %v10193_v48  ;;  %v11775_v48 = vld [vmem:[#allocation21_spill] sm:$0xff] }
 0x2e0   : > { %7259 = vmatpush3.bf16.msra.mxu0 %v7459_v29  ;;  %v10197_v0 = vpop.f32.mrf.mxu0 }
 0x2e1   : > { %7340 = vmatprep.subr.bf16.mxu0 %v7464_v45  ;;  %11769 = vst [vmem:[#allocation49_spill] sm:$0xff] %v10197_v0 }
 0x2e2   : > { %7115 = vmatpush3.bf16.msra.mxu1 %v7458_v28  ;;  %v10201_v40 = vpop.f32.mrf.mxu0 }
 0x2e3   : > { %7181 = vmatmul.mubr.bf16.gmra.mxu0 %v9869_v61  ;;  %7196 = vmatprep.subr.bf16.mxu1 %v7460_v52  ;;  %11770 = vst [vmem:[#allocation2_spill] sm:$0xff] %v10201_v40 }
 0x2e4   : > { %7184 = vmatprep.mubr.bf16.mxu0 %v9873_v24  ;;  %v10205_v29 = vpop.f32.mrf.mxu0 }
 0x2e5   : > { %7037 = vmatmul.mubr.bf16.gmra.mxu1 %v11758_v53  ;;  %11771 = vst [vmem:[#allocation61_spill] sm:$0xff] %v10205_v29  ;;  %v7466_v29 = vld [vmem:[%s11211_s4 + $0x230] sm:$0xff]  }
 0x2e6   : > { %7040 = vmatprep.mubr.bf16.mxu1 %v11759_v22  ;;  %v10209_v28 = vpop.f32.mrf.mxu0 }
 0x2e7   : > { %11772 = vst [vmem:[#allocation60_spill] sm:$0xff] %v10209_v28 }
 0x2e8   : > { %v10213_v0 = vpop.f32.mrf.mxu0 }
 0x2e9   : > { %11773 = vst [vmem:[#allocation63_spill] sm:$0xff] %v10213_v0  ;;  %v7461_v0 = vld [vmem:[%s11211_s4 + $0x170] sm:$0xff]  }
 0x2ea   : > { %v10217_v40 = vpop.f32.mrf.mxu0 }
 0x2eb   : > { %7185 = vmatmul.mubr.bf16.gmra.mxu0 %v9877_v17  ;;  %11774 = vst [vmem:[#allocation65_spill] sm:$0xff] %v10217_v40 }
 0x2ec   : > { %7188 = vmatprep.mubr.bf16.mxu0 %v9881_v44  ;;  %v10224_v28 = vpop.f32.mrf.mxu0 }
 0x2ed   : > { %7041 = vmatmul.mubr.bf16.gmra.mxu1 %v10104_v37  ;;  %11776 = vst [vmem:[#allocation64_spill] sm:$0xff] %v10224_v28  ;;  %v7469_v28 = vld [vmem:[%s11211_s4 + $0x220] sm:$0xff]  }
 0x2ee   : > { %7044 = vmatprep.mubr.bf16.mxu1 %v11741_v50  ;;  %v10234_v40 = vpop.f32.mrf.mxu0 }
 0x2f0   : > { %v10244_v13 = vpop.f32.mrf.mxu0 }
 0x2f3   : > { %7189 = vmatmul.mubr.bf16.gmra.mxu0 %v9885_v38 }
 0x2f4   : > { %7192 = vmatprep.mubr.bf16.mxu0 %v9888_v51 }
 0x2f5   : > { %7045 = vmatmul.mubr.bf16.gmra.mxu1 %v10057_v8 }
 0x2f6   : > { %7048 = vmatprep.mubr.bf16.mxu1 %v11744_v43 }
 0x2fb   : > { %7193 = vmatmul.mubr.bf16.gmra.mxu0 %v9891_v6 }
 0x2fc   : > { %7260 = vmatprep.mubr.bf16.mxu0 %v9910_v33 }
 0x2fd   : > { %7049 = vmatmul.mubr.bf16.gmra.mxu1 %v9775_v3 }
 0x2fe   : > { %7116 = vmatprep.mubr.bf16.mxu1 %v11742_v32  ;;  %v7467_v32 = vld [vmem:[%s11211_s4 + $0x228] sm:$0xff]  }
 0x303   : > { %7261 = vmatmul.mubr.bf16.vlgmr.msra.gmra.mxu0 %v11775_v48 }
 0x304   : > { %7264 = vmatprep.mubr.bf16.mxu0 %v9925_v9  ;;  %7341 = vmatpush3.bf16.msra.mxu0 %v7464_v45  ;;  %v7462_v45 = vld [vmem:[%s11211_s4 + $0x168] sm:$0xff]  }
 0x305   : > { %7342 = vmatprep.subr.bf16.mxu0 %v7466_v29  ;;  %7117 = vmatmul.mubr.bf16.vlgmr.msra.gmra.mxu1 %v11746_v56  ;;  %v7463_v56 = vld [vmem:[%s11211_s4 + $0x160] sm:$0xff]  }
 0x306   : > { %7197 = vmatpush3.bf16.msra.mxu1 %v7460_v52  ;;  %7120 = vmatprep.mubr.bf16.mxu1 %v11747_v18  ;;  %v7470_v18 = vld [vmem:[%s11211_s4 + $0x218] sm:$0xff]   ;;  %v10254_v52 = vpop.f32.mrf.mxu0 }
 0x307   : > { %7198 = vmatprep.subr.bf16.mxu1 %v7461_v0 }
 0x308   : > { %7343 = vmatpush3.bf16.msra.mxu0 %v7466_v29  ;;  %v7472_v29 = vld [vmem:[%s11211_s4 + $0x210] sm:$0xff]  }
 0x309   : > { %7344 = vmatprep.subr.bf16.mxu0 %v7467_v32 }
 0x30a   : > { %7199 = vmatpush3.bf16.msra.mxu1 %v7461_v0  ;;  %v7465_v0 = vld [vmem:[%s11211_s4 + $0x158] sm:$0xff]  }
 0x30b   : > { %7265 = vmatmul.mubr.bf16.gmra.mxu0 %v9927_v59  ;;  %7200 = vmatprep.subr.bf16.mxu1 %v7462_v45 }
 0x30c   : > { %7268 = vmatprep.mubr.bf16.mxu0 %v9860_v41  ;;  %7345 = vmatpush3.bf16.msra.mxu0 %v7467_v32  ;;  %v10264_v32 = vpop.f32.mrf.mxu0 }
 0x30d   : > { %7346 = vmatprep.subr.bf16.mxu0 %v7469_v28  ;;  %7121 = vmatmul.mubr.bf16.gmra.mxu1 %v9856_v63  ;;  %v7468_v63 = vld [vmem:[%s11211_s4 + $0x150] sm:$0xff]  }
 0x30e   : > { %7124 = vmatprep.mubr.bf16.mxu1 %v11757_v57  ;;  %7201 = vmatpush3.bf16.msra.mxu1 %v7462_v45  ;;  %v7473_v57 = vld [vmem:[%s11211_s4 + $0x208] sm:$0xff]  }
 0x30f   : > { %7202 = vmatprep.subr.bf16.mxu1 %v7463_v56  ;;  %v7471_v45 = vld [vmem:[%s11211_s4 + $0x148] sm:$0xff]  }
 0x310   : > { %7347 = vmatpush3.bf16.msra.mxu0 %v7469_v28  ;;  %v10274_v28 = vpop.f32.mrf.mxu0 }
 0x311   : > { %7348 = vmatprep.subr.bf16.mxu0 %v7470_v18 }
 0x312   : > { %7203 = vmatpush3.bf16.msra.mxu1 %v7463_v56  ;;  %v7475_v56 = vld [vmem:[%s11211_s4 + $0x200] sm:$0xff]  }
 0x313   : > { %7269 = vmatmul.mubr.bf16.gmra.mxu0 %v9869_v61  ;;  %7204 = vmatprep.subr.bf16.mxu1 %v7465_v0 }
 0x314   : > { %7272 = vmatprep.mubr.bf16.mxu0 %v9873_v24  ;;  %7349 = vmatpush3.bf16.msra.mxu0 %v7470_v18  ;;  %v10284_v18 = vpop.f32.mrf.mxu0 }
 0x315   : > { %7350 = vmatprep.subr.bf16.mxu0 %v7472_v29  ;;  %7125 = vmatmul.mubr.bf16.gmra.mxu1 %v11758_v53  ;;  %v11777_v53 = vpack.c.bf16 %v9914_v42, %v9905_v30  ;;  %v7476_v30 = vld [vmem:[%s11211_s4 + $0x1f8] sm:$0xff]   ;;  %v11779_v42 = vpack.c.bf16 %v11694_v20, %v9918_v12 }
 0x316   : > { %7128 = vmatprep.mubr.bf16.mxu1 %v11759_v22  ;;  %7205 = vmatpush3.bf16.msra.mxu1 %v7465_v0  ;;  %v7474_v22 = vld [vmem:[%s11211_s4 + $0x140] sm:$0xff]   ;;  %v10293_v0 = vpop.f32.mrf.mxu0 }
 0x317   : > { %7206 = vmatprep.subr.bf16.mxu1 %v7468_v63  ;;  %11778 = vst [vmem:[#allocation68_spill] sm:$0xff] %v10293_v0 }
 0x318   : > { %7351 = vmatpush3.bf16.msra.mxu0 %v7472_v29  ;;  %v10302_v29 = vpop.f32.mrf.mxu0 }
 0x319   : > { %7352 = vmatprep.subr.bf16.mxu0 %v7473_v57  ;;  %11780 = vst [vmem:[#allocation14_spill] sm:$0xff] %v10302_v29 }
 0x31a   : > { %7207 = vmatpush3.bf16.msra.mxu1 %v7468_v63  ;;  %v11783_v63 = vpack.c.bf16 %v11697_v55, %v9935_v15 }
 0x31b   : > { %7273 = vmatmul.mubr.bf16.gmra.mxu0 %v9877_v17  ;;  %7208 = vmatprep.subr.bf16.mxu1 %v7471_v45 }
 0x31c   : > { %7276 = vmatprep.mubr.bf16.mxu0 %v11777_v53  ;;  %7353 = vmatpush3.bf16.msra.mxu0 %v7473_v57 }
 0x31d   : > { %7354 = vmatprep.subr.bf16.mxu0 %v7475_v56  ;;  %7129 = vmatmul.mubr.bf16.gmra.mxu1 %v10104_v37  ;;  %v11781_v37 = vpack.c.bf16 %v9931_v7, %v9922_v21  ;;  %v4784_v21 = vmul.f32 %v11750_v36, %v11723_v11  ;;  %v7477_v36 = vld [vmem:[%s11211_s4 + $0x1f0] sm:$0xff]  }
 0x31e   : > { %7132 = vmatprep.mubr.bf16.mxu1 %v9910_v33  ;;  %7209 = vmatpush3.bf16.msra.mxu1 %v7471_v45  ;;  %v10308_v33 = vpop.f32.mrf.mxu0 }
 0x31f   : > { %7210 = vmatprep.subr.bf16.mxu1 %v7474_v22  ;;  %11782 = vst [vmem:[#allocation70_spill] sm:$0xff] %v10308_v33 }
 0x320   : > { %7355 = vmatpush3.bf16.msra.mxu0 %v7475_v56  ;;  %v10314_v12 = vpop.f32.mrf.mxu0  ;;  %v7478_v56 = vld [vmem:[%s11211_s4 + $0x1e8] sm:$0xff]  }
 0x321   : > { %11784 = vst [vmem:[#allocation3_spill] sm:$0xff] %v10314_v12 }
 0x322   : > { %7211 = vmatpush3.bf16.msra.mxu1 %v7474_v22  ;;  %v10320_v7 = vpop.f32.mrf.mxu0 }
 0x323   : > { %7277 = vmatmul.mubr.bf16.gmra.mxu0 %v11779_v42  ;;  %7292 = vmatprep.subr.bf16.mxu1 %v7476_v30  ;;  %11785 = vst [vmem:[#allocation69_spill] sm:$0xff] %v10320_v7 }
 0x324   : > { %7280 = vmatprep.mubr.bf16.mxu0 %v11781_v37  ;;  %v10328_v15 = vpop.f32.mrf.mxu0 }
 0x325   : > { %7133 = vmatmul.mubr.bf16.gmra.mxu1 %v11775_v48  ;;  %11786 = vst [vmem:[#allocation72_spill] sm:$0xff] %v10328_v15 }
 0x326   : > { %7136 = vmatprep.mubr.bf16.mxu1 %v9925_v9  ;;  %v4785_v9 = vmul.f32 %v11748_v58, %v11727_v25  ;;  %v10332_v55 = vpop.f32.mrf.mxu0 }
 0x327   : > { %11787 = vst [vmem:[#allocation71_spill] sm:$0xff] %v10332_v55 }
 0x328   : > { %v10325_v20 = vpack.c.bf16 %v4785_v9, %v4784_v21  ;;  %v7480_v9 = vld [vmem:[%s11211_s4 + $0x1d8] sm:$0xff]  }
 0x32b   : > { %7281 = vmatmul.mubr.bf16.gmra.mxu0 %v11783_v63 }
 0x32c   : > { %7284 = vmatprep.mubr.bf16.mxu0 %v9946_v35 }
 0x32d   : > { %7137 = vmatmul.mubr.bf16.gmra.mxu1 %v9927_v59  ;;  %v10336_v59 = vpop.f32.mrf.mxu0 }
 0x32e   : > { %7140 = vmatprep.mubr.bf16.mxu1 %v9860_v41  ;;  %11788 = vst [vmem:[#allocation62_spill] sm:$0xff] %v10336_v59 }
 0x32f   : > { %v10340_v11 = vpop.f32.mrf.mxu0 }
 0x330   : > { %11789 = vst [vmem:[#allocation94_spill] sm:$0xff] %v10340_v11  ;;  %v11813_v11 = vld [vmem:[#allocation82_spill] sm:$0xff] }
 0x333   : > { %7285 = vmatmul.mubr.bf16.gmra.mxu0 %v9957_v46 }
 0x334   : > { %7288 = vmatprep.mubr.bf16.mxu0 %v10325_v20 }
 0x335   : > { %7141 = vmatmul.mubr.bf16.gmra.mxu1 %v9869_v61 }
 0x336   : > { %7144 = vmatprep.mubr.bf16.mxu1 %v9873_v24 }
 0x33b   : > { %7289 = vmatmul.mubr.bf16.gmra.mxu0 %v9968_v16 }
 0x33c   : > { %7356 = vmatprep.mubr.bf16.mxu0 %v9881_v44  ;;  %v10343_v25 = vpop.f32.mrf.mxu0 }
 0x33d   : > { %7145 = vmatmul.mubr.bf16.gmra.mxu1 %v9877_v17  ;;  %11790 = vst [vmem:[#allocation43_spill] sm:$0xff] %v10343_v25 }
 0x33e   : > { %7212 = vmatprep.mubr.bf16.mxu1 %v11741_v50  ;;  %v10347_v58 = vpop.f32.mrf.mxu0 }
 0x33f   : > { %11791 = vst [vmem:[#allocation23_spill] sm:$0xff] %v10347_v58 }
 0x340   : > { %v10355_v57 = vpop.f32.mrf.mxu0 }
 0x341   : > { %11792 = vst [vmem:[#allocation75_spill] sm:$0xff] %v10355_v57 }
 0x342   : > { %v10360_v45 = vpop.f32.mrf.mxu0 }
 0x343   : > { %7357 = vmatmul.mubr.bf16.vlgmr.msra.gmra.mxu0 %v9885_v38  ;;  %v10352_v48 = vpop.f32.mrf.mxu1  ;;  %11793 = vst [vmem:[#allocation80_spill] sm:$0xff] %v10360_v45 }
 0x344   : > { %7360 = vmatprep.mubr.bf16.mxu0 %v9888_v51 }
 0x345   : > { %7213 = vmatmul.mubr.bf16.vlgmr.msra.gmra.mxu1 %v10057_v8  ;;  %v10358_v50 = vpop.f32.mrf.mxu1 }
 0x346   : > { %7293 = vmatpush3.bf16.msra.mxu1 %v7476_v30  ;;  %7216 = vmatprep.mubr.bf16.mxu1 %v11744_v43  ;;  %v10367_v22 = vpop.f32.mrf.mxu0  ;;  %v7479_v30 = vld [vmem:[%s11211_s4 + $0x1e0] sm:$0xff]  }
 0x347   : > { %7294 = vmatprep.subr.bf16.mxu1 %v7477_v36  ;;  %v10365_v53 = vpop.f32.mrf.mxu1  ;;  %11794 = vst [vmem:[#allocation17_spill] sm:$0xff] %v10367_v22  ;;  %v11802_v22 = vld [vmem:[#allocation95_spill] sm:$0xff] }
 0x348   : > { %v10373_v43 = vpop.f32.mrf.mxu0 }
 0x349   : > { %v10371_v8 = vpop.f32.mrf.mxu1  ;;  %11795 = vst [vmem:[#allocation89_spill] sm:$0xff] %v10373_v43 }
 0x34a   : > { %7295 = vmatpush3.bf16.msra.mxu1 %v7477_v36  ;;  %v10381_v37 = vpop.f32.mrf.mxu0 }
 0x34b   : > { %7361 = vmatmul.mubr.bf16.gmra.mxu0 %v9891_v6  ;;  %7296 = vmatprep.subr.bf16.mxu1 %v7478_v56  ;;  %v10378_v42 = vpop.f32.mrf.mxu1  ;;  %11796 = vst [vmem:[#allocation22_spill] sm:$0xff] %v10381_v37  ;;  %v11801_v37 = vld [vmem:[#allocation74_spill] sm:$0xff] }
 0x34c   : > { %7364 = vmatprep.mubr.bf16.mxu0 %v9990_v23  ;;  %v10386_v21 = vpop.f32.mrf.mxu0  ;;  %v5054_v45 = vmul.f32 %v11802_v22, %v11801_v37  ;;  %v7482_v22 = vld [vmem:[%s11211_s4 + $0x1c8] sm:$0xff]  }
 0x34d   : > { %7217 = vmatmul.mubr.bf16.gmra.mxu1 %v9775_v3  ;;  %v10384_v63 = vpop.f32.mrf.mxu1  ;;  %11797 = vst [vmem:[#allocation52_spill] sm:$0xff] %v10386_v21  ;;  %v11799_v3 = vld [vmem:[#allocation42_spill] sm:$0xff]  ;;  %v7481_v21 = vld [vmem:[%s11211_s4 + $0x1d0] sm:$0xff]  }
 0x34e   : > { %7220 = vmatprep.mubr.bf16.mxu1 %v10070_v14  ;;  %7297 = vmatpush3.bf16.msra.mxu1 %v7478_v56 }
 0x34f   : > { %7298 = vmatprep.subr.bf16.mxu1 %v7479_v30  ;;  %v10391_v36 = vpop.f32.mrf.mxu1 }
 0x351   : > { %v10397_v14 = vpop.f32.mrf.mxu1 }
 0x352   : > { %7299 = vmatpush3.bf16.msra.mxu1 %v7479_v30  ;;  %v11804_v30 = vld [vmem:[#allocation73_spill] sm:$0xff] }
 0x353   : > { %v10393_v43 = vpop.f32.mrf.mxu0  ;;  %7365 = vmatmul.mubr.bf16.gmra.mxu0 %v9993_v10  ;;  %7300 = vmatprep.subr.bf16.mxu1 %v7480_v9  ;;  %v10406_v57 = vpop.f32.mrf.mxu1  ;;  %v5055_v58 = vmul.f32 %v11743_v34, %v11804_v30 }
 0x354   : > { %11798 = vst [vmem:[#allocation4_spill] sm:$0xff] %v10393_v43  ;;  %7368 = vmatprep.mubr.bf16.mxu0 %v11799_v3 }
 0x355   : > { %v10399_v56 = vpop.f32.mrf.mxu0  ;;  %7221 = vmatmul.mubr.bf16.gmra.mxu1 %v10092_v31  ;;  %v10421_v37 = vpack.c.bf16 %v5055_v58, %v5054_v45 }
 0x356   : > { %11800 = vst [vmem:[#allocation51_spill] sm:$0xff] %v10399_v56  ;;  %7224 = vmatprep.mubr.bf16.mxu1 %v10094_v62  ;;  %7301 = vmatpush3.bf16.msra.mxu1 %v7480_v9  ;;  %v10414_v56 = vpop.f32.mrf.mxu1  ;;  %v7483_v9 = vld [vmem:[%s11211_s4 + $0x1c0] sm:$0xff]  }
 0x357   : > { %v10409_v43 = vpop.f32.mrf.mxu0  ;;  %7302 = vmatprep.subr.bf16.mxu1 %v7481_v21 }
 0x358   : > { %11803 = vst [vmem:[#allocation5_spill] sm:$0xff] %v10409_v43  ;;  %v10423_v31 = vpop.f32.mrf.mxu1 }
 0x359   : > { %v10416_v25 = vpop.f32.mrf.mxu0 }
 0x35a   : > { %11805 = vst [vmem:[#allocation54_spill] sm:$0xff] %v10416_v25  ;;  %7303 = vmatpush3.bf16.msra.mxu1 %v7481_v21  ;;  %v10429_v34 = vpop.f32.mrf.mxu1  ;;  %v11811_v25 = vld [vmem:[#allocation28_spill] sm:$0xff] }
 0x35b   : > { %v10425_v43 = vpop.f32.mrf.mxu0  ;;  %7369 = vmatmul.mubr.bf16.gmra.mxu0 %v10000_v54  ;;  %7304 = vmatprep.subr.bf16.mxu1 %v7482_v22 }
 0x35c   : > { %11806 = vst [vmem:[#allocation44_spill] sm:$0xff] %v10425_v43  ;;  %7372 = vmatprep.mubr.bf16.mxu0 %v10421_v37  ;;  %v10436_v58 = vpop.f32.mrf.mxu1 }
 0x35d   : > { %v10431_v62 = vpop.f32.mrf.mxu0  ;;  %7225 = vmatmul.mubr.bf16.gmra.mxu1 %v9865_v4 }
 0x35e   : > { %11807 = vst [vmem:[#allocation57_spill] sm:$0xff] %v10431_v62  ;;  %7228 = vmatprep.mubr.bf16.mxu1 %v9881_v44  ;;  %7305 = vmatpush3.bf16.msra.mxu1 %v7482_v22  ;;  %v10442_v30 = vpop.f32.mrf.mxu1  ;;  %v11814_v22 = vld [vmem:[#allocation9_spill] sm:$0xff] }
 0x35f   : > { %v10439_v45 = vpop.f32.mrf.mxu0  ;;  %7306 = vmatprep.subr.bf16.mxu1 %v7483_v9  ;;  %v5324_v59 = vmul.f32 %v11814_v22, %v11813_v11  ;;  %v11819_v11 = vld [vmem:[#allocation29_spill] sm:$0xff]  ;;  %v11820_v22 = vld [vmem:[#allocation83_spill] sm:$0xff] }
 0x360   : > { %11808 = vst [vmem:[#allocation56_spill] sm:$0xff] %v10439_v45  ;;  %v10446_v62 = vpop.f32.mrf.mxu1 }
 0x361   : > { %v10444_v21 = vpop.f32.mrf.mxu0 }
 0x362   : > { %11809 = vst [vmem:[#allocation11_spill] sm:$0xff] %v10444_v21  ;;  %7307 = vmatpush3.bf16.msra.mxu1 %v7483_v9  ;;  %v10452_v4 = vpop.f32.mrf.mxu1 }
 0x363   : > { %v10448_v43 = vpop.f32.mrf.mxu0  ;;  %7373 = vmatmul.mubr.bf16.gmra.mxu0 %v10003_v49 }
 0x364   : > { %11810 = vst [vmem:[#allocation79_spill] sm:$0xff] %v10448_v43  ;;  %7376 = vmatprep.mubr.bf16.mxu0 %v11811_v25  ;;  %v10458_v55 = vpop.f32.mrf.mxu1  ;;  %v11816_v43 = vld [vmem:[#allocation81_spill] sm:$0xff] }
 0x365   : > { %v10454_v45 = vpop.f32.mrf.mxu0  ;;  %7229 = vmatmul.mubr.bf16.gmra.mxu1 %v9885_v38  ;;  %v5325_v15 = vmul.f32 %v11756_v26, %v11816_v43  ;;  %v11822_v26 = vld [vmem:[#allocation86_spill] sm:$0xff] }
 0x366   : > { %11812 = vst [vmem:[#allocation55_spill] sm:$0xff] %v10454_v45  ;;  %7232 = vmatprep.mubr.bf16.mxu1 %v9888_v51  ;;  %v10466_v7 = vpop.f32.mrf.mxu1  ;;  %v5328_v43 = vmul.f32 %v10079_v2, %v11822_v26 }
 0x367   : > { %v10461_v21 = vpop.f32.mrf.mxu0  ;;  %v5332_v12 = vpack.c.bf16 %v5325_v15, %v5324_v59  ;;  %v11824_v59 = vld [vmem:[#allocation84_spill] sm:$0xff] }
 0x368   : > { %11815 = vst [vmem:[#allocation76_spill] sm:$0xff] %v10461_v21  ;;  %v10470_v45 = vpop.f32.mrf.mxu1  ;;  %v5327_v21 = vmul.f32 %v11755_v19, %v11820_v22  ;;  %v11826_v19 = vld [vmem:[#allocation39_spill] sm:$0xff] }
 0x369   : > { %v10468_v9 = vpop.f32.mrf.mxu0 }
 0x36a   : > { %11817 = vst [vmem:[#allocation66_spill] sm:$0xff] %v10468_v9  ;;  %v10477_v33 = vpop.f32.mrf.mxu1 }
 0x36b   : > { %v10472_v25 = vpop.f32.mrf.mxu0  ;;  %7377 = vmatmul.mubr.bf16.gmra.mxu0 %v11819_v11 }
 0x36c   : > { %11818 = vst [vmem:[#allocation10_spill] sm:$0xff] %v10472_v25  ;;  %7380 = vmatprep.mubr.bf16.mxu0 %v5332_v12  ;;  %v10483_v29 = vpop.f32.mrf.mxu1  ;;  %v5326_v25 = vmul.f32 %v11754_v39, %v11824_v59  ;;  %v11825_v12 = vld [vmem:[#allocation85_spill] sm:$0xff] }
 0x36d   : > { %v10479_v49 = vpop.f32.mrf.mxu0  ;;  %7233 = vmatmul.mubr.bf16.gmra.mxu1 %v9891_v6  ;;  %v5329_v22 = vmul.f32 %v11826_v19, %v11825_v12  ;;  %v11833_v12 = vld [vmem:[#allocation31_spill] sm:$0xff]  ;;  %v11834_v19 = vld [vmem:[#allocation32_spill] sm:$0xff] }
 0x36e   : > { %11821 = vst [vmem:[#allocation35_spill] sm:$0xff] %v10479_v49  ;;  %7236 = vmatprep.mubr.bf16.mxu1 %v9990_v23  ;;  %v10493_v9 = vpop.f32.mrf.mxu1  ;;  %v5333_v11 = vpack.c.bf16 %v5327_v21, %v5326_v25 }
 0x36f   : > { %v10486_v15 = vpop.f32.mrf.mxu0  ;;  %v5334_v2 = vpack.c.bf16 %v5329_v22, %v5328_v43  ;;  %v11835_v22 = vpack.c.bf16 %v11833_v12, %v11834_v19 }
 0x370   : > { %11823 = vst [vmem:[#allocation20_spill] sm:$0xff] %v10486_v15  ;;  %v10497_v26 = vpop.f32.mrf.mxu1 }
 0x371   : > { %v10495_v49 = vpop.f32.mrf.mxu0 }
 0x372   : > { %11827 = vst [vmem:[#allocation18_spill] sm:$0xff] %v10495_v49  ;;  %v10501_v15 = vpop.f32.mrf.mxu1 }
 0x373   : > { %v10499_v0 = vpop.f32.mrf.mxu0  ;;  %7381 = vmatmul.mubr.bf16.gmra.mxu0 %v5333_v11 }
 0x374   : > { %11828 = vst [vmem:[#allocation78_spill] sm:$0xff] %v10499_v0  ;;  %7384 = vmatprep.mubr.bf16.mxu0 %v5334_v2  ;;  %v10505_v23 = vpop.f32.mrf.mxu1 }
 0x375   : > { %v10503_v39 = vpop.f32.mrf.mxu0  ;;  %7237 = vmatmul.mubr.bf16.gmra.mxu1 %v9993_v10 }
 0x376   : > { %11829 = vst [vmem:[#allocation48_spill] sm:$0xff] %v10503_v39  ;;  %7240 = vmatprep.mubr.bf16.mxu1 %v11799_v3  ;;  %v10511_v25 = vpop.f32.mrf.mxu1 }
 0x377   : > { %v10508_v59 = vpop.f32.mrf.mxu0 }
 0x378   : > { %11830 = vst [vmem:[#allocation13_spill] sm:$0xff] %v10508_v59  ;;  %v10515_v43 = vpop.f32.mrf.mxu1 }
 0x379   : > { %v10513_v21 = vpop.f32.mrf.mxu0 }
 0x37a   : > { %11831 = vst [vmem:[#allocation77_spill] sm:$0xff] %v10513_v21  ;;  %v10522_v2 = vpop.f32.mrf.mxu1 }
 0x37b   : > { %v10517_v11 = vpop.f32.mrf.mxu0  ;;  %7385 = vmatmul.mubr.bf16.gmra.mxu0 %v11835_v22 }
 0x37c   : > { %11832 = vst [vmem:[#allocation38_spill] sm:$0xff] %v10517_v11  ;;  %v10526_v10 = vpop.f32.mrf.mxu1 }
 0x37d   : > { %v10524_v39 = vpop.f32.mrf.mxu0  ;;  %7241 = vmatmul.mubr.bf16.gmra.mxu1 %v10000_v54 }
 0x37e   : > { %11836 = vst [vmem:[#allocation67_spill] sm:$0xff] %v10524_v39  ;;  %7308 = vmatprep.mubr.bf16.mxu1 %v9860_v41  ;;  %v10532_v21 = vpop.f32.mrf.mxu1  ;;  %v3260_v39 = vadd.f32 %v10112_v47, %v10352_v48  ;;  %v3252_v41 = vadd.f32 %v10122_v5, %v10358_v50 }
 0x37f   : > { %v10529_v3 = vpop.f32.mrf.mxu0 }
 0x380   : > { %11837 = vst [vmem:[#allocation87_spill] sm:$0xff] %v10529_v3  ;;  %v10536_v11 = vpop.f32.mrf.mxu1 }
 0x381   : > { %v10534_v59 = vpop.f32.mrf.mxu0  ;;  %11839 = vst [vmem:[#allocation88_spill] sm:$0xff] %v10536_v11 }
 0x382   : > { %11838 = vst [vmem:[#allocation91_spill] sm:$0xff] %v10534_v59  ;;  %v10540_v19 = vpop.f32.mrf.mxu1 }
 0x383   : > { %v10538_v12 = vpop.f32.mrf.mxu0  ;;  %11841 = vst [vmem:[#allocation37_spill] sm:$0xff] %v10540_v19 }
 0x384   : > { %11840 = vst [vmem:[#allocation47_spill] sm:$0xff] %v10538_v12  ;;  %v7022_v54 = vpop.f32.mrf.mxu1 }
 0x385   : > { %v10542_v22 = vpop.f32.mrf.mxu0  ;;  %7309 = vmatmul.mubr.bf16.vlgmr.msra.gmra.mxu1 %v9869_v61  ;;  %v10551_v59 = vadd.f32 %v7022_v54, %v3260_v39  ;;  %v11846_v61 = vld [vmem:[#allocation24_spill] sm:$0xff] }
 0x386   : > { %11842 = vst [vmem:[#allocation90_spill] sm:$0xff] %v10542_v22  ;;  %7312 = vmatprep.mubr.bf16.mxu1 %v9873_v24  ;;  %v3493_v12 = vpop.f32.mrf.mxu1  ;;  %v11845_v22 = vld [vmem:[#allocation25_spill] sm:$0xff]  ;;  %v11847_v24 = vld [vmem:[#allocation34_spill] sm:$0xff] }
 0x387   : > { %v10547_v3 = vpop.f32.mrf.mxu0  ;;  %v3263_v49 = vadd.f32 %v11845_v22, %v10365_v53  ;;  %v10558_v19 = vadd.f32 %v3493_v12, %v3252_v41  ;;  %v3276_v39 = vadd.f32 %v11847_v24, %v10378_v42  ;;  %v3268_v12 = vadd.f32 %v10162_v1, %v10384_v63 }
 0x388   : > { %11843 = vst [vmem:[#allocation45_spill] sm:$0xff] %v10547_v3  ;;  %v7023_v47 = vpop.f32.mrf.mxu1  ;;  %v3255_v3 = vadd.f32 %v11846_v61, %v10371_v8  ;;  %v3279_v42 = vadd.f32 %v10172_v60, %v10391_v36  ;;  %v11849_v36 = vld [vmem:[#allocation50_spill] sm:$0xff] }
 0x389   : > { %v10554_v0 = vpop.f32.mrf.mxu0  ;;  %v10564_v11 = vadd.f32 %v7023_v47, %v3263_v49 }
 0x38a   : > { %11844 = vst [vmem:[#allocation30_spill] sm:$0xff] %v10554_v0  ;;  %v3496_v5 = vpop.f32.mrf.mxu1 }
 0x38b   : > { %v10560_v48 = vpop.f32.mrf.mxu0  ;;  %v10570_v54 = vadd.f32 %v3496_v5, %v3255_v3 }
 0x38c   : > { %v7026_v0 = vpop.f32.mrf.mxu1 }
 0x38d   : > { %v10566_v50 = vpop.f32.mrf.mxu0  ;;  %7313 = vmatmul.mubr.bf16.gmra.mxu1 %v9877_v17  ;;  %v10577_v22 = vadd.f32 %v7026_v0, %v3276_v39  ;;  %v3271_v17 = vadd.f32 %v10182_v27, %v10397_v14  ;;  %v3284_v39 = vadd.f32 %v11849_v36, %v10414_v56 }
 0x38e   : > { %7316 = vmatprep.mubr.bf16.mxu1 %v9881_v44  ;;  %v3509_v49 = vpop.f32.mrf.mxu1  ;;  %v11848_v44 = vld [vmem:[#allocation33_spill] sm:$0xff] }
 0x38f   : > { %v10573_v53 = vpop.f32.mrf.mxu0  ;;  %v10584_v3 = vadd.f32 %v3509_v49, %v3268_v12  ;;  %v3292_v63 = vadd.f32 %v11848_v44, %v10406_v57  ;;  %v11851_v49 = vld [vmem:[#allocation49_spill] sm:$0xff] }
 0x390   : > { %v7027_v41 = vpop.f32.mrf.mxu1  ;;  %v3295_v57 = vadd.f32 %v11851_v49, %v10423_v31 }
 0x391   : > { %v10580_v8 = vpop.f32.mrf.mxu0  ;;  %v10590_v61 = vadd.f32 %v7027_v41, %v3279_v42 }
 0x392   : > { %v3512_v1 = vpop.f32.mrf.mxu1 }
 0x393   : > { %v10586_v47 = vpop.f32.mrf.mxu0  ;;  %v10596_v5 = vadd.f32 %v3512_v1, %v3271_v17 }
 0x395   : > { %v10592_v0 = vpop.f32.mrf.mxu0  ;;  %v7030_v24 = vpop.f32.mrf.mxu1  ;;  %7317 = vmatmul.mubr.bf16.gmra.mxu1 %v9885_v38  ;;  %v11852_v38 = vld [vmem:[#allocation2_spill] sm:$0xff] }
 0x396   : > { %v10603_v12 = vadd.f32 %v7030_v24, %v3292_v63  ;;  %7320 = vmatprep.mubr.bf16.mxu1 %v9888_v51  ;;  %v3287_v1 = vadd.f32 %v11852_v38, %v10429_v34  ;;  %v11853_v51 = vld [vmem:[#allocation61_spill] sm:$0xff] }
 0x397   : > { %v10599_v60 = vpop.f32.mrf.mxu0  ;;  %v3525_v27 = vpop.f32.mrf.mxu1  ;;  %v3308_v24 = vadd.f32 %v11853_v51, %v10436_v58 }
 0x398   : > { %v10610_v42 = vadd.f32 %v3525_v27, %v3284_v39  ;;  %v11855_v39 = vld [vmem:[#allocation60_spill] sm:$0xff] }
 0x399   : > { %v10606_v14 = vpop.f32.mrf.mxu0  ;;  %v7031_v41 = vpop.f32.mrf.mxu1  ;;  %v3300_v27 = vadd.f32 %v11855_v39, %v10442_v30 }
 0x39a   : > { %11850 = vst [vmem:[#allocation46_spill] sm:$0xff] %v10606_v14  ;;  %v10616_v44 = vadd.f32 %v7031_v41, %v3295_v57  ;;  %v11857_v41 = vld [vmem:[#allocation63_spill] sm:$0xff] }
 0x39b   : > { %v10612_v17 = vpop.f32.mrf.mxu0  ;;  %v3528_v56 = vpop.f32.mrf.mxu1  ;;  %v3311_v58 = vadd.f32 %v11857_v41, %v10446_v62 }
 0x39c   : > { %v10622_v36 = vadd.f32 %v3528_v56, %v3287_v1 }
 0x39d   : > { %v10618_v63 = vpop.f32.mrf.mxu0  ;;  %v7034_v14 = vpop.f32.mrf.mxu1  ;;  %7321 = vmatmul.mubr.bf16.gmra.mxu1 %v9891_v6  ;;  %v11858_v6 = vld [vmem:[#allocation65_spill] sm:$0xff] }
 0x39e   : > { %v10629_v49 = vadd.f32 %v7034_v14, %v3308_v24  ;;  %7324 = vmatprep.mubr.bf16.mxu1 %v9946_v35  ;;  %v3303_v51 = vadd.f32 %v11858_v6, %v10452_v4  ;;  %v11859_v35 = vld [vmem:[#allocation64_spill] sm:$0xff] }
 0x39f   : > { %v10625_v31 = vpop.f32.mrf.mxu0  ;;  %v3541_v34 = vpop.f32.mrf.mxu1  ;;  %v3324_v24 = vadd.f32 %v11859_v35, %v10458_v55  ;;  %v3327_v55 = vadd.f32 %v10244_v13, %v10470_v45  ;;  %v3332_v45 = vadd.f32 %v10274_v28, %v10493_v9 }
 0x3a0   : > { %11854 = vst [vmem:[#allocation59_spill] sm:$0xff] %v10625_v31  ;;  %v10636_v38 = vadd.f32 %v3541_v34, %v3300_v27  ;;  %v3316_v27 = vadd.f32 %v10234_v40, %v10466_v7 }
 0x3a1   : > { %v10632_v57 = vpop.f32.mrf.mxu0  ;;  %v7035_v1 = vpop.f32.mrf.mxu1 }
 0x3a2   : > { %11856 = vst [vmem:[#allocation12_spill] sm:$0xff] %v10632_v57  ;;  %v10642_v31 = vadd.f32 %v7035_v1, %v3311_v58 }
 0x3a3   : > { %v10638_v56 = vpop.f32.mrf.mxu0  ;;  %v3544_v30 = vpop.f32.mrf.mxu1 }
 0x3a4   : > { %v10648_v39 = vadd.f32 %v3544_v30, %v3303_v51 }
 0x3a5   : > { %v10644_v14 = vpop.f32.mrf.mxu0  ;;  %v7038_v57 = vpop.f32.mrf.mxu1  ;;  %7325 = vmatmul.mubr.bf16.gmra.mxu1 %v9957_v46  ;;  %v3319_v46 = vadd.f32 %v10254_v52, %v10477_v33 }
 0x3a6   : > { %v10655_v34 = vadd.f32 %v7038_v57, %v3324_v24  ;;  %7328 = vmatprep.mubr.bf16.mxu1 %v10325_v20  ;;  %v3340_v20 = vadd.f32 %v10264_v32, %v10483_v29  ;;  %v3343_v32 = vadd.f32 %v10284_v18, %v10497_v26  ;;  %v11864_v18 = vld [vmem:[#allocation41_spill] sm:$0xff] }
 0x3a7   : > { %v10651_v62 = vpop.f32.mrf.mxu0  ;;  %v3557_v4 = vpop.f32.mrf.mxu1 }
 0x3a8   : > { %v10662_v58 = vadd.f32 %v3557_v4, %v3316_v27 }
 0x3a9   : > { %v10658_v41 = vpop.f32.mrf.mxu0  ;;  %v7039_v1 = vpop.f32.mrf.mxu1 }
 0x3aa   : > { %v10668_v51 = vadd.f32 %v7039_v1, %v3327_v55 }
 0x3ab   : > { %v10664_v6 = vpop.f32.mrf.mxu0  ;;  %v3560_v40 = vpop.f32.mrf.mxu1 }
 0x3ac   : > { %v10674_v57 = vadd.f32 %v3560_v40, %v3319_v46 }
 0x3ad   : > { %v10670_v7 = vpop.f32.mrf.mxu0  ;;  %v7042_v30 = vpop.f32.mrf.mxu1  ;;  %7329 = vmatmul.mubr.bf16.gmra.mxu1 %v9968_v16  ;;  %v11861_v16 = vld [vmem:[#allocation68_spill] sm:$0xff] }
 0x3ae   : > { %v10681_v35 = vadd.f32 %v7042_v30, %v3340_v20  ;;  %7332 = vmatprep.mubr.bf16.mxu1 %v10421_v37  ;;  %v3335_v4 = vadd.f32 %v11861_v16, %v10501_v15  ;;  %v11863_v37 = vld [vmem:[#allocation14_spill] sm:$0xff]  ;;  %v11867_v15 = vld [vmem:[#allocation28_spill] sm:$0xff] }
 0x3af   : > { %v10677_v13 = vpop.f32.mrf.mxu0  ;;  %v3573_v52 = vpop.f32.mrf.mxu1  ;;  %v3356_v1 = vadd.f32 %v11863_v37, %v10505_v23  ;;  %v11866_v20 = vld [vmem:[#allocation70_spill] sm:$0xff]  ;;  %v11871_v37 = vld [vmem:[#allocation69_spill] sm:$0xff] }
 0x3b0   : > { %v10688_v29 = vadd.f32 %v3573_v52, %v3332_v45  ;;  %v3348_v30 = vadd.f32 %v11866_v20, %v10511_v25 }
 0x3b1   : > { %v10684_v33 = vpop.f32.mrf.mxu0  ;;  %v7043_v24 = vpop.f32.mrf.mxu1 }
 0x3b2   : > { %v10694_v55 = vadd.f32 %v7043_v24, %v3343_v32  ;;  %v11869_v24 = vld [vmem:[#allocation3_spill] sm:$0xff] }
 0x3b3   : > { %v10690_v27 = vpop.f32.mrf.mxu0  ;;  %v3576_v28 = vpop.f32.mrf.mxu1  ;;  %v3359_v23 = vadd.f32 %v11869_v24, %v10515_v43  ;;  %v11874_v43 = vld [vmem:[#allocation29_spill] sm:$0xff] }
 0x3b4   : > { %11860 = vst [vmem:[#allocation19_spill] sm:$0xff] %v10690_v27  ;;  %v10700_v46 = vadd.f32 %v3576_v28, %v3335_v4 }
 0x3b5   : > { %v10696_v9 = vpop.f32.mrf.mxu0  ;;  %v7046_v40 = vpop.f32.mrf.mxu1  ;;  %7333 = vmatmul.mubr.bf16.gmra.mxu1 %v11864_v18  ;;  %v3351_v18 = vadd.f32 %v11871_v37, %v10522_v2  ;;  %v11879_v37 = vld [vmem:[#allocation62_spill] sm:$0xff] }
 0x3b6   : > { %11862 = vst [vmem:[#allocation92_spill] sm:$0xff] %v10696_v9  ;;  %v10707_v45 = vadd.f32 %v7046_v40, %v3356_v1  ;;  %7336 = vmatprep.mubr.bf16.mxu1 %v11867_v15  ;;  %v11873_v40 = vld [vmem:[#allocation72_spill] sm:$0xff] }
 0x3b7   : > { %v10703_v26 = vpop.f32.mrf.mxu0  ;;  %v3589_v52 = vpop.f32.mrf.mxu1  ;;  %v3372_v20 = vadd.f32 %v11873_v40, %v10526_v10  ;;  %v11882_v40 = vld [vmem:[#allocation94_spill] sm:$0xff] }
 0x3b8   : > { %11865 = vst [vmem:[#allocation15_spill] sm:$0xff] %v10703_v26  ;;  %v10714_v16 = vadd.f32 %v3589_v52, %v3348_v30  ;;  %v11876_v52 = vld [vmem:[#allocation71_spill] sm:$0xff] }
 0x3b9   : > { %v10710_v32 = vpop.f32.mrf.mxu0  ;;  %v7047_v4 = vpop.f32.mrf.mxu1  ;;  %v3364_v24 = vadd.f32 %v11876_v52, %v10532_v21 }
 0x3ba   : > { %11868 = vst [vmem:[#allocation53_spill] sm:$0xff] %v10710_v32  ;;  %v10720_v26 = vadd.f32 %v7047_v4, %v3359_v23  ;;  %v11878_v4 = vld [vmem:[#allocation88_spill] sm:$0xff] }
 0x3bb   : > { %v10716_v28 = vpop.f32.mrf.mxu0  ;;  %v3592_v25 = vpop.f32.mrf.mxu1 }
 0x3bc   : > { %11870 = vst [vmem:[#allocation93_spill] sm:$0xff] %v10716_v28  ;;  %v10726_v15 = vadd.f32 %v3592_v25, %v3351_v18  ;;  %v11881_v25 = vld [vmem:[#allocation37_spill] sm:$0xff] }
 0x3bd   : > { %v10722_v1 = vpop.f32.mrf.mxu0  ;;  %v7050_v32 = vpop.f32.mrf.mxu1  ;;  %7337 = vmatmul.mubr.bf16.gmra.mxu1 %v11874_v43  ;;  %v3367_v43 = vadd.f32 %v11882_v40, %v11881_v25 }
 0x3be   : > { %11872 = vst [vmem:[#allocation58_spill] sm:$0xff] %v10722_v1  ;;  %v10733_v28 = vadd.f32 %v7050_v32, %v3372_v20  ;;  %v3375_v1 = vadd.f32 %v11879_v37, %v11878_v4  ;;  %v11884_v20 = vld [vmem:[#allocation43_spill] sm:$0xff] }
 0x3bf   : > { %v10729_v30 = vpop.f32.mrf.mxu0  ;;  %v3605_v2 = vpop.f32.mrf.mxu1  ;;  %v3936_v52 = vadd.f32 %v11884_v20, %v10551_v59  ;;  %v11890_v20 = vld [vmem:[#allocation80_spill] sm:$0xff] }
 0x3c0   : > { %11875 = vst [vmem:[#allocation8_spill] sm:$0xff] %v10729_v30  ;;  %v10739_v9 = vadd.f32 %v3605_v2, %v3364_v24  ;;  %v11886_v2 = vld [vmem:[#allocation23_spill] sm:$0xff] }
 0x3c1   : > { %v10735_v23 = vpop.f32.mrf.mxu0  ;;  %v7051_v10 = vpop.f32.mrf.mxu1  ;;  %v3934_v37 = vadd.f32 %v11886_v2, %v10558_v19  ;;  %v11892_v2 = vld [vmem:[#allocation17_spill] sm:$0xff] }
 0x3c2   : > { %11877 = vst [vmem:[#allocation7_spill] sm:$0xff] %v10735_v23  ;;  %v10745_v30 = vadd.f32 %v7051_v10, %v3375_v1  ;;  %v11888_v10 = vld [vmem:[#allocation75_spill] sm:$0xff] }
 0x3c3   : > { %v10741_v18 = vpop.f32.mrf.mxu0  ;;  %v3608_v27 = vpop.f32.mrf.mxu1 }
 0x3c4   : > { %11880 = vst [vmem:[#allocation6_spill] sm:$0xff] %v10741_v18  ;;  %v10749_v32 = vadd.f32 %v3608_v27, %v3367_v43  ;;  %v3937_v27 = vadd.f32 %v11888_v10, %v10564_v11  ;;  %v11894_v10 = vld [vmem:[#allocation89_spill] sm:$0xff] }
 0x3c5   : > { %v10747_v21 = vpop.f32.mrf.mxu0  ;;  %v7118_v23 = vpop.f32.mrf.mxu1 }
 0x3c6   : > { %11883 = vst [vmem:[#allocation26_spill] sm:$0xff] %v10747_v21  ;;  %v10755_v24 = vadd.f32 %v7118_v23, %v3936_v52  ;;  %v3935_v23 = vadd.f32 %v11890_v20, %v10570_v54  ;;  %v11896_v20 = vld [vmem:[#allocation22_spill] sm:$0xff] }
 0x3c7   : > { %v10753_v4 = vpop.f32.mrf.mxu0  ;;  %v4081_v18 = vpop.f32.mrf.mxu1 }
 0x3c8   : > { %11885 = vst [vmem:[#allocation27_spill] sm:$0xff] %v10753_v4  ;;  %v10761_v1 = vadd.f32 %v4081_v18, %v3934_v37  ;;  %v3940_v18 = vadd.f32 %v11892_v2, %v10577_v22  ;;  %v11898_v2 = vld [vmem:[#allocation52_spill] sm:$0xff] }
 0x3c9   : > { %v10759_v25 = vpop.f32.mrf.mxu0  ;;  %v7119_v40 = vpop.f32.mrf.mxu1 }
 0x3ca   : > { %11887 = vst [vmem:[#allocation36_spill] sm:$0xff] %v10759_v25  ;;  %v10767_v59 = vadd.f32 %v7119_v40, %v3937_v27  ;;  %v3938_v27 = vadd.f32 %v11894_v10, %v10584_v3  ;;  %v11900_v10 = vld [vmem:[#allocation4_spill] sm:$0xff] }
 0x3cb   : > { %v10765_v43 = vpop.f32.mrf.mxu0  ;;  %v4084_v52 = vpop.f32.mrf.mxu1 }
 0x3cc   : > { %11889 = vst [vmem:[#allocation16_spill] sm:$0xff] %v10765_v43  ;;  %v10773_v19 = vadd.f32 %v4084_v52, %v3935_v23  ;;  %v3941_v23 = vadd.f32 %v11896_v20, %v10590_v61  ;;  %v11902_v20 = vld [vmem:[#allocation51_spill] sm:$0xff] }
 0x3cd   : > { %v10771_v4 = vpop.f32.mrf.mxu0  ;;  %v7122_v37 = vpop.f32.mrf.mxu1 }
 0x3ce   : > { %11891 = vst [vmem:[#allocation40_spill] sm:$0xff] %v10771_v4  ;;  %v10779_v11 = vadd.f32 %v7122_v37, %v3940_v18  ;;  %v3939_v18 = vadd.f32 %v11898_v2, %v10596_v5  ;;  %v11904_v2 = vld [vmem:[#allocation5_spill] sm:$0xff] }
 0x3cf   : > { %v10777_v25 = vpop.f32.mrf.mxu0  ;;  %v4097_v40 = vpop.f32.mrf.mxu1 }
 0x3d0   : > { %11893 = vst [vmem:[#allocation21_spill] sm:$0xff] %v10777_v25  ;;  %v10785_v54 = vadd.f32 %v4097_v40, %v3938_v27  ;;  %v3944_v27 = vadd.f32 %v11900_v10, %v10603_v12  ;;  %v11906_v10 = vld [vmem:[#allocation54_spill] sm:$0xff] }
 0x3d1   : > { %v10783_v43 = vpop.f32.mrf.mxu0  ;;  %v7123_v52 = vpop.f32.mrf.mxu1 }
 0x3d2   : > { %11895 = vst [vmem:[#allocation42_spill] sm:$0xff] %v10783_v43  ;;  %v10791_v22 = vadd.f32 %v7123_v52, %v3941_v23  ;;  %v3942_v23 = vadd.f32 %v11902_v20, %v10610_v42  ;;  %v11908_v20 = vld [vmem:[#allocation44_spill] sm:$0xff] }
 0x3d3   : > { %v10789_v4 = vpop.f32.mrf.mxu0  ;;  %v4100_v37 = vpop.f32.mrf.mxu1 }
 0x3d4   : > { %11897 = vst [vmem:[#allocation74_spill] sm:$0xff] %v10789_v4  ;;  %v10797_v3 = vadd.f32 %v4100_v37, %v3939_v18  ;;  %v3945_v18 = vadd.f32 %v11904_v2, %v10616_v44  ;;  %v11910_v2 = vld [vmem:[#allocation57_spill] sm:$0xff] }
 0x3d5   : > { %v10795_v25 = vpop.f32.mrf.mxu0  ;;  %v7126_v40 = vpop.f32.mrf.mxu1 }
 0x3d6   : > { %11899 = vst [vmem:[#allocation95_spill] sm:$0xff] %v10795_v25  ;;  %v10803_v61 = vadd.f32 %v7126_v40, %v3944_v27  ;;  %v3943_v27 = vadd.f32 %v11906_v10, %v10622_v36  ;;  %v11912_v10 = vld [vmem:[#allocation56_spill] sm:$0xff] }
 0x3d7   : > { %v10801_v43 = vpop.f32.mrf.mxu0  ;;  %v4113_v52 = vpop.f32.mrf.mxu1 }
 0x3d8   : > { %11901 = vst [vmem:[#allocation73_spill] sm:$0xff] %v10801_v43  ;;  %v10809_v5 = vadd.f32 %v4113_v52, %v3942_v23  ;;  %v3948_v23 = vadd.f32 %v11908_v20, %v10629_v49  ;;  %v11914_v20 = vld [vmem:[#allocation11_spill] sm:$0xff] }
 0x3d9   : > { %v10807_v4 = vpop.f32.mrf.mxu0  ;;  %v7127_v37 = vpop.f32.mrf.mxu1 }
 0x3da   : > { %11903 = vst [vmem:[#allocation82_spill] sm:$0xff] %v10807_v4  ;;  %v10815_v12 = vadd.f32 %v7127_v37, %v3945_v18  ;;  %v3946_v18 = vadd.f32 %v11910_v2, %v10636_v38  ;;  %v11916_v2 = vld [vmem:[#allocation79_spill] sm:$0xff] }
 0x3db   : > { %v10813_v25 = vpop.f32.mrf.mxu0  ;;  %v4116_v40 = vpop.f32.mrf.mxu1 }
 0x3dc   : > { %11905 = vst [vmem:[#allocation9_spill] sm:$0xff] %v10813_v25  ;;  %v10821_v42 = vadd.f32 %v4116_v40, %v3943_v27  ;;  %v3949_v27 = vadd.f32 %v11912_v10, %v10642_v31  ;;  %v11918_v10 = vld [vmem:[#allocation55_spill] sm:$0xff] }
 0x3dd   : > { %v10819_v43 = vpop.f32.mrf.mxu0  ;;  %v7130_v52 = vpop.f32.mrf.mxu1 }
 0x3de   : > { %11907 = vst [vmem:[#allocation81_spill] sm:$0xff] %v10819_v43  ;;  %v10827_v44 = vadd.f32 %v7130_v52, %v3948_v23  ;;  %v3947_v23 = vadd.f32 %v11914_v20, %v10648_v39  ;;  %v11920_v20 = vld [vmem:[#allocation76_spill] sm:$0xff] }
 0x3df   : > { %v10825_v4 = vpop.f32.mrf.mxu0  ;;  %v4129_v37 = vpop.f32.mrf.mxu1 }
 0x3e0   : > { %11909 = vst [vmem:[#allocation83_spill] sm:$0xff] %v10825_v4  ;;  %v10833_v36 = vadd.f32 %v4129_v37, %v3946_v18  ;;  %v3952_v18 = vadd.f32 %v11916_v2, %v10655_v34  ;;  %v11922_v2 = vld [vmem:[#allocation66_spill] sm:$0xff] }
 0x3e1   : > { %v10831_v25 = vpop.f32.mrf.mxu0  ;;  %v7131_v40 = vpop.f32.mrf.mxu1 }
 0x3e2   : > { %11911 = vst [vmem:[#allocation86_spill] sm:$0xff] %v10831_v25  ;;  %v10839_v49 = vadd.f32 %v7131_v40, %v3949_v27  ;;  %v3950_v27 = vadd.f32 %v11918_v10, %v10662_v58  ;;  %v11924_v10 = vld [vmem:[#allocation10_spill] sm:$0xff] }
 0x3e3   : > { %v10837_v43 = vpop.f32.mrf.mxu0  ;;  %v4132_v52 = vpop.f32.mrf.mxu1 }
 0x3e4   : > { %11913 = vst [vmem:[#allocation84_spill] sm:$0xff] %v10837_v43  ;;  %v10845_v38 = vadd.f32 %v4132_v52, %v3947_v23  ;;  %v3953_v23 = vadd.f32 %v11920_v20, %v10668_v51  ;;  %v11926_v20 = vld [vmem:[#allocation35_spill] sm:$0xff] }
 0x3e5   : > { %v10843_v4 = vpop.f32.mrf.mxu0  ;;  %v7134_v37 = vpop.f32.mrf.mxu1 }
 0x3e6   : > { %11915 = vst [vmem:[#allocation85_spill] sm:$0xff] %v10843_v4  ;;  %v10851_v31 = vadd.f32 %v7134_v37, %v3952_v18  ;;  %v3951_v18 = vadd.f32 %v11922_v2, %v10674_v57  ;;  %v11928_v2 = vld [vmem:[#allocation20_spill] sm:$0xff] }
 0x3e7   : > { %v10849_v25 = vpop.f32.mrf.mxu0  ;;  %v4145_v40 = vpop.f32.mrf.mxu1 }
 0x3e8   : > { %11917 = vst [vmem:[#allocation39_spill] sm:$0xff] %v10849_v25  ;;  %v10857_v39 = vadd.f32 %v4145_v40, %v3950_v27  ;;  %v3956_v27 = vadd.f32 %v11924_v10, %v10681_v35  ;;  %v11929_v10 = vld [vmem:[#allocation18_spill] sm:$0xff] }
 0x3e9   : > { %v10855_v43 = vpop.f32.mrf.mxu0  ;;  %v7135_v52 = vpop.f32.mrf.mxu1 }
 0x3ea   : > { %11919 = vst [vmem:[#allocation31_spill] sm:$0xff] %v10855_v43  ;;  %v10863_v34 = vadd.f32 %v7135_v52, %v3953_v23  ;;  %v3954_v23 = vadd.f32 %v11926_v20, %v10688_v29  ;;  %v11931_v20 = vld [vmem:[#allocation78_spill] sm:$0xff] }
 0x3eb   : > { %v10861_v4 = vpop.f32.mrf.mxu0  ;;  %v4148_v37 = vpop.f32.mrf.mxu1 }
 0x3ec   : > { %11921 = vst [vmem:[#allocation32_spill] sm:$0xff] %v10861_v4  ;;  %v10869_v58 = vadd.f32 %v4148_v37, %v3951_v18  ;;  %v3957_v18 = vadd.f32 %v11928_v2, %v10694_v55  ;;  %v11933_v2 = vld [vmem:[#allocation48_spill] sm:$0xff] }
 0x3ed   : > { %v10867_v25 = vpop.f32.mrf.mxu0  ;;  %v7138_v40 = vpop.f32.mrf.mxu1 }
 0x3ee   : > { %11923 = vst [vmem:[#allocation25_spill] sm:$0xff] %v10867_v25  ;;  %v10875_v51 = vadd.f32 %v7138_v40, %v3956_v27  ;;  %v3955_v27 = vadd.f32 %v11929_v10, %v10700_v46  ;;  %v11935_v10 = vld [vmem:[#allocation13_spill] sm:$0xff] }
 0x3ef   : > { %v10873_v43 = vpop.f32.mrf.mxu0  ;;  %v4161_v52 = vpop.f32.mrf.mxu1 }
 0x3f0   : > { %11925 = vst [vmem:[#allocation24_spill] sm:$0xff] %v10873_v43  ;;  %v10881_v57 = vadd.f32 %v4161_v52, %v3954_v23  ;;  %v3960_v23 = vadd.f32 %v11931_v20, %v10707_v45  ;;  %v11938_v20 = vld [vmem:[#allocation77_spill] sm:$0xff] }
 0x3f1   : > { %v10879_v4 = vpop.f32.mrf.mxu0  ;;  %v7139_v37 = vpop.f32.mrf.mxu1 }
 0x3f2   : > { %11927 = vst [vmem:[#allocation34_spill] sm:$0xff] %v10879_v4  ;;  %v10887_v35 = vadd.f32 %v7139_v37, %v3957_v18  ;;  %v3958_v18 = vadd.f32 %v11933_v2, %v10714_v16  ;;  %v11940_v16 = vld [vmem:[#allocation38_spill] sm:$0xff] }
 0x3f3   : > { %v10885_v25 = vpop.f32.mrf.mxu0  ;;  %v4164_v40 = vpop.f32.mrf.mxu1  ;;  %v3964_v2 = vadd.f32 %v11940_v16, %v10733_v28  ;;  %v11945_v28 = vld [vmem:[#allocation91_spill] sm:$0xff] }
 0x3f4   : > { %v10893_v29 = vadd.f32 %v4164_v40, %v3955_v27  ;;  %v3961_v27 = vadd.f32 %v11935_v10, %v10720_v26  ;;  %v11941_v26 = vld [vmem:[#allocation67_spill] sm:$0xff]  ;;  %v3963_v16 = vadd.f32 %v11945_v28, %v10749_v32 }
 0x3f5   : > { %v10891_v43 = vpop.f32.mrf.mxu0  ;;  %v7142_v52 = vpop.f32.mrf.mxu1  ;;  %v3962_v10 = vadd.f32 %v11941_v26, %v10739_v9 }
 0x3f6   : > { %11930 = vst [vmem:[#allocation33_spill] sm:$0xff] %v10891_v43  ;;  %v10899_v55 = vadd.f32 %v7142_v52, %v3960_v23  ;;  %v3959_v23 = vadd.f32 %v11938_v20, %v10726_v15 }
 0x3f7   : > { %v10897_v4 = vpop.f32.mrf.mxu0  ;;  %v4177_v37 = vpop.f32.mrf.mxu1 }
 0x3f8   : > { %11932 = vst [vmem:[#allocation50_spill] sm:$0xff] %v10897_v4  ;;  %v10905_v46 = vadd.f32 %v4177_v37, %v3958_v18 }
 0x3f9   : > { %v10903_v21 = vpop.f32.mrf.mxu0  ;;  %v7143_v40 = vpop.f32.mrf.mxu1 }
 0x3fa   : > { %11934 = vst [vmem:[#allocation49_spill] sm:$0xff] %v10903_v21  ;;  %v10911_v45 = vadd.f32 %v7143_v40, %v3961_v27  ;;  %v11942_v40 = vld [vmem:[#allocation87_spill] sm:$0xff] }
 0x3fb   : > { %v10909_v43 = vpop.f32.mrf.mxu0  ;;  %v4180_v52 = vpop.f32.mrf.mxu1  ;;  %v3965_v15 = vadd.f32 %v11942_v40, %v10745_v30  ;;  %v11949_v30 = vld [vmem:[#allocation90_spill] sm:$0xff] }
 0x3fc   : > { %11936 = vst [vmem:[#allocation2_spill] sm:$0xff] %v10909_v43  ;;  %11937 = vst [vmem:[#allocation61_spill] sm:$0xff] %v10911_v45  ;;  %v10915_v4 = vadd.f32 %v4180_v52, %v3959_v23  ;;  %v4470_v40 = vadd.f32 %v11949_v30, %v10761_v1  ;;  %v4476_v1 = vadd.f32 %v10560_v48, %v10779_v11  ;;  %v11975_v45 = vld [vmem:[#allocation95_spill] sm:$0xff] }
 0x3fd   : > { %v10919_v21 = vpop.f32.mrf.mxu0  ;;  %v7146_v18 = vpop.f32.mrf.mxu1  ;;  %v4475_v48 = vadd.f32 %v10580_v8, %v10797_v3  ;;  %v4481_v8 = vadd.f32 %v10599_v60, %v10815_v12  ;;  %v4482_v60 = vadd.f32 %v10618_v63, %v10833_v36  ;;  %v4488_v63 = vadd.f32 %v10638_v56, %v10851_v31 }
 0x3fe   : > { %11939 = vst [vmem:[#allocation60_spill] sm:$0xff] %v10915_v4  ;;  %v10921_v37 = vadd.f32 %v7146_v18, %v3964_v2  ;;  %v11947_v18 = vld [vmem:[#allocation47_spill] sm:$0xff]  ;;  %v4487_v56 = vadd.f32 %v10658_v41, %v10869_v58  ;;  %v4493_v41 = vadd.f32 %v10677_v13, %v10887_v35  ;;  %v11958_v13 = vld [vmem:[#allocation92_spill] sm:$0xff] }
 0x3ff   : > { %v4193_v43 = vpop.f32.mrf.mxu1  ;;  %v10929_v20 = vpop.f32.mrf.mxu0  ;;  %v4472_v9 = vadd.f32 %v11947_v18, %v10755_v24  ;;  %v11951_v24 = vld [vmem:[#allocation30_spill] sm:$0xff]  ;;  %v4494_v35 = vadd.f32 %v11958_v13, %v10905_v46 }
 0x400   : > { %v10925_v27 = vadd.f32 %v4193_v43, %v3962_v10  ;;  %11943 = vst [vmem:[#allocation63_spill] sm:$0xff] %v10929_v20  ;;  %v4471_v18 = vadd.f32 %v11951_v24, %v10773_v19  ;;  %v4477_v19 = vadd.f32 %v10573_v53, %v10791_v22  ;;  %v4478_v53 = vadd.f32 %v10592_v0, %v10809_v5 }
 0x401   : > { %v7147_v23 = vpop.f32.mrf.mxu1  ;;  %v10939_v26 = vpop.f32.mrf.mxu0  ;;  %v4484_v0 = vadd.f32 %v10612_v17, %v10827_v44  ;;  %v11954_v17 = vld [vmem:[#allocation12_spill] sm:$0xff] }
 0x402   : > { %v10931_v52 = vadd.f32 %v7147_v23, %v3965_v15  ;;  %11948 = vst [vmem:[#allocation68_spill] sm:$0xff] %v10939_v26  ;;  %v11950_v23 = vld [vmem:[#allocation45_spill] sm:$0xff]  ;;  %v4483_v44 = vadd.f32 %v11954_v17, %v10845_v38  ;;  %v4489_v38 = vadd.f32 %v10651_v62, %v10863_v34  ;;  %v4490_v62 = vadd.f32 %v10670_v7, %v10881_v57 }
 0x403   : > { %v4196_v4 = vpop.f32.mrf.mxu1  ;;  %v4473_v32 = vadd.f32 %v11950_v23, %v10767_v59  ;;  %v10949_v28 = vpop.f32.mrf.mxu0  ;;  %v4474_v59 = vadd.f32 %v10566_v50, %v10785_v54  ;;  %v4480_v50 = vadd.f32 %v10586_v47, %v10803_v61  ;;  %v11952_v47 = vld [vmem:[#allocation46_spill] sm:$0xff] }
 0x404   : > { %11944 = vst [vmem:[#allocation65_spill] sm:$0xff] %v10931_v52  ;;  %v10935_v2 = vadd.f32 %v4196_v4, %v3963_v16  ;;  %v4479_v61 = vadd.f32 %v11952_v47, %v10821_v42 }
 0x405   : > { %v7214_v43 = vpop.f32.mrf.mxu1 }
 0x406   : > { %11946 = vst [vmem:[#allocation64_spill] sm:$0xff] %v10935_v2  ;;  %v10941_v10 = vadd.f32 %v7214_v43, %v4472_v9  ;;  %v10959_v43 = vpop.f32.mrf.mxu0 }
 0x407   : > { %v4613_v20 = vpop.f32.mrf.mxu1 }
 0x408   : > { %v10945_v15 = vadd.f32 %v4613_v20, %v4470_v40 }
 0x409   : > { %v7215_v4 = vpop.f32.mrf.mxu1 }
 0x40a   : > { %v10951_v16 = vadd.f32 %v7215_v4, %v4473_v32  ;;  %v10969_v32 = vpop.f32.mrf.mxu0 }
 0x40b   : > { %v4616_v26 = vpop.f32.mrf.mxu1 }
 0x40c   : > { %v10955_v9 = vadd.f32 %v4616_v26, %v4471_v18  ;;  %v10979_v54 = vpop.f32.mrf.mxu0 }
 0x40d   : > { %v7218_v20 = vpop.f32.mrf.mxu1 }
 0x40e   : > { %v10961_v30 = vadd.f32 %v7218_v20, %v4476_v1  ;;  %v10989_v3 = vpop.f32.mrf.mxu0 }
 0x40f   : > { %v4629_v40 = vpop.f32.mrf.mxu1 }
 0x410   : > { %v10965_v23 = vadd.f32 %v4629_v40, %v4474_v59  ;;  %v10999_v5 = vpop.f32.mrf.mxu0 }
 0x411   : > { %v7219_v26 = vpop.f32.mrf.mxu1 }
 0x412   : > { %v10971_v4 = vadd.f32 %v7219_v26, %v4477_v19 }
 0x413   : > { %v4632_v11 = vpop.f32.mrf.mxu1 }
 0x414   : > { %v10975_v24 = vadd.f32 %v4632_v11, %v4475_v48 }
 0x415   : > { %v7222_v18 = vpop.f32.mrf.mxu1 }
 0x416   : > { %v10981_v1 = vadd.f32 %v7222_v18, %v4480_v50  ;;  %v11953_v18 = vld [vmem:[#allocation59_spill] sm:$0xff] }
 0x417   : > { %v4645_v22 = vpop.f32.mrf.mxu1  ;;  %v4485_v42 = vadd.f32 %v11953_v18, %v10839_v49  ;;  %v4486_v49 = vadd.f32 %v10644_v14, %v10857_v39  ;;  %v4492_v14 = vadd.f32 %v10664_v6, %v10875_v51  ;;  %v4491_v6 = vadd.f32 %v10684_v33, %v10893_v29  ;;  %v11961_v29 = vld [vmem:[#allocation33_spill] sm:$0xff] }
 0x418   : > { %v10985_v20 = vadd.f32 %v4645_v22, %v4478_v53  ;;  %v11009_v53 = vpop.f32.mrf.mxu0 }
 0x419   : > { %v7223_v59 = vpop.f32.mrf.mxu1 }
 0x41a   : > { %v10991_v40 = vadd.f32 %v7223_v59, %v4481_v8  ;;  %v11019_v36 = vpop.f32.mrf.mxu0 }
 0x41b   : > { %v4648_v19 = vpop.f32.mrf.mxu1 }
 0x41c   : > { %v10995_v26 = vadd.f32 %v4648_v19, %v4479_v61 }
 0x41d   : > { %v7226_v48 = vpop.f32.mrf.mxu1 }
 0x41e   : > { %v11001_v11 = vadd.f32 %v7226_v48, %v4484_v0 }
 0x41f   : > { %v4661_v12 = vpop.f32.mrf.mxu1 }
 0x420   : > { %v11005_v50 = vadd.f32 %v4661_v12, %v4482_v60  ;;  %v11029_v60 = vpop.f32.mrf.mxu0 }
 0x421   : > { %v7227_v22 = vpop.f32.mrf.mxu1 }
 0x422   : > { %v11011_v8 = vadd.f32 %v7227_v22, %v4485_v42  ;;  %v11039_v39 = vpop.f32.mrf.mxu0 }
 0x423   : > { %v4664_v59 = vpop.f32.mrf.mxu1 }
 0x424   : > { %v11015_v47 = vadd.f32 %v4664_v59, %v4483_v44  ;;  %v11049_v58 = vpop.f32.mrf.mxu0 }
 0x425   : > { %v7230_v61 = vpop.f32.mrf.mxu1 }
 0x426   : > { %v11021_v19 = vadd.f32 %v7230_v61, %v4488_v63  ;;  %v11059_v57 = vpop.f32.mrf.mxu0 }
 0x427   : > { %v4677_v0 = vpop.f32.mrf.mxu1 }
 0x428   : > { %v11025_v48 = vadd.f32 %v4677_v0, %v4486_v49  ;;  %v11957_v49 = vld [vmem:[#allocation19_spill] sm:$0xff] }
 0x429   : > { %v7231_v12 = vpop.f32.mrf.mxu1  ;;  %v4496_v7 = vadd.f32 %v11957_v49, %v10899_v55 }
 0x42a   : > { %v11031_v18 = vadd.f32 %v7231_v12, %v4489_v38 }
 0x42b   : > { %v4680_v31 = vpop.f32.mrf.mxu1 }
 0x42c   : > { %v11035_v42 = vadd.f32 %v4680_v31, %v4487_v56 }
 0x42d   : > { %v7234_v22 = vpop.f32.mrf.mxu1 }
 0x42e   : > { %v11041_v17 = vadd.f32 %v7234_v22, %v4492_v14  ;;  %v11066_v14 = vpop.f32.mrf.mxu0 }
 0x42f   : > { %v4693_v34 = vpop.f32.mrf.mxu1 }
 0x430   : > { %v11045_v44 = vadd.f32 %v4693_v34, %v4490_v62  ;;  %v11964_v62 = vld [vmem:[#allocation93_spill] sm:$0xff] }
 0x431   : > { %v7235_v59 = vpop.f32.mrf.mxu1  ;;  %v4500_v34 = vadd.f32 %v11964_v62, %v10921_v37 }
 0x432   : > { %v11051_v63 = vadd.f32 %v7235_v59, %v4493_v41  ;;  %v11077_v41 = vpop.f32.mrf.mxu0 }
 0x433   : > { %v4696_v51 = vpop.f32.mrf.mxu1 }
 0x434   : > { %11955 = vst [vmem:[#allocation14_spill] sm:$0xff] %v11051_v63  ;;  %v11055_v61 = vadd.f32 %v4696_v51, %v4491_v6  ;;  %v11965_v6 = vld [vmem:[#allocation58_spill] sm:$0xff]  ;;  %v5030_v63 = vadd.f32 %v11975_v45, %v10985_v20 }
 0x435   : > { %v7238_v0 = vpop.f32.mrf.mxu1 }
 0x436   : > { %11956 = vst [vmem:[#allocation41_spill] sm:$0xff] %v11055_v61  ;;  %v4766_v38 = vadd.f32 %v7238_v0, %v4496_v7  ;;  %v11966_v7 = vld [vmem:[#allocation2_spill] sm:$0xff] }
 0x437   : > { %v4709_v12 = vpop.f32.mrf.mxu1 }
 0x438   : > { %v4764_v56 = vadd.f32 %v4709_v12, %v4494_v35  ;;  %v11064_v31 = vadd.f32 %v10885_v25, %v4766_v38  ;;  %v4498_v25 = vadd.f32 %v11965_v6, %v10925_v27  ;;  %v11084_v38 = vpop.f32.mrf.mxu0 }
 0x439   : > { %v11068_v33 = vpop.f32.mrf.mxu1 }
 0x43a   : > { %11959 = vst [vmem:[#allocation70_spill] sm:$0xff] %v11064_v31  ;;  %11960 = vst [vmem:[#allocation28_spill] sm:$0xff] %v11068_v33  ;;  %v11071_v22 = vadd.f32 %v11961_v29, %v4764_v56  ;;  %v11093_v12 = vpop.f32.mrf.mxu0 }
 0x43b   : > { %v11073_v55 = vpop.f32.mrf.mxu1 }
 0x43c   : > { %11962 = vst [vmem:[#allocation3_spill] sm:$0xff] %v11071_v22  ;;  %11963 = vst [vmem:[#allocation69_spill] sm:$0xff] %v11073_v55  ;;  %v11095_v62 = vpop.f32.mrf.mxu0  ;;  %v11974_v55 = vld [vmem:[#allocation27_spill] sm:$0xff] }
 0x43d   : > { %v7242_v46 = vpop.f32.mrf.mxu1  ;;  %v5025_v33 = vadd.f32 %v11974_v55, %v10951_v16  ;;  %v11978_v16 = vld [vmem:[#allocation16_spill] sm:$0xff] }
 0x43e   : > { %v4770_v59 = vadd.f32 %v7242_v46, %v4500_v34  ;;  %v11097_v46 = vpop.f32.mrf.mxu0  ;;  %v5028_v45 = vadd.f32 %v11978_v16, %v10961_v30 }
 0x43f   : > { %v4725_v51 = vpop.f32.mrf.mxu1 }
 0x440   : > { %v4768_v49 = vadd.f32 %v4725_v51, %v4498_v25  ;;  %v11082_v0 = vadd.f32 %v11966_v7, %v4770_v59  ;;  %v11099_v25 = vpop.f32.mrf.mxu0  ;;  %v11972_v7 = vld [vmem:[#allocation26_spill] sm:$0xff] }
 0x441   : > { %v11086_v13 = vpop.f32.mrf.mxu1 }
 0x442   : > { %11967 = vst [vmem:[#allocation72_spill] sm:$0xff] %v11082_v0  ;;  %11968 = vst [vmem:[#allocation29_spill] sm:$0xff] %v11086_v13  ;;  %v11089_v35 = vadd.f32 %v10919_v21, %v4768_v49  ;;  %v11971_v21 = vld [vmem:[#allocation6_spill] sm:$0xff]  ;;  %v11107_v52 = vpop.f32.mrf.mxu0 }
 0x443   : > { %v11091_v37 = vpop.f32.mrf.mxu1  ;;  %v5024_v49 = vadd.f32 %v11971_v21, %v10941_v10  ;;  %v11973_v13 = vld [vmem:[#allocation74_spill] sm:$0xff]  ;;  %v11976_v10 = vld [vmem:[#allocation36_spill] sm:$0xff] }
 0x444   : > { %11969 = vst [vmem:[#allocation71_spill] sm:$0xff] %v11089_v35  ;;  %11970 = vst [vmem:[#allocation88_spill] sm:$0xff] %v11091_v37  ;;  %v5022_v35 = vadd.f32 %v11972_v7, %v10945_v15  ;;  %v5032_v2 = vadd.f32 %v11973_v13, %v10981_v1  ;;  %v5023_v21 = vadd.f32 %v11976_v10, %v10955_v9  ;;  %v11119_v7 = vpop.f32.mrf.mxu0  ;;  %v11979_v9 = vld [vmem:[#allocation82_spill] sm:$0xff] }
 0x445   : > { %v7310_v56 = vpop.f32.mrf.mxu1 }
 0x446   : > { %v5294_v37 = vadd.f32 %v7310_v56, %v5024_v49  ;;  %v11977_v56 = vld [vmem:[#allocation73_spill] sm:$0xff] }
 0x447   : > { %v5165_v29 = vpop.f32.mrf.mxu1  ;;  %v5033_v49 = vadd.f32 %v11977_v56, %v10991_v40  ;;  %v11983_v56 = vld [vmem:[#allocation81_spill] sm:$0xff] }
 0x448   : > { %v5292_v22 = vadd.f32 %v5165_v29, %v5022_v35  ;;  %v5564_v1 = vadd.f32 %v10949_v28, %v5294_v37  ;;  %v11981_v37 = vld [vmem:[#allocation9_spill] sm:$0xff] }
 0x449   : > { %v7311_v27 = vpop.f32.mrf.mxu1 }
 0x44a   : > { %v5295_v13 = vadd.f32 %v7311_v27, %v5025_v33 }
 0x44b   : > { %v5168_v34 = vpop.f32.mrf.mxu1 }
 0x44c   : > { %v5293_v55 = vadd.f32 %v5168_v34, %v5023_v21 }
 0x44d   : > { %v7314_v59 = vpop.f32.mrf.mxu1 }
 0x44e   : > { %v5298_v33 = vadd.f32 %v7314_v59, %v5028_v45 }
 0x44f   : > { %v5181_v6 = vpop.f32.mrf.mxu1 }
 0x451   : > { %v7315_v51 = vpop.f32.mrf.mxu1 }
 0x453   : > { %v5184_v0 = vpop.f32.mrf.mxu1 }
 0x455   : > { %v7318_v31 = vpop.f32.mrf.mxu1 }
 0x456   : > { %v5302_v61 = vadd.f32 %v7318_v31, %v5032_v2  ;;  %v5562_v2 = vadd.f32 %v10959_v43, %v5292_v22  ;;  %v5031_v31 = vadd.f32 %v11979_v9, %v10995_v26  ;;  %v5036_v43 = vadd.f32 %v11981_v37, %v11001_v11  ;;  %v11133_v26 = vpop.f32.mrf.mxu0  ;;  %v11988_v37 = vld [vmem:[#allocation85_spill] sm:$0xff] }
 0x457   : > { %v5197_v15 = vpop.f32.mrf.mxu1  ;;  %v5565_v22 = vadd.f32 %v10969_v32, %v5295_v13  ;;  %v5568_v13 = vadd.f32 %v10989_v3, %v5298_v33 }
 0x458   : > { %v5572_v35 = vadd.f32 %v11029_v60, %v5302_v61  ;;  %v5300_v29 = vadd.f32 %v5197_v15, %v5030_v63  ;;  %v11980_v60 = vld [vmem:[#allocation40_spill] sm:$0xff] }
 0x459   : > { %v7319_v20 = vpop.f32.mrf.mxu1  ;;  %v5026_v63 = vadd.f32 %v11980_v60, %v10965_v23  ;;  %v5034_v23 = vadd.f32 %v11983_v56, %v11005_v50 }
 0x45a   : > { %v5596_v10 = vadd.f32 %v5572_v35, %v5564_v1  ;;  %v5570_v40 = vadd.f32 %v11039_v39, %v5300_v29  ;;  %v5303_v28 = vadd.f32 %v7319_v20, %v5033_v49  ;;  %v11982_v39 = vld [vmem:[#allocation21_spill] sm:$0xff]  ;;  %v5563_v49 = vadd.f32 %v10979_v54, %v5293_v55  ;;  %v7379_v20 = vpop.f32.mrf.mxu0 }
 0x45b   : > { %v5200_v61 = vpop.f32.mrf.mxu1  ;;  %v5296_v34 = vadd.f32 %v5181_v6, %v5026_v63  ;;  %v5029_v21 = vadd.f32 %v11982_v39, %v10971_v4  ;;  %v11985_v6 = vld [vmem:[#allocation83_spill] sm:$0xff] }
 0x45c   : > { %v5594_v30 = vadd.f32 %v5570_v40, %v5562_v2  ;;  %v5573_v27 = vadd.f32 %v11049_v58, %v5303_v28  ;;  %v5301_v15 = vadd.f32 %v5200_v61, %v5031_v31  ;;  %v11984_v58 = vld [vmem:[#allocation42_spill] sm:$0xff]  ;;  %v5037_v2 = vadd.f32 %v11985_v6, %v11011_v8  ;;  %v11987_v8 = vld [vmem:[#allocation84_spill] sm:$0xff] }
 0x45d   : > { %v7322_v59 = vpop.f32.mrf.mxu1  ;;  %v5027_v35 = vadd.f32 %v11984_v58, %v10975_v24  ;;  %v5299_v4 = vadd.f32 %v7315_v51, %v5029_v21  ;;  %v5566_v54 = vadd.f32 %v10999_v5, %v5296_v34  ;;  %v5040_v51 = vadd.f32 %v11987_v8, %v11021_v19  ;;  %v5518_v5 = vpop.f32.mrf.mxu0  ;;  %v11989_v34 = vld [vmem:[#allocation39_spill] sm:$0xff] }
 0x45e   : > { %v5597_v1 = vadd.f32 %v5573_v27, %v5565_v22  ;;  %v5571_v11 = vadd.f32 %v11059_v57, %v5301_v15  ;;  %v5306_v32 = vadd.f32 %v7322_v59, %v5036_v43  ;;  %v11986_v57 = vld [vmem:[#allocation86_spill] sm:$0xff] }
 0x45f   : > { %v5213_v29 = vpop.f32.mrf.mxu1  ;;  %v5035_v31 = vadd.f32 %v11986_v57, %v11015_v47  ;;  %v5297_v3 = vadd.f32 %v5184_v0, %v5027_v35  ;;  %v5569_v33 = vadd.f32 %v11009_v53, %v5299_v4  ;;  %v5038_v47 = vadd.f32 %v11988_v37, %v11025_v48  ;;  %v7382_v39 = vpop.f32.mrf.mxu0 }
 0x460   : > { %v5595_v16 = vadd.f32 %v5571_v11, %v5563_v49  ;;  %v5576_v45 = vadd.f32 %v11066_v14, %v5306_v32  ;;  %v5304_v50 = vadd.f32 %v5213_v29, %v5034_v23 }
 0x461   : > { %v7323_v9 = vpop.f32.mrf.mxu1  ;;  %v5567_v0 = vadd.f32 %v11019_v36, %v5297_v3  ;;  %v11990_v36 = vld [vmem:[#allocation31_spill] sm:$0xff]  ;;  %v5531_v58 = vpop.f32.mrf.mxu0 }
 0x462   : > { %v5600_v55 = vadd.f32 %v5576_v45, %v5568_v13  ;;  %v5574_v24 = vadd.f32 %v11077_v41, %v5304_v50  ;;  %v5307_v40 = vadd.f32 %v7323_v9, %v5037_v2  ;;  %v5039_v23 = vadd.f32 %v11990_v36, %v11035_v42  ;;  %v11993_v45 = vld [vmem:[#allocation14_spill] sm:$0xff]  ;;  %v11995_v9 = vld [vmem:[#allocation61_spill] sm:$0xff] }
 0x463   : > { %v5216_v28 = vpop.f32.mrf.mxu1 }
 0x464   : > { %v5598_v14 = vadd.f32 %v5574_v24, %v5566_v54  ;;  %v5577_v60 = vadd.f32 %v11084_v38, %v5307_v40  ;;  %v5305_v63 = vadd.f32 %v5216_v28, %v5035_v31  ;;  %v5041_v38 = vadd.f32 %v11989_v34, %v11031_v18  ;;  %v7383_v54 = vpop.f32.mrf.mxu0  ;;  %v11997_v24 = vld [vmem:[#allocation41_spill] sm:$0xff]  ;;  %v11998_v40 = vld [vmem:[#allocation34_spill] sm:$0xff]  ;;  %v11999_v28 = vld [vmem:[#allocation60_spill] sm:$0xff] }
 0x465   : > { %v7326_v61 = vpop.f32.mrf.mxu1 }
 0x466   : > { %v5601_v43 = vadd.f32 %v5577_v60, %v5569_v33  ;;  %v5575_v41 = vadd.f32 %v11093_v12, %v5305_v63  ;;  %v5310_v22 = vadd.f32 %v7326_v61, %v5040_v51  ;;  %v12001_v51 = vld [vmem:[#allocation28_spill] sm:$0xff]  ;;  %v5534_v37 = vpop.f32.mrf.mxu0 }
 0x467   : > { %v5229_v27 = vpop.f32.mrf.mxu1 }
 0x468   : > { %v5599_v15 = vadd.f32 %v5575_v41, %v5567_v0  ;;  %v5580_v19 = vadd.f32 %v11095_v62, %v5310_v22  ;;  %v5308_v53 = vadd.f32 %v5229_v27, %v5038_v47  ;;  %v11991_v62 = vld [vmem:[#allocation32_spill] sm:$0xff]  ;;  %v12002_v0 = vld [vmem:[#allocation69_spill] sm:$0xff]  ;;  %v7386_v36 = vpop.f32.mrf.mxu0 }
 0x469   : > { %v7327_v21 = vpop.f32.mrf.mxu1  ;;  %v5044_v13 = vadd.f32 %v11991_v62, %v11041_v17  ;;  %v11996_v17 = vld [vmem:[#allocation15_spill] sm:$0xff]  ;;  %v12007_v62 = vld [vmem:[#allocation65_spill] sm:$0xff] }
 0x46a   : > { %v5604_v59 = vadd.f32 %v5596_v10, %v5580_v19  ;;  %v5578_v56 = vadd.f32 %v11097_v46, %v5308_v53  ;;  %v5311_v48 = vadd.f32 %v7327_v21, %v5041_v38  ;;  %v11992_v46 = vld [vmem:[#allocation25_spill] sm:$0xff]  ;;  %v4497_v57 = vadd.f32 %v11996_v17, %v11995_v9  ;;  %v12004_v38 = vld [vmem:[#allocation3_spill] sm:$0xff]  ;;  %v12013_v9 = vld [vmem:[#allocation72_spill] sm:$0xff] }
 0x46b   : > { %v5232_v49 = vpop.f32.mrf.mxu1  ;;  %v5042_v6 = vadd.f32 %v11992_v46, %v11045_v44  ;;  %v5043_v44 = vadd.f32 %v11998_v40, %v11997_v24  ;;  %v12014_v40 = vld [vmem:[#allocation71_spill] sm:$0xff] }
 0x46c   : > { %v5602_v12 = vadd.f32 %v5594_v30, %v5578_v56  ;;  %v5581_v11 = vadd.f32 %v11099_v25, %v5311_v48  ;;  %v5309_v32 = vadd.f32 %v5232_v49, %v5039_v23  ;;  %v11994_v25 = vld [vmem:[#allocation24_spill] sm:$0xff]  ;;  %v4767_v33 = vadd.f32 %v12001_v51, %v4497_v57  ;;  %v12005_v56 = vld [vmem:[#allocation50_spill] sm:$0xff] }
 0x46d   : > { %v7330_v35 = vpop.f32.mrf.mxu1  ;;  %v5045_v50 = vadd.f32 %v11994_v25, %v11993_v45 }
 0x46e   : > { %v5605_v18 = vadd.f32 %v5597_v1, %v5581_v11  ;;  %v5579_v29 = vadd.f32 %v11107_v52, %v5309_v32  ;;  %v5314_v10 = vadd.f32 %v7330_v35, %v5044_v13  ;;  %v5049_v48 = vadd.f32 %v12005_v56, %v4767_v33  ;;  %v12006_v11 = vld [vmem:[#allocation49_spill] sm:$0xff]  ;;  %v12009_v13 = vld [vmem:[#allocation64_spill] sm:$0xff]  ;;  %v12010_v35 = vld [vmem:[#allocation7_spill] sm:$0xff] }
 0x46f   : > { %v5245_v2 = vpop.f32.mrf.mxu1 }
 0x470   : > { %v5603_v4 = vadd.f32 %v5595_v16, %v5579_v29  ;;  %v5584_v42 = vadd.f32 %v11119_v7, %v5314_v10  ;;  %v5312_v30 = vadd.f32 %v5245_v2, %v5042_v6  ;;  %v12000_v16 = vld [vmem:[#allocation53_spill] sm:$0xff]  ;;  %v4499_v29 = vadd.f32 %v12010_v35, %v12009_v13  ;;  %v5547_v2 = vpop.f32.mrf.mxu0 }
 0x471   : > { %v7331_v31 = vpop.f32.mrf.mxu1  ;;  %v4495_v8 = vadd.f32 %v12000_v16, %v11999_v28  ;;  %v12015_v28 = vld [vmem:[#allocation63_spill] sm:$0xff] }
 0x472   : > { %v5608_v1 = vadd.f32 %v5600_v55, %v5584_v42  ;;  %v5582_v52 = vadd.f32 %v11133_v26, %v5312_v30  ;;  %v5315_v3 = vadd.f32 %v7331_v31, %v5045_v50  ;;  %v12003_v26 = vld [vmem:[#allocation70_spill] sm:$0xff]  ;;  %v12012_v42 = vld [vmem:[#allocation88_spill] sm:$0xff] }
 0x473   : > { %v5248_v7 = vpop.f32.mrf.mxu1  ;;  %v4765_v41 = vadd.f32 %v12002_v0, %v4495_v8  ;;  %v4769_v30 = vadd.f32 %v12012_v42, %v4499_v29 }
 0x474   : > { %v5606_v60 = vadd.f32 %v5598_v14, %v5582_v52  ;;  %v5585_v63 = vadd.f32 %v7379_v20, %v5315_v3  ;;  %v5313_v61 = vadd.f32 %v5248_v7, %v5043_v44 }
 0x475   : > { %v7334_v47 = vpop.f32.mrf.mxu1  ;;  %v5047_v32 = vadd.f32 %v12006_v11, %v4765_v41 }
 0x476   : > { %v5609_v55 = vadd.f32 %v5601_v43, %v5585_v63  ;;  %v5583_v22 = vadd.f32 %v5518_v5, %v5313_v61  ;;  %v5318_v27 = vadd.f32 %v7334_v47, %v12003_v26  ;;  %v12008_v43 = vld [vmem:[#allocation8_spill] sm:$0xff] }
 0x477   : > { %v5261_v19 = vpop.f32.mrf.mxu1  ;;  %v4501_v5 = vadd.f32 %v12008_v43, %v12007_v62 }
 0x478   : > { %v5607_v53 = vadd.f32 %v5599_v15, %v5583_v22  ;;  %v5588_v34 = vadd.f32 %v7382_v39, %v5318_v27  ;;  %v5316_v21 = vadd.f32 %v5261_v19, %v12004_v38  ;;  %v6186_v39 = vld [vmem:[%s11213_s6] ss:$0 sm:$0xff] }
 0x479   : > { %v7335_v23 = vpop.f32.mrf.mxu1 }
 0x47a   : > { %v5612_v20 = vadd.f32 %v5604_v59, %v5588_v34  ;;  %v5586_v14 = vadd.f32 %v5531_v58, %v5316_v21  ;;  %v5319_v49 = vadd.f32 %v7335_v23, %v5049_v48  ;;  %v12011_v59 = vld [vmem:[#allocation29_spill] sm:$0xff] }
 0x47b   : > { %v5264_v15 = vpop.f32.mrf.mxu1  ;;  %v4771_v58 = vadd.f32 %v12011_v59, %v4501_v5 }
 0x47c   : > { %v5610_v10 = vadd.f32 %v5602_v12, %v5586_v14  ;;  %v5589_v46 = vadd.f32 %v7383_v54, %v5319_v49  ;;  %v5317_v6 = vadd.f32 %v5264_v15, %v5047_v32  ;;  %v5627_v57 = vadd.f32 %v6186_v39, %v5612_v20  ;;  %v7387_v54 = vpop.f32.mrf.mxu0 }
 0x47d   : > { %v7338_v45 = vpop.f32.mrf.mxu1  ;;  %v5053_v16 = vadd.f32 %v12015_v28, %v4771_v58 }
 0x47e   : > { %v5613_v25 = vadd.f32 %v5605_v18, %v5589_v46  ;;  %v5587_v50 = vadd.f32 %v5534_v37, %v5317_v6  ;;  %v5322_v17 = vadd.f32 %v7338_v45, %v12013_v9  ;;  %v5625_v44 = vadd.f32 %v6186_v39, %v5610_v10  ;;  %v12016_v18 = vld [vmem:[#allocation68_spill] sm:$0xff]  ;;  %v5550_v22 = vpop.f32.mrf.mxu0 }
 0x47f   : > { %v5277_v31 = vpop.f32.mrf.mxu1  ;;  %v5051_v7 = vadd.f32 %v12016_v18, %v4769_v30 }
 0x480   : > { %v5628_v52 = vadd.f32 %v6186_v39, %v5613_v25  ;;  %v5611_v3 = vadd.f32 %v5603_v4, %v5587_v50  ;;  %v5592_v24 = vadd.f32 %v7386_v36, %v5322_v17  ;;  %v5320_v12 = vadd.f32 %v5277_v31, %v12014_v40 }
 0x481   : > { %v7339_v8 = vpop.f32.mrf.mxu1 }
 0x482   : > { %v6215_v51 = vpack.c.bf16 %v5628_v52, %v5627_v57  ;;  %v5626_v33 = vadd.f32 %v6186_v39, %v5611_v3  ;;  %v5616_v63 = vadd.f32 %v5608_v1, %v5592_v24  ;;  %v5590_v61 = vadd.f32 %v5547_v2, %v5320_v12 }
 0x483   : > { %v5323_v37 = vadd.f32 %v7339_v8, %v5053_v16  ;;  %v5280_v4 = vpop.f32.mrf.mxu1 }
 0x484   : > { %6227 = vst [vmem:[%s278_s17 + $0x8] sm:$0xff] %v6215_v51   ;;  %v6210_v47 = vpack.c.bf16 %v5626_v33, %v5625_v44  ;;  %v5614_v0 = vadd.f32 %v5606_v60, %v5590_v61  ;;  %v5321_v41 = vadd.f32 %v5280_v4, %v5051_v7  ;;  %v5631_v38 = vadd.f32 %v6186_v39, %v5616_v63 }
 0x485   : > { %v5593_v26 = vadd.f32 %v7387_v54, %v5323_v37 }
 0x486   : > { %6211 = vst [vmem:[%s278_s17] sm:$0xff] %v6210_v47   ;;  %v5591_v27 = vadd.f32 %v5550_v22, %v5321_v41  ;;  %v5629_v56 = vadd.f32 %v6186_v39, %v5614_v0 }
 0x487   : > { %v5617_v19 = vadd.f32 %v5609_v55, %v5593_v26 }
 0x488   : > { %v5615_v34 = vadd.f32 %v5607_v53, %v5591_v27 }
 0x489   : > { %v5632_v21 = vadd.f32 %v6186_v39, %v5617_v19 }
 0x48a   : > { %v5630_v48 = vadd.f32 %v6186_v39, %v5615_v34 }
 0x48b   : > { %v6225_v36 = vpack.c.bf16 %v5632_v21, %v5631_v38 }
 0x48c   : > { %v6220_v23 = vpack.c.bf16 %v5630_v48, %v5629_v56 }
 0x48d   : > { %6229 = vst [vmem:[%s278_s17 + $0x18] sm:$0xff] %v6225_v36  }
 0x48e   : > { %6228 = vst [vmem:[%s278_s17 + $0x10] sm:$0xff] %v6220_v23  }
 0x48f PF: > { %s17_s24 = sadd.s32 1, %s7506_s24  }
 0x490   : > { %p14_p4 = scmp.ge.s32.totalorder %s17_s24, 4  }
 0x492   :  { %16 = sbr.rel (!%p14_p4) target bundleno = 1 (0x1), region = 104 }

</bundles_post_ra>
